<compile_context>
chip_gen: v6e
topology: v6e:2x2x1
jax: 0.10.0
libtpu: 0.0.40
codegen_flags: <defaults>
</compile_context>

<pallas_src>
import functools

import jax
import jax.numpy as jnp
from jax.experimental import pallas as pl
from jax.experimental.pallas import tpu as pltpu


MXU_DTYPE = jnp.bfloat16     # matmul operand dtype (accumulation stays f32)
ACT_DTYPE = jnp.bfloat16     # inter-layer activation storage dtype
LRELU_SLOPE = 0.2
BN_EPS = 1e-5
VMEM_LIMIT = 32 * 1024 * 1024  # safe scoped limit on v5e/v6e/v7x


def _round_up(x, m):
    return ((x + m - 1) // m) * m


def _pick_tile(size, candidates):
    """Largest candidate that divides `size` (falls back to `size`)."""
    for t in candidates:
        if size % t == 0:
            return t
    return size


def _m_tile_and_pad(m):
    """Pick the M tile (multiple of 16, bf16 sublane packing) and padded M.

    Prefer large tiles, but cap padding waste at ~12.5% over the minimal
    16-row padding, and keep >=2 M tiles when possible so both TensorCores on
    a v7x megacore get work (the N axis of this network is a single tile).
    """
    base = _round_up(m, 16)
    tm, m_pad = 16, base
    for t in (512, 256, 128, 64, 32, 16):
        cand = _round_up(m, t)
        if cand - base <= base // 8:
            tm, m_pad = t, cand
            break
    if m_pad // tm == 1 and tm >= 32:
        tm //= 2   # guarantee 2 parallel output tiles (megacore)
    return tm, m_pad


# ---------------------------------------------------------------------------
# Pallas kernels
# ---------------------------------------------------------------------------

def _matmul_kernel(a_ref, b_ref, bias_ref, o_ref, acc_ref, *, activation):
    """out = activation(a @ b + bias); K is the last ("arbitrary") grid axis."""
    k = pl.program_id(2)

    @pl.when(k == 0)
    def _():
        acc_ref[...] = jnp.zeros_like(acc_ref)

    acc_ref[...] += jnp.dot(a_ref[...], b_ref[...],
                            preferred_element_type=jnp.float32)

    @pl.when(k == pl.num_programs(2) - 1)
    def _():
        y = acc_ref[...] + bias_ref[...]
        if activation == "lrelu":
            y = jnp.where(y >= 0, y, LRELU_SLOPE * y)
        o_ref[...] = y.astype(o_ref.dtype)


def _matmul_stats_kernel(a_ref, b_ref, o_ref, s_ref, sq_ref, acc_ref):
    """out = a @ b (no bias); also emit per-(M-tile) partial BN statistics."""
    k = pl.program_id(2)

    @pl.when(k == 0)
    def _():
        acc_ref[...] = jnp.zeros_like(acc_ref)

    acc_ref[...] += jnp.dot(a_ref[...], b_ref[...],
                            preferred_element_type=jnp.float32)

    @pl.when(k == pl.num_programs(2) - 1)
    def _():
        y = acc_ref[...]
        o_ref[...] = y.astype(o_ref.dtype)
        s_ref[...] = jnp.sum(y, axis=0, keepdims=True).reshape(s_ref.shape)
        sq_ref[...] = jnp.sum(y * y, axis=0, keepdims=True).reshape(sq_ref.shape)


def matmul_fused(a, b, bias, *, tm, mode="linear", out_dtype=ACT_DTYPE):
    """Tiled MXU matmul with fused epilogue.

    a: (M, K) bf16, b: (K, N) bf16, bias: (1, N) f32 or None (stats mode).
    M % tm == 0; K multiple of 128; N either a multiple of 128 or used as a
    single full-extent tile.  mode: "linear" | "lrelu" | "stats".
    """
    M, K = a.shape
    K2, N = b.shape
    assert K == K2 and M % tm == 0
    TM = tm
    TN = _pick_tile(N, (512, 256, 128)) if N % 128 == 0 else N
    TK = _pick_tile(K, (2048, 1024, 512, 256, 128))
    grid = (M // TM, N // TN, K // TK)

    a_spec = pl.BlockSpec((TM, TK), lambda i, j, k: (i, k))
    b_spec = pl.BlockSpec((TK, TN), lambda i, j, k: (k, j))
    out_spec = pl.BlockSpec((TM, TN), lambda i, j, k: (i, j))
    compiler_params = pltpu.CompilerParams(
        dimension_semantics=("parallel", "parallel", "arbitrary"),
        vmem_limit_bytes=VMEM_LIMIT,
    )
    scratch = [pltpu.VMEM((TM, TN), jnp.float32)]

    if mode == "stats":
        n_mt = M // TM
        return pl.pallas_call(
            _matmul_stats_kernel,
            out_shape=(
                jax.ShapeDtypeStruct((M, N), out_dtype),
                jax.ShapeDtypeStruct((n_mt, 1, N), jnp.float32),
                jax.ShapeDtypeStruct((n_mt, 1, N), jnp.float32),
            ),
            grid_spec=pltpu.PrefetchScalarGridSpec(
                num_scalar_prefetch=0,
                grid=grid,
                in_specs=[a_spec, b_spec],
                out_specs=(
                    out_spec,
                    pl.BlockSpec((1, 1, TN), lambda i, j, k: (i, 0, j)),
                    pl.BlockSpec((1, 1, TN), lambda i, j, k: (i, 0, j)),
                ),
                scratch_shapes=scratch,
            ),
            compiler_params=compiler_params,
        )(a, b)

    kern = functools.partial(_matmul_kernel, activation=mode)
    return pl.pallas_call(
        kern,
        out_shape=jax.ShapeDtypeStruct((M, N), out_dtype),
        grid_spec=pltpu.PrefetchScalarGridSpec(
            num_scalar_prefetch=0,
            grid=grid,
            in_specs=[a_spec, b_spec,
                      pl.BlockSpec((1, TN), lambda i, j, k: (0, j))],
            out_specs=out_spec,
            scratch_shapes=scratch,
        ),
        compiler_params=compiler_params,
    )(a, b, bias)


def _bn_act_kernel(x_ref, scale_ref, shift_ref, o_ref):
    y = x_ref[...].astype(jnp.float32) * scale_ref[...] + shift_ref[...]
    o_ref[...] = jnp.where(y >= 0, y, LRELU_SLOPE * y).astype(o_ref.dtype)


def bn_act(x, scale, shift):
    """y = leaky_relu(x * scale + shift); bf16 in / bf16 out, M-tiled."""
    M, C = x.shape
    TM = _pick_tile(M, (1024, 512, 256, 128, 64, 32, 16))
    return pl.pallas_call(
        _bn_act_kernel,
        out_shape=jax.ShapeDtypeStruct((M, C), x.dtype),
        grid_spec=pltpu.PrefetchScalarGridSpec(
            num_scalar_prefetch=0,
            grid=(M // TM,),
            in_specs=[
                pl.BlockSpec((TM, C), lambda i: (i, 0)),
                pl.BlockSpec((1, C), lambda i: (0, 0)),
                pl.BlockSpec((1, C), lambda i: (0, 0)),
            ],
            out_specs=pl.BlockSpec((TM, C), lambda i: (i, 0)),
        ),
        compiler_params=pltpu.CompilerParams(
            dimension_semantics=("parallel",),
            vmem_limit_bytes=VMEM_LIMIT,
        ),
    )(x, scale, shift)


# ---------------------------------------------------------------------------
# Conv glue (reflect pad + im2col) — plain JAX layout plumbing
# ---------------------------------------------------------------------------
# TODO(synk): replace the materialized im2col tensor with in-kernel DMA of
# overlapping windows (memory_space=pl.ANY + make_async_copy) — top HBM lever.

def _reflect_pad_hw(x):
    # x: (N, H, W, C); pad=1 reflect on H, W (matches padding_mode='reflect')
    return jnp.pad(x, ((0, 0), (1, 1), (1, 1), (0, 0)), mode="reflect")


def _im2col(xp, k, stride):
    N, Hp, Wp, C = xp.shape
    Ho = (Hp - k) // stride + 1
    Wo = (Wp - k) // stride + 1
    cols = []
    for kh in range(k):
        for kw in range(k):
            cols.append(xp[:,
                           kh:kh + stride * (Ho - 1) + 1:stride,
                           kw:kw + stride * (Wo - 1) + 1:stride, :])
    # (N, Ho, Wo, k*k, C) -> (N*Ho*Wo, k*k*C); flatten order (kh, kw, cin)
    p = jnp.stack(cols, axis=3)
    return p.reshape(N * Ho * Wo, k * k * C), (N, Ho, Wo)


def conv_layer(x_nhwc, w, bias, stride, mode, out_dtype=ACT_DTYPE):
    """Reflect-pad 4x4 conv via im2col + fused Pallas matmul.

    x_nhwc: (N, H, W, Cin) bf16; w: (Cout, Cin, 4, 4) torch layout;
    bias: (Cout,) or None.  Returns (out, (N,Ho,Wo,Cout), M, N_mat [, stats]).
    """
    cout, cin, kh, kw = w.shape
    xp = _reflect_pad_hw(x_nhwc)
    patches, (Nb, Ho, Wo) = _im2col(xp, kh, stride)   # bf16, fused producer
    M, K = patches.shape

    tm, M_pad = _m_tile_and_pad(M)
    K_pad = _round_up(K, 128)
    # Keep the true cout as the matmul N dim whenever it is lane-friendly
    # (>= 64); only the tiny final 1-channel conv is padded to 128 lanes.
    N_mat = cout if cout >= 64 else 128

    a = patches
    if M_pad != M or K_pad != K:
        a = jnp.pad(a, ((0, M_pad - M), (0, K_pad - K)))
    w2d = jnp.transpose(w, (2, 3, 1, 0)).reshape(K, cout).astype(MXU_DTYPE)
    if K_pad != K or N_mat != cout:
        w2d = jnp.pad(w2d, ((0, K_pad - K), (0, N_mat - cout)))

    dims = (Nb, Ho, Wo, cout)
    if mode == "stats":
        # Zero-padded M rows contribute exactly 0 to the statistics only
        # because there is no bias in stats mode.
        assert bias is None, "stats mode requires a bias-free conv (BN block)"
        out, s, sq = matmul_fused(a, w2d, None, tm=tm, mode="stats",
                                  out_dtype=out_dtype)
        return out, dims, M, N_mat, (s, sq)

    bias_full = jnp.zeros((1, N_mat), jnp.float32)
    if bias is not None:
        bias_full = bias_full.at[0, :cout].set(bias.astype(jnp.float32))
    out = matmul_fused(a, w2d, bias_full, tm=tm, mode=mode, out_dtype=out_dtype)
    return out, dims, M, N_mat


# ---------------------------------------------------------------------------
# Discriminator forward
# ---------------------------------------------------------------------------

def discriminator_forward(params, x, y, strides):
    # x: (N, 3, H, W), y: (N, 1, H, W)  (NCHW, like PyTorch)
    y3 = jnp.concatenate([y, y, y], axis=1)
    inp = jnp.concatenate([x, y3], axis=1)                      # (N, 6, H, W)
    h = jnp.transpose(inp, (0, 2, 3, 1)).astype(ACT_DTYPE)      # NHWC bf16

    # initial: Conv(6->f0, k4 s2 p1 reflect, bias) + LeakyReLU (fused epilogue)
    w, b = params["initial"]
    out, (Nb, Ho, Wo, C), M, _ = conv_layer(h, w, b, stride=2, mode="lrelu")
    # The [:M, :C] slice + reshape fuses into the next layer's im2col producer.
    h = out[:M, :C].reshape(Nb, Ho, Wo, C)

    # CNNBlocks: Conv (no bias) + BatchNorm (batch stats) + LeakyReLU(0.2)
    for (w, gamma, beta), stride in zip(params["blocks"], strides):
        out, (Nb, Ho, Wo, C), M, N_mat, (s, sq) = conv_layer(
            h, w, None, stride=stride, mode="stats")
        ssum = jnp.sum(s, axis=0)[0]               # (N_mat,)
        sqsum = jnp.sum(sq, axis=0)[0]
        mean = ssum / M
        var = jnp.maximum(sqsum / M - mean * mean, 0.0)   # biased (train BN)
        inv_std = jax.lax.rsqrt(var + BN_EPS)
        g = gamma.astype(jnp.float32)
        scale = (g * inv_std).reshape(1, N_mat)
        shift = (beta.astype(jnp.float32) - mean * g * inv_std).reshape(1, N_mat)
        out = bn_act(out, scale, shift)
        h = out[:M, :C].reshape(Nb, Ho, Wo, C)

    # final: Conv(->1 channel, k4 s1 p1 reflect, bias), no activation.
    # Cout padded to 128 inside conv_layer so stores stay lane-dense.
    w, b = params["final"]
    out, (Nb, Ho, Wo, C), M, _ = conv_layer(h, w, b, stride=1, mode="linear",
                                            out_dtype=jnp.float32)
    out = out[:M, :C].reshape(Nb, Ho, Wo, C)
    return jnp.transpose(out, (0, 3, 1, 2))         # back to NCHW, f32


# ---------------------------------------------------------------------------
# Deterministic parameter init (same shapes as the PyTorch module)
# ---------------------------------------------------------------------------

def init_params(key, in_channels=3, features=(64, 128, 256, 512)):
    keys = jax.random.split(key, len(features) + 1)

    def conv_w(k, cout, cin):
        return 0.02 * jax.random.normal(k, (cout, cin, 4, 4), jnp.float32)

    params = {}
    params["initial"] = (conv_w(keys[0], features[0], in_channels * 2),
                         jnp.zeros((features[0],), jnp.float32))
    blocks = []
    cin = features[0]
    for i, f in enumerate(features[1:]):
        blocks.append((conv_w(keys[i + 1], f, cin),
                       jnp.ones((f,), jnp.float32),     # BN gamma
                       jnp.zeros((f,), jnp.float32)))   # BN beta
        cin = f
    params["blocks"] = blocks
    params["final"] = (conv_w(keys[-1], 1, cin),
                       jnp.zeros((1,), jnp.float32))
    strides = tuple(1 if f == features[-1] else 2 for f in features[1:])
    return params, strides


if __name__ == "__main__":
    key = jax.random.PRNGKey(0)
    k_p, k_x, k_y = jax.random.split(key, 3)

    features = (64, 128, 256, 512)
    params, strides = init_params(k_p, in_channels=3, features=features)

    # Small example inputs: batch=2, x has 3 channels, y has 1 channel, 32x32.
    x = jax.random.normal(k_x, (2, 3, 32, 32), jnp.float32)
    y = jax.random.normal(k_y, (2, 1, 32, 32), jnp.float32)

    fwd = jax.jit(lambda p, xx, yy: discriminator_forward(p, xx, yy, strides))
    out = fwd(params, x, y)
    jax.block_until_ready(out)

    # Expected shape: (2, 1, 2, 2) for 32x32 inputs (PatchGAN output).
    assert out.shape == (2, 1, 2, 2), out.shape
    assert jnp.all(jnp.isfinite(out))
    print("KERNEL_OK")
</pallas_src>

<mosaic_0001>
module attributes {stable_mosaic.version = 11 : i64} {
  func.func @_matmul_kernel(%arg0: i32, %arg1: i32, %arg2: i32, %arg3: memref<256x128xbf16, #tpu.memory_space<vmem>>, %arg4: memref<128x64xbf16, #tpu.memory_space<vmem>>, %arg5: memref<1x64xf32, #tpu.memory_space<vmem>>, %arg6: memref<256x64xbf16, #tpu.memory_space<vmem>>, %arg7: memref<256x64xf32, #tpu.memory_space<vmem>>) attributes {dimension_semantics = [#tpu.dimension_semantics<parallel>, #tpu.dimension_semantics<parallel>, #tpu.dimension_semantics<arbitrary>], iteration_bounds = array<i64: 2, 1, 1>, scalar_prefetch = 0 : i64, scratch_operands = 1 : i64, tpu.core_type = #tpu.core_type<tc>, window_params = [{transform_indices = @transform_0, window_bounds = array<i64: 256, 128>}, {transform_indices = @transform_1, window_bounds = array<i64: 128, 64>}, {transform_indices = @transform_2, window_bounds = array<i64: 1, 64>}, {transform_indices = @transform_3, window_bounds = array<i64: 256, 64>}]} {
    %c0_i32 = arith.constant 0 : i32
    %0 = arith.cmpi eq, %arg2, %c0_i32 : i32
    %1 = arith.extui %0 : i1 to i32
    %c0_i32_0 = arith.constant 0 : i32
    %2 = arith.cmpi ne, %1, %c0_i32_0 : i32
    scf.if %2 {
      %cst_10 = arith.constant 0.000000e+00 : f32
      %12 = vector.broadcast %cst_10 : f32 to vector<256x64xf32>
      %c0_11 = arith.constant 0 : index
      %c0_12 = arith.constant 0 : index
      %13 = vector.load %arg7[%c0_11, %c0_12] : memref<256x64xf32, #tpu.memory_space<vmem>>, vector<256x64xf32>
      tpu.vector_store %arg7[%c0_11, %c0_12], %12 {strides = array<i32>} : memref<256x64xf32, #tpu.memory_space<vmem>>, vector<256x64xf32>,
    } else {
    }
    %c0 = arith.constant 0 : index
    %c0_1 = arith.constant 0 : index
    %3 = vector.load %arg7[%c0, %c0_1] : memref<256x64xf32, #tpu.memory_space<vmem>>, vector<256x64xf32>
    %c0_2 = arith.constant 0 : index
    %c0_3 = arith.constant 0 : index
    %4 = vector.load %arg3[%c0_2, %c0_3] : memref<256x128xbf16, #tpu.memory_space<vmem>>, vector<256x128xbf16>
    %c0_4 = arith.constant 0 : index
    %c0_5 = arith.constant 0 : index
    %5 = vector.load %arg4[%c0_4, %c0_5] : memref<128x64xbf16, #tpu.memory_space<vmem>>, vector<128x64xbf16>
    %cst = arith.constant dense<0.000000e+00> : vector<256x64xf32>
    %6 = tpu.matmul %4, %5, %cst {dimension_numbers = #tpu.dot_dimension_numbers<[1], [0], [0], [1], [0, 0, 1, 1], [], []>} : vector<256x128xbf16>, vector<128x64xbf16>, vector<256x64xf32> -> vector<256x64xf32>
    %7 = arith.addf %3, %6 : vector<256x64xf32>
    %c0_6 = arith.constant 0 : index
    %c0_7 = arith.constant 0 : index
    %8 = vector.load %arg7[%c0_6, %c0_7] : memref<256x64xf32, #tpu.memory_space<vmem>>, vector<256x64xf32>
    tpu.vector_store %arg7[%c0_6, %c0_7], %7 {strides = array<i32>} : memref<256x64xf32, #tpu.memory_space<vmem>>, vector<256x64xf32>,
    %c0_i32_8 = arith.constant 0 : i32
    %9 = arith.cmpi eq, %arg2, %c0_i32_8 : i32
    %10 = arith.extui %9 : i1 to i32
    %c0_i32_9 = arith.constant 0 : i32
    %11 = arith.cmpi ne, %10, %c0_i32_9 : i32
    scf.if %11 {
      %c0_10 = arith.constant 0 : index
      %c0_11 = arith.constant 0 : index
      %12 = vector.load %arg7[%c0_10, %c0_11] : memref<256x64xf32, #tpu.memory_space<vmem>>, vector<256x64xf32>
      %c0_12 = arith.constant 0 : index
      %c0_13 = arith.constant 0 : index
      %13 = vector.load %arg5[%c0_12, %c0_13] : memref<1x64xf32, #tpu.memory_space<vmem>>, vector<1x64xf32>
      %14 = vector.broadcast %13 : vector<1x64xf32> to vector<256x64xf32>
      %15 = arith.addf %12, %14 : vector<256x64xf32>
      %cst_14 = arith.constant 0.000000e+00 : f32
      %16 = vector.broadcast %cst_14 : f32 to vector<256x64xf32>
      %17 = arith.cmpf oge, %15, %16 : vector<256x64xf32>
      %cst_15 = arith.constant 2.000000e-01 : f32
      %18 = vector.broadcast %cst_15 : f32 to vector<256x64xf32>
      %19 = arith.mulf %18, %15 : vector<256x64xf32>
      %20 = arith.select %17, %15, %19 : vector<256x64xi1>, vector<256x64xf32>
      %21 = arith.truncf %20 : vector<256x64xf32> to vector<256x64xbf16>
      %c0_16 = arith.constant 0 : index
      %c0_17 = arith.constant 0 : index
      %22 = vector.load %arg6[%c0_16, %c0_17] : memref<256x64xbf16, #tpu.memory_space<vmem>>, vector<256x64xbf16>
      tpu.vector_store %arg6[%c0_16, %c0_17], %21 {strides = array<i32>} : memref<256x64xbf16, #tpu.memory_space<vmem>>, vector<256x64xbf16>,
    } else {
    }
    return
  }
  func.func @transform_0(%arg0: i32, %arg1: i32, %arg2: i32) -> (i32, i32) {
    %c0_i32 = arith.constant 0 : i32
    return %arg0, %arg2 : i32, i32
  }
  func.func @transform_1(%arg0: i32, %arg1: i32, %arg2: i32) -> (i32, i32) {
    %c0_i32 = arith.constant 0 : i32
    return %arg2, %arg1 : i32, i32
  }
  func.func @transform_2(%arg0: i32, %arg1: i32, %arg2: i32) -> (i32, i32) {
    %c0_i32 = arith.constant 0 : i32
    %c0_i32_0 = arith.constant 0 : i32
    return %c0_i32, %arg1 : i32, i32
  }
  func.func @transform_3(%arg0: i32, %arg1: i32, %arg2: i32) -> (i32, i32) {
    %c0_i32 = arith.constant 0 : i32
    return %arg0, %arg1 : i32, i32
  }
}

module attributes {stable_mosaic.version = 11 : i64} {
  func.func @_matmul_stats_kernel(%arg0: i32, %arg1: i32, %arg2: i32, %arg3: memref<64x1024xbf16, #tpu.memory_space<vmem>>, %arg4: memref<1024x128xbf16, #tpu.memory_space<vmem>>, %arg5: memref<64x128xbf16, #tpu.memory_space<vmem>>, %arg6: memref<1x1x128xf32, #tpu.memory_space<vmem>>, %arg7: memref<1x1x128xf32, #tpu.memory_space<vmem>>, %arg8: memref<64x128xf32, #tpu.memory_space<vmem>>) attributes {dimension_semantics = [#tpu.dimension_semantics<parallel>, #tpu.dimension_semantics<parallel>, #tpu.dimension_semantics<arbitrary>], iteration_bounds = array<i64: 2, 1, 1>, scalar_prefetch = 0 : i64, scratch_operands = 1 : i64, tpu.core_type = #tpu.core_type<tc>, window_params = [{transform_indices = @transform_0, window_bounds = array<i64: 64, 1024>}, {transform_indices = @transform_1, window_bounds = array<i64: 1024, 128>}, {transform_indices = @transform_2, window_bounds = array<i64: 64, 128>}, {transform_indices = @transform_3, window_bounds = array<i64: 1, 1, 128>}, {transform_indices = @transform_4, window_bounds = array<i64: 1, 1, 128>}]} {
    %c0_i32 = arith.constant 0 : i32
    %0 = arith.cmpi eq, %arg2, %c0_i32 : i32
    %1 = arith.extui %0 : i1 to i32
    %c0_i32_0 = arith.constant 0 : i32
    %2 = arith.cmpi ne, %1, %c0_i32_0 : i32
    scf.if %2 {
      %cst_10 = arith.constant 0.000000e+00 : f32
      %12 = vector.broadcast %cst_10 : f32 to vector<64x128xf32>
      %c0_11 = arith.constant 0 : index
      %c0_12 = arith.constant 0 : index
      %13 = vector.load %arg8[%c0_11, %c0_12] : memref<64x128xf32, #tpu.memory_space<vmem>>, vector<64x128xf32>
      tpu.vector_store %arg8[%c0_11, %c0_12], %12 {strides = array<i32>} : memref<64x128xf32, #tpu.memory_space<vmem>>, vector<64x128xf32>,
    } else {
    }
    %c0 = arith.constant 0 : index
    %c0_1 = arith.constant 0 : index
    %3 = vector.load %arg8[%c0, %c0_1] : memref<64x128xf32, #tpu.memory_space<vmem>>, vector<64x128xf32>
    %c0_2 = arith.constant 0 : index
    %c0_3 = arith.constant 0 : index
    %4 = vector.load %arg3[%c0_2, %c0_3] : memref<64x1024xbf16, #tpu.memory_space<vmem>>, vector<64x1024xbf16>
    %c0_4 = arith.constant 0 : index
    %c0_5 = arith.constant 0 : index
    %5 = vector.load %arg4[%c0_4, %c0_5] : memref<1024x128xbf16, #tpu.memory_space<vmem>>, vector<1024x128xbf16>
    %cst = arith.constant dense<0.000000e+00> : vector<64x128xf32>
    %6 = tpu.matmul %4, %5, %cst {dimension_numbers = #tpu.dot_dimension_numbers<[1], [0], [0], [1], [0, 0, 1, 1], [], []>} : vector<64x1024xbf16>, vector<1024x128xbf16>, vector<64x128xf32> -> vector<64x128xf32>
    %7 = arith.addf %3, %6 : vector<64x128xf32>
    %c0_6 = arith.constant 0 : index
    %c0_7 = arith.constant 0 : index
    %8 = vector.load %arg8[%c0_6, %c0_7] : memref<64x128xf32, #tpu.memory_space<vmem>>, vector<64x128xf32>
    tpu.vector_store %arg8[%c0_6, %c0_7], %7 {strides = array<i32>} : memref<64x128xf32, #tpu.memory_space<vmem>>, vector<64x128xf32>,
    %c0_i32_8 = arith.constant 0 : i32
    %9 = arith.cmpi eq, %arg2, %c0_i32_8 : i32
    %10 = arith.extui %9 : i1 to i32
    %c0_i32_9 = arith.constant 0 : i32
    %11 = arith.cmpi ne, %10, %c0_i32_9 : i32
    scf.if %11 {
      %c0_10 = arith.constant 0 : index
      %c0_11 = arith.constant 0 : index
      %12 = vector.load %arg8[%c0_10, %c0_11] : memref<64x128xf32, #tpu.memory_space<vmem>>, vector<64x128xf32>
      %13 = arith.truncf %12 : vector<64x128xf32> to vector<64x128xbf16>
      %c0_12 = arith.constant 0 : index
      %c0_13 = arith.constant 0 : index
      %14 = vector.load %arg5[%c0_12, %c0_13] : memref<64x128xbf16, #tpu.memory_space<vmem>>, vector<64x128xbf16>
      tpu.vector_store %arg5[%c0_12, %c0_13], %13 {strides = array<i32>} : memref<64x128xbf16, #tpu.memory_space<vmem>>, vector<64x128xbf16>,
      %cst_14 = arith.constant dense<0.000000e+00> : vector<128xf32>
      %15 = vector.multi_reduction <add>, %12, %cst_14 [0] : vector<64x128xf32> to vector<128xf32>
      %16 = vector.shape_cast %15 : vector<128xf32> to vector<1x128xf32>
      %17 = vector.shape_cast %16 : vector<1x128xf32> to vector<1x1x128xf32>
      %c0_15 = arith.constant 0 : index
      %c0_16 = arith.constant 0 : index
      %c0_17 = arith.constant 0 : index
      %18 = vector.load %arg6[%c0_15, %c0_16, %c0_17] : memref<1x1x128xf32, #tpu.memory_space<vmem>>, vector<1x1x128xf32>
      tpu.vector_store %arg6[%c0_15, %c0_16, %c0_17], %17 {strides = array<i32>} : memref<1x1x128xf32, #tpu.memory_space<vmem>>, vector<1x1x128xf32>,
      %19 = arith.mulf %12, %12 : vector<64x128xf32>
      %cst_18 = arith.constant dense<0.000000e+00> : vector<128xf32>
      %20 = vector.multi_reduction <add>, %19, %cst_18 [0] : vector<64x128xf32> to vector<128xf32>
      %21 = vector.shape_cast %20 : vector<128xf32> to vector<1x128xf32>
      %22 = vector.shape_cast %21 : vector<1x128xf32> to vector<1x1x128xf32>
      %c0_19 = arith.constant 0 : index
      %c0_20 = arith.constant 0 : index
      %c0_21 = arith.constant 0 : index
      %23 = vector.load %arg7[%c0_19, %c0_20, %c0_21] : memref<1x1x128xf32, #tpu.memory_space<vmem>>, vector<1x1x128xf32>
      tpu.vector_store %arg7[%c0_19, %c0_20, %c0_21], %22 {strides = array<i32>} : memref<1x1x128xf32, #tpu.memory_space<vmem>>, vector<1x1x128xf32>,
    } else {
    }
    return
  }
  func.func @transform_0(%arg0: i32, %arg1: i32, %arg2: i32) -> (i32, i32) {
    %c0_i32 = arith.constant 0 : i32
    return %arg0, %arg2 : i32, i32
  }
  func.func @transform_1(%arg0: i32, %arg1: i32, %arg2: i32) -> (i32, i32) {
    %c0_i32 = arith.constant 0 : i32
    return %arg2, %arg1 : i32, i32
  }
  func.func @transform_2(%arg0: i32, %arg1: i32, %arg2: i32) -> (i32, i32) {
    %c0_i32 = arith.constant 0 : i32
    return %arg0, %arg1 : i32, i32
  }
  func.func @transform_3(%arg0: i32, %arg1: i32, %arg2: i32) -> (i32, i32, i32) {
    %c0_i32 = arith.constant 0 : i32
    %c0_i32_0 = arith.constant 0 : i32
    return %arg0, %c0_i32, %arg1 : i32, i32, i32
  }
  func.func @transform_4(%arg0: i32, %arg1: i32, %arg2: i32) -> (i32, i32, i32) {
    %c0_i32 = arith.constant 0 : i32
    %c0_i32_0 = arith.constant 0 : i32
    return %arg0, %c0_i32, %arg1 : i32, i32, i32
  }
}

module attributes {stable_mosaic.version = 11 : i64} {
  func.func @_bn_act_kernel(%arg0: i32, %arg1: memref<128x128xbf16, #tpu.memory_space<vmem>>, %arg2: memref<1x128xf32, #tpu.memory_space<vmem>>, %arg3: memref<1x128xf32, #tpu.memory_space<vmem>>, %arg4: memref<128x128xbf16, #tpu.memory_space<vmem>>) attributes {dimension_semantics = [#tpu.dimension_semantics<parallel>], iteration_bounds = array<i64: 1>, scalar_prefetch = 0 : i64, scratch_operands = 0 : i64, tpu.core_type = #tpu.core_type<tc>, window_params = [{transform_indices = @transform_0, window_bounds = array<i64: 128, 128>}, {pipeline_mode = #tpu.pipeline_mode<synchronous>, transform_indices = @transform_1, window_bounds = array<i64: 1, 128>}, {pipeline_mode = #tpu.pipeline_mode<synchronous>, transform_indices = @transform_2, window_bounds = array<i64: 1, 128>}, {transform_indices = @transform_3, window_bounds = array<i64: 128, 128>}]} {
    %c0 = arith.constant 0 : index
    %c0_0 = arith.constant 0 : index
    %0 = vector.load %arg1[%c0, %c0_0] : memref<128x128xbf16, #tpu.memory_space<vmem>>, vector<128x128xbf16>
    %1 = arith.extf %0 : vector<128x128xbf16> to vector<128x128xf32>
    %c0_1 = arith.constant 0 : index
    %c0_2 = arith.constant 0 : index
    %2 = vector.load %arg2[%c0_1, %c0_2] : memref<1x128xf32, #tpu.memory_space<vmem>>, vector<1x128xf32>
    %3 = vector.broadcast %2 : vector<1x128xf32> to vector<128x128xf32>
    %4 = arith.mulf %1, %3 : vector<128x128xf32>
    %c0_3 = arith.constant 0 : index
    %c0_4 = arith.constant 0 : index
    %5 = vector.load %arg3[%c0_3, %c0_4] : memref<1x128xf32, #tpu.memory_space<vmem>>, vector<1x128xf32>
    %6 = vector.broadcast %5 : vector<1x128xf32> to vector<128x128xf32>
    %7 = arith.addf %4, %6 : vector<128x128xf32>
    %cst = arith.constant 0.000000e+00 : f32
    %8 = vector.broadcast %cst : f32 to vector<128x128xf32>
    %9 = arith.cmpf oge, %7, %8 : vector<128x128xf32>
    %cst_5 = arith.constant 2.000000e-01 : f32
    %10 = vector.broadcast %cst_5 : f32 to vector<128x128xf32>
    %11 = arith.mulf %10, %7 : vector<128x128xf32>
    %12 = arith.select %9, %7, %11 : vector<128x128xi1>, vector<128x128xf32>
    %13 = arith.truncf %12 : vector<128x128xf32> to vector<128x128xbf16>
    %c0_6 = arith.constant 0 : index
    %c0_7 = arith.constant 0 : index
    %14 = vector.load %arg4[%c0_6, %c0_7] : memref<128x128xbf16, #tpu.memory_space<vmem>>, vector<128x128xbf16>
    tpu.vector_store %arg4[%c0_6, %c0_7], %13 {strides = array<i32>} : memref<128x128xbf16, #tpu.memory_space<vmem>>, vector<128x128xbf16>,
    return
  }
  func.func @transform_0(%arg0: i32) -> (i32, i32) {
    %c0_i32 = arith.constant 0 : i32
    %c0_i32_0 = arith.constant 0 : i32
    return %arg0, %c0_i32 : i32, i32
  }
  func.func @transform_1(%arg0: i32) -> (i32, i32) {
    %c0_i32 = arith.constant 0 : i32
    %c0_i32_0 = arith.constant 0 : i32
    %c0_i32_1 = arith.constant 0 : i32
    return %c0_i32, %c0_i32_0 : i32, i32
  }
  func.func @transform_2(%arg0: i32) -> (i32, i32) {
    %c0_i32 = arith.constant 0 : i32
    %c0_i32_0 = arith.constant 0 : i32
    %c0_i32_1 = arith.constant 0 : i32
    return %c0_i32, %c0_i32_0 : i32, i32
  }
  func.func @transform_3(%arg0: i32) -> (i32, i32) {
    %c0_i32 = arith.constant 0 : i32
    %c0_i32_0 = arith.constant 0 : i32
    return %arg0, %c0_i32 : i32, i32
  }
}

module attributes {stable_mosaic.version = 11 : i64} {
  func.func @_matmul_stats_kernel(%arg0: i32, %arg1: i32, %arg2: i32, %arg3: memref<16x2048xbf16, #tpu.memory_space<vmem>>, %arg4: memref<2048x256xbf16, #tpu.memory_space<vmem>>, %arg5: memref<16x256xbf16, #tpu.memory_space<vmem>>, %arg6: memref<1x1x256xf32, #tpu.memory_space<vmem>>, %arg7: memref<1x1x256xf32, #tpu.memory_space<vmem>>, %arg8: memref<16x256xf32, #tpu.memory_space<vmem>>) attributes {dimension_semantics = [#tpu.dimension_semantics<parallel>, #tpu.dimension_semantics<parallel>, #tpu.dimension_semantics<arbitrary>], iteration_bounds = array<i64: 2, 1, 1>, scalar_prefetch = 0 : i64, scratch_operands = 1 : i64, tpu.core_type = #tpu.core_type<tc>, window_params = [{transform_indices = @transform_0, window_bounds = array<i64: 16, 2048>}, {transform_indices = @transform_1, window_bounds = array<i64: 2048, 256>}, {transform_indices = @transform_2, window_bounds = array<i64: 16, 256>}, {transform_indices = @transform_3, window_bounds = array<i64: 1, 1, 256>}, {transform_indices = @transform_4, window_bounds = array<i64: 1, 1, 256>}]} {
    %c0_i32 = arith.constant 0 : i32
    %0 = arith.cmpi eq, %arg2, %c0_i32 : i32
    %1 = arith.extui %0 : i1 to i32
    %c0_i32_0 = arith.constant 0 : i32
    %2 = arith.cmpi ne, %1, %c0_i32_0 : i32
    scf.if %2 {
      %cst_10 = arith.constant 0.000000e+00 : f32
      %12 = vector.broadcast %cst_10 : f32 to vector<16x256xf32>
      %c0_11 = arith.constant 0 : index
      %c0_12 = arith.constant 0 : index
      %13 = vector.load %arg8[%c0_11, %c0_12] : memref<16x256xf32, #tpu.memory_space<vmem>>, vector<16x256xf32>
      tpu.vector_store %arg8[%c0_11, %c0_12], %12 {strides = array<i32>} : memref<16x256xf32, #tpu.memory_space<vmem>>, vector<16x256xf32>,
    } else {
    }
    %c0 = arith.constant 0 : index
    %c0_1 = arith.constant 0 : index
    %3 = vector.load %arg8[%c0, %c0_1] : memref<16x256xf32, #tpu.memory_space<vmem>>, vector<16x256xf32>
    %c0_2 = arith.constant 0 : index
    %c0_3 = arith.constant 0 : index
    %4 = vector.load %arg3[%c0_2, %c0_3] : memref<16x2048xbf16, #tpu.memory_space<vmem>>, vector<16x2048xbf16>
    %c0_4 = arith.constant 0 : index
    %c0_5 = arith.constant 0 : index
    %5 = vector.load %arg4[%c0_4, %c0_5] : memref<2048x256xbf16, #tpu.memory_space<vmem>>, vector<2048x256xbf16>
    %cst = arith.constant dense<0.000000e+00> : vector<16x256xf32>
    %6 = tpu.matmul %4, %5, %cst {dimension_numbers = #tpu.dot_dimension_numbers<[1], [0], [0], [1], [0, 0, 1, 1], [], []>} : vector<16x2048xbf16>, vector<2048x256xbf16>, vector<16x256xf32> -> vector<16x256xf32>
    %7 = arith.addf %3, %6 : vector<16x256xf32>
    %c0_6 = arith.constant 0 : index
    %c0_7 = arith.constant 0 : index
    %8 = vector.load %arg8[%c0_6, %c0_7] : memref<16x256xf32, #tpu.memory_space<vmem>>, vector<16x256xf32>
    tpu.vector_store %arg8[%c0_6, %c0_7], %7 {strides = array<i32>} : memref<16x256xf32, #tpu.memory_space<vmem>>, vector<16x256xf32>,
    %c0_i32_8 = arith.constant 0 : i32
    %9 = arith.cmpi eq, %arg2, %c0_i32_8 : i32
    %10 = arith.extui %9 : i1 to i32
    %c0_i32_9 = arith.constant 0 : i32
    %11 = arith.cmpi ne, %10, %c0_i32_9 : i32
    scf.if %11 {
      %c0_10 = arith.constant 0 : index
      %c0_11 = arith.constant 0 : index
      %12 = vector.load %arg8[%c0_10, %c0_11] : memref<16x256xf32, #tpu.memory_space<vmem>>, vector<16x256xf32>
      %13 = arith.truncf %12 : vector<16x256xf32> to vector<16x256xbf16>
      %c0_12 = arith.constant 0 : index
      %c0_13 = arith.constant 0 : index
      %14 = vector.load %arg5[%c0_12, %c0_13] : memref<16x256xbf16, #tpu.memory_space<vmem>>, vector<16x256xbf16>
      tpu.vector_store %arg5[%c0_12, %c0_13], %13 {strides = array<i32>} : memref<16x256xbf16, #tpu.memory_space<vmem>>, vector<16x256xbf16>,
      %cst_14 = arith.constant dense<0.000000e+00> : vector<256xf32>
      %15 = vector.multi_reduction <add>, %12, %cst_14 [0] : vector<16x256xf32> to vector<256xf32>
      %16 = vector.shape_cast %15 : vector<256xf32> to vector<1x256xf32>
      %17 = vector.shape_cast %16 : vector<1x256xf32> to vector<1x1x256xf32>
      %c0_15 = arith.constant 0 : index
      %c0_16 = arith.constant 0 : index
      %c0_17 = arith.constant 0 : index
      %18 = vector.load %arg6[%c0_15, %c0_16, %c0_17] : memref<1x1x256xf32, #tpu.memory_space<vmem>>, vector<1x1x256xf32>
      tpu.vector_store %arg6[%c0_15, %c0_16, %c0_17], %17 {strides = array<i32>} : memref<1x1x256xf32, #tpu.memory_space<vmem>>, vector<1x1x256xf32>,
      %19 = arith.mulf %12, %12 : vector<16x256xf32>
      %cst_18 = arith.constant dense<0.000000e+00> : vector<256xf32>
      %20 = vector.multi_reduction <add>, %19, %cst_18 [0] : vector<16x256xf32> to vector<256xf32>
      %21 = vector.shape_cast %20 : vector<256xf32> to vector<1x256xf32>
      %22 = vector.shape_cast %21 : vector<1x256xf32> to vector<1x1x256xf32>
      %c0_19 = arith.constant 0 : index
      %c0_20 = arith.constant 0 : index
      %c0_21 = arith.constant 0 : index
      %23 = vector.load %arg7[%c0_19, %c0_20, %c0_21] : memref<1x1x256xf32, #tpu.memory_space<vmem>>, vector<1x1x256xf32>
      tpu.vector_store %arg7[%c0_19, %c0_20, %c0_21], %22 {strides = array<i32>} : memref<1x1x256xf32, #tpu.memory_space<vmem>>, vector<1x1x256xf32>,
    } else {
    }
    return
  }
  func.func @transform_0(%arg0: i32, %arg1: i32, %arg2: i32) -> (i32, i32) {
    %c0_i32 = arith.constant 0 : i32
    return %arg0, %arg2 : i32, i32
  }
  func.func @transform_1(%arg0: i32, %arg1: i32, %arg2: i32) -> (i32, i32) {
    %c0_i32 = arith.constant 0 : i32
    return %arg2, %arg1 : i32, i32
  }
  func.func @transform_2(%arg0: i32, %arg1: i32, %arg2: i32) -> (i32, i32) {
    %c0_i32 = arith.constant 0 : i32
    return %arg0, %arg1 : i32, i32
  }
  func.func @transform_3(%arg0: i32, %arg1: i32, %arg2: i32) -> (i32, i32, i32) {
    %c0_i32 = arith.constant 0 : i32
    %c0_i32_0 = arith.constant 0 : i32
    return %arg0, %c0_i32, %arg1 : i32, i32, i32
  }
  func.func @transform_4(%arg0: i32, %arg1: i32, %arg2: i32) -> (i32, i32, i32) {
    %c0_i32 = arith.constant 0 : i32
    %c0_i32_0 = arith.constant 0 : i32
    return %arg0, %c0_i32, %arg1 : i32, i32, i32
  }
}

module attributes {stable_mosaic.version = 11 : i64} {
  func.func @_bn_act_kernel(%arg0: i32, %arg1: memref<32x256xbf16, #tpu.memory_space<vmem>>, %arg2: memref<1x256xf32, #tpu.memory_space<vmem>>, %arg3: memref<1x256xf32, #tpu.memory_space<vmem>>, %arg4: memref<32x256xbf16, #tpu.memory_space<vmem>>) attributes {dimension_semantics = [#tpu.dimension_semantics<parallel>], iteration_bounds = array<i64: 1>, scalar_prefetch = 0 : i64, scratch_operands = 0 : i64, tpu.core_type = #tpu.core_type<tc>, window_params = [{transform_indices = @transform_0, window_bounds = array<i64: 32, 256>}, {pipeline_mode = #tpu.pipeline_mode<synchronous>, transform_indices = @transform_1, window_bounds = array<i64: 1, 256>}, {pipeline_mode = #tpu.pipeline_mode<synchronous>, transform_indices = @transform_2, window_bounds = array<i64: 1, 256>}, {transform_indices = @transform_3, window_bounds = array<i64: 32, 256>}]} {
    %c0 = arith.constant 0 : index
    %c0_0 = arith.constant 0 : index
    %0 = vector.load %arg1[%c0, %c0_0] : memref<32x256xbf16, #tpu.memory_space<vmem>>, vector<32x256xbf16>
    %1 = arith.extf %0 : vector<32x256xbf16> to vector<32x256xf32>
    %c0_1 = arith.constant 0 : index
    %c0_2 = arith.constant 0 : index
    %2 = vector.load %arg2[%c0_1, %c0_2] : memref<1x256xf32, #tpu.memory_space<vmem>>, vector<1x256xf32>
    %3 = vector.broadcast %2 : vector<1x256xf32> to vector<32x256xf32>
    %4 = arith.mulf %1, %3 : vector<32x256xf32>
    %c0_3 = arith.constant 0 : index
    %c0_4 = arith.constant 0 : index
    %5 = vector.load %arg3[%c0_3, %c0_4] : memref<1x256xf32, #tpu.memory_space<vmem>>, vector<1x256xf32>
    %6 = vector.broadcast %5 : vector<1x256xf32> to vector<32x256xf32>
    %7 = arith.addf %4, %6 : vector<32x256xf32>
    %cst = arith.constant 0.000000e+00 : f32
    %8 = vector.broadcast %cst : f32 to vector<32x256xf32>
    %9 = arith.cmpf oge, %7, %8 : vector<32x256xf32>
    %cst_5 = arith.constant 2.000000e-01 : f32
    %10 = vector.broadcast %cst_5 : f32 to vector<32x256xf32>
    %11 = arith.mulf %10, %7 : vector<32x256xf32>
    %12 = arith.select %9, %7, %11 : vector<32x256xi1>, vector<32x256xf32>
    %13 = arith.truncf %12 : vector<32x256xf32> to vector<32x256xbf16>
    %c0_6 = arith.constant 0 : index
    %c0_7 = arith.constant 0 : index
    %14 = vector.load %arg4[%c0_6, %c0_7] : memref<32x256xbf16, #tpu.memory_space<vmem>>, vector<32x256xbf16>
    tpu.vector_store %arg4[%c0_6, %c0_7], %13 {strides = array<i32>} : memref<32x256xbf16, #tpu.memory_space<vmem>>, vector<32x256xbf16>,
    return
  }
  func.func @transform_0(%arg0: i32) -> (i32, i32) {
    %c0_i32 = arith.constant 0 : i32
    %c0_i32_0 = arith.constant 0 : i32
    return %arg0, %c0_i32 : i32, i32
  }
  func.func @transform_1(%arg0: i32) -> (i32, i32) {
    %c0_i32 = arith.constant 0 : i32
    %c0_i32_0 = arith.constant 0 : i32
    %c0_i32_1 = arith.constant 0 : i32
    return %c0_i32, %c0_i32_0 : i32, i32
  }
  func.func @transform_2(%arg0: i32) -> (i32, i32) {
    %c0_i32 = arith.constant 0 : i32
    %c0_i32_0 = arith.constant 0 : i32
    %c0_i32_1 = arith.constant 0 : i32
    return %c0_i32, %c0_i32_0 : i32, i32
  }
  func.func @transform_3(%arg0: i32) -> (i32, i32) {
    %c0_i32 = arith.constant 0 : i32
    %c0_i32_0 = arith.constant 0 : i32
    return %arg0, %c0_i32 : i32, i32
  }
}

module attributes {stable_mosaic.version = 11 : i64} {
  func.func @_matmul_stats_kernel(%arg0: i32, %arg1: i32, %arg2: i32, %arg3: memref<16x2048xbf16, #tpu.memory_space<vmem>>, %arg4: memref<2048x512xbf16, #tpu.memory_space<vmem>>, %arg5: memref<16x512xbf16, #tpu.memory_space<vmem>>, %arg6: memref<1x1x512xf32, #tpu.memory_space<vmem>>, %arg7: memref<1x1x512xf32, #tpu.memory_space<vmem>>, %arg8: memref<16x512xf32, #tpu.memory_space<vmem>>) attributes {dimension_semantics = [#tpu.dimension_semantics<parallel>, #tpu.dimension_semantics<parallel>, #tpu.dimension_semantics<arbitrary>], iteration_bounds = array<i64: 2, 1, 2>, scalar_prefetch = 0 : i64, scratch_operands = 1 : i64, tpu.core_type = #tpu.core_type<tc>, window_params = [{transform_indices = @transform_0, window_bounds = array<i64: 16, 2048>}, {transform_indices = @transform_1, window_bounds = array<i64: 2048, 512>}, {transform_indices = @transform_2, window_bounds = array<i64: 16, 512>}, {transform_indices = @transform_3, window_bounds = array<i64: 1, 1, 512>}, {transform_indices = @transform_4, window_bounds = array<i64: 1, 1, 512>}]} {
    %c0_i32 = arith.constant 0 : i32
    %0 = arith.cmpi eq, %arg2, %c0_i32 : i32
    %1 = arith.extui %0 : i1 to i32
    %c0_i32_0 = arith.constant 0 : i32
    %2 = arith.cmpi ne, %1, %c0_i32_0 : i32
    scf.if %2 {
      %cst_9 = arith.constant 0.000000e+00 : f32
      %12 = vector.broadcast %cst_9 : f32 to vector<16x512xf32>
      %c0_10 = arith.constant 0 : index
      %c0_11 = arith.constant 0 : index
      %13 = vector.load %arg8[%c0_10, %c0_11] : memref<16x512xf32, #tpu.memory_space<vmem>>, vector<16x512xf32>
      tpu.vector_store %arg8[%c0_10, %c0_11], %12 {strides = array<i32>} : memref<16x512xf32, #tpu.memory_space<vmem>>, vector<16x512xf32>,
    } else {
    }
    %c0 = arith.constant 0 : index
    %c0_1 = arith.constant 0 : index
    %3 = vector.load %arg8[%c0, %c0_1] : memref<16x512xf32, #tpu.memory_space<vmem>>, vector<16x512xf32>
    %c0_2 = arith.constant 0 : index
    %c0_3 = arith.constant 0 : index
    %4 = vector.load %arg3[%c0_2, %c0_3] : memref<16x2048xbf16, #tpu.memory_space<vmem>>, vector<16x2048xbf16>
    %c0_4 = arith.constant 0 : index
    %c0_5 = arith.constant 0 : index
    %5 = vector.load %arg4[%c0_4, %c0_5] : memref<2048x512xbf16, #tpu.memory_space<vmem>>, vector<2048x512xbf16>
    %cst = arith.constant dense<0.000000e+00> : vector<16x512xf32>
    %6 = tpu.matmul %4, %5, %cst {dimension_numbers = #tpu.dot_dimension_numbers<[1], [0], [0], [1], [0, 0, 1, 1], [], []>} : vector<16x2048xbf16>, vector<2048x512xbf16>, vector<16x512xf32> -> vector<16x512xf32>
    %7 = arith.addf %3, %6 : vector<16x512xf32>
    %c0_6 = arith.constant 0 : index
    %c0_7 = arith.constant 0 : index
    %8 = vector.load %arg8[%c0_6, %c0_7] : memref<16x512xf32, #tpu.memory_space<vmem>>, vector<16x512xf32>
    tpu.vector_store %arg8[%c0_6, %c0_7], %7 {strides = array<i32>} : memref<16x512xf32, #tpu.memory_space<vmem>>, vector<16x512xf32>,
    %c1_i32 = arith.constant 1 : i32
    %9 = arith.cmpi eq, %arg2, %c1_i32 : i32
    %10 = arith.extui %9 : i1 to i32
    %c0_i32_8 = arith.constant 0 : i32
    %11 = arith.cmpi ne, %10, %c0_i32_8 : i32
    scf.if %11 {
      %c0_9 = arith.constant 0 : index
      %c0_10 = arith.constant 0 : index
      %12 = vector.load %arg8[%c0_9, %c0_10] : memref<16x512xf32, #tpu.memory_space<vmem>>, vector<16x512xf32>
      %13 = arith.truncf %12 : vector<16x512xf32> to vector<16x512xbf16>
      %c0_11 = arith.constant 0 : index
      %c0_12 = arith.constant 0 : index
      %14 = vector.load %arg5[%c0_11, %c0_12] : memref<16x512xbf16, #tpu.memory_space<vmem>>, vector<16x512xbf16>
      tpu.vector_store %arg5[%c0_11, %c0_12], %13 {strides = array<i32>} : memref<16x512xbf16, #tpu.memory_space<vmem>>, vector<16x512xbf16>,
      %cst_13 = arith.constant dense<0.000000e+00> : vector<512xf32>
      %15 = vector.multi_reduction <add>, %12, %cst_13 [0] : vector<16x512xf32> to vector<512xf32>
      %16 = vector.shape_cast %15 : vector<512xf32> to vector<1x512xf32>
      %17 = vector.shape_cast %16 : vector<1x512xf32> to vector<1x1x512xf32>
      %c0_14 = arith.constant 0 : index
      %c0_15 = arith.constant 0 : index
      %c0_16 = arith.constant 0 : index
      %18 = vector.load %arg6[%c0_14, %c0_15, %c0_16] : memref<1x1x512xf32, #tpu.memory_space<vmem>>, vector<1x1x512xf32>
      tpu.vector_store %arg6[%c0_14, %c0_15, %c0_16], %17 {strides = array<i32>} : memref<1x1x512xf32, #tpu.memory_space<vmem>>, vector<1x1x512xf32>,
      %19 = arith.mulf %12, %12 : vector<16x512xf32>
      %cst_17 = arith.constant dense<0.000000e+00> : vector<512xf32>
      %20 = vector.multi_reduction <add>, %19, %cst_17 [0] : vector<16x512xf32> to vector<512xf32>
      %21 = vector.shape_cast %20 : vector<512xf32> to vector<1x512xf32>
      %22 = vector.shape_cast %21 : vector<1x512xf32> to vector<1x1x512xf32>
      %c0_18 = arith.constant 0 : index
      %c0_19 = arith.constant 0 : index
      %c0_20 = arith.constant 0 : index
      %23 = vector.load %arg7[%c0_18, %c0_19, %c0_20] : memref<1x1x512xf32, #tpu.memory_space<vmem>>, vector<1x1x512xf32>
      tpu.vector_store %arg7[%c0_18, %c0_19, %c0_20], %22 {strides = array<i32>} : memref<1x1x512xf32, #tpu.memory_space<vmem>>, vector<1x1x512xf32>,
    } else {
    }
    return
  }
  func.func @transform_0(%arg0: i32, %arg1: i32, %arg2: i32) -> (i32, i32) {
    %c0_i32 = arith.constant 0 : i32
    return %arg0, %arg2 : i32, i32
  }
  func.func @transform_1(%arg0: i32, %arg1: i32, %arg2: i32) -> (i32, i32) {
    %c0_i32 = arith.constant 0 : i32
    return %arg2, %arg1 : i32, i32
  }
  func.func @transform_2(%arg0: i32, %arg1: i32, %arg2: i32) -> (i32, i32) {
    %c0_i32 = arith.constant 0 : i32
    return %arg0, %arg1 : i32, i32
  }
  func.func @transform_3(%arg0: i32, %arg1: i32, %arg2: i32) -> (i32, i32, i32) {
    %c0_i32 = arith.constant 0 : i32
    %c0_i32_0 = arith.constant 0 : i32
    return %arg0, %c0_i32, %arg1 : i32, i32, i32
  }
  func.func @transform_4(%arg0: i32, %arg1: i32, %arg2: i32) -> (i32, i32, i32) {
    %c0_i32 = arith.constant 0 : i32
    %c0_i32_0 = arith.constant 0 : i32
    return %arg0, %c0_i32, %arg1 : i32, i32, i32
  }
}

module attributes {stable_mosaic.version = 11 : i64} {
  func.func @_bn_act_kernel(%arg0: i32, %arg1: memref<32x512xbf16, #tpu.memory_space<vmem>>, %arg2: memref<1x512xf32, #tpu.memory_space<vmem>>, %arg3: memref<1x512xf32, #tpu.memory_space<vmem>>, %arg4: memref<32x512xbf16, #tpu.memory_space<vmem>>) attributes {dimension_semantics = [#tpu.dimension_semantics<parallel>], iteration_bounds = array<i64: 1>, scalar_prefetch = 0 : i64, scratch_operands = 0 : i64, tpu.core_type = #tpu.core_type<tc>, window_params = [{transform_indices = @transform_0, window_bounds = array<i64: 32, 512>}, {pipeline_mode = #tpu.pipeline_mode<synchronous>, transform_indices = @transform_1, window_bounds = array<i64: 1, 512>}, {pipeline_mode = #tpu.pipeline_mode<synchronous>, transform_indices = @transform_2, window_bounds = array<i64: 1, 512>}, {transform_indices = @transform_3, window_bounds = array<i64: 32, 512>}]} {
    %c0 = arith.constant 0 : index
    %c0_0 = arith.constant 0 : index
    %0 = vector.load %arg1[%c0, %c0_0] : memref<32x512xbf16, #tpu.memory_space<vmem>>, vector<32x512xbf16>
    %1 = arith.extf %0 : vector<32x512xbf16> to vector<32x512xf32>
    %c0_1 = arith.constant 0 : index
    %c0_2 = arith.constant 0 : index
    %2 = vector.load %arg2[%c0_1, %c0_2] : memref<1x512xf32, #tpu.memory_space<vmem>>, vector<1x512xf32>
    %3 = vector.broadcast %2 : vector<1x512xf32> to vector<32x512xf32>
    %4 = arith.mulf %1, %3 : vector<32x512xf32>
    %c0_3 = arith.constant 0 : index
    %c0_4 = arith.constant 0 : index
    %5 = vector.load %arg3[%c0_3, %c0_4] : memref<1x512xf32, #tpu.memory_space<vmem>>, vector<1x512xf32>
    %6 = vector.broadcast %5 : vector<1x512xf32> to vector<32x512xf32>
    %7 = arith.addf %4, %6 : vector<32x512xf32>
    %cst = arith.constant 0.000000e+00 : f32
    %8 = vector.broadcast %cst : f32 to vector<32x512xf32>
    %9 = arith.cmpf oge, %7, %8 : vector<32x512xf32>
    %cst_5 = arith.constant 2.000000e-01 : f32
    %10 = vector.broadcast %cst_5 : f32 to vector<32x512xf32>
    %11 = arith.mulf %10, %7 : vector<32x512xf32>
    %12 = arith.select %9, %7, %11 : vector<32x512xi1>, vector<32x512xf32>
    %13 = arith.truncf %12 : vector<32x512xf32> to vector<32x512xbf16>
    %c0_6 = arith.constant 0 : index
    %c0_7 = arith.constant 0 : index
    %14 = vector.load %arg4[%c0_6, %c0_7] : memref<32x512xbf16, #tpu.memory_space<vmem>>, vector<32x512xbf16>
    tpu.vector_store %arg4[%c0_6, %c0_7], %13 {strides = array<i32>} : memref<32x512xbf16, #tpu.memory_space<vmem>>, vector<32x512xbf16>,
    return
  }
  func.func @transform_0(%arg0: i32) -> (i32, i32) {
    %c0_i32 = arith.constant 0 : i32
    %c0_i32_0 = arith.constant 0 : i32
    return %arg0, %c0_i32 : i32, i32
  }
  func.func @transform_1(%arg0: i32) -> (i32, i32) {
    %c0_i32 = arith.constant 0 : i32
    %c0_i32_0 = arith.constant 0 : i32
    %c0_i32_1 = arith.constant 0 : i32
    return %c0_i32, %c0_i32_0 : i32, i32
  }
  func.func @transform_2(%arg0: i32) -> (i32, i32) {
    %c0_i32 = arith.constant 0 : i32
    %c0_i32_0 = arith.constant 0 : i32
    %c0_i32_1 = arith.constant 0 : i32
    return %c0_i32, %c0_i32_0 : i32, i32
  }
  func.func @transform_3(%arg0: i32) -> (i32, i32) {
    %c0_i32 = arith.constant 0 : i32
    %c0_i32_0 = arith.constant 0 : i32
    return %arg0, %c0_i32 : i32, i32
  }
}

module attributes {stable_mosaic.version = 11 : i64} {
  func.func @_matmul_kernel(%arg0: i32, %arg1: i32, %arg2: i32, %arg3: memref<16x2048xbf16, #tpu.memory_space<vmem>>, %arg4: memref<2048x128xbf16, #tpu.memory_space<vmem>>, %arg5: memref<1x128xf32, #tpu.memory_space<vmem>>, %arg6: memref<16x128xf32, #tpu.memory_space<vmem>>, %arg7: memref<16x128xf32, #tpu.memory_space<vmem>>) attributes {dimension_semantics = [#tpu.dimension_semantics<parallel>, #tpu.dimension_semantics<parallel>, #tpu.dimension_semantics<arbitrary>], iteration_bounds = array<i64: 1, 1, 4>, scalar_prefetch = 0 : i64, scratch_operands = 1 : i64, tpu.core_type = #tpu.core_type<tc>, window_params = [{transform_indices = @transform_0, window_bounds = array<i64: 16, 2048>}, {transform_indices = @transform_1, window_bounds = array<i64: 2048, 128>}, {transform_indices = @transform_2, window_bounds = array<i64: 1, 128>}, {transform_indices = @transform_3, window_bounds = array<i64: 16, 128>}]} {
    %c0_i32 = arith.constant 0 : i32
    %0 = arith.cmpi eq, %arg2, %c0_i32 : i32
    %1 = arith.extui %0 : i1 to i32
    %c0_i32_0 = arith.constant 0 : i32
    %2 = arith.cmpi ne, %1, %c0_i32_0 : i32
    scf.if %2 {
      %cst_9 = arith.constant 0.000000e+00 : f32
      %12 = vector.broadcast %cst_9 : f32 to vector<16x128xf32>
      %c0_10 = arith.constant 0 : index
      %c0_11 = arith.constant 0 : index
      %13 = vector.load %arg7[%c0_10, %c0_11] : memref<16x128xf32, #tpu.memory_space<vmem>>, vector<16x128xf32>
      tpu.vector_store %arg7[%c0_10, %c0_11], %12 {strides = array<i32>} : memref<16x128xf32, #tpu.memory_space<vmem>>, vector<16x128xf32>,
    } else {
    }
    %c0 = arith.constant 0 : index
    %c0_1 = arith.constant 0 : index
    %3 = vector.load %arg7[%c0, %c0_1] : memref<16x128xf32, #tpu.memory_space<vmem>>, vector<16x128xf32>
    %c0_2 = arith.constant 0 : index
    %c0_3 = arith.constant 0 : index
    %4 = vector.load %arg3[%c0_2, %c0_3] : memref<16x2048xbf16, #tpu.memory_space<vmem>>, vector<16x2048xbf16>
    %c0_4 = arith.constant 0 : index
    %c0_5 = arith.constant 0 : index
    %5 = vector.load %arg4[%c0_4, %c0_5] : memref<2048x128xbf16, #tpu.memory_space<vmem>>, vector<2048x128xbf16>
    %cst = arith.constant dense<0.000000e+00> : vector<16x128xf32>
    %6 = tpu.matmul %4, %5, %cst {dimension_numbers = #tpu.dot_dimension_numbers<[1], [0], [0], [1], [0, 0, 1, 1], [], []>} : vector<16x2048xbf16>, vector<2048x128xbf16>, vector<16x128xf32> -> vector<16x128xf32>
    %7 = arith.addf %3, %6 : vector<16x128xf32>
    %c0_6 = arith.constant 0 : index
    %c0_7 = arith.constant 0 : index
    %8 = vector.load %arg7[%c0_6, %c0_7] : memref<16x128xf32, #tpu.memory_space<vmem>>, vector<16x128xf32>
    tpu.vector_store %arg7[%c0_6, %c0_7], %7 {strides = array<i32>} : memref<16x128xf32, #tpu.memory_space<vmem>>, vector<16x128xf32>,
    %c3_i32 = arith.constant 3 : i32
    %9 = arith.cmpi eq, %arg2, %c3_i32 : i32
    %10 = arith.extui %9 : i1 to i32
    %c0_i32_8 = arith.constant 0 : i32
    %11 = arith.cmpi ne, %10, %c0_i32_8 : i32
    scf.if %11 {
      %c0_9 = arith.constant 0 : index
      %c0_10 = arith.constant 0 : index
      %12 = vector.load %arg7[%c0_9, %c0_10] : memref<16x128xf32, #tpu.memory_space<vmem>>, vector<16x128xf32>
      %c0_11 = arith.constant 0 : index
      %c0_12 = arith.constant 0 : index
      %13 = vector.load %arg5[%c0_11, %c0_12] : memref<1x128xf32, #tpu.memory_space<vmem>>, vector<1x128xf32>
      %14 = vector.broadcast %13 : vector<1x128xf32> to vector<16x128xf32>
      %15 = arith.addf %12, %14 : vector<16x128xf32>
      %c0_13 = arith.constant 0 : index
      %c0_14 = arith.constant 0 : index
      %16 = vector.load %arg6[%c0_13, %c0_14] : memref<16x128xf32, #tpu.memory_space<vmem>>, vector<16x128xf32>
      tpu.vector_store %arg6[%c0_13, %c0_14], %15 {strides = array<i32>} : memref<16x128xf32, #tpu.memory_space<vmem>>, vector<16x128xf32>,
    } else {
    }
    return
  }
  func.func @transform_0(%arg0: i32, %arg1: i32, %arg2: i32) -> (i32, i32) {
    %c0_i32 = arith.constant 0 : i32
    return %arg0, %arg2 : i32, i32
  }
  func.func @transform_1(%arg0: i32, %arg1: i32, %arg2: i32) -> (i32, i32) {
    %c0_i32 = arith.constant 0 : i32
    return %arg2, %arg1 : i32, i32
  }
  func.func @transform_2(%arg0: i32, %arg1: i32, %arg2: i32) -> (i32, i32) {
    %c0_i32 = arith.constant 0 : i32
    %c0_i32_0 = arith.constant 0 : i32
    return %c0_i32, %arg1 : i32, i32
  }
  func.func @transform_3(%arg0: i32, %arg1: i32, %arg2: i32) -> (i32, i32) {
    %c0_i32 = arith.constant 0 : i32
    return %arg0, %arg1 : i32, i32
  }
}

</mosaic_0001>

<bundles_post_ra>
// kernel: _lambda_.8
= control target key start
LH: loop header
LB: loop body
LE: loop exit
PB: predicated region body
PF: predicated region fallthrough
CT: control target
= control target key end

     0   :  { %s1473_s12 = smov 0   ;;  %s1475_s13 = smov 0   ;;  %s1763_s0 = inlined_call_operand.vmem [shape: bf16[512,128], index: 0, kind: input, shape index: {}]   ;;  %s1764_s1 = inlined_call_operand.vmem [shape: bf16[128,64], index: 1, kind: input, shape index: {}]   ;;  %s1765_s2 = inlined_call_operand.vmem [shape: f32[1,64], index: 2, kind: input, shape index: {}]   ;;  %s1766_s3 = inlined_call_operand.vmem [shape: bf16[512,64], index: 3, kind: output, shape index: {}]  }
   0x1   :  { %s1477_s14 = smov 0  }
   0x2 LB: > { %s32_s15 = sadd.s32 1, %s1446_s13  ;;  %p1195_p0 = scmp.ge.s32.totalorder %s1450_s14, 1  ;;  %s1450_s14 = sphi %s1477_s14, %s13_s14   ;;  %s1446_s13 = sphi %s1475_s13, %s1768_s13   ;;  %s1442_s12 = sphi %s1473_s12, %s1767_s12  }
   0x3   : > { %p34_p1 = scmp.ge.s32.totalorder %s32_s15, 2  ;;  %p188_p2 = scmp.lt.s32.totalorder %s1450_s14, 3 }
   0x5   : > { %s1770_s15 = smov (%p34_p1, %s32_s15), 0  ;;  %p189_p3 = pnand %p1195_p0, %p188_p2 }
   0x6   : > { %s1196_s18 = sshll.u32 (!%p189_p3), %s1442_s12, 5 }
   0x7   : > { %192 = sbr.rel (%p189_p3) target bundleno = 302 (0x12e), region = 32  ;;  %p230_p4 = scmp.lt.s32.totalorder (!%p189_p3), %s1196_s18, 63 }
   0xc   : > { %v1404_v0 = vld [vmem:[%s1764_s1 + $0x38] sm:$0xff]   ;;  %v1405_v1 = vld [vmem:[%s1764_s1 + $0x30] sm:$0xff]   ;;  %vm264_vm0 = vcmask 523264   ;;  %s1772_s18 = smov (!%p230_p4, %s1196_s18), 63  ;;  %v1406_v2 = vld [vmem:[%s1764_s1 + $0x28] sm:$0xff]   ;;  %v1452_v3 = vmov 0.0  }
   0xd   : > { %1315 = vmatprep.subr.bf16.mxu0 %v1404_v0  ;;  %1363 = vmatprep.subr.bf16.mxu1 %v1404_v0  ;;  %s1197_s23 = sshll.u32 %s1772_s18, 2  ;;  %267 = vst.msk [vmem:[#allocation2 + $0x10] sm:$0xff] %vm264_vm0, %v1452_v3  ;;  %265 = vst.msk [vmem:[#allocation2] sm:$0xff] %vm264_vm0, %v1452_v3  ;;  %v1407_v4 = vld [vmem:[%s1764_s1 + $0x20] sm:$0xff]   ;;  %v1408_v7 = vld [vmem:[%s1764_s1 + $0x18] sm:$0xff]   ;;  %vm1045_vm1 = vcmask 519168  }
   0xe   : > { %1316 = vmatpush3.bf16.msra.mxu0 %v1404_v0  ;;  %1371 = vmatpush3.bf16.msra.mxu1 %v1404_v0  ;;  %266 = vst.msk [vmem:[#allocation2 + $0x8] sm:$0xff] %vm264_vm0, %v1452_v3  ;;  %268 = vst.msk [vmem:[#allocation2 + $0x18] sm:$0xff] %vm264_vm0, %v1452_v3  ;;  %s1540_s26 = scalar_lea.vmem %s1763_s0, %s1197_s23  ;;  %v1409_v8 = vld [vmem:[%s1764_s1 + $0x10] sm:$0xff]   ;;  %v1410_v9 = vld [vmem:[%s1764_s1 + $0x8] sm:$0xff]   ;;  %s1599_s17 = scalar_lea.vmem %s1766_s3, %s1197_s23 }
   0xf   : > { %1317 = vmatprep.subr.bf16.mxu0 %v1405_v1  ;;  %1364 = vmatprep.subr.bf16.mxu1 %v1405_v1  ;;  %269 = vst.msk [vmem:[#allocation2 + $0x20] sm:$0xff] %vm264_vm0, %v1452_v3  ;;  %270 = vst.msk [vmem:[#allocation2 + $0x28] sm:$0xff] %vm264_vm0, %v1452_v3  ;;  %v1412_v5 = vld [vmem:[%s1540_s26] sm:$0xff]   ;;  %v1414_v11 = vld [vmem:[%s1540_s26 + $0x8] sm:$0xff]  }
  0x10   : > { %271 = vst.msk [vmem:[#allocation2 + $0x30] sm:$0xff] %vm264_vm0, %v1452_v3  ;;  %272 = vst.msk [vmem:[#allocation2 + $0x38] sm:$0xff] %vm264_vm0, %v1452_v3  ;;  %v1413_v6 = vld [vmem:[%s1540_s26 + $0x40] sm:$0xff]   ;;  %1331 = vmatprep.mubr.bf16.mxu0 %v1412_v5  ;;  %v1415_v12 = vld [vmem:[%s1540_s26 + $0x48] sm:$0xff]  }
  0x11   : > { %273 = vst.msk [vmem:[#allocation2 + $0x40] sm:$0xff] %vm264_vm0, %v1452_v3  ;;  %274 = vst.msk [vmem:[#allocation2 + $0x48] sm:$0xff] %vm264_vm0, %v1452_v3  ;;  %1347 = vmatprep.mubr.bf16.mxu1 %v1413_v6  ;;  %v1411_v10 = vld [vmem:[%s1764_s1] sm:$0xff]   ;;  %v1416_v13 = vld [vmem:[%s1540_s26 + $0x10] sm:$0xff]  }
  0x12   : > { %275 = vst.msk [vmem:[#allocation2 + $0x50] sm:$0xff] %vm264_vm0, %v1452_v3  ;;  %276 = vst.msk [vmem:[#allocation2 + $0x58] sm:$0xff] %vm264_vm0, %v1452_v3  ;;  %1318 = vmatpush3.bf16.msra.mxu0 %v1405_v1  ;;  %1372 = vmatpush3.bf16.msra.mxu1 %v1405_v1  ;;  %v1417_v14 = vld [vmem:[%s1540_s26 + $0x50] sm:$0xff]   ;;  %v1418_v15 = vld [vmem:[%s1540_s26 + $0x18] sm:$0xff]  }
  0x13   : > { %277 = vst.msk [vmem:[#allocation2 + $0x60] sm:$0xff] %vm264_vm0, %v1452_v3  ;;  %278 = vst.msk [vmem:[#allocation2 + $0x68] sm:$0xff] %vm264_vm0, %v1452_v3  ;;  %1319 = vmatprep.subr.bf16.mxu0 %v1406_v2  ;;  %1365 = vmatprep.subr.bf16.mxu1 %v1406_v2  ;;  %v1419_v16 = vld [vmem:[%s1540_s26 + $0x58] sm:$0xff]   ;;  %v1420_v17 = vld [vmem:[%s1540_s26 + $0x20] sm:$0xff]  }
  0x14   : > { %279 = vst.msk [vmem:[#allocation2 + $0x70] sm:$0xff] %vm264_vm0, %v1452_v3  ;;  %280 = vst.msk [vmem:[#allocation2 + $0x78] sm:$0xff] %vm264_vm0, %v1452_v3  ;;  %v1421_v18 = vld [vmem:[%s1540_s26 + $0x60] sm:$0xff]   ;;  %v1422_v19 = vld [vmem:[%s1540_s26 + $0x28] sm:$0xff]  }
  0x15   : > { %281 = vst.msk [vmem:[#allocation2 + $0x80] sm:$0xff] %vm264_vm0, %v1452_v3  ;;  %282 = vst.msk [vmem:[#allocation2 + $0x88] sm:$0xff] %vm264_vm0, %v1452_v3  ;;  %v1423_v20 = vld [vmem:[%s1540_s26 + $0x68] sm:$0xff]   ;;  %v1424_v21 = vld [vmem:[%s1540_s26 + $0x30] sm:$0xff]  }
  0x16   : > { %283 = vst.msk [vmem:[#allocation2 + $0x90] sm:$0xff] %vm264_vm0, %v1452_v3  ;;  %284 = vst.msk [vmem:[#allocation2 + $0x98] sm:$0xff] %vm264_vm0, %v1452_v3  ;;  %1320 = vmatpush3.bf16.msra.mxu0 %v1406_v2  ;;  %1373 = vmatpush3.bf16.msra.mxu1 %v1406_v2  ;;  %v1425_v22 = vld [vmem:[%s1540_s26 + $0x70] sm:$0xff]   ;;  %v1426_v23 = vld [vmem:[%s1540_s26 + $0x38] sm:$0xff]  }
  0x17   : > { %285 = vst.msk [vmem:[#allocation2 + $0xa0] sm:$0xff] %vm264_vm0, %v1452_v3  ;;  %286 = vst.msk [vmem:[#allocation2 + $0xa8] sm:$0xff] %vm264_vm0, %v1452_v3  ;;  %1321 = vmatprep.subr.bf16.mxu0 %v1407_v4  ;;  %1366 = vmatprep.subr.bf16.mxu1 %v1407_v4  ;;  %v1427_v24 = vld [vmem:[%s1540_s26 + $0x78] sm:$0xff]   ;;  %v299_v25 = vld [vmem:[#allocation2 + $0x10] sm:$0xff] }
  0x18   : > { %287 = vst.msk [vmem:[#allocation2 + $0xb0] sm:$0xff] %vm264_vm0, %v1452_v3  ;;  %288 = vst.msk [vmem:[#allocation2 + $0xb8] sm:$0xff] %vm264_vm0, %v1452_v3  ;;  %v297_v29 = vld [vmem:[#allocation2] sm:$0xff]  ;;  %v300_v35 = vld [vmem:[#allocation2 + $0x18] sm:$0xff] }
  0x19   : > { %289 = vst.msk [vmem:[#allocation2 + $0xc0] sm:$0xff] %vm264_vm0, %v1452_v3  ;;  %290 = vst.msk [vmem:[#allocation2 + $0xc8] sm:$0xff] %vm264_vm0, %v1452_v3  ;;  %v298_v41 = vld [vmem:[#allocation2 + $0x8] sm:$0xff]  ;;  %v303_v47 = vld [vmem:[#allocation2 + $0x30] sm:$0xff] }
  0x1a   : > { %291 = vst.msk [vmem:[#allocation2 + $0xd0] sm:$0xff] %vm264_vm0, %v1452_v3  ;;  %292 = vst.msk [vmem:[#allocation2 + $0xd8] sm:$0xff] %vm264_vm0, %v1452_v3  ;;  %1322 = vmatpush3.bf16.msra.mxu0 %v1407_v4  ;;  %1374 = vmatpush3.bf16.msra.mxu1 %v1407_v4  ;;  %v1582_v51 = vld [vmem:[%s1765_s2] ss:$0 sm:$0xff]  ;;  %v304_v2 = vld [vmem:[#allocation2 + $0x38] sm:$0xff] }
  0x1b   : > { %293 = vst.msk [vmem:[#allocation2 + $0xe0] sm:$0xff] %vm264_vm0, %v1452_v3  ;;  %294 = vst.msk [vmem:[#allocation2 + $0xe8] sm:$0xff] %vm264_vm0, %v1452_v3  ;;  %1323 = vmatprep.subr.bf16.mxu0 %v1408_v7  ;;  %1367 = vmatprep.subr.bf16.mxu1 %v1408_v7  ;;  %v301_v54 = vld [vmem:[#allocation2 + $0x20] sm:$0xff] }
  0x1c   : > { %295 = vst.msk [vmem:[#allocation2 + $0xf0] sm:$0xff] %vm264_vm0, %v1452_v3  ;;  %296 = vst.msk [vmem:[#allocation2 + $0xf8] sm:$0xff] %vm264_vm0, %v1452_v3  ;;  %v313_v30 = vld [vmem:[#allocation2 + $0x80] sm:$0xff]  ;;  %v314_v42 = vld [vmem:[#allocation2 + $0x88] sm:$0xff] }
  0x1d   : > { %v315_v26 = vld [vmem:[#allocation2 + $0x90] sm:$0xff]  ;;  %v316_v36 = vld [vmem:[#allocation2 + $0x98] sm:$0xff] }
  0x1e   : > { %1324 = vmatpush3.bf16.msra.mxu0 %v1408_v7  ;;  %1375 = vmatpush3.bf16.msra.mxu1 %v1408_v7  ;;  %v317_v55 = vld [vmem:[#allocation2 + $0xa0] sm:$0xff] }
  0x1f   : > { %1325 = vmatprep.subr.bf16.mxu0 %v1409_v8  ;;  %1368 = vmatprep.subr.bf16.mxu1 %v1409_v8  ;;  %v319_v48 = vld [vmem:[#allocation2 + $0xb0] sm:$0xff]  ;;  %v320_v3 = vld [vmem:[#allocation2 + $0xb8] sm:$0xff] }
  0x22   : > { %1326 = vmatpush3.bf16.msra.mxu0 %v1409_v8  ;;  %1376 = vmatpush3.bf16.msra.mxu1 %v1409_v8 }
  0x23   : > { %1327 = vmatprep.subr.bf16.mxu0 %v1410_v9  ;;  %1369 = vmatprep.subr.bf16.mxu1 %v1410_v9 }
  0x26   : > { %1328 = vmatpush3.bf16.msra.mxu0 %v1410_v9  ;;  %1377 = vmatpush3.bf16.msra.mxu1 %v1410_v9 }
  0x27   : > { %1329 = vmatprep.subr.bf16.mxu0 %v1411_v10  ;;  %1370 = vmatprep.subr.bf16.mxu1 %v1411_v10 }
  0x2a   : > { %1330 = vmatpush3.bf16.msra.mxu0 %v1411_v10  ;;  %1378 = vmatpush3.bf16.msra.mxu1 %v1411_v10 }
  0x2d   : > { %1332 = vmatmul.mubr.bf16.vlgmr.msra.gmra.mxu0 %v1414_v11  ;;  %1348 = vmatmul.mubr.bf16.vlgmr.msra.gmra.mxu1 %v1415_v12 }
  0x2e   : > { %1335 = vmatprep.mubr.bf16.mxu0 %v1416_v13  ;;  %1351 = vmatprep.mubr.bf16.mxu1 %v1417_v14 }
  0x35   : > { %1336 = vmatmul.mubr.bf16.gmra.mxu0 %v1418_v15  ;;  %1352 = vmatmul.mubr.bf16.gmra.mxu1 %v1419_v16 }
  0x36   : > { %1339 = vmatprep.mubr.bf16.mxu0 %v1420_v17  ;;  %1355 = vmatprep.mubr.bf16.mxu1 %v1421_v18 }
  0x3d   : > { %1340 = vmatmul.mubr.bf16.gmra.mxu0 %v1422_v19  ;;  %1356 = vmatmul.mubr.bf16.gmra.mxu1 %v1423_v20 }
  0x3e   : > { %1343 = vmatprep.mubr.bf16.mxu0 %v1424_v21  ;;  %1359 = vmatprep.mubr.bf16.mxu1 %v1425_v22 }
  0x45   : > { %1344 = vmatmul.mubr.bf16.gmra.mxu0 %v1426_v23  ;;  %1360 = vmatmul.mubr.bf16.gmra.mxu1 %v1427_v24 }
  0xed   : > { %v1333_v27 = vpop.f32.mrf.mxu0  ;;  %v1349_v28 = vpop.f32.mrf.mxu1 }
  0xee   : > { %v684_v31 = vadd.f32 %v1333_v27, %v299_v25  ;;  %v700_v32 = vadd.f32 %v1349_v28, %v315_v26 }
  0xef   : > { %v555_v33 = vpop.f32.mrf.mxu0  ;;  %v619_v34 = vpop.f32.mrf.mxu1 }
  0xf0   : > { %717 = vst.msk [vmem:[#allocation2 + $0x10] sm:$0xff] %vm264_vm0, %v684_v31  ;;  %733 = vst.msk [vmem:[#allocation2 + $0x90] sm:$0xff] %vm264_vm0, %v700_v32  ;;  %v682_v37 = vadd.f32 %v555_v33, %v297_v29  ;;  %v698_v38 = vadd.f32 %v619_v34, %v313_v30 }
  0xf1   : > { %v1334_v39 = vpop.f32.mrf.mxu0  ;;  %v1350_v40 = vpop.f32.mrf.mxu1 }
  0xf2   : > { %715 = vst.msk [vmem:[#allocation2] sm:$0xff] %vm264_vm0, %v682_v37  ;;  %731 = vst.msk [vmem:[#allocation2 + $0x80] sm:$0xff] %vm264_vm0, %v698_v38  ;;  %v685_v43 = vadd.f32 %v1334_v39, %v300_v35  ;;  %v701_v44 = vadd.f32 %v1350_v40, %v316_v36 }
  0xf3   : > { %v558_v45 = vpop.f32.mrf.mxu0  ;;  %v622_v46 = vpop.f32.mrf.mxu1 }
  0xf4   : > { %718 = vst.msk [vmem:[#allocation2 + $0x18] sm:$0xff] %vm264_vm0, %v685_v43  ;;  %734 = vst.msk [vmem:[#allocation2 + $0x98] sm:$0xff] %vm264_vm0, %v701_v44  ;;  %v683_v49 = vadd.f32 %v558_v45, %v298_v41  ;;  %v699_v50 = vadd.f32 %v622_v46, %v314_v42  ;;  %v302_v42 = vld [vmem:[#allocation2 + $0x28] sm:$0xff] }
  0xf5   : > { %v1337_v52 = vpop.f32.mrf.mxu0  ;;  %v1353_v53 = vpop.f32.mrf.mxu1 }
  0xf6   : > { %716 = vst.msk [vmem:[#allocation2 + $0x8] sm:$0xff] %vm264_vm0, %v683_v49  ;;  %732 = vst.msk [vmem:[#allocation2 + $0x88] sm:$0xff] %vm264_vm0, %v699_v50  ;;  %v688_v56 = vadd.f32 %v1337_v52, %v303_v47  ;;  %v704_v57 = vadd.f32 %v1353_v53, %v319_v48  ;;  %v318_v48 = vld [vmem:[#allocation2 + $0xa8] sm:$0xff] }
  0xf7   : > { %v752_v58 = vld [vmem:[#allocation2 + $0x10] sm:$0xff]  ;;  %v571_v60 = vpop.f32.mrf.mxu0  ;;  %v635_v61 = vpop.f32.mrf.mxu1 }
  0xf8   : > { %v768_v59 = vld [vmem:[#allocation2 + $0x90] sm:$0xff]  ;;  %v791_v62 = vadd.f32 %v1582_v51, %v752_v58  ;;  %721 = vst.msk [vmem:[#allocation2 + $0x30] sm:$0xff] %vm264_vm0, %v688_v56  ;;  %737 = vst.msk [vmem:[#allocation2 + $0xb0] sm:$0xff] %vm264_vm0, %v704_v57  ;;  %v686_v0 = vadd.f32 %v571_v60, %v301_v54  ;;  %v702_v1 = vadd.f32 %v635_v61, %v317_v55 }
  0xf9   : > { %v807_v63 = vadd.f32 %v1582_v51, %v768_v59  ;;  %v750_v4 = vld [vmem:[#allocation2] sm:$0xff]  ;;  %v1338_v6 = vpop.f32.mrf.mxu0  ;;  %v1354_v7 = vpop.f32.mrf.mxu1 }
  0xfa   : > { %v766_v5 = vld [vmem:[#allocation2 + $0x80] sm:$0xff]  ;;  %vm823_vm2 = vcmp.ge.f32.partialorder %v791_v62, 0.0  ;;  %v855_v8 = vmul.f32 0.2, %v791_v62  ;;  %719 = vst.msk [vmem:[#allocation2 + $0x20] sm:$0xff] %vm264_vm0, %v686_v0  ;;  %735 = vst.msk [vmem:[#allocation2 + $0xa0] sm:$0xff] %vm264_vm0, %v702_v1  ;;  %v789_v10 = vadd.f32 %v1582_v51, %v750_v4  ;;  %v689_v14 = vadd.f32 %v1338_v6, %v304_v2 }
  0xfb   : > { %vm839_vm3 = vcmp.ge.f32.partialorder %v807_v63, 0.0  ;;  %v871_v9 = vmul.f32 0.2, %v807_v63  ;;  %v805_v11 = vadd.f32 %v1582_v51, %v766_v5  ;;  %v753_v12 = vld [vmem:[#allocation2 + $0x18] sm:$0xff]  ;;  %v705_v15 = vadd.f32 %v1354_v7, %v320_v3  ;;  %v574_v16 = vpop.f32.mrf.mxu0  ;;  %v638_v17 = vpop.f32.mrf.mxu1 }
  0xfc   : > { %v769_v13 = vld [vmem:[#allocation2 + $0x98] sm:$0xff]  ;;  %v887_v18 = vsel %vm823_vm2, %v791_v62, %v855_v8  ;;  %v792_v20 = vadd.f32 %v1582_v51, %v753_v12  ;;  %vm821_vm4 = vcmp.ge.f32.partialorder %v789_v10, 0.0  ;;  %v853_v24 = vmul.f32 0.2, %v789_v10  ;;  %722 = vst.msk [vmem:[#allocation2 + $0x38] sm:$0xff] %vm264_vm0, %v689_v14 }
  0xfd   : > { %v903_v19 = vsel %vm839_vm3, %v807_v63, %v871_v9  ;;  %v808_v21 = vadd.f32 %v1582_v51, %v769_v13  ;;  %v1261_v22 = vpack.c.bf16 %v887_v18, %v887_v18  ;;  %v751_v25 = vld [vmem:[#allocation2 + $0x8] sm:$0xff]  ;;  %738 = vst.msk [vmem:[#allocation2 + $0xb8] sm:$0xff] %vm264_vm0, %v705_v15  ;;  %v1605_v27 = vpop.f32.mrf.mxu0  ;;  %v1607_v28 = vpop.f32.mrf.mxu1  ;;  %vm837_vm5 = vcmp.ge.f32.partialorder %v805_v11, 0.0  ;;  %v307_v13 = vld [vmem:[#allocation2 + $0x50] sm:$0xff] }
  0xfe   : > { %v1277_v23 = vpack.c.bf16 %v903_v19, %v903_v19  ;;  %v767_v26 = vld [vmem:[#allocation2 + $0x88] sm:$0xff]  ;;  %v869_v29 = vmul.f32 0.2, %v805_v11  ;;  %vm824_vm6 = vcmp.ge.f32.partialorder %v792_v20, 0.0  ;;  %v856_v30 = vmul.f32 0.2, %v792_v20 }
  0xff   : > { %1048 = vst.msk [vmem:[%s1599_s17 + $0x8] sm:$0xf] %vm1045_vm1, %v1261_v22  ;;  %v885_v31 = vsel %vm821_vm4, %v789_v10, %v853_v24  ;;  %vm840_vm7 = vcmp.ge.f32.partialorder %v808_v21, 0.0  ;;  %v872_v32 = vmul.f32 0.2, %v808_v21  ;;  %v790_v33 = vadd.f32 %v1582_v51, %v751_v25  ;;  %v1614_v34 = vpop.f32.mrf.mxu0  ;;  %v1616_v35 = vpop.f32.mrf.mxu1  ;;  %v756_v40 = vld [vmem:[#allocation2 + $0x30] sm:$0xff] }
 0x100   : > { %1064 = vst.msk [vmem:[%s1599_s17 + $0x48] sm:$0xf] %vm1045_vm1, %v1277_v23  ;;  %v1259_v36 = vpack.c.bf16 %v885_v31, %v885_v31  ;;  %v901_v37 = vsel %vm837_vm5, %v805_v11, %v869_v29  ;;  %v888_v38 = vsel %vm824_vm6, %v792_v20, %v856_v30  ;;  %v806_v39 = vadd.f32 %v1582_v51, %v767_v26  ;;  %v772_v41 = vld [vmem:[#allocation2 + $0xb0] sm:$0xff]  ;;  %v321_v22 = vld [vmem:[#allocation2 + $0xc0] sm:$0xff]  ;;  %v308_v26 = vld [vmem:[#allocation2 + $0x58] sm:$0xff] }
 0x101   : > { %v1275_v43 = vpack.c.bf16 %v901_v37, %v901_v37  ;;  %v1262_v44 = vpack.c.bf16 %v888_v38, %v888_v38  ;;  %v904_v45 = vsel %vm840_vm7, %v808_v21, %v872_v32  ;;  %vm822_vm8 = vcmp.ge.f32.partialorder %v790_v33, 0.0  ;;  %v754_v46 = vld [vmem:[#allocation2 + $0x20] sm:$0xff]  ;;  %v1619_v49 = vpop.f32.mrf.mxu0  ;;  %v1621_v50 = vpop.f32.mrf.mxu1  ;;  %v323_v20 = vld [vmem:[#allocation2 + $0xd0] sm:$0xff]  ;;  %v324_v29 = vld [vmem:[#allocation2 + $0xd8] sm:$0xff] }
 0x102   : > { %v770_v47 = vld [vmem:[#allocation2 + $0xa0] sm:$0xff]  ;;  %1046 = vst.msk [vmem:[%s1599_s17] sm:$0xf] %vm1045_vm1, %v1259_v36  ;;  %v1278_v52 = vpack.c.bf16 %v904_v45, %v904_v45  ;;  %v854_v53 = vmul.f32 0.2, %v790_v33  ;;  %vm838_vm9 = vcmp.ge.f32.partialorder %v806_v39, 0.0  ;;  %v795_v55 = vadd.f32 %v1582_v51, %v756_v40 }
 0x103   : > { %v870_v54 = vmul.f32 0.2, %v806_v39  ;;  %1062 = vst.msk [vmem:[%s1599_s17 + $0x40] sm:$0xf] %vm1045_vm1, %v1275_v43  ;;  %1049 = vst.msk [vmem:[%s1599_s17 + $0xc] sm:$0xf] %vm1045_vm1, %v1262_v44  ;;  %v811_v56 = vadd.f32 %v1582_v51, %v772_v41  ;;  %v793_v57 = vadd.f32 %v1582_v51, %v754_v46  ;;  %v809_v58 = vadd.f32 %v1582_v51, %v770_v47  ;;  %v1633_v59 = vpop.f32.mrf.mxu0  ;;  %v1635_v60 = vpop.f32.mrf.mxu1 }
 0x104   : > { %1065 = vst.msk [vmem:[%s1599_s17 + $0x4c] sm:$0xf] %vm1045_vm1, %v1278_v52  ;;  %v886_v61 = vsel %vm822_vm8, %v790_v33, %v854_v53  ;;  %v757_v63 = vld [vmem:[#allocation2 + $0x38] sm:$0xff]  ;;  %v687_v0 = vadd.f32 %v574_v16, %v302_v42  ;;  %v703_v1 = vadd.f32 %v638_v17, %v318_v48  ;;  %vm827_vm10 = vcmp.ge.f32.partialorder %v795_v55, 0.0  ;;  %v305_v21 = vld [vmem:[#allocation2 + $0x40] sm:$0xff]  ;;  %v306_v30 = vld [vmem:[#allocation2 + $0x48] sm:$0xff] }
 0x105   : > { %v902_v62 = vsel %vm838_vm9, %v806_v39, %v870_v54  ;;  %v1260_v2 = vpack.c.bf16 %v886_v61, %v886_v61  ;;  %v859_v4 = vmul.f32 0.2, %v795_v55  ;;  %v773_v5 = vld [vmem:[#allocation2 + $0xb8] sm:$0xff]  ;;  %v1640_v6 = vpop.f32.mrf.mxu0  ;;  %v1642_v7 = vpop.f32.mrf.mxu1  ;;  %vm843_vm11 = vcmp.ge.f32.partialorder %v811_v56, 0.0  ;;  %v322_v36 = vld [vmem:[#allocation2 + $0xc8] sm:$0xff]  ;;  %v311_v43 = vld [vmem:[#allocation2 + $0x70] sm:$0xff] }
 0x106   : > { %v1276_v3 = vpack.c.bf16 %v902_v62, %v902_v62  ;;  %v875_v8 = vmul.f32 0.2, %v811_v56  ;;  %vm825_vm12 = vcmp.ge.f32.partialorder %v793_v57, 0.0  ;;  %v857_v9 = vmul.f32 0.2, %v793_v57  ;;  %720 = vst.msk [vmem:[#allocation2 + $0x28] sm:$0xff] %vm264_vm0, %v687_v0 }
 0x107   : > { %736 = vst.msk [vmem:[#allocation2 + $0xa8] sm:$0xff] %vm264_vm0, %v703_v1  ;;  %v891_v10 = vsel %vm827_vm10, %v795_v55, %v859_v4  ;;  %vm841_vm13 = vcmp.ge.f32.partialorder %v809_v58, 0.0  ;;  %v873_v11 = vmul.f32 0.2, %v809_v58  ;;  %v796_v12 = vadd.f32 %v1582_v51, %v757_v63  ;;  %v1651_v14 = vpop.f32.mrf.mxu0  ;;  %v1653_v15 = vpop.f32.mrf.mxu1  ;;  %v327_v44 = vld [vmem:[#allocation2 + $0xf0] sm:$0xff]  ;;  %v309_v45 = vld [vmem:[#allocation2 + $0x60] sm:$0xff] }
 0x108   : > { %1047 = vst.msk [vmem:[%s1599_s17 + $0x4] sm:$0xf] %vm1045_vm1, %v1260_v2  ;;  %1063 = vst.msk [vmem:[%s1599_s17 + $0x44] sm:$0xf] %vm1045_vm1, %v1276_v3  ;;  %v1265_v16 = vpack.c.bf16 %v891_v10, %v891_v10  ;;  %v907_v17 = vsel %vm843_vm11, %v811_v56, %v875_v8  ;;  %v889_v18 = vsel %vm825_vm12, %v793_v57, %v857_v9  ;;  %v312_v53 = vld [vmem:[#allocation2 + $0x78] sm:$0xff]  ;;  %v310_v62 = vld [vmem:[#allocation2 + $0x68] sm:$0xff] }
 0x109   : > { %v812_v19 = vadd.f32 %v1582_v51, %v773_v5  ;;  %v1281_v23 = vpack.c.bf16 %v907_v17, %v907_v17  ;;  %v1263_v24 = vpack.c.bf16 %v889_v18, %v889_v18  ;;  %v905_v25 = vsel %vm841_vm13, %v809_v58, %v873_v11  ;;  %v1346_v37 = vpop.f32.mrf.mxu0  ;;  %v1362_v38 = vpop.f32.mrf.mxu1  ;;  %v326_v0 = vld [vmem:[#allocation2 + $0xe8] sm:$0xff] }
 0x10a   : > { %vm828_vm14 = vcmp.ge.f32.partialorder %v796_v12, 0.0  ;;  %1052 = vst.msk [vmem:[%s1599_s17 + $0x18] sm:$0xf] %vm1045_vm1, %v1265_v16  ;;  %v1279_v31 = vpack.c.bf16 %v905_v25, %v905_v25  ;;  %v860_v32 = vmul.f32 0.2, %v796_v12  ;;  %v692_v39 = vadd.f32 %v1605_v27, %v307_v13  ;;  %v325_v27 = vld [vmem:[#allocation2 + $0xe0] sm:$0xff] }
 0x10b   : > { %vm844_vm15 = vcmp.ge.f32.partialorder %v812_v19, 0.0  ;;  %v876_v33 = vmul.f32 0.2, %v812_v19  ;;  %1068 = vst.msk [vmem:[%s1599_s17 + $0x58] sm:$0xf] %vm1045_vm1, %v1281_v23  ;;  %v708_v40 = vadd.f32 %v1607_v28, %v323_v20  ;;  %v690_v41 = vadd.f32 %v1614_v34, %v305_v21  ;;  %v328_v28 = vld [vmem:[#allocation2 + $0xf8] sm:$0xff]  ;;  %v606_v63 = vpop.f32.mrf.mxu0  ;;  %v670_v1 = vpop.f32.mrf.mxu1 }
 0x10c   : > { %1050 = vst.msk [vmem:[%s1599_s17 + $0x10] sm:$0xf] %vm1045_vm1, %v1263_v24  ;;  %v706_v42 = vadd.f32 %v1616_v35, %v321_v22  ;;  %1066 = vst.msk [vmem:[%s1599_s17 + $0x50] sm:$0xf] %vm1045_vm1, %v1279_v31  ;;  %v892_v46 = vsel %vm828_vm14, %v796_v12, %v860_v32  ;;  %v693_v48 = vadd.f32 %v1619_v49, %v308_v26 }
 0x10d   : > { %v908_v47 = vsel %vm844_vm15, %v812_v19, %v876_v33  ;;  %v709_v52 = vadd.f32 %v1621_v50, %v324_v29  ;;  %v1266_v54 = vpack.c.bf16 %v892_v46, %v892_v46  ;;  %v755_v55 = vld [vmem:[#allocation2 + $0x28] sm:$0xff]  ;;  %725 = vst.msk [vmem:[#allocation2 + $0x50] sm:$0xff] %vm264_vm0, %v692_v39  ;;  %741 = vst.msk [vmem:[#allocation2 + $0xd0] sm:$0xff] %vm264_vm0, %v708_v40 }
 0x10e   : > { %v1282_v34 = vpack.c.bf16 %v908_v47, %v908_v47  ;;  %v771_v35 = vld [vmem:[#allocation2 + $0xa8] sm:$0xff]  ;;  %723 = vst.msk [vmem:[#allocation2 + $0x40] sm:$0xff] %vm264_vm0, %v690_v41  ;;  %739 = vst.msk [vmem:[#allocation2 + $0xc0] sm:$0xff] %vm264_vm0, %v706_v42  ;;  %v691_v49 = vadd.f32 %v1633_v59, %v306_v30  ;;  %v707_v50 = vadd.f32 %v1635_v60, %v322_v36 }
 0x10f   : > { %v794_v56 = vadd.f32 %v1582_v51, %v755_v55  ;;  %v810_v57 = vadd.f32 %v1582_v51, %v771_v35  ;;  %726 = vst.msk [vmem:[#allocation2 + $0x58] sm:$0xff] %vm264_vm0, %v693_v48  ;;  %742 = vst.msk [vmem:[#allocation2 + $0xd8] sm:$0xff] %vm264_vm0, %v709_v52  ;;  %v696_v58 = vadd.f32 %v1640_v6, %v311_v43 }
 0x110   : > { %v712_v61 = vadd.f32 %v1642_v7, %v327_v44  ;;  %1053 = vst.msk [vmem:[%s1599_s17 + $0x1c] sm:$0xf] %vm1045_vm1, %v1266_v54  ;;  %1069 = vst.msk [vmem:[%s1599_s17 + $0x5c] sm:$0xf] %vm1045_vm1, %v1282_v34  ;;  %v694_v59 = vadd.f32 %v1651_v14, %v309_v45  ;;  %v710_v60 = vadd.f32 %v1653_v15, %v325_v27 }
 0x111   : > { %724 = vst.msk [vmem:[#allocation2 + $0x48] sm:$0xff] %vm264_vm0, %v691_v49  ;;  %740 = vst.msk [vmem:[#allocation2 + $0xc8] sm:$0xff] %vm264_vm0, %v707_v50  ;;  %v697_v2 = vadd.f32 %v1346_v37, %v312_v53  ;;  %v713_v3 = vadd.f32 %v1362_v38, %v328_v28  ;;  %vm826_vm2 = vcmp.ge.f32.partialorder %v794_v56, 0.0  ;;  %v858_v4 = vmul.f32 0.2, %v794_v56 }
 0x112   : > { %vm842_vm3 = vcmp.ge.f32.partialorder %v810_v57, 0.0  ;;  %v874_v5 = vmul.f32 0.2, %v810_v57  ;;  %729 = vst.msk [vmem:[#allocation2 + $0x70] sm:$0xff] %vm264_vm0, %v696_v58  ;;  %745 = vst.msk [vmem:[#allocation2 + $0xf0] sm:$0xff] %vm264_vm0, %v712_v61  ;;  %v695_v6 = vadd.f32 %v606_v63, %v310_v62  ;;  %v711_v7 = vadd.f32 %v670_v1, %v326_v0 }
 0x113   : > { %727 = vst.msk [vmem:[#allocation2 + $0x60] sm:$0xff] %vm264_vm0, %v694_v59  ;;  %743 = vst.msk [vmem:[#allocation2 + $0xe0] sm:$0xff] %vm264_vm0, %v710_v60  ;;  %v890_v8 = vsel %vm826_vm2, %v794_v56, %v858_v4 }
 0x114   : > { %730 = vst.msk [vmem:[#allocation2 + $0x78] sm:$0xff] %vm264_vm0, %v697_v2  ;;  %746 = vst.msk [vmem:[#allocation2 + $0xf8] sm:$0xff] %vm264_vm0, %v713_v3  ;;  %v906_v9 = vsel %vm842_vm3, %v810_v57, %v874_v5  ;;  %v1264_v10 = vpack.c.bf16 %v890_v8, %v890_v8  ;;  %v760_v12 = vld [vmem:[#allocation2 + $0x50] sm:$0xff] }
 0x115   : > { %v1280_v11 = vpack.c.bf16 %v906_v9, %v906_v9  ;;  %728 = vst.msk [vmem:[#allocation2 + $0x68] sm:$0xff] %vm264_vm0, %v695_v6  ;;  %744 = vst.msk [vmem:[#allocation2 + $0xe8] sm:$0xff] %vm264_vm0, %v711_v7  ;;  %v776_v13 = vld [vmem:[#allocation2 + $0xd0] sm:$0xff]  ;;  %v758_v14 = vld [vmem:[#allocation2 + $0x40] sm:$0xff]  ;;  %v799_v15 = vadd.f32 %v1582_v51, %v760_v12 }
 0x116   : > { %1051 = vst.msk [vmem:[%s1599_s17 + $0x14] sm:$0xf] %vm1045_vm1, %v1264_v10  ;;  %v815_v16 = vadd.f32 %v1582_v51, %v776_v13  ;;  %v797_v17 = vadd.f32 %v1582_v51, %v758_v14  ;;  %v774_v18 = vld [vmem:[#allocation2 + $0xc0] sm:$0xff]  ;;  %v761_v19 = vld [vmem:[#allocation2 + $0x58] sm:$0xff] }
 0x117   : > { %1067 = vst.msk [vmem:[%s1599_s17 + $0x54] sm:$0xf] %vm1045_vm1, %v1280_v11  ;;  %v777_v20 = vld [vmem:[#allocation2 + $0xd8] sm:$0xff]  ;;  %v813_v21 = vadd.f32 %v1582_v51, %v774_v18  ;;  %v800_v22 = vadd.f32 %v1582_v51, %v761_v19  ;;  %vm831_vm0 = vcmp.ge.f32.partialorder %v799_v15, 0.0  ;;  %v863_v24 = vmul.f32 0.2, %v799_v15 }
 0x118   : > { %v816_v23 = vadd.f32 %v1582_v51, %v777_v20  ;;  %vm847_vm4 = vcmp.ge.f32.partialorder %v815_v16, 0.0  ;;  %v879_v25 = vmul.f32 0.2, %v815_v16  ;;  %vm829_vm5 = vcmp.ge.f32.partialorder %v797_v17, 0.0  ;;  %v759_v33 = vld [vmem:[#allocation2 + $0x48] sm:$0xff] }
 0x119   : > { %v861_v26 = vmul.f32 0.2, %v797_v17  ;;  %vm845_vm6 = vcmp.ge.f32.partialorder %v813_v21, 0.0  ;;  %v877_v29 = vmul.f32 0.2, %v813_v21  ;;  %v895_v30 = vsel %vm831_vm0, %v799_v15, %v863_v24  ;;  %v775_v36 = vld [vmem:[#allocation2 + $0xc8] sm:$0xff] }
 0x11a   : > { %v911_v31 = vsel %vm847_vm4, %v815_v16, %v879_v25  ;;  %vm832_vm7 = vcmp.ge.f32.partialorder %v800_v22, 0.0  ;;  %v864_v32 = vmul.f32 0.2, %v800_v22  ;;  %v764_v37 = vld [vmem:[#allocation2 + $0x70] sm:$0xff]  ;;  %v1269_v38 = vpack.c.bf16 %v895_v30, %v895_v30  ;;  %v762_v43 = vld [vmem:[#allocation2 + $0x60] sm:$0xff] }
 0x11b   : > { %v1285_v39 = vpack.c.bf16 %v911_v31, %v911_v31  ;;  %v893_v40 = vsel %vm829_vm5, %v797_v17, %v861_v26  ;;  %v909_v41 = vsel %vm845_vm6, %v813_v21, %v877_v29  ;;  %v780_v42 = vld [vmem:[#allocation2 + $0xf0] sm:$0xff]  ;;  %v778_v44 = vld [vmem:[#allocation2 + $0xe0] sm:$0xff]  ;;  %vm848_vm8 = vcmp.ge.f32.partialorder %v816_v23, 0.0  ;;  %v765_v62 = vld [vmem:[#allocation2 + $0x78] sm:$0xff] }
 0x11c   : > { %v1267_v45 = vpack.c.bf16 %v893_v40, %v893_v40  ;;  %v1283_v46 = vpack.c.bf16 %v909_v41, %v909_v41  ;;  %v896_v47 = vsel %vm832_vm7, %v800_v22, %v864_v32  ;;  %1056 = vst.msk [vmem:[%s1599_s17 + $0x28] sm:$0xf] %vm1045_vm1, %v1269_v38  ;;  %v880_v52 = vmul.f32 0.2, %v816_v23  ;;  %v781_v60 = vld [vmem:[#allocation2 + $0xf8] sm:$0xff]  ;;  %v763_v2 = vld [vmem:[#allocation2 + $0x68] sm:$0xff] }
 0x11d   : > { %1072 = vst.msk [vmem:[%s1599_s17 + $0x68] sm:$0xf] %vm1045_vm1, %v1285_v39  ;;  %v1270_v48 = vpack.c.bf16 %v896_v47, %v896_v47  ;;  %v798_v27 = vadd.f32 %v1582_v51, %v759_v33  ;;  %v814_v53 = vadd.f32 %v1582_v51, %v775_v36  ;;  %v803_v28 = vadd.f32 %v1582_v51, %v764_v37  ;;  %v779_v3 = vld [vmem:[#allocation2 + $0xe8] sm:$0xff] }
 0x11e   : > { %1054 = vst.msk [vmem:[%s1599_s17 + $0x20] sm:$0xf] %vm1045_vm1, %v1267_v45  ;;  %1070 = vst.msk [vmem:[%s1599_s17 + $0x60] sm:$0xf] %vm1045_vm1, %v1283_v46  ;;  %v819_v54 = vadd.f32 %v1582_v51, %v780_v42  ;;  %v801_v34 = vadd.f32 %v1582_v51, %v762_v43  ;;  %v817_v55 = vadd.f32 %v1582_v51, %v778_v44 }
 0x11f   : > { %1057 = vst.msk [vmem:[%s1599_s17 + $0x2c] sm:$0xf] %vm1045_vm1, %v1270_v48  ;;  %v912_v35 = vsel %vm848_vm8, %v816_v23, %v880_v52  ;;  %vm830_vm9 = vcmp.ge.f32.partialorder %v798_v27, 0.0  ;;  %v862_v49 = vmul.f32 0.2, %v798_v27  ;;  %vm846_vm10 = vcmp.ge.f32.partialorder %v814_v53, 0.0 }
 0x120   : > { %v1286_v50 = vpack.c.bf16 %v912_v35, %v912_v35  ;;  %v878_v56 = vmul.f32 0.2, %v814_v53  ;;  %vm835_vm11 = vcmp.ge.f32.partialorder %v803_v28, 0.0  ;;  %v867_v57 = vmul.f32 0.2, %v803_v28 }
 0x121   : > { %v894_v58 = vsel %vm830_vm9, %v798_v27, %v862_v49  ;;  %vm851_vm12 = vcmp.ge.f32.partialorder %v819_v54, 0.0  ;;  %v883_v61 = vmul.f32 0.2, %v819_v54  ;;  %vm833_vm13 = vcmp.ge.f32.partialorder %v801_v34, 0.0 }
 0x122   : > { %1073 = vst.msk [vmem:[%s1599_s17 + $0x6c] sm:$0xf] %vm1045_vm1, %v1286_v50  ;;  %v1268_v63 = vpack.c.bf16 %v894_v58, %v894_v58  ;;  %v910_v0 = vsel %vm846_vm10, %v814_v53, %v878_v56  ;;  %v899_v1 = vsel %vm835_vm11, %v803_v28, %v867_v57  ;;  %v865_v59 = vmul.f32 0.2, %v801_v34 }
 0x123   : > { %v1284_v4 = vpack.c.bf16 %v910_v0, %v910_v0  ;;  %v1273_v5 = vpack.c.bf16 %v899_v1, %v899_v1  ;;  %v915_v6 = vsel %vm851_vm12, %v819_v54, %v883_v61  ;;  %vm849_vm14 = vcmp.ge.f32.partialorder %v817_v55, 0.0 }
 0x124   : > { %1055 = vst.msk [vmem:[%s1599_s17 + $0x24] sm:$0xf] %vm1045_vm1, %v1268_v63  ;;  %v1289_v7 = vpack.c.bf16 %v915_v6, %v915_v6  ;;  %v897_v8 = vsel %vm833_vm13, %v801_v34, %v865_v59  ;;  %v881_v9 = vmul.f32 0.2, %v817_v55  ;;  %v804_v10 = vadd.f32 %v1582_v51, %v765_v62 }
 0x125   : > { %1071 = vst.msk [vmem:[%s1599_s17 + $0x64] sm:$0xf] %vm1045_vm1, %v1284_v4  ;;  %1060 = vst.msk [vmem:[%s1599_s17 + $0x38] sm:$0xf] %vm1045_vm1, %v1273_v5  ;;  %v1271_v11 = vpack.c.bf16 %v897_v8, %v897_v8  ;;  %v820_v12 = vadd.f32 %v1582_v51, %v781_v60  ;;  %v802_v13 = vadd.f32 %v1582_v51, %v763_v2 }
 0x126   : > { %v818_v14 = vadd.f32 %v1582_v51, %v779_v3  ;;  %1076 = vst.msk [vmem:[%s1599_s17 + $0x78] sm:$0xf] %vm1045_vm1, %v1289_v7  ;;  %v913_v15 = vsel %vm849_vm14, %v817_v55, %v881_v9  ;;  %vm836_vm15 = vcmp.ge.f32.partialorder %v804_v10, 0.0  ;;  %v868_v16 = vmul.f32 0.2, %v804_v10 }
 0x127   : > { %1058 = vst.msk [vmem:[%s1599_s17 + $0x30] sm:$0xf] %vm1045_vm1, %v1271_v11  ;;  %v1287_v17 = vpack.c.bf16 %v913_v15, %v913_v15  ;;  %vm852_vm2 = vcmp.ge.f32.partialorder %v820_v12, 0.0  ;;  %v884_v18 = vmul.f32 0.2, %v820_v12  ;;  %vm834_vm3 = vcmp.ge.f32.partialorder %v802_v13, 0.0 }
 0x128   : > { %v900_v19 = vsel %vm836_vm15, %v804_v10, %v868_v16  ;;  %v866_v20 = vmul.f32 0.2, %v802_v13  ;;  %vm850_vm0 = vcmp.ge.f32.partialorder %v818_v14, 0.0  ;;  %v882_v21 = vmul.f32 0.2, %v818_v14 }
 0x129   : > { %1074 = vst.msk [vmem:[%s1599_s17 + $0x70] sm:$0xf] %vm1045_vm1, %v1287_v17  ;;  %v1274_v51 = vpack.c.bf16 %v900_v19, %v900_v19  ;;  %v916_v22 = vsel %vm852_vm2, %v820_v12, %v884_v18 }
 0x12a   : > { %v1290_v23 = vpack.c.bf16 %v916_v22, %v916_v22  ;;  %v898_v24 = vsel %vm834_vm3, %v802_v13, %v866_v20  ;;  %v914_v25 = vsel %vm850_vm0, %v818_v14, %v882_v21 }
 0x12b   : > { %1061 = vst.msk [vmem:[%s1599_s17 + $0x3c] sm:$0xf] %vm1045_vm1, %v1274_v51  ;;  %v1272_v26 = vpack.c.bf16 %v898_v24, %v898_v24  ;;  %v1288_v29 = vpack.c.bf16 %v914_v25, %v914_v25 }
 0x12c   : > { %1077 = vst.msk [vmem:[%s1599_s17 + $0x7c] sm:$0xf] %vm1045_vm1, %v1290_v23 }
 0x12d   : > { %1059 = vst.msk [vmem:[%s1599_s17 + $0x34] sm:$0xf] %vm1045_vm1, %v1272_v26  ;;  %1075 = vst.msk [vmem:[%s1599_s17 + $0x74] sm:$0xf] %vm1045_vm1, %v1288_v29 }
 0x12e PF: > { %s13_s14 = sadd.s32 1, %s1450_s14   ;;  %s1767_s12 = smov %s1446_s13 }
 0x12f   : > { %p10_p5 = scmp.ge.s32.totalorder %s13_s14, 4   ;;  %s1768_s13 = smov %s1770_s15 }
 0x131   :  { %12 = sbr.rel (!%p10_p5) target bundleno = 2 (0x2), region = 76 }

// kernel: _lambda_.9
= control target key start
LH: loop header
LB: loop body
LE: loop exit
PB: predicated region body
PF: predicated region fallthrough
CT: control target
= control target key end

     0   :  { %s2019_s15 = smov 0   ;;  %s2021_s16 = smov 0   ;;  %s2329_s0 = inlined_call_operand.vmem [shape: bf16[128,1024], index: 0, kind: input, shape index: {}]   ;;  %s2330_s1 = inlined_call_operand.vmem [shape: bf16[1024,128], index: 1, kind: input, shape index: {}]   ;;  %s2331_s2 = inlined_call_operand.vmem [shape: bf16[128,128], index: 2, kind: output, shape index: {0}]   ;;  %s2332_s3 = inlined_call_operand.vmem [shape: f32[2,1,128], index: 3, kind: output, shape index: {1}]   ;;  %s2333_s4 = inlined_call_operand.vmem [shape: f32[2,1,128], index: 4, kind: output, shape index: {2}]  }
   0x1   :  { %s2023_s17 = smov 0  }
   0x2 LB: > { %s34_s18 = sadd.s32 1, %s1988_s16  ;;  %p1578_p0 = scmp.ge.s32.totalorder %s1992_s17, 1  ;;  %s1992_s17 = sphi %s2023_s17, %s15_s17   ;;  %s1988_s16 = sphi %s2021_s16, %s2335_s16   ;;  %s1984_s15 = sphi %s2019_s15, %s2334_s15  }
   0x3   : > { %p36_p1 = scmp.ge.s32.totalorder %s34_s18, 2  ;;  %p217_p2 = scmp.lt.s32.totalorder %s1992_s17, 3 }
   0x5   : > { %s2337_s18 = smov (%p36_p1, %s34_s18), 0  ;;  %p218_p3 = pnand %p1578_p0, %p217_p2 }
   0x6   : > { %s1579_s29 = sshll.u32 (!%p218_p3), %s1984_s15, 3  ;;  %p301_p5 = scmp.lt.s32.totalorder (!%p218_p3), %s1984_s15, 1 }
   0x7   : > { %221 = sbr.rel (%p218_p3) target bundleno = 324 (0x144), region = 28  ;;  %p273_p4 = scmp.lt.s32.totalorder (!%p218_p3), %s1579_s29, 15 }
   0xc   : > { %v1906_v0 = vld [vmem:[%s2330_s1 + $0x78] sm:$0xff]   ;;  %v1910_v4 = vld [vmem:[%s2330_s1 + $0x70] sm:$0xff]   ;;  %v1914_v8 = vld [vmem:[%s2330_s1 + $0x68] sm:$0xff]   ;;  %s2339_s29 = smov (!%p273_p4, %s1579_s29), 15  ;;  %s2341_s15 = smov (!%p301_p5, %s1984_s15), 1 }
   0xd   : > { %v1907_v1 = vld [vmem:[%s2330_s1 + $0xf8] sm:$0xff]   ;;  %1722 = vmatprep.subr.bf16.mxu0 %v1906_v0  ;;  %v1911_v5 = vld [vmem:[%s2330_s1 + $0xf0] sm:$0xff]   ;;  %v1915_v9 = vld [vmem:[%s2330_s1 + $0xe8] sm:$0xff]   ;;  %s1690_s5 = sshll.u32 %s2339_s29, 5  ;;  %s306_s6 = scalar_lea.vmem %s2332_s3, %s2341_s15 }
   0xe   : > { %v1908_v2 = vld [vmem:[%s2330_s1 + $0x38] sm:$0xff]   ;;  %1762 = vmatprep.subr.bf16.mxu1 %v1907_v1  ;;  %v1912_v6 = vld [vmem:[%s2330_s1 + $0x30] sm:$0xff]   ;;  %v1916_v10 = vld [vmem:[%s2330_s1 + $0x28] sm:$0xff]   ;;  %s2136_s14 = scalar_lea.vmem %s2329_s0, %s1690_s5  ;;  %s312_s9 = scalar_lea.vmem %s2333_s4, %s2341_s15 }
   0xf   : > { %v1909_v3 = vld [vmem:[%s2330_s1 + $0xb8] sm:$0xff]   ;;  %1723 = vmatpush3.bf16.msra.mxu0 %v1908_v2  ;;  %v1913_v7 = vld [vmem:[%s2330_s1 + $0xb0] sm:$0xff]   ;;  %v1917_v11 = vld [vmem:[%s2330_s1 + $0xa8] sm:$0xff]  }
  0x10   : > { %1763 = vmatpush3.bf16.msra.mxu1 %v1909_v3  ;;  %1724 = vmatprep.subr.bf16.mxu0 %v1910_v4  ;;  %v1918_v12 = vld [vmem:[%s2330_s1 + $0x60] sm:$0xff]   ;;  %v1922_v16 = vld [vmem:[%s2330_s1 + $0x58] sm:$0xff]   ;;  %v1926_v20 = vld [vmem:[%s2330_s1 + $0x50] sm:$0xff]  }
  0x11   : > { %1764 = vmatprep.subr.bf16.mxu1 %v1911_v5  ;;  %v1919_v13 = vld [vmem:[%s2330_s1 + $0xe0] sm:$0xff]   ;;  %v1923_v17 = vld [vmem:[%s2330_s1 + $0xd8] sm:$0xff]   ;;  %v1927_v21 = vld [vmem:[%s2330_s1 + $0xd0] sm:$0xff]  }
  0x12   : > { %v1920_v14 = vld [vmem:[%s2330_s1 + $0x20] sm:$0xff]   ;;  %v1924_v18 = vld [vmem:[%s2330_s1 + $0x18] sm:$0xff]   ;;  %v1928_v22 = vld [vmem:[%s2330_s1 + $0x10] sm:$0xff]  }
  0x13   : > { %1725 = vmatpush3.bf16.msra.mxu0 %v1912_v6  ;;  %v1921_v15 = vld [vmem:[%s2330_s1 + $0xa0] sm:$0xff]   ;;  %v1925_v19 = vld [vmem:[%s2330_s1 + $0x98] sm:$0xff]   ;;  %v1929_v23 = vld [vmem:[%s2330_s1 + $0x90] sm:$0xff]  }
  0x14   : > { %1765 = vmatpush3.bf16.msra.mxu1 %v1913_v7  ;;  %1726 = vmatprep.subr.bf16.mxu0 %v1914_v8  ;;  %v1930_v24 = vld [vmem:[%s2330_s1 + $0x48] sm:$0xff]   ;;  %v1934_v28 = vld [vmem:[%s2330_s1 + $0x40] sm:$0xff]   ;;  %v1938_v40 = vld [vmem:[%s2330_s1 + $0x178] sm:$0xff]  }
  0x15   : > { %1766 = vmatprep.subr.bf16.mxu1 %v1915_v9  ;;  %v1931_v25 = vld [vmem:[%s2330_s1 + $0xc8] sm:$0xff]   ;;  %v1935_v29 = vld [vmem:[%s2330_s1 + $0xc0] sm:$0xff]   ;;  %v1939_v41 = vld [vmem:[%s2330_s1 + $0x1f8] sm:$0xff]  }
  0x16   : > { %v1932_v26 = vld [vmem:[%s2330_s1 + $0x8] sm:$0xff]   ;;  %v1936_v30 = vld [vmem:[%s2330_s1] sm:$0xff]   ;;  %v1940_v42 = vld [vmem:[%s2330_s1 + $0x138] sm:$0xff]  }
  0x17   : > { %1727 = vmatpush3.bf16.msra.mxu0 %v1916_v10  ;;  %v1933_v27 = vld [vmem:[%s2330_s1 + $0x88] sm:$0xff]   ;;  %v1937_v31 = vld [vmem:[%s2330_s1 + $0x80] sm:$0xff]   ;;  %v1941_v43 = vld [vmem:[%s2330_s1 + $0x1b8] sm:$0xff]  }
  0x18   : > { %1767 = vmatpush3.bf16.msra.mxu1 %v1917_v11  ;;  %1728 = vmatprep.subr.bf16.mxu0 %v1918_v12  ;;  %v334_v32 = vld [vmem:[%s2136_s14] sm:$0xff]  ;;  %v335_v34 = vld [vmem:[%s2136_s14 + $0x8] sm:$0xff]  ;;  %v1942_v44 = vld [vmem:[%s2330_s1 + $0x170] sm:$0xff]  }
  0x19   : > { %1768 = vmatprep.subr.bf16.mxu1 %v1919_v13  ;;  %v338_v33 = vld [vmem:[%s2136_s14 + $0x20] sm:$0xff]  ;;  %v339_v37 = vld [vmem:[%s2136_s14 + $0x28] sm:$0xff]  ;;  %v1943_v45 = vld [vmem:[%s2330_s1 + $0x1f0] sm:$0xff]  }
  0x1a   : > { %v1584_v35 = vcombine.low %v334_v32, %v338_v33  ;;  %v1585_v36 = vcombine.high %v334_v32, %v338_v33  ;;  %v1586_v38 = vcombine.low %v335_v34, %v339_v37  ;;  %v1587_v39 = vcombine.high %v335_v34, %v339_v37  ;;  %v1944_v46 = vld [vmem:[%s2330_s1 + $0x130] sm:$0xff]   ;;  %v342_v48 = vld [vmem:[%s2136_s14 + $0x40] sm:$0xff]  ;;  %v343_v51 = vld [vmem:[%s2136_s14 + $0x48] sm:$0xff] }
  0x1b   : > { %1729 = vmatpush3.bf16.msra.mxu0 %v1920_v14  ;;  %v1945_v47 = vld [vmem:[%s2330_s1 + $0x1b0] sm:$0xff]   ;;  %v346_v49 = vld [vmem:[%s2136_s14 + $0x60] sm:$0xff]  ;;  %v347_v52 = vld [vmem:[%s2136_s14 + $0x68] sm:$0xff] }
  0x1c   : > { %1769 = vmatpush3.bf16.msra.mxu1 %v1921_v15  ;;  %1730 = vmatprep.subr.bf16.mxu0 %v1922_v16  ;;  %v1593_v50 = vcombine.high %v342_v48, %v346_v49  ;;  %v1592_v53 = vcombine.low %v342_v48, %v346_v49  ;;  %v1595_v54 = vcombine.high %v343_v51, %v347_v52  ;;  %v1946_v56 = vld [vmem:[%s2330_s1 + $0x168] sm:$0xff]   ;;  %v1950_v60 = vld [vmem:[%s2330_s1 + $0x160] sm:$0xff]   ;;  %v1954_v8 = vld [vmem:[%s2330_s1 + $0x158] sm:$0xff]  }
  0x1d   : > { %1770 = vmatprep.subr.bf16.mxu1 %v1923_v17  ;;  %1070 = vmatprep.mubr.bf16.mxu0 %v1585_v36  ;;  %v1594_v55 = vcombine.low %v343_v51, %v347_v52  ;;  %v1947_v57 = vld [vmem:[%s2330_s1 + $0x1e8] sm:$0xff]   ;;  %v1951_v61 = vld [vmem:[%s2330_s1 + $0x1e0] sm:$0xff]   ;;  %v1955_v9 = vld [vmem:[%s2330_s1 + $0x1d8] sm:$0xff]  }
  0x1e   : > { %1135 = vmatprep.mubr.bf16.mxu1 %v1587_v39  ;;  %v1948_v58 = vld [vmem:[%s2330_s1 + $0x128] sm:$0xff]   ;;  %v1952_v62 = vld [vmem:[%s2330_s1 + $0x120] sm:$0xff]   ;;  %v1956_v10 = vld [vmem:[%s2330_s1 + $0x118] sm:$0xff]  }
  0x1f   : > { %1731 = vmatpush3.bf16.msra.mxu0 %v1924_v18  ;;  %v1949_v59 = vld [vmem:[%s2330_s1 + $0x1a8] sm:$0xff]   ;;  %v1953_v63 = vld [vmem:[%s2330_s1 + $0x1a0] sm:$0xff]   ;;  %v1957_v11 = vld [vmem:[%s2330_s1 + $0x198] sm:$0xff]  }
  0x20   : > { %1771 = vmatpush3.bf16.msra.mxu1 %v1925_v19  ;;  %1732 = vmatprep.subr.bf16.mxu0 %v1926_v20  ;;  %v350_v0 = vld [vmem:[%s2136_s14 + $0x80] sm:$0xff]  ;;  %v351_v2 = vld [vmem:[%s2136_s14 + $0x88] sm:$0xff]  ;;  %v1958_v12 = vld [vmem:[%s2330_s1 + $0x150] sm:$0xff]  }
  0x21   : > { %1772 = vmatprep.subr.bf16.mxu1 %v1927_v21  ;;  %v354_v1 = vld [vmem:[%s2136_s14 + $0xa0] sm:$0xff]  ;;  %v355_v3 = vld [vmem:[%s2136_s14 + $0xa8] sm:$0xff]  ;;  %v1959_v13 = vld [vmem:[%s2330_s1 + $0x1d0] sm:$0xff]  }
  0x22   : > { %v1601_v4 = vcombine.high %v350_v0, %v354_v1  ;;  %v1603_v5 = vcombine.high %v351_v2, %v355_v3  ;;  %v1600_v6 = vcombine.low %v350_v0, %v354_v1  ;;  %v1602_v7 = vcombine.low %v351_v2, %v355_v3  ;;  %v1960_v14 = vld [vmem:[%s2330_s1 + $0x110] sm:$0xff]   ;;  %v358_v16 = vld [vmem:[%s2136_s14 + $0xc0] sm:$0xff]  ;;  %v359_v18 = vld [vmem:[%s2136_s14 + $0xc8] sm:$0xff] }
  0x23   : > { %1733 = vmatpush3.bf16.msra.mxu0 %v1928_v22  ;;  %v1961_v15 = vld [vmem:[%s2330_s1 + $0x190] sm:$0xff]   ;;  %v362_v17 = vld [vmem:[%s2136_s14 + $0xe0] sm:$0xff]  ;;  %v363_v20 = vld [vmem:[%s2136_s14 + $0xe8] sm:$0xff] }
  0x24   : > { %1773 = vmatpush3.bf16.msra.mxu1 %v1929_v23  ;;  %1734 = vmatprep.subr.bf16.mxu0 %v1930_v24  ;;  %v1609_v19 = vcombine.high %v358_v16, %v362_v17  ;;  %v1608_v21 = vcombine.low %v358_v16, %v362_v17  ;;  %v1611_v22 = vcombine.high %v359_v18, %v363_v20  ;;  %v1962_v24 = vld [vmem:[%s2330_s1 + $0x148] sm:$0xff]   ;;  %v336_v32 = vld [vmem:[%s2136_s14 + $0x10] sm:$0xff]  ;;  %v337_v36 = vld [vmem:[%s2136_s14 + $0x18] sm:$0xff] }
  0x25   : > { %1774 = vmatprep.subr.bf16.mxu1 %v1931_v25  ;;  %v1610_v23 = vcombine.low %v359_v18, %v363_v20  ;;  %v1963_v25 = vld [vmem:[%s2330_s1 + $0x1c8] sm:$0xff]   ;;  %v340_v33 = vld [vmem:[%s2136_s14 + $0x30] sm:$0xff]  ;;  %v341_v37 = vld [vmem:[%s2136_s14 + $0x38] sm:$0xff] }
  0x26   : > { %v1588_v34 = vcombine.low %v336_v32, %v340_v33  ;;  %v1590_v39 = vcombine.low %v337_v36, %v341_v37  ;;  %v353_v48 = vld [vmem:[%s2136_s14 + $0x98] sm:$0xff] }
  0x27   : > { %1735 = vmatpush3.bf16.msra.mxu0 %v1932_v26  ;;  %v1964_v26 = vld [vmem:[%s2330_s1 + $0x108] sm:$0xff]   ;;  %v357_v49 = vld [vmem:[%s2136_s14 + $0xb8] sm:$0xff] }
  0x28   : > { %1775 = vmatpush3.bf16.msra.mxu1 %v1933_v27  ;;  %1736 = vmatprep.subr.bf16.mxu0 %v1934_v28  ;;  %v1965_v27 = vld [vmem:[%s2330_s1 + $0x188] sm:$0xff]   ;;  %v1966_v28 = vld [vmem:[%s2330_s1 + $0x140] sm:$0xff]  }
  0x29   : > { %1776 = vmatprep.subr.bf16.mxu1 %v1935_v29  ;;  %v1967_v29 = vld [vmem:[%s2330_s1 + $0x1c0] sm:$0xff]  }
  0x2b   : > { %1737 = vmatpush3.bf16.msra.mxu0 %v1936_v30  ;;  %v1968_v30 = vld [vmem:[%s2330_s1 + $0x100] sm:$0xff]  }
  0x2c   : > { %1777 = vmatpush3.bf16.msra.mxu1 %v1937_v31  ;;  %1802 = vmatprep.subr.bf16.mxu0 %v1938_v40  ;;  %v1969_v31 = vld [vmem:[%s2330_s1 + $0x180] sm:$0xff]   ;;  %v1591_v40 = vcombine.high %v337_v36, %v341_v37 }
  0x2d   : > { %1842 = vmatprep.subr.bf16.mxu1 %v1939_v41  ;;  %v348_v41 = vld [vmem:[%s2136_s14 + $0x70] sm:$0xff] }
  0x2e   : > { %1071 = vmatmul.mubr.bf16.vlgmr.msra.gmra.mxu0 %v1584_v35  ;;  %v1589_v35 = vcombine.high %v336_v32, %v340_v33 }
  0x2f   : > { %1136 = vmatmul.mubr.bf16.vlgmr.msra.gmra.mxu1 %v1586_v38  ;;  %1803 = vmatpush3.bf16.msra.mxu0 %v1940_v42  ;;  %v344_v38 = vld [vmem:[%s2136_s14 + $0x50] sm:$0xff]  ;;  %v345_v42 = vld [vmem:[%s2136_s14 + $0x58] sm:$0xff] }
  0x30   : > { %1843 = vmatpush3.bf16.msra.mxu1 %v1941_v43  ;;  %1804 = vmatprep.subr.bf16.mxu0 %v1942_v44  ;;  %v349_v43 = vld [vmem:[%s2136_s14 + $0x78] sm:$0xff]  ;;  %v1597_v44 = vcombine.high %v344_v38, %v348_v41 }
  0x31   : > { %1844 = vmatprep.subr.bf16.mxu1 %v1943_v45  ;;  %1078 = vmatprep.mubr.bf16.mxu0 %v1593_v50  ;;  %v1599_v45 = vcombine.high %v345_v42, %v349_v43  ;;  %v1596_v50 = vcombine.low %v344_v38, %v348_v41  ;;  %v1598_v51 = vcombine.low %v345_v42, %v349_v43 }
  0x32   : > { %1143 = vmatprep.mubr.bf16.mxu1 %v1595_v54  ;;  %v360_v54 = vld [vmem:[%s2136_s14 + $0xd0] sm:$0xff] }
  0x33   : > { %1805 = vmatpush3.bf16.msra.mxu0 %v1944_v46  ;;  %v352_v46 = vld [vmem:[%s2136_s14 + $0x90] sm:$0xff] }
  0x34   : > { %1845 = vmatpush3.bf16.msra.mxu1 %v1945_v47  ;;  %1806 = vmatprep.subr.bf16.mxu0 %v1946_v56  ;;  %v356_v47 = vld [vmem:[%s2136_s14 + $0xb0] sm:$0xff]  ;;  %v361_v56 = vld [vmem:[%s2136_s14 + $0xd8] sm:$0xff] }
  0x35   : > { %1846 = vmatprep.subr.bf16.mxu1 %v1947_v57  ;;  %v1605_v52 = vcombine.high %v352_v46, %v356_v47  ;;  %v365_v57 = vld [vmem:[%s2136_s14 + $0xf8] sm:$0xff] }
  0x36   : > { %1079 = vmatmul.mubr.bf16.gmra.mxu0 %v1592_v53  ;;  %v1607_v53 = vcombine.high %v353_v48, %v357_v49 }
  0x37   : > { %1144 = vmatmul.mubr.bf16.gmra.mxu1 %v1594_v55  ;;  %1807 = vmatpush3.bf16.msra.mxu0 %v1948_v58  ;;  %v364_v55 = vld [vmem:[%s2136_s14 + $0xf0] sm:$0xff]  ;;  %v1604_v58 = vcombine.low %v352_v46, %v356_v47  ;;  %s1583_s14 = sshll.u32 %s2339_s29, 2 }
  0x38   : > { %1847 = vmatpush3.bf16.msra.mxu1 %v1949_v59  ;;  %1808 = vmatprep.subr.bf16.mxu0 %v1950_v60  ;;  %v1606_v59 = vcombine.low %v353_v48, %v357_v49  ;;  %v1613_v60 = vcombine.high %v360_v54, %v364_v55  ;;  %s2296_s30 = scalar_lea.vmem %s2331_s2, %s1583_s14 }
  0x39   : > { %1848 = vmatprep.subr.bf16.mxu1 %v1951_v61  ;;  %1086 = vmatprep.mubr.bf16.mxu0 %v1601_v4  ;;  %v1615_v61 = vcombine.high %v361_v56, %v365_v57 }
  0x3a   : > { %1151 = vmatprep.mubr.bf16.mxu1 %v1603_v5 }
  0x3b   : > { %1809 = vmatpush3.bf16.msra.mxu0 %v1952_v62  ;;  %v1612_v62 = vcombine.low %v360_v54, %v364_v55 }
  0x3c   : > { %1849 = vmatpush3.bf16.msra.mxu1 %v1953_v63  ;;  %1810 = vmatprep.subr.bf16.mxu0 %v1954_v8  ;;  %v1614_v63 = vcombine.low %v361_v56, %v365_v57 }
  0x3d   : > { %1850 = vmatprep.subr.bf16.mxu1 %v1955_v9 }
  0x3e   : > { %1087 = vmatmul.mubr.bf16.gmra.mxu0 %v1600_v6 }
  0x3f   : > { %1152 = vmatmul.mubr.bf16.gmra.mxu1 %v1602_v7  ;;  %1811 = vmatpush3.bf16.msra.mxu0 %v1956_v10 }
  0x40   : > { %1851 = vmatpush3.bf16.msra.mxu1 %v1957_v11  ;;  %1812 = vmatprep.subr.bf16.mxu0 %v1958_v12 }
  0x41   : > { %1852 = vmatprep.subr.bf16.mxu1 %v1959_v13  ;;  %1094 = vmatprep.mubr.bf16.mxu0 %v1609_v19 }
  0x42   : > { %1159 = vmatprep.mubr.bf16.mxu1 %v1611_v22 }
  0x43   : > { %1813 = vmatpush3.bf16.msra.mxu0 %v1960_v14 }
  0x44   : > { %1853 = vmatpush3.bf16.msra.mxu1 %v1961_v15  ;;  %1814 = vmatprep.subr.bf16.mxu0 %v1962_v24 }
  0x45   : > { %1854 = vmatprep.subr.bf16.mxu1 %v1963_v25 }
  0x46   : > { %1095 = vmatmul.mubr.bf16.gmra.mxu0 %v1608_v21 }
  0x47   : > { %1160 = vmatmul.mubr.bf16.gmra.mxu1 %v1610_v23  ;;  %1815 = vmatpush3.bf16.msra.mxu0 %v1964_v26 }
  0x48   : > { %1855 = vmatpush3.bf16.msra.mxu1 %v1965_v27  ;;  %1816 = vmatprep.subr.bf16.mxu0 %v1966_v28 }
  0x49   : > { %1856 = vmatprep.subr.bf16.mxu1 %v1967_v29  ;;  %1200 = vmatprep.mubr.bf16.mxu0 %v1589_v35 }
  0x4a   : > { %1265 = vmatprep.mubr.bf16.mxu1 %v1591_v40 }
  0x4b   : > { %1817 = vmatpush3.bf16.msra.mxu0 %v1968_v30 }
  0x4c   : > { %1857 = vmatpush3.bf16.msra.mxu1 %v1969_v31 }
  0x4e   : > { %1201 = vmatmul.mubr.bf16.vlgmr.msra.gmra.mxu0 %v1588_v34 }
  0x4f   : > { %1266 = vmatmul.mubr.bf16.vlgmr.msra.gmra.mxu1 %v1590_v39  ;;  %1208 = vmatprep.mubr.bf16.mxu0 %v1597_v44 }
  0x50   : > { %1273 = vmatprep.mubr.bf16.mxu1 %v1599_v45 }
  0x56   : > { %1209 = vmatmul.mubr.bf16.gmra.mxu0 %v1596_v50 }
  0x57   : > { %1274 = vmatmul.mubr.bf16.gmra.mxu1 %v1598_v51  ;;  %1216 = vmatprep.mubr.bf16.mxu0 %v1605_v52 }
  0x58   : > { %1281 = vmatprep.mubr.bf16.mxu1 %v1607_v53 }
  0x5e   : > { %1217 = vmatmul.mubr.bf16.gmra.mxu0 %v1604_v58 }
  0x5f   : > { %1282 = vmatmul.mubr.bf16.gmra.mxu1 %v1606_v59  ;;  %1224 = vmatprep.mubr.bf16.mxu0 %v1613_v60 }
  0x60   : > { %1289 = vmatprep.mubr.bf16.mxu1 %v1615_v61 }
  0x66   : > { %1225 = vmatmul.mubr.bf16.gmra.mxu0 %v1612_v62 }
  0x67   : > { %1290 = vmatmul.mubr.bf16.gmra.mxu1 %v1614_v63 }
  0xee   : > { %v1738_v0 = vpop.f32.mrf.mxu0 }
  0xef   : > { %v1778_v1 = vpop.f32.mrf.mxu1 }
  0xf0   : > { %v1739_v2 = vpop.f32.mrf.mxu0 }
  0xf1   : > { %v1779_v3 = vpop.f32.mrf.mxu1  ;;  %v1740_v33 = vadd.f32 %v1739_v2, %v1738_v0 }
  0xf2   : > { %v1741_v4 = vpop.f32.mrf.mxu0  ;;  %v1780_v34 = vadd.f32 %v1779_v3, %v1778_v1 }
  0xf3   : > { %v1781_v5 = vpop.f32.mrf.mxu1 }
  0xf4   : > { %v1742_v6 = vpop.f32.mrf.mxu0  ;;  %v1138_v42 = vadd.f32 %v1780_v34, %v1740_v33 }
  0xf5   : > { %v1782_v7 = vpop.f32.mrf.mxu1  ;;  %v1743_v37 = vadd.f32 %v1742_v6, %v1741_v4 }
  0xf6   : > { %v1744_v8 = vpop.f32.mrf.mxu0  ;;  %v1783_v38 = vadd.f32 %v1782_v7, %v1781_v5 }
  0xf7   : > { %v1784_v9 = vpop.f32.mrf.mxu1 }
  0xf8   : > { %v1745_v10 = vpop.f32.mrf.mxu0  ;;  %v1141_v45 = vadd.f32 %v1783_v38, %v1743_v37 }
  0xf9   : > { %v1785_v11 = vpop.f32.mrf.mxu1  ;;  %v1746_v49 = vadd.f32 %v1745_v10, %v1744_v8 }
  0xfa   : > { %v1747_v12 = vpop.f32.mrf.mxu0  ;;  %v1786_v51 = vadd.f32 %v1785_v11, %v1784_v9 }
  0xfb   : > { %v1787_v13 = vpop.f32.mrf.mxu1 }
  0xfc   : > { %v1748_v14 = vpop.f32.mrf.mxu0  ;;  %v1146_v0 = vadd.f32 %v1786_v51, %v1746_v49 }
  0xfd   : > { %v1788_v15 = vpop.f32.mrf.mxu1  ;;  %v1749_v56 = vadd.f32 %v1748_v14, %v1747_v12 }
  0xfe   : > { %v1750_v16 = vpop.f32.mrf.mxu0  ;;  %v1789_v58 = vadd.f32 %v1788_v15, %v1787_v13 }
  0xff   : > { %v1790_v17 = vpop.f32.mrf.mxu1 }
 0x100   : > { %v1751_v18 = vpop.f32.mrf.mxu0  ;;  %v1149_v6 = vadd.f32 %v1789_v58, %v1749_v56 }
 0x101   : > { %v1791_v19 = vpop.f32.mrf.mxu1  ;;  %v1752_v3 = vadd.f32 %v1751_v18, %v1750_v16 }
 0x102   : > { %v2272_v20 = vpop.f32.mrf.mxu0  ;;  %v1792_v4 = vadd.f32 %v1791_v19, %v1790_v17 }
 0x103   : > { %v2274_v21 = vpop.f32.mrf.mxu1 }
 0x104   : > { %v1754_v22 = vpop.f32.mrf.mxu0  ;;  %v1154_v15 = vadd.f32 %v1792_v4, %v1752_v3 }
 0x105   : > { %v1794_v23 = vpop.f32.mrf.mxu1 }
 0x106   : > { %v2276_v24 = vpop.f32.mrf.mxu0  ;;  %v1795_v34 = vadd.f32 %v1794_v23, %v2274_v21 }
 0x107   : > { %v2278_v25 = vpop.f32.mrf.mxu1 }
 0x108   : > { %v2280_v26 = vpop.f32.mrf.mxu0 }
 0x109   : > { %v2282_v27 = vpop.f32.mrf.mxu1 }
 0x10a   : > { %v2284_v28 = vpop.f32.mrf.mxu0 }
 0x10b   : > { %v2286_v29 = vpop.f32.mrf.mxu1 }
 0x10c   : > { %v2288_v30 = vpop.f32.mrf.mxu0 }
 0x10d   : > { %v2290_v31 = vpop.f32.mrf.mxu1  ;;  %v1761_v51 = vadd.f32 %v2288_v30, %v2284_v28 }
 0x10e   : > { %v1818_v32 = vpop.f32.mrf.mxu0 }
 0x10f   : > { %v1858_v35 = vpop.f32.mrf.mxu1 }
 0x110   : > { %v1819_v36 = vpop.f32.mrf.mxu0 }
 0x111   : > { %v1820_v39 = vadd.f32 %v1819_v36, %v1818_v32  ;;  %v1859_v40 = vpop.f32.mrf.mxu1  ;;  %v1755_v32 = vadd.f32 %v1754_v22, %v2272_v20  ;;  %v1798_v20 = vadd.f32 %v2282_v27, %v2278_v25 }
 0x112   : > { %v1821_v41 = vpop.f32.mrf.mxu0  ;;  %v1860_v52 = vadd.f32 %v1859_v40, %v1858_v35 }
 0x113   : > { %v1861_v43 = vpop.f32.mrf.mxu1  ;;  %v1203_v46 = vadd.f32 %v1820_v39, %v1138_v42  ;;  %v1157_v42 = vadd.f32 %v1795_v34, %v1755_v32 }
 0x114   : > { %v1822_v44 = vpop.f32.mrf.mxu0 }
 0x115   : > { %v1823_v47 = vadd.f32 %v1822_v44, %v1821_v41  ;;  %v1862_v48 = vpop.f32.mrf.mxu1  ;;  %v1268_v59 = vadd.f32 %v1860_v52, %v1203_v46 }
 0x116   : > { %v1824_v50 = vpop.f32.mrf.mxu0  ;;  %v1863_v54 = vadd.f32 %v1862_v48, %v1861_v43  ;;  %v1758_v43 = vadd.f32 %v2280_v26, %v2276_v24  ;;  %v1801_v24 = vadd.f32 %v2290_v31, %v2286_v29 }
 0x117   : > { %v1206_v53 = vadd.f32 %v1823_v47, %v1141_v45  ;;  %v1864_v55 = vpop.f32.mrf.mxu1  ;;  %v1379_v23 = vmul.f32 %v1268_v59, %v1268_v59 }
 0x118   : > { %v1825_v57 = vpop.f32.mrf.mxu0  ;;  %v1162_v27 = vadd.f32 %v1798_v20, %v1758_v43  ;;  %v1165_v30 = vadd.f32 %v1801_v24, %v1761_v51 }
 0x119   : > { %v1271_v60 = vadd.f32 %v1863_v54, %v1206_v53  ;;  %v1826_v61 = vadd.f32 %v1825_v57, %v1824_v50  ;;  %v1865_v62 = vpop.f32.mrf.mxu1 }
 0x11a   : > { %v1827_v63 = vpop.f32.mrf.mxu0  ;;  %v1866_v11 = vadd.f32 %v1865_v62, %v1864_v55 }
 0x11b   : > { %v1702_v1 = vpack.c.bf16 %v1271_v60, %v1268_v59  ;;  %v1867_v2 = vpop.f32.mrf.mxu1  ;;  %v1211_v7 = vadd.f32 %v1826_v61, %v1146_v0  ;;  %v1380_v39 = vmul.f32 %v1271_v60, %v1271_v60  ;;  %v1365_v47 = vadd.f32 %v1271_v60, %v1268_v59 }
 0x11c   : > { %v1828_v5 = vpop.f32.mrf.mxu0 }
 0x11d   : > { %1703 = vst [vmem:[%s2296_s30] sm:$0xff] %v1702_v1   ;;  %v1829_v8 = vadd.f32 %v1828_v5, %v1827_v63  ;;  %v1868_v9 = vpop.f32.mrf.mxu1  ;;  %v1276_v16 = vadd.f32 %v1866_v11, %v1211_v7  ;;  %v1387_v26 = vadd.f32 %v1380_v39, %v1379_v23 }
 0x11e   : > { %v1830_v10 = vpop.f32.mrf.mxu0  ;;  %v1869_v13 = vadd.f32 %v1868_v9, %v1867_v2 }
 0x11f   : > { %v1214_v12 = vadd.f32 %v1829_v8, %v1149_v6  ;;  %v1870_v14 = vpop.f32.mrf.mxu1  ;;  %v1381_v44 = vmul.f32 %v1276_v16, %v1276_v16  ;;  %v1366_v53 = vadd.f32 %v1365_v47, %v1276_v16 }
 0x120   : > { %v1831_v33 = vpop.f32.mrf.mxu0 }
 0x121   : > { %v1279_v17 = vadd.f32 %v1869_v13, %v1214_v12  ;;  %v1832_v18 = vadd.f32 %v1831_v33, %v1830_v10  ;;  %v1871_v19 = vpop.f32.mrf.mxu1  ;;  %v1388_v57 = vadd.f32 %v1387_v26, %v1381_v44 }
 0x122   : > { %v1833_v35 = vpop.f32.mrf.mxu0  ;;  %v1872_v40 = vadd.f32 %v1871_v19, %v1870_v14 }
 0x123   : > { %v1707_v36 = vpack.c.bf16 %v1279_v17, %v1276_v16  ;;  %v1219_v37 = vadd.f32 %v1832_v18, %v1154_v15  ;;  %v1873_v38 = vpop.f32.mrf.mxu1  ;;  %v1382_v52 = vmul.f32 %v1279_v17, %v1279_v17  ;;  %v1367_v60 = vadd.f32 %v1366_v53, %v1279_v17 }
 0x124   : > { %v1834_v41 = vpop.f32.mrf.mxu0 }
 0x125   : > { %1719 = vst [vmem:[%s2296_s30 + $0x8] sm:$0xff] %v1707_v36   ;;  %v1835_v21 = vadd.f32 %v1834_v41, %v1833_v35  ;;  %v1874_v22 = vpop.f32.mrf.mxu1  ;;  %v1284_v45 = vadd.f32 %v1872_v40, %v1219_v37  ;;  %v1389_v0 = vadd.f32 %v1388_v57, %v1382_v52 }
 0x126   : > { %v1836_v46 = vpop.f32.mrf.mxu0  ;;  %v1875_v49 = vadd.f32 %v1874_v22, %v1873_v38 }
 0x127   : > { %v1222_v48 = vadd.f32 %v1835_v21, %v1157_v42  ;;  %v1876_v50 = vpop.f32.mrf.mxu1  ;;  %v1383_v58 = vmul.f32 %v1284_v45, %v1284_v45  ;;  %v1368_v31 = vadd.f32 %v1367_v60, %v1284_v45 }
 0x128   : > { %v1837_v25 = vpop.f32.mrf.mxu0 }
 0x129   : > { %v1287_v54 = vadd.f32 %v1875_v49, %v1222_v48  ;;  %v1838_v55 = vadd.f32 %v1837_v25, %v1836_v46  ;;  %v1877_v56 = vpop.f32.mrf.mxu1  ;;  %v1390_v5 = vadd.f32 %v1389_v0, %v1383_v58 }
 0x12a   : > { %v1839_v59 = vpop.f32.mrf.mxu0  ;;  %v1878_v63 = vadd.f32 %v1877_v56, %v1876_v50 }
 0x12b   : > { %v1712_v61 = vpack.c.bf16 %v1287_v54, %v1284_v45  ;;  %v1227_v62 = vadd.f32 %v1838_v55, %v1162_v27  ;;  %v1879_v28 = vpop.f32.mrf.mxu1  ;;  %v1384_v1 = vmul.f32 %v1287_v54, %v1287_v54  ;;  %v1369_v6 = vadd.f32 %v1368_v31, %v1287_v54 }
 0x12c   : > { %v1840_v29 = vpop.f32.mrf.mxu0 }
 0x12d   : > { %1720 = vst [vmem:[%s2296_s30 + $0x10] sm:$0xff] %v1712_v61   ;;  %v1292_v2 = vadd.f32 %v1878_v63, %v1227_v62  ;;  %v1841_v3 = vadd.f32 %v1840_v29, %v1839_v59  ;;  %v1880_v4 = vpop.f32.mrf.mxu1  ;;  %v1391_v10 = vadd.f32 %v1390_v5, %v1384_v1 }
 0x12e   : > { %v1881_v9 = vadd.f32 %v1880_v4, %v1879_v28 }
 0x12f   : > { %v1385_v7 = vmul.f32 %v1292_v2, %v1292_v2  ;;  %v1230_v8 = vadd.f32 %v1841_v3, %v1165_v30  ;;  %v1370_v11 = vadd.f32 %v1369_v6, %v1292_v2 }
 0x131   : > { %v1295_v12 = vadd.f32 %v1881_v9, %v1230_v8  ;;  %v1392_v13 = vadd.f32 %v1391_v10, %v1385_v7 }
 0x133   : > { %v1717_v14 = vpack.c.bf16 %v1295_v12, %v1292_v2  ;;  %v1371_v15 = vadd.f32 %v1370_v11, %v1295_v12  ;;  %v1386_v32 = vmul.f32 %v1295_v12, %v1295_v12 }
 0x135   : > { %1721 = vst [vmem:[%s2296_s30 + $0x18] sm:$0xff] %v1717_v14   ;;  %v1372_v33 = vrot.slane %v1371_v15, 4  ;;  %v1393_v34 = vadd.f32 %v1392_v13, %v1386_v32 }
 0x137   : > { %v1373_v16 = vadd.f32 %v1372_v33, %v1371_v15  ;;  %v1394_v17 = vrot.slane %v1393_v34, 4 }
 0x139   : > { %v1374_v18 = vrot.slane %v1373_v16, 2  ;;  %v1395_v19 = vadd.f32 %v1394_v17, %v1393_v34 }
 0x13b   : > { %v1375_v35 = vadd.f32 %v1374_v18, %v1373_v16  ;;  %v1396_v36 = vrot.slane %v1395_v19, 2 }
 0x13d   : > { %v1376_v37 = vrot.slane %v1375_v35, 1  ;;  %v1397_v38 = vadd.f32 %v1396_v36, %v1395_v19 }
 0x13f   : > { %v1377_v39 = vadd.f32 %v1376_v37, %v1375_v35  ;;  %v1398_v40 = vrot.slane %v1397_v38, 1 }
 0x141   : > { %1378 = vst [vmem:[%s306_s6] sm:$0x1] %v1377_v39  ;;  %v1399_v41 = vadd.f32 %v1398_v40, %v1397_v38 }
 0x143   : > { %1400 = vst [vmem:[%s312_s9] sm:$0x1] %v1399_v41 }
 0x144 PF: > { %s15_s17 = sadd.s32 1, %s1992_s17   ;;  %s2334_s15 = smov %s1988_s16 }
 0x145   : > { %p12_p6 = scmp.ge.s32.totalorder %s15_s17, 4   ;;  %s2335_s16 = smov %s2337_s18 }
 0x147   :  { %14 = sbr.rel (!%p12_p6) target bundleno = 2 (0x2), region = 93 }

// kernel: _lambda_.10
= control target key start
LH: loop header
LB: loop body
LE: loop exit
PB: predicated region body
PF: predicated region fallthrough
CT: control target
= control target key end

     0   :  { %s455_s0 = inlined_call_operand.vmem [shape: bf16[128,128], index: 0, kind: input, shape index: {}]   ;;  %s456_s1 = inlined_call_operand.vmem [shape: f32[1,128], index: 1, kind: input, shape index: {}]   ;;  %s457_s2 = inlined_call_operand.vmem [shape: f32[1,128], index: 2, kind: input, shape index: {}]   ;;  %s458_s3 = inlined_call_operand.vmem [shape: bf16[128,128], index: 3, kind: output, shape index: {}]  }
   0x1   :  { %v259_v0 = vld [vmem:[%s455_s0] sm:$0xff]   ;;  %v330_v4 = vld [vmem:[%s455_s0 + $0x8] sm:$0xff]   ;;  %v331_v5 = vld [vmem:[%s455_s0 + $0x10] sm:$0xff]  }
   0x2   :  { %v370_v1 = vld [vmem:[%s456_s1] ss:$0 sm:$0xff]  ;;  %v260_v2 = vunpack.c.l.bf16 %v259_v0  ;;  %v261_v3 = vunpack.c.h.bf16 %v259_v0  ;;  %v332_v6 = vld [vmem:[%s455_s0 + $0x18] sm:$0xff]   ;;  %v264_v8 = vunpack.c.l.bf16 %v330_v4  ;;  %v265_v9 = vunpack.c.h.bf16 %v330_v4  ;;  %v334_v35 = vld [vmem:[%s455_s0 + $0x28] sm:$0xff]  }
   0x3   :  { %v384_v7 = vld [vmem:[%s457_s2] ss:$0 sm:$0xff]  ;;  %v268_v10 = vunpack.c.l.bf16 %v331_v5  ;;  %v269_v11 = vunpack.c.h.bf16 %v331_v5  ;;  %v272_v14 = vunpack.c.l.bf16 %v332_v6  ;;  %v273_v15 = vunpack.c.h.bf16 %v332_v6  ;;  %v335_v48 = vld [vmem:[%s455_s0 + $0x30] sm:$0xff]   ;;  %v336_v4 = vld [vmem:[%s455_s0 + $0x38] sm:$0xff]  }
   0x4   :  { %v53_v12 = vmul.f32 %v260_v2, %v370_v1  ;;  %v54_v13 = vmul.f32 %v261_v3, %v370_v1  ;;  %v55_v16 = vmul.f32 %v264_v8, %v370_v1  ;;  %v56_v17 = vmul.f32 %v265_v9, %v370_v1  ;;  %v333_v34 = vld [vmem:[%s455_s0 + $0x20] sm:$0xff]  }
   0x5   :  { %v57_v18 = vmul.f32 %v268_v10, %v370_v1  ;;  %v58_v19 = vmul.f32 %v269_v11, %v370_v1  ;;  %v59_v22 = vmul.f32 %v272_v14, %v370_v1  ;;  %v60_v23 = vmul.f32 %v273_v15, %v370_v1 }
   0x6   :  { %v76_v20 = vadd.f32 %v384_v7, %v53_v12  ;;  %v77_v21 = vadd.f32 %v384_v7, %v54_v13  ;;  %v78_v24 = vadd.f32 %v384_v7, %v55_v16  ;;  %v79_v25 = vadd.f32 %v384_v7, %v56_v17 }
   0x7   :  { %v80_v26 = vadd.f32 %v384_v7, %v57_v18  ;;  %v81_v27 = vadd.f32 %v384_v7, %v58_v19  ;;  %v82_v42 = vadd.f32 %v384_v7, %v59_v22  ;;  %v83_v43 = vadd.f32 %v384_v7, %v60_v23 }
   0x8   :  { %vm92_vm0 = vcmp.ge.f32.partialorder %v76_v20, 0.0  ;;  %vm93_vm1 = vcmp.ge.f32.partialorder %v77_v21, 0.0  ;;  %v108_v28 = vmul.f32 0.2, %v76_v20  ;;  %v109_v29 = vmul.f32 0.2, %v77_v21 }
   0x9   :  { %vm94_vm2 = vcmp.ge.f32.partialorder %v78_v24, 0.0  ;;  %vm95_vm3 = vcmp.ge.f32.partialorder %v79_v25, 0.0  ;;  %v110_v30 = vmul.f32 0.2, %v78_v24  ;;  %v111_v31 = vmul.f32 0.2, %v79_v25 }
   0xa   :  { %v124_v32 = vsel %vm92_vm0, %v76_v20, %v108_v28  ;;  %v125_v33 = vsel %vm93_vm1, %v77_v21, %v109_v29  ;;  %vm96_vm4 = vcmp.ge.f32.partialorder %v80_v26, 0.0  ;;  %vm97_vm5 = vcmp.ge.f32.partialorder %v81_v27, 0.0 }
   0xb   :  { %v293_v36 = vpack.c.bf16 %v125_v33, %v124_v32  ;;  %v126_v37 = vsel %vm94_vm2, %v78_v24, %v110_v30  ;;  %v127_v38 = vsel %vm95_vm3, %v79_v25, %v111_v31  ;;  %v112_v39 = vmul.f32 0.2, %v80_v26 }
   0xc   :  { %v298_v40 = vpack.c.bf16 %v127_v38, %v126_v37  ;;  %v113_v41 = vmul.f32 0.2, %v81_v27  ;;  %v276_v45 = vunpack.c.l.bf16 %v333_v34  ;;  %v277_v46 = vunpack.c.h.bf16 %v333_v34 }
   0xd   :  { %294 = vst [vmem:[%s458_s3] sm:$0xff] %v293_v36   ;;  %v128_v44 = vsel %vm96_vm4, %v80_v26, %v112_v39  ;;  %v280_v47 = vunpack.c.l.bf16 %v334_v35  ;;  %vm98_vm6 = vcmp.ge.f32.partialorder %v82_v42, 0.0  ;;  %vm99_vm7 = vcmp.ge.f32.partialorder %v83_v43, 0.0 }
   0xe   :  { %337 = vst [vmem:[%s458_s3 + $0x8] sm:$0xff] %v298_v40   ;;  %v129_v49 = vsel %vm97_vm5, %v81_v27, %v113_v41  ;;  %v114_v50 = vmul.f32 0.2, %v82_v42  ;;  %v115_v52 = vmul.f32 0.2, %v83_v43  ;;  %v61_v53 = vmul.f32 %v276_v45, %v370_v1 }
   0xf   :  { %v303_v51 = vpack.c.bf16 %v129_v49, %v128_v44  ;;  %v62_v54 = vmul.f32 %v277_v46, %v370_v1  ;;  %v281_v56 = vunpack.c.h.bf16 %v334_v35  ;;  %v63_v57 = vmul.f32 %v280_v47, %v370_v1 }
  0x10   :  { %v130_v55 = vsel %vm98_vm6, %v82_v42, %v114_v50  ;;  %v284_v58 = vunpack.c.l.bf16 %v335_v48  ;;  %v131_v59 = vsel %vm99_vm7, %v83_v43, %v115_v52  ;;  %v84_v60 = vadd.f32 %v384_v7, %v61_v53 }
  0x11   :  { %338 = vst [vmem:[%s458_s3 + $0x10] sm:$0xff] %v303_v51   ;;  %v85_v61 = vadd.f32 %v384_v7, %v62_v54  ;;  %v285_v62 = vunpack.c.h.bf16 %v335_v48  ;;  %v308_v63 = vpack.c.bf16 %v131_v59, %v130_v55  ;;  %v64_v0 = vmul.f32 %v281_v56, %v370_v1 }
  0x12   :  { %v86_v2 = vadd.f32 %v384_v7, %v63_v57  ;;  %v65_v3 = vmul.f32 %v284_v58, %v370_v1  ;;  %vm100_vm8 = vcmp.ge.f32.partialorder %v84_v60, 0.0  ;;  %v116_v5 = vmul.f32 0.2, %v84_v60 }
  0x13   :  { %vm101_vm9 = vcmp.ge.f32.partialorder %v85_v61, 0.0  ;;  %v117_v6 = vmul.f32 0.2, %v85_v61  ;;  %339 = vst [vmem:[%s458_s3 + $0x18] sm:$0xff] %v308_v63   ;;  %v87_v8 = vadd.f32 %v384_v7, %v64_v0  ;;  %v66_v10 = vmul.f32 %v285_v62, %v370_v1 }
  0x14   :  { %vm102_vm10 = vcmp.ge.f32.partialorder %v86_v2, 0.0  ;;  %v118_v9 = vmul.f32 0.2, %v86_v2  ;;  %v132_v11 = vsel %vm100_vm8, %v84_v60, %v116_v5  ;;  %v88_v13 = vadd.f32 %v384_v7, %v65_v3 }
  0x15   :  { %v133_v12 = vsel %vm101_vm9, %v85_v61, %v117_v6  ;;  %v288_v14 = vunpack.c.l.bf16 %v336_v4  ;;  %vm103_vm11 = vcmp.ge.f32.partialorder %v87_v8, 0.0  ;;  %v119_v16 = vmul.f32 0.2, %v87_v8 }
  0x16   :  { %v313_v15 = vpack.c.bf16 %v133_v12, %v132_v11  ;;  %v134_v17 = vsel %vm102_vm10, %v86_v2, %v118_v9  ;;  %v89_v18 = vadd.f32 %v384_v7, %v66_v10  ;;  %vm104_vm12 = vcmp.ge.f32.partialorder %v88_v13, 0.0 }
  0x17   :  { %v120_v19 = vmul.f32 0.2, %v88_v13  ;;  %v289_v20 = vunpack.c.h.bf16 %v336_v4  ;;  %v135_v21 = vsel %vm103_vm11, %v87_v8, %v119_v16  ;;  %v67_v22 = vmul.f32 %v288_v14, %v370_v1 }
  0x18   :  { %340 = vst [vmem:[%s458_s3 + $0x20] sm:$0xff] %v313_v15   ;;  %v318_v23 = vpack.c.bf16 %v135_v21, %v134_v17  ;;  %vm105_vm13 = vcmp.ge.f32.partialorder %v89_v18, 0.0  ;;  %v121_v24 = vmul.f32 0.2, %v89_v18 }
  0x19   :  { %v136_v25 = vsel %vm104_vm12, %v88_v13, %v120_v19  ;;  %v68_v26 = vmul.f32 %v289_v20, %v370_v1  ;;  %v90_v27 = vadd.f32 %v384_v7, %v67_v22 }
  0x1a   :  { %341 = vst [vmem:[%s458_s3 + $0x28] sm:$0xff] %v318_v23   ;;  %v137_v28 = vsel %vm105_vm13, %v89_v18, %v121_v24 }
  0x1b   :  { %v323_v29 = vpack.c.bf16 %v137_v28, %v136_v25  ;;  %v91_v30 = vadd.f32 %v384_v7, %v68_v26  ;;  %vm106_vm14 = vcmp.ge.f32.partialorder %v90_v27, 0.0  ;;  %v122_v31 = vmul.f32 0.2, %v90_v27 }
  0x1d   :  { %342 = vst [vmem:[%s458_s3 + $0x30] sm:$0xff] %v323_v29   ;;  %vm107_vm15 = vcmp.ge.f32.partialorder %v91_v30, 0.0  ;;  %v123_v32 = vmul.f32 0.2, %v91_v30  ;;  %v138_v33 = vsel %vm106_vm14, %v90_v27, %v122_v31 }
  0x1f   :  { %v139_v1 = vsel %vm107_vm15, %v91_v30, %v123_v32 }
  0x20   :  { %v328_v34 = vpack.c.bf16 %v139_v1, %v138_v33 }
  0x22   :  { %343 = vst [vmem:[%s458_s3 + $0x38] sm:$0xff] %v328_v34  }

// kernel: _lambda_.11
= control target key start
LH: loop header
LB: loop body
LE: loop exit
PB: predicated region body
PF: predicated region fallthrough
CT: control target
= control target key end

     0   :  { %s3382_s15 = smov 0   ;;  %s3384_s16 = smov 0   ;;  %s4264_s0 = inlined_call_operand.vmem [shape: bf16[32,2048], index: 0, kind: input, shape index: {}]   ;;  %s4265_s1 = inlined_call_operand.vmem [shape: bf16[2048,256], index: 1, kind: input, shape index: {}]   ;;  %s4266_s2 = inlined_call_operand.vmem [shape: bf16[32,256], index: 2, kind: output, shape index: {0}]   ;;  %s4267_s3 = inlined_call_operand.vmem [shape: f32[2,1,256], index: 3, kind: output, shape index: {1}]   ;;  %s4268_s4 = inlined_call_operand.vmem [shape: f32[2,1,256], index: 4, kind: output, shape index: {2}]  }
   0x1   :  { %s3386_s17 = smov 0  }
   0x2 LB: > { %s34_s18 = sadd.s32 1, %s3350_s16  ;;  %p2634_p0 = scmp.ge.s32.totalorder %s3354_s17, 1  ;;  %s3354_s17 = sphi %s3386_s17, %s15_s17   ;;  %s3350_s16 = sphi %s3384_s16, %s4270_s16   ;;  %s3346_s15 = sphi %s3382_s15, %s4269_s15  }
   0x3   : > { %p36_p1 = scmp.ge.s32.totalorder %s34_s18, 2  ;;  %p220_p2 = scmp.lt.s32.totalorder %s3354_s17, 3 }
   0x5   : > { %s4272_s18 = smov (%p36_p1, %s34_s18), 0  ;;  %p221_p3 = pnand %p2634_p0, %p220_p2 }
   0x6   : > { %s2635_s9 = sshll.u32 (!%p221_p3), %s3346_s15, 1  ;;  %p319_p5 = scmp.lt.s32.totalorder (!%p221_p3), %s3346_s15, 1 }
   0x7   : > { %224 = sbr.rel (%p221_p3) target bundleno = 496 (0x1f0), region = 28  ;;  %p284_p4 = scmp.lt.s32.totalorder (!%p221_p3), %s2635_s9, 3 }
   0xc   : > { %v2948_v0 = vld [vmem:[%s4265_s1 + $0x74] ss:$8 sps:$4 sm:$0xff]   ;;  %v2952_v2 = vld [vmem:[%s4265_s1 + $0x70] ss:$8 sps:$4 sm:$0xff]   ;;  %v2954_v4 = vld [vmem:[%s4265_s1 + $0x64] ss:$8 sps:$4 sm:$0xff]  }
   0xd   : > { %v2950_v1 = vld [vmem:[%s4265_s1 + $0x174] ss:$8 sps:$4 sm:$0xff]   ;;  %1980 = vmatprep.subr.bf16.mxu0 %v2948_v0  ;;  %v2953_v3 = vld [vmem:[%s4265_s1 + $0x170] ss:$8 sps:$4 sm:$0xff]   ;;  %v2956_v5 = vld [vmem:[%s4265_s1 + $0x164] ss:$8 sps:$4 sm:$0xff]  }
   0xe   : > { %2023 = vmatprep.subr.bf16.mxu1 %v2950_v1  ;;  %1981 = vmatpush1.bf16.msra.mxu0 %v2952_v2  ;;  %v2958_v6 = vld [vmem:[%s4265_s1 + $0x60] ss:$8 sps:$4 sm:$0xff]   ;;  %v2960_v8 = vld [vmem:[%s4265_s1 + $0x54] ss:$8 sps:$4 sm:$0xff]   ;;  %v2964_v10 = vld [vmem:[%s4265_s1 + $0x50] ss:$8 sps:$4 sm:$0xff]  }
   0xf   : > { %2024 = vmatpush1.bf16.msra.mxu1 %v2953_v3  ;;  %1982 = vmatprep.subr.bf16.mxu0 %v2954_v4  ;;  %v2959_v7 = vld [vmem:[%s4265_s1 + $0x160] ss:$8 sps:$4 sm:$0xff]   ;;  %v2962_v9 = vld [vmem:[%s4265_s1 + $0x154] ss:$8 sps:$4 sm:$0xff]   ;;  %v2965_v11 = vld [vmem:[%s4265_s1 + $0x150] ss:$8 sps:$4 sm:$0xff]  }
  0x10   : > { %2025 = vmatprep.subr.bf16.mxu1 %v2956_v5  ;;  %v2966_v12 = vld [vmem:[%s4265_s1 + $0x44] ss:$8 sps:$4 sm:$0xff]   ;;  %v2970_v14 = vld [vmem:[%s4265_s1 + $0x40] ss:$8 sps:$4 sm:$0xff]   ;;  %v2972_v16 = vld [vmem:[%s4265_s1 + $0x34] ss:$8 sps:$4 sm:$0xff]  }
  0x11   : > { %v2968_v13 = vld [vmem:[%s4265_s1 + $0x144] ss:$8 sps:$4 sm:$0xff]   ;;  %v2971_v15 = vld [vmem:[%s4265_s1 + $0x140] ss:$8 sps:$4 sm:$0xff]   ;;  %v2974_v17 = vld [vmem:[%s4265_s1 + $0x134] ss:$8 sps:$4 sm:$0xff]  }
  0x12   : > { %1983 = vmatpush1.bf16.msra.mxu0 %v2958_v6  ;;  %v2976_v18 = vld [vmem:[%s4265_s1 + $0x30] ss:$8 sps:$4 sm:$0xff]   ;;  %v2978_v20 = vld [vmem:[%s4265_s1 + $0x24] ss:$8 sps:$4 sm:$0xff]   ;;  %v2982_v22 = vld [vmem:[%s4265_s1 + $0x20] ss:$8 sps:$4 sm:$0xff]  }
  0x13   : > { %2026 = vmatpush1.bf16.msra.mxu1 %v2959_v7  ;;  %1984 = vmatprep.subr.bf16.mxu0 %v2960_v8  ;;  %v2977_v19 = vld [vmem:[%s4265_s1 + $0x130] ss:$8 sps:$4 sm:$0xff]   ;;  %v2980_v21 = vld [vmem:[%s4265_s1 + $0x124] ss:$8 sps:$4 sm:$0xff]   ;;  %v2983_v23 = vld [vmem:[%s4265_s1 + $0x120] ss:$8 sps:$4 sm:$0xff]  }
  0x14   : > { %2027 = vmatprep.subr.bf16.mxu1 %v2962_v9  ;;  %v2984_v24 = vld [vmem:[%s4265_s1 + $0x14] ss:$8 sps:$4 sm:$0xff]   ;;  %v2988_v26 = vld [vmem:[%s4265_s1 + $0x10] ss:$8 sps:$4 sm:$0xff]   ;;  %v2990_v28 = vld [vmem:[%s4265_s1 + $0x4] ss:$8 sps:$4 sm:$0xff]  }
  0x15   : > { %v2986_v25 = vld [vmem:[%s4265_s1 + $0x114] ss:$8 sps:$4 sm:$0xff]   ;;  %v2989_v27 = vld [vmem:[%s4265_s1 + $0x110] ss:$8 sps:$4 sm:$0xff]   ;;  %v2992_v29 = vld [vmem:[%s4265_s1 + $0x104] ss:$8 sps:$4 sm:$0xff]  }
  0x16   : > { %1985 = vmatpush1.bf16.msra.mxu0 %v2964_v10  ;;  %v2994_v30 = vld [vmem:[%s4265_s1] ss:$8 sps:$4 sm:$0xff]   ;;  %v2996_v32 = vld [vmem:[%s4265_s1 + $0xf4] ss:$8 sps:$4 sm:$0xff]   ;;  %v3000_v34 = vld [vmem:[%s4265_s1 + $0xf0] ss:$8 sps:$4 sm:$0xff]  }
  0x17   : > { %2028 = vmatpush1.bf16.msra.mxu1 %v2965_v11  ;;  %1986 = vmatprep.subr.bf16.mxu0 %v2966_v12  ;;  %v2995_v31 = vld [vmem:[%s4265_s1 + $0x100] ss:$8 sps:$4 sm:$0xff]   ;;  %v2998_v33 = vld [vmem:[%s4265_s1 + $0x1f4] ss:$8 sps:$4 sm:$0xff]   ;;  %v3001_v35 = vld [vmem:[%s4265_s1 + $0x1f0] ss:$8 sps:$4 sm:$0xff]  }
  0x18   : > { %2029 = vmatprep.subr.bf16.mxu1 %v2968_v13  ;;  %v3002_v36 = vld [vmem:[%s4265_s1 + $0xe4] ss:$8 sps:$4 sm:$0xff]   ;;  %s4274_s9 = smov (!%p284_p4, %s2635_s9), 3  ;;  %v3006_v38 = vld [vmem:[%s4265_s1 + $0xe0] ss:$8 sps:$4 sm:$0xff]   ;;  %s4276_s15 = smov (!%p319_p5, %s3346_s15), 1 }
  0x19   : > { %v3004_v37 = vld [vmem:[%s4265_s1 + $0x1e4] ss:$8 sps:$4 sm:$0xff]   ;;  %v3007_v39 = vld [vmem:[%s4265_s1 + $0x1e0] ss:$8 sps:$4 sm:$0xff]   ;;  %v3008_v40 = vld [vmem:[%s4265_s1 + $0xd4] ss:$8 sps:$4 sm:$0xff]  }
  0x1a   : > { %1987 = vmatpush1.bf16.msra.mxu0 %v2970_v14  ;;  %s2919_s11 = sshll.u32 %s4274_s9, 6  ;;  %v3010_v41 = vld [vmem:[%s4265_s1 + $0x1d4] ss:$8 sps:$4 sm:$0xff]   ;;  %v3012_v42 = vld [vmem:[%s4265_s1 + $0xd0] ss:$8 sps:$4 sm:$0xff]   ;;  %s2920_s22 = sshll.u32 %s4274_s9, 3 }
  0x1b   : > { %2030 = vmatpush1.bf16.msra.mxu1 %v2971_v15  ;;  %1988 = vmatprep.subr.bf16.mxu0 %v2972_v16  ;;  %v3013_v43 = vld [vmem:[%s4265_s1 + $0x1d0] ss:$8 sps:$4 sm:$0xff]   ;;  %s3541_s24 = scalar_lea.vmem %s4264_s0, %s2919_s11  ;;  %v3014_v44 = vld [vmem:[%s4265_s1 + $0xc4] ss:$8 sps:$4 sm:$0xff]   ;;  %v3018_v46 = vld [vmem:[%s4265_s1 + $0xc0] ss:$8 sps:$4 sm:$0xff]   ;;  %s315_s26 = scalar_lea.vmem %s4266_s2, %s2920_s22 }
  0x1c   : > { %2031 = vmatprep.subr.bf16.mxu1 %v2974_v17  ;;  %v3016_v45 = vld [vmem:[%s4265_s1 + $0x1c4] ss:$8 sps:$4 sm:$0xff]   ;;  %v3019_v47 = vld [vmem:[%s4265_s1 + $0x1c0] ss:$8 sps:$4 sm:$0xff]   ;;  %v3020_v52 = vld [vmem:[%s4265_s1 + $0xb4] ss:$8 sps:$4 sm:$0xff]  }
  0x1d   : > { %v348_v48 = vld [vmem:[%s3541_s24] sm:$0xff]  ;;  %v349_v50 = vld [vmem:[%s3541_s24 + $0x8] sm:$0xff]  ;;  %v3022_v54 = vld [vmem:[%s4265_s1 + $0x1b4] ss:$8 sps:$4 sm:$0xff]   ;;  %s2641_s9 = sshll.u32 %s4276_s15, 1 }
  0x1e   : > { %1989 = vmatpush1.bf16.msra.mxu0 %v2976_v18  ;;  %v356_v49 = vld [vmem:[%s3541_s24 + $0x40] sm:$0xff]  ;;  %v357_v51 = vld [vmem:[%s3541_s24 + $0x48] sm:$0xff]  ;;  %v3024_v56 = vld [vmem:[%s4265_s1 + $0xb0] ss:$8 sps:$4 sm:$0xff]   ;;  %s325_s29 = scalar_lea.vmem %s4267_s3, %s2641_s9  ;;  %s334_s6 = scalar_lea.vmem %s4268_s4, %s2641_s9 }
  0x1f   : > { %2032 = vmatpush1.bf16.msra.mxu1 %v2977_v19  ;;  %1990 = vmatprep.subr.bf16.mxu0 %v2978_v20  ;;  %v2644_v53 = vcombine.high %v348_v48, %v356_v49  ;;  %v2646_v55 = vcombine.high %v349_v50, %v357_v51  ;;  %v3025_v57 = vld [vmem:[%s4265_s1 + $0x1b0] ss:$8 sps:$4 sm:$0xff]   ;;  %v3026_v58 = vld [vmem:[%s4265_s1 + $0xa4] ss:$8 sps:$4 sm:$0xff]   ;;  %v3030_v60 = vld [vmem:[%s4265_s1 + $0xa0] ss:$8 sps:$4 sm:$0xff]   ;;  %v2643_v8 = vcombine.low %v348_v48, %v356_v49 }
  0x20   : > { %2033 = vmatprep.subr.bf16.mxu1 %v2980_v21  ;;  %v3028_v59 = vld [vmem:[%s4265_s1 + $0x1a4] ss:$8 sps:$4 sm:$0xff]   ;;  %v3031_v61 = vld [vmem:[%s4265_s1 + $0x1a0] ss:$8 sps:$4 sm:$0xff]   ;;  %v3032_v62 = vld [vmem:[%s4265_s1 + $0x94] ss:$8 sps:$4 sm:$0xff]   ;;  %v2645_v9 = vcombine.low %v349_v50, %v357_v51 }
  0x21   : > { %2012 = vmatprep.mubr.bf16.mxu0 %v2644_v53  ;;  %2055 = vmatprep.mubr.bf16.mxu1 %v2646_v55  ;;  %v3034_v63 = vld [vmem:[%s4265_s1 + $0x194] ss:$8 sps:$4 sm:$0xff]   ;;  %v3036_v0 = vld [vmem:[%s4265_s1 + $0x90] ss:$8 sps:$4 sm:$0xff]   ;;  %v3038_v2 = vld [vmem:[%s4265_s1 + $0x84] ss:$8 sps:$4 sm:$0xff]  }
  0x22   : > { %1991 = vmatpush1.bf16.msra.mxu0 %v2982_v22  ;;  %v3037_v1 = vld [vmem:[%s4265_s1 + $0x190] ss:$8 sps:$4 sm:$0xff]   ;;  %v3040_v3 = vld [vmem:[%s4265_s1 + $0x184] ss:$8 sps:$4 sm:$0xff]   ;;  %v3042_v4 = vld [vmem:[%s4265_s1 + $0x80] ss:$8 sps:$4 sm:$0xff]  }
  0x23   : > { %2034 = vmatpush1.bf16.msra.mxu1 %v2983_v23  ;;  %1992 = vmatprep.subr.bf16.mxu0 %v2984_v24  ;;  %v3043_v5 = vld [vmem:[%s4265_s1 + $0x180] ss:$8 sps:$4 sm:$0xff]   ;;  %v3046_v6 = vld [vmem:[%s4265_s1 + $0x274] ss:$8 sps:$4 sm:$0xff]   ;;  %v3044_v10 = vld [vmem:[%s4265_s1 + $0x270] ss:$8 sps:$4 sm:$0xff]  }
  0x24   : > { %2035 = vmatprep.subr.bf16.mxu1 %v2986_v25  ;;  %v3049_v7 = vld [vmem:[%s4265_s1 + $0x374] ss:$8 sps:$4 sm:$0xff]   ;;  %v3047_v11 = vld [vmem:[%s4265_s1 + $0x370] ss:$8 sps:$4 sm:$0xff]   ;;  %v3052_v12 = vld [vmem:[%s4265_s1 + $0x264] ss:$8 sps:$4 sm:$0xff]  }
  0x25   : > { %v3055_v13 = vld [vmem:[%s4265_s1 + $0x364] ss:$8 sps:$4 sm:$0xff]   ;;  %v3050_v14 = vld [vmem:[%s4265_s1 + $0x260] ss:$8 sps:$4 sm:$0xff]   ;;  %v3058_v16 = vld [vmem:[%s4265_s1 + $0x254] ss:$8 sps:$4 sm:$0xff]  }
  0x26   : > { %1993 = vmatpush1.bf16.msra.mxu0 %v2988_v26  ;;  %v3053_v15 = vld [vmem:[%s4265_s1 + $0x360] ss:$8 sps:$4 sm:$0xff]   ;;  %v3061_v17 = vld [vmem:[%s4265_s1 + $0x354] ss:$8 sps:$4 sm:$0xff]   ;;  %v3056_v18 = vld [vmem:[%s4265_s1 + $0x250] ss:$8 sps:$4 sm:$0xff]  }
  0x27   : > { %2036 = vmatpush1.bf16.msra.mxu1 %v2989_v27  ;;  %1994 = vmatprep.subr.bf16.mxu0 %v2990_v28  ;;  %v3059_v19 = vld [vmem:[%s4265_s1 + $0x350] ss:$8 sps:$4 sm:$0xff]   ;;  %v3064_v20 = vld [vmem:[%s4265_s1 + $0x244] ss:$8 sps:$4 sm:$0xff]   ;;  %v3062_v22 = vld [vmem:[%s4265_s1 + $0x240] ss:$8 sps:$4 sm:$0xff]  }
  0x28   : > { %2037 = vmatprep.subr.bf16.mxu1 %v2992_v29  ;;  %v3067_v21 = vld [vmem:[%s4265_s1 + $0x344] ss:$8 sps:$4 sm:$0xff]   ;;  %v3065_v23 = vld [vmem:[%s4265_s1 + $0x340] ss:$8 sps:$4 sm:$0xff]   ;;  %v3070_v24 = vld [vmem:[%s4265_s1 + $0x234] ss:$8 sps:$4 sm:$0xff]  }
  0x29   : > { %v3073_v25 = vld [vmem:[%s4265_s1 + $0x334] ss:$8 sps:$4 sm:$0xff]   ;;  %v3068_v26 = vld [vmem:[%s4265_s1 + $0x230] ss:$8 sps:$4 sm:$0xff]   ;;  %v3076_v28 = vld [vmem:[%s4265_s1 + $0x224] ss:$8 sps:$4 sm:$0xff]  }
  0x2a   : > { %1995 = vmatpush1.bf16.msra.mxu0 %v2994_v30  ;;  %v3071_v27 = vld [vmem:[%s4265_s1 + $0x330] ss:$8 sps:$4 sm:$0xff]   ;;  %v3079_v29 = vld [vmem:[%s4265_s1 + $0x324] ss:$8 sps:$4 sm:$0xff]   ;;  %v3074_v30 = vld [vmem:[%s4265_s1 + $0x220] ss:$8 sps:$4 sm:$0xff]  }
  0x2b   : > { %2038 = vmatpush1.bf16.msra.mxu1 %v2995_v31  ;;  %1996 = vmatprep.subr.bf16.mxu0 %v2996_v32  ;;  %v3077_v31 = vld [vmem:[%s4265_s1 + $0x320] ss:$8 sps:$4 sm:$0xff]   ;;  %v3082_v32 = vld [vmem:[%s4265_s1 + $0x214] ss:$8 sps:$4 sm:$0xff]   ;;  %v3092_v48 = vld [vmem:[%s4265_s1 + $0x2f0] ss:$8 sps:$4 sm:$0xff]  }
  0x2c   : > { %2039 = vmatprep.subr.bf16.mxu1 %v2998_v33  ;;  %v3085_v33 = vld [vmem:[%s4265_s1 + $0x314] ss:$8 sps:$4 sm:$0xff]   ;;  %v3095_v49 = vld [vmem:[%s4265_s1 + $0x3f0] ss:$8 sps:$4 sm:$0xff]   ;;  %v3100_v50 = vld [vmem:[%s4265_s1 + $0x2e4] ss:$8 sps:$4 sm:$0xff]  }
  0x2d   : > { %v3103_v51 = vld [vmem:[%s4265_s1 + $0x3e4] ss:$8 sps:$4 sm:$0xff]   ;;  %v3101_v53 = vld [vmem:[%s4265_s1 + $0x3e0] ss:$8 sps:$4 sm:$0xff]   ;;  %v3109_v55 = vld [vmem:[%s4265_s1 + $0x3d4] ss:$8 sps:$4 sm:$0xff]  }
  0x2e   : > { %1997 = vmatpush2.bf16.msra.mxu0 %v3000_v34  ;;  %v3080_v34 = vld [vmem:[%s4265_s1 + $0x210] ss:$8 sps:$4 sm:$0xff]  }
  0x2f   : > { %2040 = vmatpush2.bf16.msra.mxu1 %v3001_v35  ;;  %1998 = vmatprep.subr.bf16.mxu0 %v3002_v36  ;;  %v3083_v35 = vld [vmem:[%s4265_s1 + $0x310] ss:$8 sps:$4 sm:$0xff]  }
  0x30   : > { %2041 = vmatprep.subr.bf16.mxu1 %v3004_v37  ;;  %v3692_v36 = vld [vmem:[%s3541_s24 + $0x10] sm:$0xff] }
  0x31   : > { %v3695_v37 = vld [vmem:[%s3541_s24 + $0x50] sm:$0xff] }
  0x32   : > { %1999 = vmatpush2.bf16.msra.mxu0 %v3006_v38  ;;  %v3698_v38 = vld [vmem:[%s3541_s24 + $0x18] sm:$0xff] }
  0x33   : > { %2042 = vmatpush2.bf16.msra.mxu1 %v3007_v39  ;;  %2000 = vmatprep.subr.bf16.mxu0 %v3008_v40  ;;  %v3701_v39 = vld [vmem:[%s3541_s24 + $0x58] sm:$0xff]  ;;  %v3088_v40 = vld [vmem:[%s4265_s1 + $0x204] ss:$8 sps:$4 sm:$0xff]  }
  0x34   : > { %2043 = vmatprep.subr.bf16.mxu1 %v3010_v41  ;;  %v2648_v41 = vcombine.high %v3692_v36, %v3695_v37 }
  0x36   : > { %2001 = vmatpush2.bf16.msra.mxu0 %v3012_v42  ;;  %v3091_v42 = vld [vmem:[%s4265_s1 + $0x304] ss:$8 sps:$4 sm:$0xff]  }
  0x37   : > { %2044 = vmatpush2.bf16.msra.mxu1 %v3013_v43  ;;  %2002 = vmatprep.subr.bf16.mxu0 %v3014_v44  ;;  %v2650_v43 = vcombine.high %v3698_v38, %v3701_v39  ;;  %v3086_v44 = vld [vmem:[%s4265_s1 + $0x200] ss:$8 sps:$4 sm:$0xff]  }
  0x38   : > { %2045 = vmatprep.subr.bf16.mxu1 %v3016_v45  ;;  %v3089_v45 = vld [vmem:[%s4265_s1 + $0x300] ss:$8 sps:$4 sm:$0xff]  }
  0x3a   : > { %2003 = vmatpush2.bf16.msra.mxu0 %v3018_v46  ;;  %v3094_v46 = vld [vmem:[%s4265_s1 + $0x2f4] ss:$8 sps:$4 sm:$0xff]  }
  0x3b   : > { %2046 = vmatpush2.bf16.msra.mxu1 %v3019_v47  ;;  %2004 = vmatprep.subr.bf16.mxu0 %v3020_v52  ;;  %v3097_v47 = vld [vmem:[%s4265_s1 + $0x3f4] ss:$8 sps:$4 sm:$0xff]   ;;  %v3098_v52 = vld [vmem:[%s4265_s1 + $0x2e0] ss:$8 sps:$4 sm:$0xff]  }
  0x3c   : > { %2047 = vmatprep.subr.bf16.mxu1 %v3022_v54  ;;  %v3106_v54 = vld [vmem:[%s4265_s1 + $0x2d4] ss:$8 sps:$4 sm:$0xff]  }
  0x3e   : > { %2005 = vmatpush2.bf16.msra.mxu0 %v3024_v56  ;;  %v3104_v56 = vld [vmem:[%s4265_s1 + $0x2d0] ss:$8 sps:$4 sm:$0xff]  }
  0x3f   : > { %2048 = vmatpush2.bf16.msra.mxu1 %v3025_v57  ;;  %2006 = vmatprep.subr.bf16.mxu0 %v3026_v58  ;;  %v3107_v57 = vld [vmem:[%s4265_s1 + $0x3d0] ss:$8 sps:$4 sm:$0xff]   ;;  %v3112_v58 = vld [vmem:[%s4265_s1 + $0x2c4] ss:$8 sps:$4 sm:$0xff]  }
  0x40   : > { %2049 = vmatprep.subr.bf16.mxu1 %v3028_v59  ;;  %v3115_v59 = vld [vmem:[%s4265_s1 + $0x3c4] ss:$8 sps:$4 sm:$0xff]  }
  0x42   : > { %2007 = vmatpush2.bf16.msra.mxu0 %v3030_v60  ;;  %v3110_v60 = vld [vmem:[%s4265_s1 + $0x2c0] ss:$8 sps:$4 sm:$0xff]  }
  0x43   : > { %2050 = vmatpush2.bf16.msra.mxu1 %v3031_v61  ;;  %2008 = vmatprep.subr.bf16.mxu0 %v3032_v62  ;;  %v3113_v61 = vld [vmem:[%s4265_s1 + $0x3c0] ss:$8 sps:$4 sm:$0xff]   ;;  %v3118_v62 = vld [vmem:[%s4265_s1 + $0x2b4] ss:$8 sps:$4 sm:$0xff]  }
  0x44   : > { %2051 = vmatprep.subr.bf16.mxu1 %v3034_v63  ;;  %v3121_v63 = vld [vmem:[%s4265_s1 + $0x3b4] ss:$8 sps:$4 sm:$0xff]  }
  0x46   : > { %2009 = vmatpush2.bf16.msra.mxu0 %v3036_v0  ;;  %v3116_v0 = vld [vmem:[%s4265_s1 + $0x2b0] ss:$8 sps:$4 sm:$0xff]  }
  0x47   : > { %2052 = vmatpush2.bf16.msra.mxu1 %v3037_v1  ;;  %2010 = vmatprep.subr.bf16.mxu0 %v3038_v2  ;;  %v3119_v1 = vld [vmem:[%s4265_s1 + $0x3b0] ss:$8 sps:$4 sm:$0xff]   ;;  %v3124_v2 = vld [vmem:[%s4265_s1 + $0x2a4] ss:$8 sps:$4 sm:$0xff]  }
  0x48   : > { %2053 = vmatprep.subr.bf16.mxu1 %v3040_v3  ;;  %v3127_v3 = vld [vmem:[%s4265_s1 + $0x3a4] ss:$8 sps:$4 sm:$0xff]  }
  0x4a   : > { %2011 = vmatpush2.bf16.msra.mxu0 %v3042_v4  ;;  %v3122_v4 = vld [vmem:[%s4265_s1 + $0x2a0] ss:$8 sps:$4 sm:$0xff]  }
  0x4b   : > { %2054 = vmatpush2.bf16.msra.mxu1 %v3043_v5  ;;  %2066 = vmatprep.subr.bf16.mxu0 %v3046_v6  ;;  %v3125_v5 = vld [vmem:[%s4265_s1 + $0x3a0] ss:$8 sps:$4 sm:$0xff]   ;;  %v3130_v6 = vld [vmem:[%s4265_s1 + $0x294] ss:$8 sps:$4 sm:$0xff]  }
  0x4c   : > { %2109 = vmatprep.subr.bf16.mxu1 %v3049_v7  ;;  %v3133_v7 = vld [vmem:[%s4265_s1 + $0x394] ss:$8 sps:$4 sm:$0xff]  }
  0x4d   : > { %2013 = vmatmul.mubr.bf16.vlgmr.msra.gmra.mxu0 %v2643_v8  ;;  %v3128_v8 = vld [vmem:[%s4265_s1 + $0x290] ss:$8 sps:$4 sm:$0xff]  }
  0x4e   : > { %2056 = vmatmul.mubr.bf16.vlgmr.msra.gmra.mxu1 %v2645_v9  ;;  %2067 = vmatpush1.bf16.msra.mxu0 %v3044_v10  ;;  %v3131_v9 = vld [vmem:[%s4265_s1 + $0x390] ss:$8 sps:$4 sm:$0xff]   ;;  %v3136_v10 = vld [vmem:[%s4265_s1 + $0x284] ss:$8 sps:$4 sm:$0xff]  }
  0x4f   : > { %2110 = vmatpush1.bf16.msra.mxu1 %v3047_v11  ;;  %2068 = vmatprep.subr.bf16.mxu0 %v3052_v12  ;;  %v3139_v11 = vld [vmem:[%s4265_s1 + $0x384] ss:$8 sps:$4 sm:$0xff]   ;;  %v3134_v12 = vld [vmem:[%s4265_s1 + $0x280] ss:$8 sps:$4 sm:$0xff]  }
  0x50   : > { %2111 = vmatprep.subr.bf16.mxu1 %v3055_v13  ;;  %2098 = vmatprep.mubr.bf16.mxu0 %v2648_v41  ;;  %v3137_v13 = vld [vmem:[%s4265_s1 + $0x380] ss:$8 sps:$4 sm:$0xff]   ;;  %v3167_v41 = vld [vmem:[%s4265_s1 + $0x530] ss:$8 sps:$4 sm:$0xff]  }
  0x51   : > { %2141 = vmatprep.mubr.bf16.mxu1 %v2650_v43  ;;  %v3175_v43 = vld [vmem:[%s4265_s1 + $0x524] ss:$8 sps:$4 sm:$0xff]  }
  0x52   : > { %2069 = vmatpush1.bf16.msra.mxu0 %v3050_v14  ;;  %v3142_v14 = vld [vmem:[%s4265_s1 + $0x474] ss:$8 sps:$4 sm:$0xff]  }
  0x53   : > { %2112 = vmatpush1.bf16.msra.mxu1 %v3053_v15  ;;  %2070 = vmatprep.subr.bf16.mxu0 %v3058_v16  ;;  %v3145_v15 = vld [vmem:[%s4265_s1 + $0x574] ss:$8 sps:$4 sm:$0xff]   ;;  %v2647_v16 = vcombine.low %v3692_v36, %v3695_v37  ;;  %v3158_v36 = vld [vmem:[%s4265_s1 + $0x440] ss:$8 sps:$4 sm:$0xff]  }
  0x54   : > { %2113 = vmatprep.subr.bf16.mxu1 %v3061_v17  ;;  %v2649_v17 = vcombine.low %v3698_v38, %v3701_v39  ;;  %v3161_v37 = vld [vmem:[%s4265_s1 + $0x540] ss:$8 sps:$4 sm:$0xff]   ;;  %v3166_v38 = vld [vmem:[%s4265_s1 + $0x434] ss:$8 sps:$4 sm:$0xff]  }
  0x55   : > { %v3169_v39 = vld [vmem:[%s4265_s1 + $0x534] ss:$8 sps:$4 sm:$0xff]  }
  0x56   : > { %2071 = vmatpush1.bf16.msra.mxu0 %v3056_v18  ;;  %v3140_v18 = vld [vmem:[%s4265_s1 + $0x470] ss:$8 sps:$4 sm:$0xff]  }
  0x57   : > { %2114 = vmatpush1.bf16.msra.mxu1 %v3059_v19  ;;  %2072 = vmatprep.subr.bf16.mxu0 %v3064_v20  ;;  %v3143_v19 = vld [vmem:[%s4265_s1 + $0x570] ss:$8 sps:$4 sm:$0xff]   ;;  %v3148_v20 = vld [vmem:[%s4265_s1 + $0x464] ss:$8 sps:$4 sm:$0xff]  }
  0x58   : > { %2115 = vmatprep.subr.bf16.mxu1 %v3067_v21  ;;  %v3151_v21 = vld [vmem:[%s4265_s1 + $0x564] ss:$8 sps:$4 sm:$0xff]  }
  0x5a   : > { %2073 = vmatpush1.bf16.msra.mxu0 %v3062_v22  ;;  %v3146_v22 = vld [vmem:[%s4265_s1 + $0x460] ss:$8 sps:$4 sm:$0xff]  }
  0x5b   : > { %2116 = vmatpush1.bf16.msra.mxu1 %v3065_v23  ;;  %2074 = vmatprep.subr.bf16.mxu0 %v3070_v24  ;;  %v3149_v23 = vld [vmem:[%s4265_s1 + $0x560] ss:$8 sps:$4 sm:$0xff]  }
  0x5c   : > { %2117 = vmatprep.subr.bf16.mxu1 %v3073_v25  ;;  %v3844_v24 = vld [vmem:[%s3541_s24 + $0x20] sm:$0xff] }
  0x5d   : > { %v3847_v25 = vld [vmem:[%s3541_s24 + $0x60] sm:$0xff] }
  0x5e   : > { %2075 = vmatpush1.bf16.msra.mxu0 %v3068_v26  ;;  %v3850_v26 = vld [vmem:[%s3541_s24 + $0x28] sm:$0xff] }
  0x5f   : > { %2118 = vmatpush1.bf16.msra.mxu1 %v3071_v27  ;;  %2076 = vmatprep.subr.bf16.mxu0 %v3076_v28  ;;  %v3853_v27 = vld [vmem:[%s3541_s24 + $0x68] sm:$0xff]  ;;  %v3154_v28 = vld [vmem:[%s4265_s1 + $0x454] ss:$8 sps:$4 sm:$0xff]  }
  0x60   : > { %2119 = vmatprep.subr.bf16.mxu1 %v3079_v29  ;;  %v2652_v29 = vcombine.high %v3844_v24, %v3847_v25 }
  0x62   : > { %2077 = vmatpush1.bf16.msra.mxu0 %v3074_v30  ;;  %v3157_v30 = vld [vmem:[%s4265_s1 + $0x554] ss:$8 sps:$4 sm:$0xff]  }
  0x63   : > { %2120 = vmatpush1.bf16.msra.mxu1 %v3077_v31  ;;  %2078 = vmatprep.subr.bf16.mxu0 %v3082_v32  ;;  %v2654_v31 = vcombine.high %v3850_v26, %v3853_v27  ;;  %v3152_v32 = vld [vmem:[%s4265_s1 + $0x450] ss:$8 sps:$4 sm:$0xff]  }
  0x64   : > { %2121 = vmatprep.subr.bf16.mxu1 %v3085_v33  ;;  %v3155_v33 = vld [vmem:[%s4265_s1 + $0x550] ss:$8 sps:$4 sm:$0xff]  }
  0x66   : > { %2079 = vmatpush1.bf16.msra.mxu0 %v3080_v34  ;;  %v3160_v34 = vld [vmem:[%s4265_s1 + $0x444] ss:$8 sps:$4 sm:$0xff]  }
  0x67   : > { %2122 = vmatpush1.bf16.msra.mxu1 %v3083_v35  ;;  %2080 = vmatprep.subr.bf16.mxu0 %v3088_v40  ;;  %v3163_v35 = vld [vmem:[%s4265_s1 + $0x544] ss:$8 sps:$4 sm:$0xff]   ;;  %v3164_v40 = vld [vmem:[%s4265_s1 + $0x430] ss:$8 sps:$4 sm:$0xff]  }
  0x68   : > { %2123 = vmatprep.subr.bf16.mxu1 %v3091_v42  ;;  %v3172_v42 = vld [vmem:[%s4265_s1 + $0x424] ss:$8 sps:$4 sm:$0xff]  }
  0x6a   : > { %2081 = vmatpush1.bf16.msra.mxu0 %v3086_v44  ;;  %v3170_v44 = vld [vmem:[%s4265_s1 + $0x420] ss:$8 sps:$4 sm:$0xff]  }
  0x6b   : > { %2124 = vmatpush1.bf16.msra.mxu1 %v3089_v45  ;;  %2082 = vmatprep.subr.bf16.mxu0 %v3094_v46  ;;  %v3173_v45 = vld [vmem:[%s4265_s1 + $0x520] ss:$8 sps:$4 sm:$0xff]   ;;  %v3178_v46 = vld [vmem:[%s4265_s1 + $0x414] ss:$8 sps:$4 sm:$0xff]  }
  0x6c   : > { %2125 = vmatprep.subr.bf16.mxu1 %v3097_v47  ;;  %v3181_v47 = vld [vmem:[%s4265_s1 + $0x514] ss:$8 sps:$4 sm:$0xff]  }
  0x6e   : > { %2083 = vmatpush2.bf16.msra.mxu0 %v3092_v48  ;;  %v3176_v48 = vld [vmem:[%s4265_s1 + $0x410] ss:$8 sps:$4 sm:$0xff]  }
  0x6f   : > { %2126 = vmatpush2.bf16.msra.mxu1 %v3095_v49  ;;  %2084 = vmatprep.subr.bf16.mxu0 %v3100_v50  ;;  %v3179_v49 = vld [vmem:[%s4265_s1 + $0x510] ss:$8 sps:$4 sm:$0xff]   ;;  %v3184_v50 = vld [vmem:[%s4265_s1 + $0x404] ss:$8 sps:$4 sm:$0xff]  }
  0x70   : > { %2127 = vmatprep.subr.bf16.mxu1 %v3103_v51  ;;  %v3187_v51 = vld [vmem:[%s4265_s1 + $0x504] ss:$8 sps:$4 sm:$0xff]  }
  0x72   : > { %2085 = vmatpush2.bf16.msra.mxu0 %v3098_v52  ;;  %v3182_v52 = vld [vmem:[%s4265_s1 + $0x400] ss:$8 sps:$4 sm:$0xff]  }
  0x73   : > { %2128 = vmatpush2.bf16.msra.mxu1 %v3101_v53  ;;  %2086 = vmatprep.subr.bf16.mxu0 %v3106_v54  ;;  %v3185_v53 = vld [vmem:[%s4265_s1 + $0x500] ss:$8 sps:$4 sm:$0xff]   ;;  %v3190_v54 = vld [vmem:[%s4265_s1 + $0x4f4] ss:$8 sps:$4 sm:$0xff]  }
  0x74   : > { %2129 = vmatprep.subr.bf16.mxu1 %v3109_v55  ;;  %v3193_v55 = vld [vmem:[%s4265_s1 + $0x5f4] ss:$8 sps:$4 sm:$0xff]  }
  0x76   : > { %2087 = vmatpush2.bf16.msra.mxu0 %v3104_v56  ;;  %v3188_v56 = vld [vmem:[%s4265_s1 + $0x4f0] ss:$8 sps:$4 sm:$0xff]  }
  0x77   : > { %2130 = vmatpush2.bf16.msra.mxu1 %v3107_v57  ;;  %2088 = vmatprep.subr.bf16.mxu0 %v3112_v58  ;;  %v3191_v57 = vld [vmem:[%s4265_s1 + $0x5f0] ss:$8 sps:$4 sm:$0xff]   ;;  %v3196_v58 = vld [vmem:[%s4265_s1 + $0x4e4] ss:$8 sps:$4 sm:$0xff]  }
  0x78   : > { %2131 = vmatprep.subr.bf16.mxu1 %v3115_v59  ;;  %v3199_v59 = vld [vmem:[%s4265_s1 + $0x5e4] ss:$8 sps:$4 sm:$0xff]  }
  0x7a   : > { %2089 = vmatpush2.bf16.msra.mxu0 %v3110_v60  ;;  %v3194_v60 = vld [vmem:[%s4265_s1 + $0x4e0] ss:$8 sps:$4 sm:$0xff]  }
  0x7b   : > { %2132 = vmatpush2.bf16.msra.mxu1 %v3113_v61  ;;  %2090 = vmatprep.subr.bf16.mxu0 %v3118_v62  ;;  %v3197_v61 = vld [vmem:[%s4265_s1 + $0x5e0] ss:$8 sps:$4 sm:$0xff]   ;;  %v3202_v62 = vld [vmem:[%s4265_s1 + $0x4d4] ss:$8 sps:$4 sm:$0xff]  }
  0x7c   : > { %2133 = vmatprep.subr.bf16.mxu1 %v3121_v63  ;;  %v3205_v63 = vld [vmem:[%s4265_s1 + $0x5d4] ss:$8 sps:$4 sm:$0xff]  }
  0x7e   : > { %2091 = vmatpush2.bf16.msra.mxu0 %v3116_v0  ;;  %v3200_v0 = vld [vmem:[%s4265_s1 + $0x4d0] ss:$8 sps:$4 sm:$0xff]  }
  0x7f   : > { %2134 = vmatpush2.bf16.msra.mxu1 %v3119_v1  ;;  %2092 = vmatprep.subr.bf16.mxu0 %v3124_v2  ;;  %v3203_v1 = vld [vmem:[%s4265_s1 + $0x5d0] ss:$8 sps:$4 sm:$0xff]   ;;  %v3208_v2 = vld [vmem:[%s4265_s1 + $0x4c4] ss:$8 sps:$4 sm:$0xff]  }
  0x80   : > { %2135 = vmatprep.subr.bf16.mxu1 %v3127_v3  ;;  %v3211_v3 = vld [vmem:[%s4265_s1 + $0x5c4] ss:$8 sps:$4 sm:$0xff]  }
  0x82   : > { %2093 = vmatpush2.bf16.msra.mxu0 %v3122_v4  ;;  %v3206_v4 = vld [vmem:[%s4265_s1 + $0x4c0] ss:$8 sps:$4 sm:$0xff]  }
  0x83   : > { %2136 = vmatpush2.bf16.msra.mxu1 %v3125_v5  ;;  %2094 = vmatprep.subr.bf16.mxu0 %v3130_v6  ;;  %v3209_v5 = vld [vmem:[%s4265_s1 + $0x5c0] ss:$8 sps:$4 sm:$0xff]   ;;  %v3214_v6 = vld [vmem:[%s4265_s1 + $0x4b4] ss:$8 sps:$4 sm:$0xff]  }
  0x84   : > { %2137 = vmatprep.subr.bf16.mxu1 %v3133_v7  ;;  %v3217_v7 = vld [vmem:[%s4265_s1 + $0x5b4] ss:$8 sps:$4 sm:$0xff]  }
  0x86   : > { %2095 = vmatpush2.bf16.msra.mxu0 %v3128_v8  ;;  %v3212_v8 = vld [vmem:[%s4265_s1 + $0x4b0] ss:$8 sps:$4 sm:$0xff]  }
  0x87   : > { %2138 = vmatpush2.bf16.msra.mxu1 %v3131_v9  ;;  %2096 = vmatprep.subr.bf16.mxu0 %v3136_v10  ;;  %v3215_v9 = vld [vmem:[%s4265_s1 + $0x5b0] ss:$8 sps:$4 sm:$0xff]   ;;  %v3220_v10 = vld [vmem:[%s4265_s1 + $0x4a4] ss:$8 sps:$4 sm:$0xff]  }
  0x88   : > { %2139 = vmatprep.subr.bf16.mxu1 %v3139_v11  ;;  %v3223_v11 = vld [vmem:[%s4265_s1 + $0x5a4] ss:$8 sps:$4 sm:$0xff]  }
  0x8a   : > { %2097 = vmatpush2.bf16.msra.mxu0 %v3134_v12  ;;  %v3218_v12 = vld [vmem:[%s4265_s1 + $0x4a0] ss:$8 sps:$4 sm:$0xff]  }
  0x8b   : > { %2140 = vmatpush2.bf16.msra.mxu1 %v3137_v13  ;;  %2152 = vmatprep.subr.bf16.mxu0 %v3142_v14  ;;  %v3221_v13 = vld [vmem:[%s4265_s1 + $0x5a0] ss:$8 sps:$4 sm:$0xff]   ;;  %v3226_v14 = vld [vmem:[%s4265_s1 + $0x494] ss:$8 sps:$4 sm:$0xff]  }
  0x8c   : > { %2195 = vmatprep.subr.bf16.mxu1 %v3145_v15  ;;  %v3229_v15 = vld [vmem:[%s4265_s1 + $0x594] ss:$8 sps:$4 sm:$0xff]  }
  0x8d   : > { %2099 = vmatmul.mubr.bf16.vlgmr.msra.gmra.mxu0 %v2647_v16  ;;  %v3224_v16 = vld [vmem:[%s4265_s1 + $0x490] ss:$8 sps:$4 sm:$0xff]  }
  0x8e   : > { %2142 = vmatmul.mubr.bf16.vlgmr.msra.gmra.mxu1 %v2649_v17  ;;  %2153 = vmatpush1.bf16.msra.mxu0 %v3140_v18  ;;  %v3227_v17 = vld [vmem:[%s4265_s1 + $0x590] ss:$8 sps:$4 sm:$0xff]   ;;  %v3232_v18 = vld [vmem:[%s4265_s1 + $0x484] ss:$8 sps:$4 sm:$0xff]  }
  0x8f   : > { %2196 = vmatpush1.bf16.msra.mxu1 %v3143_v19  ;;  %2154 = vmatprep.subr.bf16.mxu0 %v3148_v20  ;;  %v3235_v19 = vld [vmem:[%s4265_s1 + $0x584] ss:$8 sps:$4 sm:$0xff]   ;;  %v3230_v20 = vld [vmem:[%s4265_s1 + $0x480] ss:$8 sps:$4 sm:$0xff]  }
  0x90   : > { %2197 = vmatprep.subr.bf16.mxu1 %v3151_v21  ;;  %2184 = vmatprep.mubr.bf16.mxu0 %v2652_v29  ;;  %v3233_v21 = vld [vmem:[%s4265_s1 + $0x580] ss:$8 sps:$4 sm:$0xff]   ;;  %v2651_v29 = vcombine.low %v3844_v24, %v3847_v25  ;;  %v3244_v24 = vld [vmem:[%s4265_s1 + $0x664] ss:$8 sps:$4 sm:$0xff]  }
  0x91   : > { %2227 = vmatprep.mubr.bf16.mxu1 %v2654_v31  ;;  %v4041_v31 = vld [vmem:[%s3541_s24 + $0x70] sm:$0xff]  ;;  %v3247_v25 = vld [vmem:[%s4265_s1 + $0x764] ss:$8 sps:$4 sm:$0xff]  }
  0x92   : > { %2155 = vmatpush1.bf16.msra.mxu0 %v3146_v22  ;;  %v3238_v22 = vld [vmem:[%s4265_s1 + $0x674] ss:$8 sps:$4 sm:$0xff]  }
  0x93   : > { %2198 = vmatpush1.bf16.msra.mxu1 %v3149_v23  ;;  %2156 = vmatprep.subr.bf16.mxu0 %v3154_v28  ;;  %v3241_v23 = vld [vmem:[%s4265_s1 + $0x774] ss:$8 sps:$4 sm:$0xff]  }
  0x94   : > { %2199 = vmatprep.subr.bf16.mxu1 %v3157_v30  ;;  %v4034_v28 = vld [vmem:[%s3541_s24 + $0x30] sm:$0xff]  ;;  %v2653_v30 = vcombine.low %v3850_v26, %v3853_v27 }
  0x95   : > { %v2656_v26 = vcombine.high %v4034_v28, %v4041_v31 }
  0x96   : > { %2157 = vmatpush1.bf16.msra.mxu0 %v3152_v32  ;;  %v4044_v32 = vld [vmem:[%s3541_s24 + $0x38] sm:$0xff] }
  0x97   : > { %2200 = vmatpush1.bf16.msra.mxu1 %v3155_v33  ;;  %2158 = vmatprep.subr.bf16.mxu0 %v3160_v34  ;;  %v4047_v33 = vld [vmem:[%s3541_s24 + $0x78] sm:$0xff] }
  0x98   : > { %2201 = vmatprep.subr.bf16.mxu1 %v3163_v35  ;;  %v3236_v34 = vld [vmem:[%s4265_s1 + $0x670] ss:$8 sps:$4 sm:$0xff]   ;;  %v2658_v27 = vcombine.high %v4044_v32, %v4047_v33 }
  0x99   : > { %v3239_v35 = vld [vmem:[%s4265_s1 + $0x770] ss:$8 sps:$4 sm:$0xff]  }
  0x9a   : > { %2159 = vmatpush1.bf16.msra.mxu0 %v3158_v36  ;;  %v3242_v36 = vld [vmem:[%s4265_s1 + $0x660] ss:$8 sps:$4 sm:$0xff]  }
  0x9b   : > { %2202 = vmatpush1.bf16.msra.mxu1 %v3161_v37  ;;  %2160 = vmatprep.subr.bf16.mxu0 %v3166_v38  ;;  %v3245_v37 = vld [vmem:[%s4265_s1 + $0x760] ss:$8 sps:$4 sm:$0xff]   ;;  %v3250_v38 = vld [vmem:[%s4265_s1 + $0x654] ss:$8 sps:$4 sm:$0xff]  }
  0x9c   : > { %2203 = vmatprep.subr.bf16.mxu1 %v3169_v39  ;;  %v3253_v39 = vld [vmem:[%s4265_s1 + $0x754] ss:$8 sps:$4 sm:$0xff]  }
  0x9e   : > { %2161 = vmatpush1.bf16.msra.mxu0 %v3164_v40  ;;  %v3248_v40 = vld [vmem:[%s4265_s1 + $0x650] ss:$8 sps:$4 sm:$0xff]  }
  0x9f   : > { %2204 = vmatpush1.bf16.msra.mxu1 %v3167_v41  ;;  %2162 = vmatprep.subr.bf16.mxu0 %v3172_v42  ;;  %v3251_v41 = vld [vmem:[%s4265_s1 + $0x750] ss:$8 sps:$4 sm:$0xff]   ;;  %v3256_v42 = vld [vmem:[%s4265_s1 + $0x644] ss:$8 sps:$4 sm:$0xff]  }
  0xa0   : > { %2205 = vmatprep.subr.bf16.mxu1 %v3175_v43  ;;  %v3259_v43 = vld [vmem:[%s4265_s1 + $0x744] ss:$8 sps:$4 sm:$0xff]  }
  0xa2   : > { %2163 = vmatpush1.bf16.msra.mxu0 %v3170_v44  ;;  %v3254_v44 = vld [vmem:[%s4265_s1 + $0x640] ss:$8 sps:$4 sm:$0xff]  }
  0xa3   : > { %2206 = vmatpush1.bf16.msra.mxu1 %v3173_v45  ;;  %2164 = vmatprep.subr.bf16.mxu0 %v3178_v46  ;;  %v3257_v45 = vld [vmem:[%s4265_s1 + $0x740] ss:$8 sps:$4 sm:$0xff]   ;;  %v3262_v46 = vld [vmem:[%s4265_s1 + $0x634] ss:$8 sps:$4 sm:$0xff]  }
  0xa4   : > { %2207 = vmatprep.subr.bf16.mxu1 %v3181_v47  ;;  %v3265_v47 = vld [vmem:[%s4265_s1 + $0x734] ss:$8 sps:$4 sm:$0xff]  }
  0xa6   : > { %2165 = vmatpush1.bf16.msra.mxu0 %v3176_v48  ;;  %v3260_v48 = vld [vmem:[%s4265_s1 + $0x630] ss:$8 sps:$4 sm:$0xff]  }
  0xa7   : > { %2208 = vmatpush1.bf16.msra.mxu1 %v3179_v49  ;;  %2166 = vmatprep.subr.bf16.mxu0 %v3184_v50  ;;  %v3263_v49 = vld [vmem:[%s4265_s1 + $0x730] ss:$8 sps:$4 sm:$0xff]   ;;  %v3268_v50 = vld [vmem:[%s4265_s1 + $0x624] ss:$8 sps:$4 sm:$0xff]  }
  0xa8   : > { %2209 = vmatprep.subr.bf16.mxu1 %v3187_v51  ;;  %v3271_v51 = vld [vmem:[%s4265_s1 + $0x724] ss:$8 sps:$4 sm:$0xff]  }
  0xaa   : > { %2167 = vmatpush1.bf16.msra.mxu0 %v3182_v52  ;;  %v3266_v52 = vld [vmem:[%s4265_s1 + $0x620] ss:$8 sps:$4 sm:$0xff]  }
  0xab   : > { %2210 = vmatpush1.bf16.msra.mxu1 %v3185_v53  ;;  %2168 = vmatprep.subr.bf16.mxu0 %v3190_v54  ;;  %v3269_v53 = vld [vmem:[%s4265_s1 + $0x720] ss:$8 sps:$4 sm:$0xff]   ;;  %v3274_v54 = vld [vmem:[%s4265_s1 + $0x614] ss:$8 sps:$4 sm:$0xff]  }
  0xac   : > { %2211 = vmatprep.subr.bf16.mxu1 %v3193_v55  ;;  %v3277_v55 = vld [vmem:[%s4265_s1 + $0x714] ss:$8 sps:$4 sm:$0xff]  }
  0xae   : > { %2169 = vmatpush2.bf16.msra.mxu0 %v3188_v56  ;;  %v3272_v56 = vld [vmem:[%s4265_s1 + $0x610] ss:$8 sps:$4 sm:$0xff]  }
  0xaf   : > { %2212 = vmatpush2.bf16.msra.mxu1 %v3191_v57  ;;  %2170 = vmatprep.subr.bf16.mxu0 %v3196_v58  ;;  %v3275_v57 = vld [vmem:[%s4265_s1 + $0x710] ss:$8 sps:$4 sm:$0xff]   ;;  %v3280_v58 = vld [vmem:[%s4265_s1 + $0x604] ss:$8 sps:$4 sm:$0xff]  }
  0xb0   : > { %2213 = vmatprep.subr.bf16.mxu1 %v3199_v59  ;;  %v3283_v59 = vld [vmem:[%s4265_s1 + $0x704] ss:$8 sps:$4 sm:$0xff]  }
  0xb2   : > { %2171 = vmatpush2.bf16.msra.mxu0 %v3194_v60  ;;  %v3278_v60 = vld [vmem:[%s4265_s1 + $0x600] ss:$8 sps:$4 sm:$0xff]  }
  0xb3   : > { %2214 = vmatpush2.bf16.msra.mxu1 %v3197_v61  ;;  %2172 = vmatprep.subr.bf16.mxu0 %v3202_v62  ;;  %v3281_v61 = vld [vmem:[%s4265_s1 + $0x700] ss:$8 sps:$4 sm:$0xff]   ;;  %v3286_v62 = vld [vmem:[%s4265_s1 + $0x6f4] ss:$8 sps:$4 sm:$0xff]  }
  0xb4   : > { %2215 = vmatprep.subr.bf16.mxu1 %v3205_v63  ;;  %v3289_v63 = vld [vmem:[%s4265_s1 + $0x7f4] ss:$8 sps:$4 sm:$0xff]  }
  0xb6   : > { %2173 = vmatpush2.bf16.msra.mxu0 %v3200_v0  ;;  %v3284_v0 = vld [vmem:[%s4265_s1 + $0x6f0] ss:$8 sps:$4 sm:$0xff]  }
  0xb7   : > { %2216 = vmatpush2.bf16.msra.mxu1 %v3203_v1  ;;  %2174 = vmatprep.subr.bf16.mxu0 %v3208_v2  ;;  %v3287_v1 = vld [vmem:[%s4265_s1 + $0x7f0] ss:$8 sps:$4 sm:$0xff]   ;;  %v3292_v2 = vld [vmem:[%s4265_s1 + $0x6e4] ss:$8 sps:$4 sm:$0xff]  }
  0xb8   : > { %2217 = vmatprep.subr.bf16.mxu1 %v3211_v3  ;;  %v3295_v3 = vld [vmem:[%s4265_s1 + $0x7e4] ss:$8 sps:$4 sm:$0xff]  }
  0xba   : > { %2175 = vmatpush2.bf16.msra.mxu0 %v3206_v4  ;;  %v3290_v4 = vld [vmem:[%s4265_s1 + $0x6e0] ss:$8 sps:$4 sm:$0xff]  }
  0xbb   : > { %2218 = vmatpush2.bf16.msra.mxu1 %v3209_v5  ;;  %2176 = vmatprep.subr.bf16.mxu0 %v3214_v6  ;;  %v3293_v5 = vld [vmem:[%s4265_s1 + $0x7e0] ss:$8 sps:$4 sm:$0xff]   ;;  %v3298_v6 = vld [vmem:[%s4265_s1 + $0x6d4] ss:$8 sps:$4 sm:$0xff]  }
  0xbc   : > { %2219 = vmatprep.subr.bf16.mxu1 %v3217_v7  ;;  %v3301_v7 = vld [vmem:[%s4265_s1 + $0x7d4] ss:$8 sps:$4 sm:$0xff]  }
  0xbe   : > { %2177 = vmatpush2.bf16.msra.mxu0 %v3212_v8  ;;  %v3296_v8 = vld [vmem:[%s4265_s1 + $0x6d0] ss:$8 sps:$4 sm:$0xff]  }
  0xbf   : > { %2220 = vmatpush2.bf16.msra.mxu1 %v3215_v9  ;;  %2178 = vmatprep.subr.bf16.mxu0 %v3220_v10  ;;  %v3299_v9 = vld [vmem:[%s4265_s1 + $0x7d0] ss:$8 sps:$4 sm:$0xff]   ;;  %v3304_v10 = vld [vmem:[%s4265_s1 + $0x6c4] ss:$8 sps:$4 sm:$0xff]  }
  0xc0   : > { %2221 = vmatprep.subr.bf16.mxu1 %v3223_v11  ;;  %v3307_v11 = vld [vmem:[%s4265_s1 + $0x7c4] ss:$8 sps:$4 sm:$0xff]  }
  0xc2   : > { %2179 = vmatpush2.bf16.msra.mxu0 %v3218_v12  ;;  %v3302_v12 = vld [vmem:[%s4265_s1 + $0x6c0] ss:$8 sps:$4 sm:$0xff]  }
  0xc3   : > { %2222 = vmatpush2.bf16.msra.mxu1 %v3221_v13  ;;  %2180 = vmatprep.subr.bf16.mxu0 %v3226_v14  ;;  %v3305_v13 = vld [vmem:[%s4265_s1 + $0x7c0] ss:$8 sps:$4 sm:$0xff]   ;;  %v3310_v14 = vld [vmem:[%s4265_s1 + $0x6b4] ss:$8 sps:$4 sm:$0xff]  }
  0xc4   : > { %2223 = vmatprep.subr.bf16.mxu1 %v3229_v15  ;;  %v3313_v15 = vld [vmem:[%s4265_s1 + $0x7b4] ss:$8 sps:$4 sm:$0xff]  }
  0xc6   : > { %2181 = vmatpush2.bf16.msra.mxu0 %v3224_v16  ;;  %v3308_v16 = vld [vmem:[%s4265_s1 + $0x6b0] ss:$8 sps:$4 sm:$0xff]  }
  0xc7   : > { %2224 = vmatpush2.bf16.msra.mxu1 %v3227_v17  ;;  %2182 = vmatprep.subr.bf16.mxu0 %v3232_v18  ;;  %v3311_v17 = vld [vmem:[%s4265_s1 + $0x7b0] ss:$8 sps:$4 sm:$0xff]   ;;  %v3316_v18 = vld [vmem:[%s4265_s1 + $0x6a4] ss:$8 sps:$4 sm:$0xff]  }
  0xc8   : > { %2225 = vmatprep.subr.bf16.mxu1 %v3235_v19  ;;  %v3319_v19 = vld [vmem:[%s4265_s1 + $0x7a4] ss:$8 sps:$4 sm:$0xff]  }
  0xca   : > { %2183 = vmatpush2.bf16.msra.mxu0 %v3230_v20  ;;  %v3314_v20 = vld [vmem:[%s4265_s1 + $0x6a0] ss:$8 sps:$4 sm:$0xff]  }
  0xcb   : > { %2226 = vmatpush2.bf16.msra.mxu1 %v3233_v21  ;;  %2238 = vmatprep.subr.bf16.mxu0 %v3238_v22  ;;  %v3317_v21 = vld [vmem:[%s4265_s1 + $0x7a0] ss:$8 sps:$4 sm:$0xff]   ;;  %v3322_v22 = vld [vmem:[%s4265_s1 + $0x694] ss:$8 sps:$4 sm:$0xff]  }
  0xcc   : > { %2281 = vmatprep.subr.bf16.mxu1 %v3241_v23  ;;  %v3325_v23 = vld [vmem:[%s4265_s1 + $0x794] ss:$8 sps:$4 sm:$0xff]  }
  0xcd   : > { %2185 = vmatmul.mubr.bf16.vlgmr.msra.gmra.mxu0 %v2651_v29  ;;  %v3320_v29 = vld [vmem:[%s4265_s1 + $0x690] ss:$8 sps:$4 sm:$0xff]  }
  0xce   : > { %2228 = vmatmul.mubr.bf16.vlgmr.msra.gmra.mxu1 %v2653_v30  ;;  %2239 = vmatpush1.bf16.msra.mxu0 %v3236_v34  ;;  %v3323_v30 = vld [vmem:[%s4265_s1 + $0x790] ss:$8 sps:$4 sm:$0xff]   ;;  %v3328_v34 = vld [vmem:[%s4265_s1 + $0x684] ss:$8 sps:$4 sm:$0xff]  }
  0xcf   : > { %2282 = vmatpush1.bf16.msra.mxu1 %v3239_v35  ;;  %2240 = vmatprep.subr.bf16.mxu0 %v3244_v24  ;;  %v3331_v35 = vld [vmem:[%s4265_s1 + $0x784] ss:$8 sps:$4 sm:$0xff]   ;;  %v3326_v24 = vld [vmem:[%s4265_s1 + $0x680] ss:$8 sps:$4 sm:$0xff]  }
  0xd0   : > { %2283 = vmatprep.subr.bf16.mxu1 %v3247_v25  ;;  %2270 = vmatprep.mubr.bf16.mxu0 %v2656_v26  ;;  %v3329_v25 = vld [vmem:[%s4265_s1 + $0x780] ss:$8 sps:$4 sm:$0xff]   ;;  %v2655_v26 = vcombine.low %v4034_v28, %v4041_v31 }
  0xd1   : > { %2313 = vmatprep.mubr.bf16.mxu1 %v2658_v27  ;;  %v2657_v27 = vcombine.low %v4044_v32, %v4047_v33 }
  0xd2   : > { %2241 = vmatpush1.bf16.msra.mxu0 %v3242_v36 }
  0xd3   : > { %2284 = vmatpush1.bf16.msra.mxu1 %v3245_v37  ;;  %2242 = vmatprep.subr.bf16.mxu0 %v3250_v38 }
  0xd4   : > { %2285 = vmatprep.subr.bf16.mxu1 %v3253_v39 }
  0xd6   : > { %2243 = vmatpush1.bf16.msra.mxu0 %v3248_v40 }
  0xd7   : > { %2286 = vmatpush1.bf16.msra.mxu1 %v3251_v41  ;;  %2244 = vmatprep.subr.bf16.mxu0 %v3256_v42 }
  0xd8   : > { %2287 = vmatprep.subr.bf16.mxu1 %v3259_v43 }
  0xda   : > { %2245 = vmatpush1.bf16.msra.mxu0 %v3254_v44 }
  0xdb   : > { %2288 = vmatpush1.bf16.msra.mxu1 %v3257_v45  ;;  %2246 = vmatprep.subr.bf16.mxu0 %v3262_v46 }
  0xdc   : > { %2289 = vmatprep.subr.bf16.mxu1 %v3265_v47 }
  0xde   : > { %2247 = vmatpush1.bf16.msra.mxu0 %v3260_v48 }
  0xdf   : > { %2290 = vmatpush1.bf16.msra.mxu1 %v3263_v49  ;;  %2248 = vmatprep.subr.bf16.mxu0 %v3268_v50 }
  0xe0   : > { %2291 = vmatprep.subr.bf16.mxu1 %v3271_v51 }
  0xe2   : > { %2249 = vmatpush1.bf16.msra.mxu0 %v3266_v52 }
  0xe3   : > { %2292 = vmatpush1.bf16.msra.mxu1 %v3269_v53  ;;  %2250 = vmatprep.subr.bf16.mxu0 %v3274_v54 }
  0xe4   : > { %2293 = vmatprep.subr.bf16.mxu1 %v3277_v55 }
  0xe6   : > { %2251 = vmatpush1.bf16.msra.mxu0 %v3272_v56 }
  0xe7   : > { %2294 = vmatpush1.bf16.msra.mxu1 %v3275_v57  ;;  %2252 = vmatprep.subr.bf16.mxu0 %v3280_v58 }
  0xe8   : > { %2295 = vmatprep.subr.bf16.mxu1 %v3283_v59 }
  0xea   : > { %2253 = vmatpush1.bf16.msra.mxu0 %v3278_v60 }
  0xeb   : > { %2296 = vmatpush1.bf16.msra.mxu1 %v3281_v61  ;;  %2254 = vmatprep.subr.bf16.mxu0 %v3286_v62 }
  0xec   : > { %2297 = vmatprep.subr.bf16.mxu1 %v3289_v63 }
  0xee   : > { %2255 = vmatpush2.bf16.msra.mxu0 %v3284_v0 }
  0xef   : > { %2298 = vmatpush2.bf16.msra.mxu1 %v3287_v1  ;;  %2256 = vmatprep.subr.bf16.mxu0 %v3292_v2 }
  0xf0   : > { %2299 = vmatprep.subr.bf16.mxu1 %v3295_v3 }
  0xf2   : > { %2257 = vmatpush2.bf16.msra.mxu0 %v3290_v4 }
  0xf3   : > { %2300 = vmatpush2.bf16.msra.mxu1 %v3293_v5  ;;  %2258 = vmatprep.subr.bf16.mxu0 %v3298_v6 }
  0xf4   : > { %2301 = vmatprep.subr.bf16.mxu1 %v3301_v7 }
  0xf6   : > { %2259 = vmatpush2.bf16.msra.mxu0 %v3296_v8 }
  0xf7   : > { %2302 = vmatpush2.bf16.msra.mxu1 %v3299_v9  ;;  %2260 = vmatprep.subr.bf16.mxu0 %v3304_v10 }
  0xf8   : > { %2303 = vmatprep.subr.bf16.mxu1 %v3307_v11 }
  0xfa   : > { %2261 = vmatpush2.bf16.msra.mxu0 %v3302_v12 }
  0xfb   : > { %2304 = vmatpush2.bf16.msra.mxu1 %v3305_v13  ;;  %2262 = vmatprep.subr.bf16.mxu0 %v3310_v14 }
  0xfc   : > { %2305 = vmatprep.subr.bf16.mxu1 %v3313_v15 }
  0xfe   : > { %2263 = vmatpush2.bf16.msra.mxu0 %v3308_v16 }
  0xff   : > { %2306 = vmatpush2.bf16.msra.mxu1 %v3311_v17  ;;  %2264 = vmatprep.subr.bf16.mxu0 %v3316_v18 }
 0x100   : > { %2307 = vmatprep.subr.bf16.mxu1 %v3319_v19 }
 0x102   : > { %2265 = vmatpush2.bf16.msra.mxu0 %v3314_v20 }
 0x103   : > { %2308 = vmatpush2.bf16.msra.mxu1 %v3317_v21  ;;  %2266 = vmatprep.subr.bf16.mxu0 %v3322_v22 }
 0x104   : > { %2309 = vmatprep.subr.bf16.mxu1 %v3325_v23 }
 0x106   : > { %2267 = vmatpush2.bf16.msra.mxu0 %v3320_v29 }
 0x107   : > { %2310 = vmatpush2.bf16.msra.mxu1 %v3323_v30  ;;  %2268 = vmatprep.subr.bf16.mxu0 %v3328_v34 }
 0x108   : > { %2311 = vmatprep.subr.bf16.mxu1 %v3331_v35 }
 0x10a   : > { %2269 = vmatpush2.bf16.msra.mxu0 %v3326_v24 }
 0x10b   : > { %2312 = vmatpush2.bf16.msra.mxu1 %v3329_v25 }
 0x10d   : > { %2271 = vmatmul.mubr.bf16.vlgmr.msra.gmra.mxu0 %v2655_v26  ;;  %v2014_v36 = vpop.f32.mrf.mxu0 }
 0x10e   : > { %2314 = vmatmul.mubr.bf16.vlgmr.msra.gmra.mxu1 %v2657_v27  ;;  %v2057_v37 = vpop.f32.mrf.mxu1 }
 0x10f   : > { %v2016_v38 = vpop.f32.mrf.mxu0  ;;  %v2058_v50 = vadd.f32 %v2057_v37, %v2014_v36 }
 0x110   : > { %v2059_v39 = vpop.f32.mrf.mxu1 }
 0x111   : > { %v2018_v40 = vpop.f32.mrf.mxu0  ;;  %v2060_v51 = vadd.f32 %v2059_v39, %v2016_v38 }
 0x112   : > { %v2061_v41 = vpop.f32.mrf.mxu1 }
 0x113   : > { %v2020_v42 = vpop.f32.mrf.mxu0  ;;  %v2062_v55 = vadd.f32 %v2061_v41, %v2018_v40 }
 0x114   : > { %v2063_v43 = vpop.f32.mrf.mxu1 }
 0x115   : > { %v2064_v57 = vadd.f32 %v2063_v43, %v2020_v42 }
 0x14d   : > { %v2100_v44 = vpop.f32.mrf.mxu0 }
 0x14e   : > { %v2143_v45 = vpop.f32.mrf.mxu1  ;;  %v2101_v52 = vadd.f32 %v2100_v44, %v2058_v50 }
 0x14f   : > { %v2102_v46 = vpop.f32.mrf.mxu0 }
 0x150   : > { %v2145_v47 = vpop.f32.mrf.mxu1  ;;  %v2103_v56 = vadd.f32 %v2102_v46, %v2060_v51  ;;  %v2144_v58 = vadd.f32 %v2143_v45, %v2101_v52  ;;  %v3356_v45 = vmov 1966171168  }
 0x151   : > { %v2104_v28 = vpop.f32.mrf.mxu0  ;;  %v2371_v46 = vunpack.c.l.s4 %v3356_v45 }
 0x152   : > { %v2147_v31 = vpop.f32.mrf.mxu1  ;;  %v2105_v59 = vadd.f32 %v2104_v28, %v2062_v55  ;;  %v2146_v62 = vadd.f32 %v2145_v47, %v2103_v56 }
 0x153   : > { %v2106_v48 = vpop.f32.mrf.mxu0  ;;  %v2372_v52 = vunpack.c.0.s8 %v2371_v46 }
 0x154   : > { %v2149_v32 = vpop.f32.mrf.mxu1  ;;  %v2107_v63 = vadd.f32 %v2106_v48, %v2064_v57  ;;  %v2148_v1 = vadd.f32 %v2147_v31, %v2105_v59 }
 0x156   : > { %v2150_v5 = vadd.f32 %v2149_v32, %v2107_v63  ;;  %v2373_v32 = vlaneseq }
 0x158   : > { %v2374_v57 = vshrl.u32 %v2373_v32, 7  ;;  %vm2387_vm0 = vcmp.lt.s32.totalorder %v2373_v32, 256 }
 0x18d   : > { %v2186_v33 = vpop.f32.mrf.mxu0 }
 0x18e   : > { %v2229_v49 = vpop.f32.mrf.mxu1  ;;  %v2187_v0 = vadd.f32 %v2186_v33, %v2144_v58 }
 0x18f   : > { %v2188_v53 = vpop.f32.mrf.mxu0 }
 0x190   : > { %v2231_v54 = vpop.f32.mrf.mxu1  ;;  %v2189_v2 = vadd.f32 %v2188_v53, %v2146_v62  ;;  %v2230_v6 = vadd.f32 %v2229_v49, %v2187_v0  ;;  %v2375_v0 = vsub.s32 %v2372_v52, %v2374_v57 }
 0x191   : > { %v2190_v60 = vpop.f32.mrf.mxu0 }
 0x192   : > { %v2233_v61 = vpop.f32.mrf.mxu1  ;;  %v2191_v7 = vadd.f32 %v2190_v60, %v2148_v1  ;;  %v2232_v10 = vadd.f32 %v2231_v54, %v2189_v2 }
 0x193   : > { %v2192_v3 = vpop.f32.mrf.mxu0 }
 0x194   : > { %v2235_v4 = vpop.f32.mrf.mxu1  ;;  %v2193_v11 = vadd.f32 %v2192_v3, %v2150_v5  ;;  %v2234_v15 = vadd.f32 %v2233_v61, %v2191_v7 }
 0x196   : > { %v2236_v19 = vadd.f32 %v2235_v4, %v2193_v11 }
 0x1cd   : > { %v2272_v8 = vpop.f32.mrf.mxu0 }
 0x1ce   : > { %v2315_v9 = vpop.f32.mrf.mxu1  ;;  %v2273_v12 = vadd.f32 %v2272_v8, %v2230_v6 }
 0x1cf   : > { %v2274_v13 = vpop.f32.mrf.mxu0 }
 0x1d0   : > { %v2317_v14 = vpop.f32.mrf.mxu1  ;;  %v2275_v16 = vadd.f32 %v2274_v13, %v2232_v10  ;;  %v2316_v20 = vadd.f32 %v2315_v9, %v2273_v12 }
 0x1d1   : > { %v2276_v17 = vpop.f32.mrf.mxu0 }
 0x1d2   : > { %v2319_v18 = vpop.f32.mrf.mxu1  ;;  %v2318_v21 = vadd.f32 %v2317_v14, %v2275_v16  ;;  %v2277_v22 = vadd.f32 %v2276_v17, %v2234_v15  ;;  %v2390_v24 = vmul.f32 %v2316_v20, %v2316_v20 }
 0x1d3   : > { %v2278_v23 = vpop.f32.mrf.mxu0 }
 0x1d4   : > { %v2921_v29 = vpack.c.bf16 %v2318_v21, %v2316_v20  ;;  %v2320_v30 = vadd.f32 %v2319_v18, %v2277_v22  ;;  %v2279_v34 = vadd.f32 %v2278_v23, %v2236_v19  ;;  %v2321_v35 = vpop.f32.mrf.mxu1  ;;  %v2391_v40 = vmul.f32 %v2318_v21, %v2318_v21 }
 0x1d6   : > { %2351 = vst [vmem:[%s315_s26] sm:$0xff] %v2921_v29  ;;  %v2353_v25 = vadd.f32 %v2320_v30, %v2316_v20  ;;  %v2392_v26 = vmul.f32 %v2320_v30, %v2320_v30  ;;  %v2322_v27 = vadd.f32 %v2321_v35, %v2279_v34 }
 0x1d8   : > { %v2354_v36 = vrot.slane %v2353_v25, 4  ;;  %v2394_v37 = vadd.f32 %v2392_v26, %v2390_v24  ;;  %v2922_v38 = vpack.c.bf16 %v2322_v27, %v2320_v30  ;;  %v2360_v39 = vadd.f32 %v2322_v27, %v2318_v21 }
 0x1d9   : > { %v2393_v41 = vmul.f32 %v2322_v27, %v2322_v27 }
 0x1da   : > { %v2355_v42 = vadd.f32 %v2354_v36, %v2353_v25  ;;  %v2395_v43 = vrot.slane %v2394_v37, 4  ;;  %2352 = vst [vmem:[%s315_s26 + $0x8] sm:$0xff] %v2922_v38  ;;  %v2361_v44 = vrot.slane %v2360_v39, 4 }
 0x1db   : > { %v2401_v47 = vadd.f32 %v2393_v41, %v2391_v40 }
 0x1dc   : > { %v2356_v28 = vrot.slane %v2355_v42, 2  ;;  %v2396_v31 = vadd.f32 %v2395_v43, %v2394_v37  ;;  %v2362_v48 = vadd.f32 %v2361_v44, %v2360_v39 }
 0x1dd   : > { %v2402_v33 = vrot.slane %v2401_v47, 4 }
 0x1de   : > { %v2357_v49 = vadd.f32 %v2356_v28, %v2355_v42  ;;  %v2397_v50 = vrot.slane %v2396_v31, 2  ;;  %v2363_v51 = vrot.slane %v2362_v48, 2 }
 0x1df   : > { %v2403_v53 = vadd.f32 %v2402_v33, %v2401_v47 }
 0x1e0   : > { %v2358_v54 = vrot.slane %v2357_v49, 1  ;;  %v2398_v55 = vadd.f32 %v2397_v50, %v2396_v31  ;;  %v2364_v56 = vadd.f32 %v2363_v51, %v2362_v48 }
 0x1e1   : > { %v2404_v58 = vrot.slane %v2403_v53, 2 }
 0x1e2   : > { %v2365_v59 = vrot.slane %v2364_v56, 1  ;;  %v2399_v60 = vrot.slane %v2398_v55, 1  ;;  %v2359_v62 = vadd.f32 %v2358_v54, %v2357_v49 }
 0x1e3   : > { %v2405_v61 = vadd.f32 %v2404_v58, %v2403_v53 }
 0x1e4   : > { %v2366_v63 = vadd.f32 %v2365_v59, %v2364_v56  ;;  %v2400_v3 = vadd.f32 %v2399_v60, %v2398_v55 }
 0x1e5   : > { %v2406_v1 = vrot.slane %v2405_v61, 1 }
 0x1e6   : > { %v2369_v2 = vcombine.low %v2359_v62, %v2366_v63 }
 0x1e7   : > { %v2407_v4 = vadd.f32 %v2406_v1, %v2405_v61 }
 0x1e8   : > { %v2376_v5 = vrot.slane %v2369_v2, %v2375_v0 }
 0x1e9   : > { %v2410_v6 = vcombine.low %v2400_v3, %v2407_v4 }
 0x1ea   : > { %v2383_v7 = vrot.slane %v2376_v5, %v2375_v0 }
 0x1eb   : > { %v2417_v8 = vrot.slane %v2410_v6, %v2375_v0 }
 0x1ec   : > { %2389 = vst.msk [vmem:[%s325_s29] sm:$0x3] %vm2387_vm0, %v2383_v7 }
 0x1ed   : > { %v2424_v9 = vrot.slane %v2417_v8, %v2375_v0 }
 0x1ef   : > { %2426 = vst.msk [vmem:[%s334_s6] sm:$0x3] %vm2387_vm0, %v2424_v9 }
 0x1f0 PF: > { %s15_s17 = sadd.s32 1, %s3354_s17   ;;  %s4269_s15 = smov %s3350_s16 }
 0x1f1   : > { %p12_p6 = scmp.ge.s32.totalorder %s15_s17, 4   ;;  %s4270_s16 = smov %s4272_s18 }
 0x1f3   :  { %14 = sbr.rel (!%p12_p6) target bundleno = 2 (0x2), region = 93 }

// kernel: _lambda_.12
= control target key start
LH: loop header
LB: loop body
LE: loop exit
PB: predicated region body
PF: predicated region fallthrough
CT: control target
= control target key end

     0   :  { %v28_v0 = vlaneseq  ;;  %s180_s0 = inlined_call_operand.vmem [shape: bf16[32,256], index: 0, kind: input, shape index: {}]   ;;  %s181_s1 = inlined_call_operand.vmem [shape: f32[1,256], index: 1, kind: input, shape index: {}]   ;;  %s182_s2 = inlined_call_operand.vmem [shape: f32[1,256], index: 2, kind: input, shape index: {}]   ;;  %s183_s3 = inlined_call_operand.vmem [shape: bf16[32,256], index: 3, kind: output, shape index: {}]  }
   0x1   :  { %v14_v1 = vld [vmem:[%s180_s0] sm:$0xff]  ;;  %v15_v3 = vld [vmem:[%s180_s0 + $0x8] sm:$0xff]  ;;  %v16_v4 = vld [vmem:[%s180_s0 + $0x10] sm:$0xff] }
   0x2   :  { %v29_v2 = vshrl.u32 %v28_v0, 7  ;;  %v17_v5 = vld [vmem:[%s180_s0 + $0x18] sm:$0xff]  ;;  %v18_v6 = vunpack.c.l.bf16 %v14_v1  ;;  %v19_v7 = vunpack.c.h.bf16 %v14_v1  ;;  %v26_v8 = vld [vmem:[%s181_s1] sm:$0x3]  ;;  %v20_v12 = vunpack.c.l.bf16 %v15_v3 }
   0x3   :  { %v46_v9 = vld [vmem:[%s182_s2] sm:$0x3]  ;;  %v21_v13 = vunpack.c.h.bf16 %v15_v3  ;;  %v22_v14 = vunpack.c.l.bf16 %v16_v4  ;;  %v23_v15 = vunpack.c.h.bf16 %v16_v4  ;;  %v24_v16 = vunpack.c.l.bf16 %v17_v5 }
   0x4   :  { %v30_v10 = vsub.s32 0, %v29_v2  ;;  %v34_v11 = vsub.s32 1, %v29_v2  ;;  %v25_v17 = vunpack.c.h.bf16 %v17_v5 }
   0x6   :  { %v31_v18 = vrot.slane %v26_v8, %v30_v10  ;;  %v35_v19 = vrot.slane %v26_v8, %v34_v11  ;;  %v51_v20 = vrot.slane %v46_v9, %v30_v10  ;;  %v55_v21 = vrot.slane %v46_v9, %v34_v11 }
   0x8   :  { %v38_v22 = vmul.f32 %v31_v18, %v18_v6  ;;  %v39_v23 = vmul.f32 %v35_v19, %v19_v7  ;;  %v40_v24 = vmul.f32 %v31_v18, %v20_v12  ;;  %v41_v25 = vmul.f32 %v35_v19, %v21_v13 }
   0x9   :  { %v42_v26 = vmul.f32 %v31_v18, %v22_v14  ;;  %v43_v27 = vmul.f32 %v35_v19, %v23_v15  ;;  %v44_v28 = vmul.f32 %v31_v18, %v24_v16  ;;  %v45_v29 = vmul.f32 %v35_v19, %v25_v17 }
   0xa   :  { %v58_v30 = vadd.f32 %v51_v20, %v38_v22  ;;  %v59_v31 = vadd.f32 %v55_v21, %v39_v23  ;;  %v60_v32 = vadd.f32 %v51_v20, %v40_v24  ;;  %v61_v33 = vadd.f32 %v55_v21, %v41_v25 }
   0xb   :  { %v62_v34 = vadd.f32 %v51_v20, %v42_v26  ;;  %v63_v35 = vadd.f32 %v55_v21, %v43_v27  ;;  %v64_v36 = vadd.f32 %v51_v20, %v44_v28  ;;  %v65_v37 = vadd.f32 %v55_v21, %v45_v29 }
   0xc   :  { %vm66_vm0 = vcmp.ge.f32.partialorder %v58_v30, 0.0  ;;  %vm67_vm1 = vcmp.ge.f32.partialorder %v59_v31, 0.0  ;;  %v74_v38 = vmul.f32 0.2, %v58_v30  ;;  %v75_v39 = vmul.f32 0.2, %v59_v31 }
   0xd   :  { %vm68_vm2 = vcmp.ge.f32.partialorder %v60_v32, 0.0  ;;  %vm69_vm3 = vcmp.ge.f32.partialorder %v61_v33, 0.0  ;;  %v76_v40 = vmul.f32 0.2, %v60_v32  ;;  %v77_v41 = vmul.f32 0.2, %v61_v33 }
   0xe   :  { %v82_v42 = vsel %vm66_vm0, %v58_v30, %v74_v38  ;;  %v83_v43 = vsel %vm67_vm1, %v59_v31, %v75_v39  ;;  %vm70_vm4 = vcmp.ge.f32.partialorder %v62_v34, 0.0  ;;  %vm71_vm5 = vcmp.ge.f32.partialorder %v63_v35, 0.0 }
   0xf   :  { %v126_v44 = vpack.c.bf16 %v83_v43, %v82_v42  ;;  %v84_v45 = vsel %vm68_vm2, %v60_v32, %v76_v40  ;;  %v85_v46 = vsel %vm69_vm3, %v61_v33, %v77_v41  ;;  %v78_v47 = vmul.f32 0.2, %v62_v34 }
  0x10   :  { %v127_v48 = vpack.c.bf16 %v85_v46, %v84_v45  ;;  %v79_v49 = vmul.f32 0.2, %v63_v35  ;;  %vm72_vm6 = vcmp.ge.f32.partialorder %v64_v36, 0.0  ;;  %vm73_vm7 = vcmp.ge.f32.partialorder %v65_v37, 0.0 }
  0x11   :  { %114 = vst [vmem:[%s183_s3] sm:$0xff] %v126_v44  ;;  %v86_v50 = vsel %vm70_vm4, %v62_v34, %v78_v47  ;;  %v80_v51 = vmul.f32 0.2, %v64_v36  ;;  %v81_v52 = vmul.f32 0.2, %v65_v37 }
  0x12   :  { %115 = vst [vmem:[%s183_s3 + $0x8] sm:$0xff] %v127_v48  ;;  %v87_v53 = vsel %vm71_vm5, %v63_v35, %v79_v49 }
  0x13   :  { %v128_v54 = vpack.c.bf16 %v87_v53, %v86_v50  ;;  %v88_v55 = vsel %vm72_vm6, %v64_v36, %v80_v51  ;;  %v89_v56 = vsel %vm73_vm7, %v65_v37, %v81_v52 }
  0x14   :  { %v129_v57 = vpack.c.bf16 %v89_v56, %v88_v55 }
  0x15   :  { %116 = vst [vmem:[%s183_s3 + $0x10] sm:$0xff] %v128_v54 }
  0x16   :  { %117 = vst [vmem:[%s183_s3 + $0x18] sm:$0xff] %v129_v57 }

// kernel: _lambda_.14
= control target key start
LH: loop header
LB: loop body
LE: loop exit
PB: predicated region body
PF: predicated region fallthrough
CT: control target
= control target key end

     0   :  { %v40_v0 = vlaneseq  ;;  %s365_s0 = inlined_call_operand.vmem [shape: bf16[32,512], index: 0, kind: input, shape index: {}]   ;;  %s366_s1 = inlined_call_operand.vmem [shape: f32[1,512], index: 1, kind: input, shape index: {}]   ;;  %s367_s2 = inlined_call_operand.vmem [shape: f32[1,512], index: 2, kind: input, shape index: {}]   ;;  %s368_s3 = inlined_call_operand.vmem [shape: bf16[32,512], index: 3, kind: output, shape index: {}]  }
   0x1   :  { %v14_v1 = vld [vmem:[%s365_s0] sm:$0xff]  ;;  %v15_v5 = vld [vmem:[%s365_s0 + $0x8] sm:$0xff]  ;;  %v16_v6 = vld [vmem:[%s365_s0 + $0x10] sm:$0xff] }
   0x2   :  { %v22_v2 = vunpack.c.l.bf16 %v14_v1  ;;  %v23_v3 = vunpack.c.h.bf16 %v14_v1  ;;  %v41_v4 = vshrl.u32 %v40_v0, 7  ;;  %v17_v7 = vld [vmem:[%s365_s0 + $0x18] sm:$0xff]  ;;  %v38_v8 = vld [vmem:[%s366_s1] sm:$0xf]  ;;  %v24_v10 = vunpack.c.l.bf16 %v15_v5  ;;  %v19_v57 = vld [vmem:[%s365_s0 + $0x28] sm:$0xff] }
   0x3   :  { %v76_v9 = vld [vmem:[%s367_s2] sm:$0xf]  ;;  %v25_v11 = vunpack.c.h.bf16 %v15_v5  ;;  %v26_v12 = vunpack.c.l.bf16 %v16_v6  ;;  %v27_v13 = vunpack.c.h.bf16 %v16_v6  ;;  %v28_v19 = vunpack.c.l.bf16 %v17_v7 }
   0x4   :  { %v279_v14 = vld [vmem:[%s365_s0 + $0x20] sm:$0xff]  ;;  %v42_v15 = vsub.s32 0, %v41_v4  ;;  %v46_v16 = vsub.s32 1, %v41_v4  ;;  %v50_v17 = vsub.s32 2, %v41_v4  ;;  %v54_v18 = vsub.s32 3, %v41_v4  ;;  %v20_v4 = vld [vmem:[%s365_s0 + $0x30] sm:$0xff] }
   0x5   :  { %v29_v20 = vunpack.c.h.bf16 %v17_v7  ;;  %v30_v21 = vunpack.c.l.bf16 %v279_v14  ;;  %v31_v22 = vunpack.c.h.bf16 %v279_v14 }
   0x6   :  { %v283_v23 = vrot.slane %v38_v8, %v42_v15  ;;  %v285_v24 = vrot.slane %v38_v8, %v46_v16  ;;  %v287_v25 = vrot.slane %v76_v9, %v42_v15  ;;  %v289_v26 = vrot.slane %v76_v9, %v46_v16 }
   0x7   :  { %v291_v27 = vrot.slane %v38_v8, %v50_v17  ;;  %v293_v28 = vrot.slane %v38_v8, %v54_v18  ;;  %v295_v29 = vrot.slane %v76_v9, %v50_v17  ;;  %v297_v30 = vrot.slane %v76_v9, %v54_v18 }
   0x8   :  { %v60_v31 = vmul.f32 %v283_v23, %v22_v2  ;;  %v61_v32 = vmul.f32 %v285_v24, %v23_v3  ;;  %v64_v33 = vmul.f32 %v283_v23, %v26_v12  ;;  %v65_v34 = vmul.f32 %v285_v24, %v27_v13  ;;  %v21_v13 = vld [vmem:[%s365_s0 + $0x38] sm:$0xff] }
   0x9   :  { %v62_v35 = vmul.f32 %v291_v27, %v24_v10  ;;  %v63_v36 = vmul.f32 %v293_v28, %v25_v11  ;;  %v66_v37 = vmul.f32 %v291_v27, %v28_v19  ;;  %v67_v38 = vmul.f32 %v293_v28, %v29_v20 }
   0xa   :  { %v98_v39 = vadd.f32 %v287_v25, %v60_v31  ;;  %v99_v40 = vadd.f32 %v289_v26, %v61_v32  ;;  %v102_v41 = vadd.f32 %v287_v25, %v64_v33  ;;  %v103_v42 = vadd.f32 %v289_v26, %v65_v34 }
   0xb   :  { %v100_v43 = vadd.f32 %v295_v29, %v62_v35  ;;  %v101_v44 = vadd.f32 %v297_v30, %v63_v36  ;;  %v104_v45 = vadd.f32 %v295_v29, %v66_v37  ;;  %v105_v46 = vadd.f32 %v297_v30, %v67_v38 }
   0xc   :  { %vm114_vm0 = vcmp.ge.f32.partialorder %v98_v39, 0.0  ;;  %vm115_vm1 = vcmp.ge.f32.partialorder %v99_v40, 0.0  ;;  %v130_v47 = vmul.f32 0.2, %v98_v39  ;;  %v131_v48 = vmul.f32 0.2, %v99_v40 }
   0xd   :  { %vm116_vm2 = vcmp.ge.f32.partialorder %v100_v43, 0.0  ;;  %vm117_vm3 = vcmp.ge.f32.partialorder %v101_v44, 0.0  ;;  %v132_v49 = vmul.f32 0.2, %v100_v43  ;;  %v133_v50 = vmul.f32 0.2, %v101_v44 }
   0xe   :  { %v146_v51 = vsel %vm114_vm0, %v98_v39, %v130_v47  ;;  %v147_v52 = vsel %vm115_vm1, %v99_v40, %v131_v48  ;;  %vm118_vm4 = vcmp.ge.f32.partialorder %v102_v41, 0.0  ;;  %vm119_vm5 = vcmp.ge.f32.partialorder %v103_v42, 0.0 }
   0xf   :  { %v230_v53 = vpack.c.bf16 %v147_v52, %v146_v51  ;;  %v148_v54 = vsel %vm116_vm2, %v100_v43, %v132_v49  ;;  %v149_v55 = vsel %vm117_vm3, %v101_v44, %v133_v50  ;;  %v134_v56 = vmul.f32 0.2, %v102_v41 }
  0x10   :  { %v231_v58 = vpack.c.bf16 %v149_v55, %v148_v54  ;;  %v135_v59 = vmul.f32 0.2, %v103_v42  ;;  %vm120_vm6 = vcmp.ge.f32.partialorder %v104_v45, 0.0  ;;  %vm121_vm7 = vcmp.ge.f32.partialorder %v105_v46, 0.0 }
  0x11   :  { %210 = vst [vmem:[%s368_s3] sm:$0xff] %v230_v53  ;;  %v150_v60 = vsel %vm118_vm4, %v102_v41, %v134_v56  ;;  %v136_v61 = vmul.f32 0.2, %v104_v45  ;;  %v137_v62 = vmul.f32 0.2, %v105_v46  ;;  %v68_v63 = vmul.f32 %v283_v23, %v30_v21 }
  0x12   :  { %211 = vst [vmem:[%s368_s3 + $0x8] sm:$0xff] %v231_v58  ;;  %v151_v0 = vsel %vm119_vm5, %v103_v42, %v135_v59  ;;  %v69_v1 = vmul.f32 %v285_v24, %v31_v22  ;;  %v32_v2 = vunpack.c.l.bf16 %v19_v57  ;;  %v33_v3 = vunpack.c.h.bf16 %v19_v57 }
  0x13   :  { %v232_v5 = vpack.c.bf16 %v151_v0, %v150_v60  ;;  %v152_v6 = vsel %vm120_vm6, %v104_v45, %v136_v61  ;;  %v153_v7 = vsel %vm121_vm7, %v105_v46, %v137_v62  ;;  %v106_v8 = vadd.f32 %v287_v25, %v68_v63 }
  0x14   :  { %v233_v9 = vpack.c.bf16 %v153_v7, %v152_v6  ;;  %v107_v10 = vadd.f32 %v289_v26, %v69_v1  ;;  %v70_v11 = vmul.f32 %v291_v27, %v32_v2  ;;  %v71_v12 = vmul.f32 %v293_v28, %v33_v3 }
  0x15   :  { %212 = vst [vmem:[%s368_s3 + $0x10] sm:$0xff] %v232_v5  ;;  %vm122_vm8 = vcmp.ge.f32.partialorder %v106_v8, 0.0  ;;  %v138_v14 = vmul.f32 0.2, %v106_v8  ;;  %v34_v15 = vunpack.c.l.bf16 %v20_v4  ;;  %v35_v16 = vunpack.c.h.bf16 %v20_v4 }
  0x16   :  { %213 = vst [vmem:[%s368_s3 + $0x18] sm:$0xff] %v233_v9  ;;  %vm123_vm9 = vcmp.ge.f32.partialorder %v107_v10, 0.0  ;;  %v139_v17 = vmul.f32 0.2, %v107_v10  ;;  %v108_v18 = vadd.f32 %v295_v29, %v70_v11  ;;  %v109_v19 = vadd.f32 %v297_v30, %v71_v12 }
  0x17   :  { %v154_v20 = vsel %vm122_vm8, %v106_v8, %v138_v14  ;;  %v72_v21 = vmul.f32 %v283_v23, %v34_v15  ;;  %v73_v22 = vmul.f32 %v285_v24, %v35_v16  ;;  %v36_v31 = vunpack.c.l.bf16 %v21_v13 }
  0x18   :  { %v155_v32 = vsel %vm123_vm9, %v107_v10, %v139_v17  ;;  %vm124_vm10 = vcmp.ge.f32.partialorder %v108_v18, 0.0  ;;  %vm125_vm11 = vcmp.ge.f32.partialorder %v109_v19, 0.0  ;;  %v140_v33 = vmul.f32 0.2, %v108_v18 }
  0x19   :  { %v234_v34 = vpack.c.bf16 %v155_v32, %v154_v20  ;;  %v141_v35 = vmul.f32 0.2, %v109_v19  ;;  %v110_v36 = vadd.f32 %v287_v25, %v72_v21  ;;  %v111_v37 = vadd.f32 %v289_v26, %v73_v22 }
  0x1a   :  { %v156_v38 = vsel %vm124_vm10, %v108_v18, %v140_v33  ;;  %v37_v39 = vunpack.c.h.bf16 %v21_v13  ;;  %v74_v40 = vmul.f32 %v291_v27, %v36_v31 }
  0x1b   :  { %214 = vst [vmem:[%s368_s3 + $0x20] sm:$0xff] %v234_v34  ;;  %v157_v23 = vsel %vm125_vm11, %v109_v19, %v141_v35  ;;  %vm126_vm12 = vcmp.ge.f32.partialorder %v110_v36, 0.0  ;;  %vm127_vm13 = vcmp.ge.f32.partialorder %v111_v37, 0.0  ;;  %v142_v24 = vmul.f32 0.2, %v110_v36 }
  0x1c   :  { %v235_v41 = vpack.c.bf16 %v157_v23, %v156_v38  ;;  %v143_v42 = vmul.f32 0.2, %v111_v37  ;;  %v75_v43 = vmul.f32 %v293_v28, %v37_v39  ;;  %v112_v25 = vadd.f32 %v295_v29, %v74_v40 }
  0x1d   :  { %v158_v44 = vsel %vm126_vm12, %v110_v36, %v142_v24 }
  0x1e   :  { %215 = vst [vmem:[%s368_s3 + $0x28] sm:$0xff] %v235_v41  ;;  %v159_v26 = vsel %vm127_vm13, %v111_v37, %v143_v42  ;;  %v113_v27 = vadd.f32 %v297_v30, %v75_v43  ;;  %vm128_vm14 = vcmp.ge.f32.partialorder %v112_v25, 0.0  ;;  %v144_v45 = vmul.f32 0.2, %v112_v25 }
  0x1f   :  { %v236_v46 = vpack.c.bf16 %v159_v26, %v158_v44 }
  0x20   :  { %vm129_vm15 = vcmp.ge.f32.partialorder %v113_v27, 0.0  ;;  %v145_v47 = vmul.f32 0.2, %v113_v27  ;;  %v160_v48 = vsel %vm128_vm14, %v112_v25, %v144_v45 }
  0x21   :  { %216 = vst [vmem:[%s368_s3 + $0x30] sm:$0xff] %v236_v46 }
  0x22   :  { %v161_v28 = vsel %vm129_vm15, %v113_v27, %v145_v47 }
  0x23   :  { %v237_v29 = vpack.c.bf16 %v161_v28, %v160_v48 }
  0x25   :  { %217 = vst [vmem:[%s368_s3 + $0x38] sm:$0xff] %v237_v29 }

// kernel: _lambda_.13
= control target key start
LH: loop header
LB: loop body
LE: loop exit
PB: predicated region body
PF: predicated region fallthrough
CT: control target
= control target key end

     0   :  { %s6108_s15 = smov 0   ;;  %s6110_s16 = smov 0   ;;  %s6907_s0 = inlined_call_operand.vmem [shape: bf16[32,4096], index: 0, kind: input, shape index: {}]   ;;  %s6908_s1 = inlined_call_operand.vmem [shape: bf16[4096,512], index: 1, kind: input, shape index: {}]   ;;  %s6909_s2 = inlined_call_operand.vmem [shape: bf16[32,512], index: 2, kind: output, shape index: {0}]   ;;  %s6910_s3 = inlined_call_operand.vmem [shape: f32[2,1,512], index: 3, kind: output, shape index: {1}]   ;;  %s6911_s4 = inlined_call_operand.vmem [shape: f32[2,1,512], index: 4, kind: output, shape index: {2}]  }
   0x1   :  { %s6112_s17 = smov 0   ;;  %s6114_s18 = smov 0  }
   0x2   :  { %s6116_s19 = smov 0   ;;  %s6118_s20 = smov 0  }
   0x3   :  { %s6120_s21 = smov 0  }
   0x4 LB: > { %s27_s22 = sadd.s32 1, %s6071_s19  ;;  %s34_s23 = sadd.s32 1, %s6075_s20  ;;  %s6079_s21 = sphi %s6120_s21, %s15_s21   ;;  %s6075_s20 = sphi %s6118_s20, %s6917_s20   ;;  %s6071_s19 = sphi %s6116_s19, %s6916_s19   ;;  %s6067_s18 = sphi %s6114_s18, %s6915_s18   ;;  %s6063_s17 = sphi %s6112_s17, %s6914_s17   ;;  %s6059_s16 = sphi %s6110_s16, %s6913_s16   ;;  %s6055_s15 = sphi %s6108_s15, %s6912_s15  }
   0x5   : > { %p28_p0 = scmp.ge.s32.totalorder %s27_s22, 2  ;;  %p50_p1 = scmp.ne.s32.totalorder %s6059_s16, %s6055_s15 }
   0x6   : > { %p51_p2 = scmp.eq.s32.totalorder %s6079_s21, 0  ;;  %s43_s27 = sadd.s32 1, %s6059_s16 }
   0x7   : > { %s6919_s22 = smov (%p28_p0, %s27_s22), 0  ;;  %s6921_s23 = smov (!%p28_p0, %s34_s23), %s6075_s20 }
   0x8   : > { %p52_p3 = por %p51_p2, %p50_p1  ;;  %p36_p4 = scmp.ge.s32.totalorder %s6921_s23, 2 }
   0x9   : > { %s39_s24 = ssub.s32 %s6071_s19, %s6919_s22  ;;  %p4640_p6 = scmp.ge.s32.totalorder %s6079_s21, 4 }
   0xa   : > { %s6923_s23 = smov (%p36_p4, %s6921_s23), 0 }
   0xb   : > { %s38_s25 = ssub.s32 %s6075_s20, %s6923_s23  ;;  %188 = sbr.rel (%p4640_p6) target bundleno = 31 (0x1f), region = 16 }
   0xc   : > { %s40_s26 = sor.u32 %s39_s24, %s38_s25 }
   0xd   : > { %p41_p5 = scmp.eq.s32.totalorder %s40_s26, 0 }
   0xf   : > { %s6159_s28 = scalar_select %p41_p5, %s6059_s16, %s43_s27  }
  0x10   : > { %191 = sbr.rel (!%p52_p3) target bundleno = 31 (0x1f), region = 20  ;;  %s193_s29 = sand.u32 (%p52_p3), 1, %s6059_s16  }
  0x11   : > { %s4643_s30 = sshll.u32 (%p52_p3), %s6071_s19, 4  ;;  %s4641_s5 = sshll.u32 (%p52_p3), %s193_s29, 7 }
  0x12   : > { %s5192_s6 = sshll.u32 (%p52_p3), %s6075_s20, 6  ;;  %s195_s12 = scalar_lea.vmem (%p52_p3), [#allocation3], %s4641_s5 }
  0x13   : > { %s199_s7 = sadd.s32 (%p52_p3), %s5192_s6, %s4643_s30 }
  0x14   : > { %s4645_s8 = sshll.u32 (%p52_p3), %s199_s7, 2 }
  0x15   : > { %s6168_s11 = scalar_lea.vmem %s6907_s0, %s4645_s8 }
  0x16   : > { %v214_v0 = vld [vmem:[%s6168_s11] sm:$0xff]  ;;  %v216_v1 = vld [vmem:[%s6168_s11 + $0x8] sm:$0xff]  ;;  %v218_v2 = vld [vmem:[%s6168_s11 + $0x10] sm:$0xff] }
  0x17   : > { %215 = vst [vmem:[%s195_s12] sm:$0xff] %v214_v0  ;;  %217 = vst [vmem:[%s195_s12 + $0x8] sm:$0xff] %v216_v1  ;;  %v220_v3 = vld [vmem:[%s6168_s11 + $0x18] sm:$0xff]  ;;  %v222_v4 = vld [vmem:[%s6168_s11 + $0x20] sm:$0xff] }
  0x18   : > { %219 = vst [vmem:[%s195_s12 + $0x10] sm:$0xff] %v218_v2  ;;  %v224_v5 = vld [vmem:[%s6168_s11 + $0x28] sm:$0xff]  ;;  %221 = vst [vmem:[%s195_s12 + $0x18] sm:$0xff] %v220_v3  ;;  %v226_v6 = vld [vmem:[%s6168_s11 + $0x30] sm:$0xff] }
  0x19   : > { %223 = vst [vmem:[%s195_s12 + $0x20] sm:$0xff] %v222_v4  ;;  %225 = vst [vmem:[%s195_s12 + $0x28] sm:$0xff] %v224_v5  ;;  %v228_v7 = vld [vmem:[%s6168_s11 + $0x38] sm:$0xff]  ;;  %v230_v8 = vld [vmem:[%s6168_s11 + $0x80] sm:$0xff] }
  0x1a   : > { %227 = vst [vmem:[%s195_s12 + $0x30] sm:$0xff] %v226_v6  ;;  %229 = vst [vmem:[%s195_s12 + $0x38] sm:$0xff] %v228_v7  ;;  %v232_v9 = vld [vmem:[%s6168_s11 + $0x88] sm:$0xff]  ;;  %v234_v10 = vld [vmem:[%s6168_s11 + $0x90] sm:$0xff] }
  0x1b   : > { %231 = vst [vmem:[%s195_s12 + $0x40] sm:$0xff] %v230_v8  ;;  %v236_v11 = vld [vmem:[%s6168_s11 + $0x98] sm:$0xff]  ;;  %233 = vst [vmem:[%s195_s12 + $0x48] sm:$0xff] %v232_v9  ;;  %v238_v12 = vld [vmem:[%s6168_s11 + $0xa0] sm:$0xff] }
  0x1c   : > { %235 = vst [vmem:[%s195_s12 + $0x50] sm:$0xff] %v234_v10  ;;  %237 = vst [vmem:[%s195_s12 + $0x58] sm:$0xff] %v236_v11  ;;  %v240_v13 = vld [vmem:[%s6168_s11 + $0xa8] sm:$0xff]  ;;  %v242_v14 = vld [vmem:[%s6168_s11 + $0xb0] sm:$0xff] }
  0x1d   : > { %239 = vst [vmem:[%s195_s12 + $0x60] sm:$0xff] %v238_v12  ;;  %241 = vst [vmem:[%s195_s12 + $0x68] sm:$0xff] %v240_v13  ;;  %v244_v15 = vld [vmem:[%s6168_s11 + $0xb8] sm:$0xff] }
  0x1e   : > { %243 = vst [vmem:[%s195_s12 + $0x70] sm:$0xff] %v242_v14  ;;  %245 = vst [vmem:[%s195_s12 + $0x78] sm:$0xff] %v244_v15 }
  0x1f PF: > { %p4646_p7 = scmp.ge.s32.totalorder %s6079_s21, 1  ;;  %p265_p8 = scmp.lt.s32.totalorder %s6079_s21, 5 }
  0x21   : > { %p266_p9 = pnand %p4646_p7, %p265_p8 }
  0x22   : > { %s272_s13 = sand.u32 (!%p266_p9), 1, %s6055_s15   ;;  %s4648_s14 = sshll.u32 (!%p266_p9), %s6063_s17, 8 }
  0x23   : > { %269 = sbr.rel (%p266_p9) target bundleno = 806 (0x326), region = 47  ;;  %s4647_s24 = sshll.u32 (!%p266_p9), %s272_s13, 7 }
  0x24   : > { %p332_p10 = scmp.lt.s32.totalorder (!%p266_p9), %s4648_s14, 511  ;;  %s4651_s25 = sshll.u32 (!%p266_p9), %s6067_s18, 1 }
  0x25   : > { %p344_p11 = scmp.lt.s32.totalorder (!%p266_p9), %s4651_s25, 3  ;;  %p355_p12 = scmp.lt.s32.totalorder (!%p266_p9), %s6067_s18, 1 }
  0x26   : > { %p4656_p13 = scmp.ne.s32.totalorder (!%p266_p9), %s6063_s17, 0 }
  0x28   : > { %s6925_s14 = smov (!%p332_p10, %s4648_s14), 511  ;;  %s6927_s25 = smov (!%p344_p11, %s4651_s25), 3 }
  0x29   : > { %s5193_s26 = sshll.u32 %s6925_s14, 4  ;;  %s6929_s18 = smov (!%p355_p12, %s6067_s18), 1 }
  0x2a   : > { %s6195_s30 = scalar_lea.vmem %s6908_s1, %s5193_s26  ;;  %s5194_s5 = sshll.u32 %s6927_s25, 4 }
  0x2b   : > { %s6201_s15 = scalar_lea.vmem %s6909_s2, %s5194_s5  ;;  %s4654_s8 = sshll.u32 %s6929_s18, 2 }
  0x2c   : > { %s6206_s11 = scalar_lea.vmem %s6910_s3, %s4654_s8  ;;  %s6211_s14 = scalar_lea.vmem %s6911_s4, %s4654_s8 }
  0x2d   : > { %s6213_s26 = scalar_lea.vmem [#allocation3], %s4647_s24  ;;  %375 = sbr.rel (%p4656_p13) target bundleno = 55 (0x37), region = 55 }
  0x32   : > { %v6081_v16 = vmov 0.0  }
  0x33   : > { %376 = vst [vmem:[#allocation2 + $0x30] sm:$0xff] %v6081_v16  ;;  %377 = vst [vmem:[#allocation2] sm:$0xff] %v6081_v16 }
  0x34   : > { %378 = vst [vmem:[#allocation2 + $0x18] sm:$0xff] %v6081_v16  ;;  %379 = vst [vmem:[#allocation2 + $0x10] sm:$0xff] %v6081_v16 }
  0x35   : > { %380 = vst [vmem:[#allocation2 + $0x8] sm:$0xff] %v6081_v16  ;;  %381 = vst [vmem:[#allocation2 + $0x20] sm:$0xff] %v6081_v16 }
  0x36   : > { %382 = vst [vmem:[#allocation2 + $0x28] sm:$0xff] %v6081_v16  ;;  %383 = vst [vmem:[#allocation2 + $0x38] sm:$0xff] %v6081_v16 }
  0x37 PF: > { %v5257_v17 = vld [vmem:[%s6195_s30 + $0xe4] ss:$16 sps:$4 sm:$0xff]   ;;  %v5261_v19 = vld [vmem:[%s6195_s30 + $0xe0] ss:$16 sps:$4 sm:$0xff]   ;;  %v393_v3 = vld [vmem:[%s6213_s26 + $0x8] sm:$0xff]  ;;  %p5185_p0 = scmp.ne.s32.totalorder %s6063_s17, 1 }
  0x38   : > { %v5259_v18 = vld [vmem:[%s6195_s30 + $0x2e4] ss:$16 sps:$4 sm:$0xff]   ;;  %3560 = vmatprep.subr.bf16.mxu0 %v5257_v17  ;;  %v5262_v20 = vld [vmem:[%s6195_s30 + $0x2e0] ss:$16 sps:$4 sm:$0xff]   ;;  %v401_v4 = vld [vmem:[%s6213_s26 + $0x48] sm:$0xff] }
  0x39   : > { %3603 = vmatprep.subr.bf16.mxu1 %v5259_v18  ;;  %v5263_v21 = vld [vmem:[%s6195_s30 + $0xc4] ss:$16 sps:$4 sm:$0xff]   ;;  %3561 = vmatpush1.bf16.msra.mxu0 %v5261_v19  ;;  %v5267_v23 = vld [vmem:[%s6195_s30 + $0xc0] ss:$16 sps:$4 sm:$0xff]   ;;  %v6272_v8 = vcombine.high %v393_v3, %v401_v4 }
  0x3a   : > { %3604 = vmatpush1.bf16.msra.mxu1 %v5262_v20  ;;  %v5265_v22 = vld [vmem:[%s6195_s30 + $0x2c4] ss:$16 sps:$4 sm:$0xff]   ;;  %3562 = vmatprep.subr.bf16.mxu0 %v5263_v21  ;;  %v5268_v24 = vld [vmem:[%s6195_s30 + $0x2c0] ss:$16 sps:$4 sm:$0xff]  }
  0x3b   : > { %3605 = vmatprep.subr.bf16.mxu1 %v5265_v22  ;;  %v5269_v25 = vld [vmem:[%s6195_s30 + $0xa4] ss:$16 sps:$4 sm:$0xff]   ;;  %v5273_v27 = vld [vmem:[%s6195_s30 + $0xa0] ss:$16 sps:$4 sm:$0xff]   ;;  %3635 = vmatprep.mubr.bf16.mxu1 %v6272_v8 }
  0x3c   : > { %v5271_v26 = vld [vmem:[%s6195_s30 + $0x2a4] ss:$16 sps:$4 sm:$0xff]   ;;  %v5274_v28 = vld [vmem:[%s6195_s30 + $0x2a0] ss:$16 sps:$4 sm:$0xff]  }
  0x3d   : > { %3563 = vmatpush1.bf16.msra.mxu0 %v5267_v23  ;;  %v5275_v29 = vld [vmem:[%s6195_s30 + $0x84] ss:$16 sps:$4 sm:$0xff]   ;;  %v5279_v31 = vld [vmem:[%s6195_s30 + $0x80] ss:$16 sps:$4 sm:$0xff]  }
  0x3e   : > { %3606 = vmatpush1.bf16.msra.mxu1 %v5268_v24  ;;  %3564 = vmatprep.subr.bf16.mxu0 %v5269_v25  ;;  %v5277_v30 = vld [vmem:[%s6195_s30 + $0x284] ss:$16 sps:$4 sm:$0xff]   ;;  %v5280_v32 = vld [vmem:[%s6195_s30 + $0x280] ss:$16 sps:$4 sm:$0xff]  }
  0x3f   : > { %3607 = vmatprep.subr.bf16.mxu1 %v5271_v26  ;;  %v5281_v33 = vld [vmem:[%s6195_s30 + $0x64] ss:$16 sps:$4 sm:$0xff]   ;;  %v5285_v35 = vld [vmem:[%s6195_s30 + $0x60] ss:$16 sps:$4 sm:$0xff]   ;;  %v6294_v26 = vcombine.low %v393_v3, %v401_v4 }
  0x40   : > { %v5283_v34 = vld [vmem:[%s6195_s30 + $0x264] ss:$16 sps:$4 sm:$0xff]   ;;  %v5286_v36 = vld [vmem:[%s6195_s30 + $0x260] ss:$16 sps:$4 sm:$0xff]  }
  0x41   : > { %3565 = vmatpush1.bf16.msra.mxu0 %v5273_v27  ;;  %v5287_v37 = vld [vmem:[%s6195_s30 + $0x44] ss:$16 sps:$4 sm:$0xff]   ;;  %v5291_v39 = vld [vmem:[%s6195_s30 + $0x40] ss:$16 sps:$4 sm:$0xff]  }
  0x42   : > { %3608 = vmatpush1.bf16.msra.mxu1 %v5274_v28  ;;  %3566 = vmatprep.subr.bf16.mxu0 %v5275_v29  ;;  %v5289_v38 = vld [vmem:[%s6195_s30 + $0x244] ss:$16 sps:$4 sm:$0xff]   ;;  %v5292_v40 = vld [vmem:[%s6195_s30 + $0x240] ss:$16 sps:$4 sm:$0xff]  }
  0x43   : > { %3609 = vmatprep.subr.bf16.mxu1 %v5277_v30  ;;  %v5293_v41 = vld [vmem:[%s6195_s30 + $0x24] ss:$16 sps:$4 sm:$0xff]   ;;  %v5297_v43 = vld [vmem:[%s6195_s30 + $0x20] ss:$16 sps:$4 sm:$0xff]  }
  0x44   : > { %v5295_v42 = vld [vmem:[%s6195_s30 + $0x224] ss:$16 sps:$4 sm:$0xff]   ;;  %v5298_v44 = vld [vmem:[%s6195_s30 + $0x220] ss:$16 sps:$4 sm:$0xff]  }
  0x45   : > { %3567 = vmatpush1.bf16.msra.mxu0 %v5279_v31  ;;  %v5299_v45 = vld [vmem:[%s6195_s30 + $0x4] ss:$16 sps:$4 sm:$0xff]   ;;  %v5303_v47 = vld [vmem:[%s6195_s30] ss:$16 sps:$4 sm:$0xff]  }
  0x46   : > { %3610 = vmatpush1.bf16.msra.mxu1 %v5280_v32  ;;  %3568 = vmatprep.subr.bf16.mxu0 %v5281_v33  ;;  %v5301_v46 = vld [vmem:[%s6195_s30 + $0x204] ss:$16 sps:$4 sm:$0xff]   ;;  %v5304_v48 = vld [vmem:[%s6195_s30 + $0x200] ss:$16 sps:$4 sm:$0xff]  }
  0x47   : > { %3611 = vmatprep.subr.bf16.mxu1 %v5283_v34  ;;  %v5305_v49 = vld [vmem:[%s6195_s30 + $0x1e4] ss:$16 sps:$4 sm:$0xff]   ;;  %v5309_v51 = vld [vmem:[%s6195_s30 + $0x1e0] ss:$16 sps:$4 sm:$0xff]  }
  0x48   : > { %v5307_v50 = vld [vmem:[%s6195_s30 + $0x3e4] ss:$16 sps:$4 sm:$0xff]   ;;  %v5310_v52 = vld [vmem:[%s6195_s30 + $0x3e0] ss:$16 sps:$4 sm:$0xff]  }
  0x49   : > { %3569 = vmatpush1.bf16.msra.mxu0 %v5285_v35  ;;  %v5311_v53 = vld [vmem:[%s6195_s30 + $0x1c4] ss:$16 sps:$4 sm:$0xff]   ;;  %v5315_v55 = vld [vmem:[%s6195_s30 + $0x1c0] ss:$16 sps:$4 sm:$0xff]  }
  0x4a   : > { %3612 = vmatpush1.bf16.msra.mxu1 %v5286_v36  ;;  %3570 = vmatprep.subr.bf16.mxu0 %v5287_v37  ;;  %v5313_v54 = vld [vmem:[%s6195_s30 + $0x3c4] ss:$16 sps:$4 sm:$0xff]   ;;  %v5316_v56 = vld [vmem:[%s6195_s30 + $0x3c0] ss:$16 sps:$4 sm:$0xff]  }
  0x4b   : > { %3613 = vmatprep.subr.bf16.mxu1 %v5289_v38  ;;  %v5317_v57 = vld [vmem:[%s6195_s30 + $0x1a4] ss:$16 sps:$4 sm:$0xff]   ;;  %v5321_v59 = vld [vmem:[%s6195_s30 + $0x1a0] ss:$16 sps:$4 sm:$0xff]  }
  0x4c   : > { %v5319_v58 = vld [vmem:[%s6195_s30 + $0x3a4] ss:$16 sps:$4 sm:$0xff]   ;;  %v5322_v60 = vld [vmem:[%s6195_s30 + $0x3a0] ss:$16 sps:$4 sm:$0xff]  }
  0x4d   : > { %3571 = vmatpush1.bf16.msra.mxu0 %v5291_v39  ;;  %v5323_v61 = vld [vmem:[%s6195_s30 + $0x184] ss:$16 sps:$4 sm:$0xff]   ;;  %v5327_v63 = vld [vmem:[%s6195_s30 + $0x180] ss:$16 sps:$4 sm:$0xff]  }
  0x4e   : > { %3614 = vmatpush1.bf16.msra.mxu1 %v5292_v40  ;;  %3572 = vmatprep.subr.bf16.mxu0 %v5293_v41  ;;  %v5325_v62 = vld [vmem:[%s6195_s30 + $0x384] ss:$16 sps:$4 sm:$0xff]   ;;  %v5328_v0 = vld [vmem:[%s6195_s30 + $0x380] ss:$16 sps:$4 sm:$0xff]  }
  0x4f   : > { %3615 = vmatprep.subr.bf16.mxu1 %v5295_v42  ;;  %v392_v1 = vld [vmem:[%s6213_s26] sm:$0xff] }
  0x50   : > { %v400_v2 = vld [vmem:[%s6213_s26 + $0x40] sm:$0xff] }
  0x51   : > { %3573 = vmatpush1.bf16.msra.mxu0 %v5297_v43  ;;  %v5329_v5 = vld [vmem:[%s6195_s30 + $0x164] ss:$16 sps:$4 sm:$0xff]   ;;  %v6269_v6 = vcombine.high %v392_v1, %v400_v2  ;;  %v5333_v9 = vld [vmem:[%s6195_s30 + $0x160] ss:$16 sps:$4 sm:$0xff]   ;;  %v6292_v25 = vcombine.low %v392_v1, %v400_v2 }
  0x52   : > { %3616 = vmatpush1.bf16.msra.mxu1 %v5298_v44  ;;  %3574 = vmatprep.subr.bf16.mxu0 %v5299_v45  ;;  %v5331_v7 = vld [vmem:[%s6195_s30 + $0x364] ss:$16 sps:$4 sm:$0xff]   ;;  %v5334_v10 = vld [vmem:[%s6195_s30 + $0x360] ss:$16 sps:$4 sm:$0xff]  }
  0x53   : > { %3617 = vmatprep.subr.bf16.mxu1 %v5301_v46  ;;  %3592 = vmatprep.mubr.bf16.mxu0 %v6269_v6  ;;  %v5335_v11 = vld [vmem:[%s6195_s30 + $0x144] ss:$16 sps:$4 sm:$0xff]   ;;  %v5339_v13 = vld [vmem:[%s6195_s30 + $0x140] ss:$16 sps:$4 sm:$0xff]  }
  0x54   : > { %v5337_v12 = vld [vmem:[%s6195_s30 + $0x344] ss:$16 sps:$4 sm:$0xff]   ;;  %v5340_v14 = vld [vmem:[%s6195_s30 + $0x340] ss:$16 sps:$4 sm:$0xff]  }
  0x55   : > { %3575 = vmatpush1.bf16.msra.mxu0 %v5303_v47  ;;  %v5341_v15 = vld [vmem:[%s6195_s30 + $0x124] ss:$16 sps:$4 sm:$0xff]   ;;  %v5345_v17 = vld [vmem:[%s6195_s30 + $0x120] ss:$16 sps:$4 sm:$0xff]  }
  0x56   : > { %3618 = vmatpush1.bf16.msra.mxu1 %v5304_v48  ;;  %3576 = vmatprep.subr.bf16.mxu0 %v5305_v49  ;;  %v5343_v16 = vld [vmem:[%s6195_s30 + $0x324] ss:$16 sps:$4 sm:$0xff]   ;;  %v5346_v18 = vld [vmem:[%s6195_s30 + $0x320] ss:$16 sps:$4 sm:$0xff]  }
  0x57   : > { %3619 = vmatprep.subr.bf16.mxu1 %v5307_v50  ;;  %v5347_v19 = vld [vmem:[%s6195_s30 + $0x104] ss:$16 sps:$4 sm:$0xff]   ;;  %v5351_v21 = vld [vmem:[%s6195_s30 + $0x100] ss:$16 sps:$4 sm:$0xff]  }
  0x58   : > { %v5349_v20 = vld [vmem:[%s6195_s30 + $0x304] ss:$16 sps:$4 sm:$0xff]   ;;  %v5352_v22 = vld [vmem:[%s6195_s30 + $0x300] ss:$16 sps:$4 sm:$0xff]  }
  0x59   : > { %3577 = vmatpush2.bf16.msra.mxu0 %v5309_v51  ;;  %v5355_v23 = vld [vmem:[%s6195_s30 + $0x4e4] ss:$16 sps:$4 sm:$0xff]   ;;  %v5353_v27 = vld [vmem:[%s6195_s30 + $0x4e0] ss:$16 sps:$4 sm:$0xff]  }
  0x5a   : > { %3620 = vmatpush2.bf16.msra.mxu1 %v5310_v52  ;;  %3578 = vmatprep.subr.bf16.mxu0 %v5311_v53  ;;  %v5358_v24 = vld [vmem:[%s6195_s30 + $0x6e4] ss:$16 sps:$4 sm:$0xff]   ;;  %v5356_v28 = vld [vmem:[%s6195_s30 + $0x6e0] ss:$16 sps:$4 sm:$0xff]  }
  0x5b   : > { %3621 = vmatprep.subr.bf16.mxu1 %v5313_v54  ;;  %v5361_v29 = vld [vmem:[%s6195_s30 + $0x4c4] ss:$16 sps:$4 sm:$0xff]   ;;  %v5359_v31 = vld [vmem:[%s6195_s30 + $0x4c0] ss:$16 sps:$4 sm:$0xff]  }
  0x5c   : > { %v5364_v30 = vld [vmem:[%s6195_s30 + $0x6c4] ss:$16 sps:$4 sm:$0xff]   ;;  %v5362_v32 = vld [vmem:[%s6195_s30 + $0x6c0] ss:$16 sps:$4 sm:$0xff]  }
  0x5d   : > { %3579 = vmatpush2.bf16.msra.mxu0 %v5315_v55  ;;  %v5367_v33 = vld [vmem:[%s6195_s30 + $0x4a4] ss:$16 sps:$4 sm:$0xff]   ;;  %v5365_v35 = vld [vmem:[%s6195_s30 + $0x4a0] ss:$16 sps:$4 sm:$0xff]   ;;  %v6331_v55 = vld [vmem:[%s6213_s26 + $0x18] sm:$0xff] }
  0x5e   : > { %3622 = vmatpush2.bf16.msra.mxu1 %v5316_v56  ;;  %3580 = vmatprep.subr.bf16.mxu0 %v5317_v57  ;;  %v5370_v34 = vld [vmem:[%s6195_s30 + $0x6a4] ss:$16 sps:$4 sm:$0xff]   ;;  %v5368_v36 = vld [vmem:[%s6195_s30 + $0x6a0] ss:$16 sps:$4 sm:$0xff]   ;;  %v6334_v56 = vld [vmem:[%s6213_s26 + $0x58] sm:$0xff] }
  0x5f   : > { %3623 = vmatprep.subr.bf16.mxu1 %v5319_v58  ;;  %v5373_v37 = vld [vmem:[%s6195_s30 + $0x484] ss:$16 sps:$4 sm:$0xff]   ;;  %v5371_v39 = vld [vmem:[%s6195_s30 + $0x480] ss:$16 sps:$4 sm:$0xff]  }
  0x60   : > { %v5376_v38 = vld [vmem:[%s6195_s30 + $0x684] ss:$16 sps:$4 sm:$0xff]   ;;  %v5374_v40 = vld [vmem:[%s6195_s30 + $0x680] ss:$16 sps:$4 sm:$0xff]  }
  0x61   : > { %3581 = vmatpush2.bf16.msra.mxu0 %v5321_v59  ;;  %v5379_v41 = vld [vmem:[%s6195_s30 + $0x464] ss:$16 sps:$4 sm:$0xff]   ;;  %v5377_v43 = vld [vmem:[%s6195_s30 + $0x460] ss:$16 sps:$4 sm:$0xff]  }
  0x62   : > { %3624 = vmatpush2.bf16.msra.mxu1 %v5322_v60  ;;  %3582 = vmatprep.subr.bf16.mxu0 %v5323_v61  ;;  %v5382_v42 = vld [vmem:[%s6195_s30 + $0x664] ss:$16 sps:$4 sm:$0xff]   ;;  %v5380_v44 = vld [vmem:[%s6195_s30 + $0x660] ss:$16 sps:$4 sm:$0xff]   ;;  %v6344_v60 = vcombine.high %v6331_v55, %v6334_v56 }
  0x63   : > { %3625 = vmatprep.subr.bf16.mxu1 %v5325_v62  ;;  %v5385_v45 = vld [vmem:[%s6195_s30 + $0x444] ss:$16 sps:$4 sm:$0xff]   ;;  %v5383_v47 = vld [vmem:[%s6195_s30 + $0x440] ss:$16 sps:$4 sm:$0xff]  }
  0x64   : > { %v5388_v46 = vld [vmem:[%s6195_s30 + $0x644] ss:$16 sps:$4 sm:$0xff]   ;;  %v5386_v48 = vld [vmem:[%s6195_s30 + $0x640] ss:$16 sps:$4 sm:$0xff]  }
  0x65   : > { %3583 = vmatpush2.bf16.msra.mxu0 %v5327_v63  ;;  %v5391_v49 = vld [vmem:[%s6195_s30 + $0x424] ss:$16 sps:$4 sm:$0xff]   ;;  %v5389_v51 = vld [vmem:[%s6195_s30 + $0x420] ss:$16 sps:$4 sm:$0xff]  }
  0x66   : > { %3626 = vmatpush2.bf16.msra.mxu1 %v5328_v0  ;;  %3584 = vmatprep.subr.bf16.mxu0 %v5329_v5  ;;  %v5394_v50 = vld [vmem:[%s6195_s30 + $0x624] ss:$16 sps:$4 sm:$0xff]   ;;  %v5392_v52 = vld [vmem:[%s6195_s30 + $0x620] ss:$16 sps:$4 sm:$0xff]  }
  0x67   : > { %3627 = vmatprep.subr.bf16.mxu1 %v5331_v7  ;;  %v6325_v53 = vld [vmem:[%s6213_s26 + $0x10] sm:$0xff] }
  0x68   : > { %v6328_v54 = vld [vmem:[%s6213_s26 + $0x50] sm:$0xff] }
  0x69   : > { %3585 = vmatpush2.bf16.msra.mxu0 %v5333_v9  ;;  %v5397_v57 = vld [vmem:[%s6195_s30 + $0x404] ss:$16 sps:$4 sm:$0xff]   ;;  %v6339_v58 = vcombine.high %v6325_v53, %v6328_v54  ;;  %v5395_v61 = vld [vmem:[%s6195_s30 + $0x400] ss:$16 sps:$4 sm:$0xff]  }
  0x6a   : > { %3628 = vmatpush2.bf16.msra.mxu1 %v5334_v10  ;;  %3586 = vmatprep.subr.bf16.mxu0 %v5335_v11  ;;  %v5400_v59 = vld [vmem:[%s6195_s30 + $0x604] ss:$16 sps:$4 sm:$0xff]   ;;  %v5398_v62 = vld [vmem:[%s6195_s30 + $0x600] ss:$16 sps:$4 sm:$0xff]  }
  0x6b   : > { %3629 = vmatprep.subr.bf16.mxu1 %v5337_v12  ;;  %v5403_v63 = vld [vmem:[%s6195_s30 + $0x5e4] ss:$16 sps:$4 sm:$0xff]   ;;  %v5401_v1 = vld [vmem:[%s6195_s30 + $0x5e0] ss:$16 sps:$4 sm:$0xff]  }
  0x6c   : > { %v5406_v0 = vld [vmem:[%s6195_s30 + $0x7e4] ss:$16 sps:$4 sm:$0xff]   ;;  %v5404_v2 = vld [vmem:[%s6195_s30 + $0x7e0] ss:$16 sps:$4 sm:$0xff]  }
  0x6d   : > { %3587 = vmatpush2.bf16.msra.mxu0 %v5339_v13  ;;  %v5409_v3 = vld [vmem:[%s6195_s30 + $0x5c4] ss:$16 sps:$4 sm:$0xff]   ;;  %v5407_v5 = vld [vmem:[%s6195_s30 + $0x5c0] ss:$16 sps:$4 sm:$0xff]  }
  0x6e   : > { %3630 = vmatpush2.bf16.msra.mxu1 %v5340_v14  ;;  %3588 = vmatprep.subr.bf16.mxu0 %v5341_v15  ;;  %v5412_v4 = vld [vmem:[%s6195_s30 + $0x7c4] ss:$16 sps:$4 sm:$0xff]   ;;  %v5410_v7 = vld [vmem:[%s6195_s30 + $0x7c0] ss:$16 sps:$4 sm:$0xff]  }
  0x6f   : > { %3631 = vmatprep.subr.bf16.mxu1 %v5343_v16  ;;  %v5415_v9 = vld [vmem:[%s6195_s30 + $0x5a4] ss:$16 sps:$4 sm:$0xff]   ;;  %v5413_v11 = vld [vmem:[%s6195_s30 + $0x5a0] ss:$16 sps:$4 sm:$0xff]  }
  0x70   : > { %v5418_v10 = vld [vmem:[%s6195_s30 + $0x7a4] ss:$16 sps:$4 sm:$0xff]   ;;  %v5416_v12 = vld [vmem:[%s6195_s30 + $0x7a0] ss:$16 sps:$4 sm:$0xff]  }
  0x71   : > { %3589 = vmatpush2.bf16.msra.mxu0 %v5345_v17  ;;  %v5421_v13 = vld [vmem:[%s6195_s30 + $0x584] ss:$16 sps:$4 sm:$0xff]   ;;  %v5419_v15 = vld [vmem:[%s6195_s30 + $0x580] ss:$16 sps:$4 sm:$0xff]  }
  0x72   : > { %3632 = vmatpush2.bf16.msra.mxu1 %v5346_v18  ;;  %3590 = vmatprep.subr.bf16.mxu0 %v5347_v19  ;;  %v5424_v14 = vld [vmem:[%s6195_s30 + $0x784] ss:$16 sps:$4 sm:$0xff]   ;;  %v5422_v16 = vld [vmem:[%s6195_s30 + $0x780] ss:$16 sps:$4 sm:$0xff]  }
  0x73   : > { %3633 = vmatprep.subr.bf16.mxu1 %v5349_v20  ;;  %v5427_v17 = vld [vmem:[%s6195_s30 + $0x564] ss:$16 sps:$4 sm:$0xff]   ;;  %v5425_v19 = vld [vmem:[%s6195_s30 + $0x560] ss:$16 sps:$4 sm:$0xff]  }
  0x74   : > { %v5430_v18 = vld [vmem:[%s6195_s30 + $0x764] ss:$16 sps:$4 sm:$0xff]   ;;  %v5428_v20 = vld [vmem:[%s6195_s30 + $0x760] ss:$16 sps:$4 sm:$0xff]  }
  0x75   : > { %3591 = vmatpush2.bf16.msra.mxu0 %v5351_v21  ;;  %v5433_v21 = vld [vmem:[%s6195_s30 + $0x544] ss:$16 sps:$4 sm:$0xff]  }
  0x76   : > { %3634 = vmatpush2.bf16.msra.mxu1 %v5352_v22  ;;  %3646 = vmatprep.subr.bf16.mxu0 %v5355_v23  ;;  %v5436_v22 = vld [vmem:[%s6195_s30 + $0x744] ss:$16 sps:$4 sm:$0xff]   ;;  %v5431_v23 = vld [vmem:[%s6195_s30 + $0x540] ss:$16 sps:$4 sm:$0xff]  }
  0x77   : > { %3689 = vmatprep.subr.bf16.mxu1 %v5358_v24  ;;  %v5434_v24 = vld [vmem:[%s6195_s30 + $0x740] ss:$16 sps:$4 sm:$0xff]  }
  0x78   : > { %3593 = vmatmul.mubr.bf16.vlgmr.msra.gmra.mxu0 %v6292_v25 }
  0x79   : > { %3636 = vmatmul.mubr.bf16.vlgmr.msra.gmra.mxu1 %v6294_v26  ;;  %3647 = vmatpush1.bf16.msra.mxu0 %v5353_v27  ;;  %v5439_v27 = vld [vmem:[%s6195_s30 + $0x524] ss:$16 sps:$4 sm:$0xff]  }
  0x7a   : > { %3690 = vmatpush1.bf16.msra.mxu1 %v5356_v28  ;;  %3648 = vmatprep.subr.bf16.mxu0 %v5361_v29  ;;  %v5442_v28 = vld [vmem:[%s6195_s30 + $0x724] ss:$16 sps:$4 sm:$0xff]   ;;  %v5437_v29 = vld [vmem:[%s6195_s30 + $0x520] ss:$16 sps:$4 sm:$0xff]  }
  0x7b   : > { %3691 = vmatprep.subr.bf16.mxu1 %v5364_v30  ;;  %3678 = vmatprep.mubr.bf16.mxu0 %v6339_v58  ;;  %v5440_v30 = vld [vmem:[%s6195_s30 + $0x720] ss:$16 sps:$4 sm:$0xff]  }
  0x7c   : > { %3721 = vmatprep.mubr.bf16.mxu1 %v6344_v60 }
  0x7d   : > { %3649 = vmatpush1.bf16.msra.mxu0 %v5359_v31  ;;  %v5445_v31 = vld [vmem:[%s6195_s30 + $0x504] ss:$16 sps:$4 sm:$0xff]  }
  0x7e   : > { %3692 = vmatpush1.bf16.msra.mxu1 %v5362_v32  ;;  %3650 = vmatprep.subr.bf16.mxu0 %v5367_v33  ;;  %v5448_v32 = vld [vmem:[%s6195_s30 + $0x704] ss:$16 sps:$4 sm:$0xff]   ;;  %v5443_v33 = vld [vmem:[%s6195_s30 + $0x500] ss:$16 sps:$4 sm:$0xff]  }
  0x7f   : > { %3693 = vmatprep.subr.bf16.mxu1 %v5370_v34  ;;  %v5446_v34 = vld [vmem:[%s6195_s30 + $0x700] ss:$16 sps:$4 sm:$0xff]  }
  0x81   : > { %3651 = vmatpush1.bf16.msra.mxu0 %v5365_v35  ;;  %v5451_v35 = vld [vmem:[%s6195_s30 + $0x8e4] ss:$16 sps:$4 sm:$0xff]  }
  0x82   : > { %3694 = vmatpush1.bf16.msra.mxu1 %v5368_v36  ;;  %3652 = vmatprep.subr.bf16.mxu0 %v5373_v37  ;;  %v5454_v36 = vld [vmem:[%s6195_s30 + $0xae4] ss:$16 sps:$4 sm:$0xff]   ;;  %v6386_v37 = vcombine.low %v6325_v53, %v6328_v54  ;;  %v5461_v53 = vld [vmem:[%s6195_s30 + $0x8a0] ss:$16 sps:$4 sm:$0xff]  }
  0x83   : > { %3695 = vmatprep.subr.bf16.mxu1 %v5376_v38  ;;  %v6390_v38 = vcombine.low %v6331_v55, %v6334_v56  ;;  %v5464_v54 = vld [vmem:[%s6195_s30 + $0xaa0] ss:$16 sps:$4 sm:$0xff]   ;;  %v5469_v55 = vld [vmem:[%s6195_s30 + $0x884] ss:$16 sps:$4 sm:$0xff]  }
  0x84   : > { %v5472_v56 = vld [vmem:[%s6195_s30 + $0xa84] ss:$16 sps:$4 sm:$0xff]  }
  0x85   : > { %3653 = vmatpush1.bf16.msra.mxu0 %v5371_v39  ;;  %v5449_v39 = vld [vmem:[%s6195_s30 + $0x8e0] ss:$16 sps:$4 sm:$0xff]  }
  0x86   : > { %3696 = vmatpush1.bf16.msra.mxu1 %v5374_v40  ;;  %3654 = vmatprep.subr.bf16.mxu0 %v5379_v41  ;;  %v5452_v40 = vld [vmem:[%s6195_s30 + $0xae0] ss:$16 sps:$4 sm:$0xff]   ;;  %v5457_v41 = vld [vmem:[%s6195_s30 + $0x8c4] ss:$16 sps:$4 sm:$0xff]  }
  0x87   : > { %3697 = vmatprep.subr.bf16.mxu1 %v5382_v42  ;;  %v5460_v42 = vld [vmem:[%s6195_s30 + $0xac4] ss:$16 sps:$4 sm:$0xff]  }
  0x89   : > { %3655 = vmatpush1.bf16.msra.mxu0 %v5377_v43  ;;  %v5455_v43 = vld [vmem:[%s6195_s30 + $0x8c0] ss:$16 sps:$4 sm:$0xff]  }
  0x8a   : > { %3698 = vmatpush1.bf16.msra.mxu1 %v5380_v44  ;;  %3656 = vmatprep.subr.bf16.mxu0 %v5385_v45  ;;  %v5458_v44 = vld [vmem:[%s6195_s30 + $0xac0] ss:$16 sps:$4 sm:$0xff]  }
  0x8b   : > { %3699 = vmatprep.subr.bf16.mxu1 %v5388_v46  ;;  %v6399_v45 = vld [vmem:[%s6213_s26 + $0x20] sm:$0xff] }
  0x8c   : > { %v6404_v46 = vld [vmem:[%s6213_s26 + $0x60] sm:$0xff] }
  0x8d   : > { %3657 = vmatpush1.bf16.msra.mxu0 %v5383_v47  ;;  %v6407_v47 = vld [vmem:[%s6213_s26 + $0x28] sm:$0xff] }
  0x8e   : > { %3700 = vmatpush1.bf16.msra.mxu1 %v5386_v48  ;;  %3658 = vmatprep.subr.bf16.mxu0 %v5391_v49  ;;  %v6410_v48 = vld [vmem:[%s6213_s26 + $0x68] sm:$0xff]  ;;  %v5463_v49 = vld [vmem:[%s6195_s30 + $0x8a4] ss:$16 sps:$4 sm:$0xff]  }
  0x8f   : > { %3701 = vmatprep.subr.bf16.mxu1 %v5394_v50  ;;  %v6415_v50 = vcombine.high %v6399_v45, %v6404_v46 }
  0x91   : > { %3659 = vmatpush1.bf16.msra.mxu0 %v5389_v51  ;;  %v5466_v51 = vld [vmem:[%s6195_s30 + $0xaa4] ss:$16 sps:$4 sm:$0xff]  }
  0x92   : > { %3702 = vmatpush1.bf16.msra.mxu1 %v5392_v52  ;;  %3660 = vmatprep.subr.bf16.mxu0 %v5397_v57  ;;  %v6420_v52 = vcombine.high %v6407_v47, %v6410_v48  ;;  %v5467_v57 = vld [vmem:[%s6195_s30 + $0x880] ss:$16 sps:$4 sm:$0xff]  }
  0x93   : > { %3703 = vmatprep.subr.bf16.mxu1 %v5400_v59  ;;  %v5470_v59 = vld [vmem:[%s6195_s30 + $0xa80] ss:$16 sps:$4 sm:$0xff]  }
  0x95   : > { %3661 = vmatpush1.bf16.msra.mxu0 %v5395_v61  ;;  %v5475_v61 = vld [vmem:[%s6195_s30 + $0x864] ss:$16 sps:$4 sm:$0xff]  }
  0x96   : > { %3704 = vmatpush1.bf16.msra.mxu1 %v5398_v62  ;;  %3662 = vmatprep.subr.bf16.mxu0 %v5403_v63  ;;  %v5478_v62 = vld [vmem:[%s6195_s30 + $0xa64] ss:$16 sps:$4 sm:$0xff]   ;;  %v5473_v63 = vld [vmem:[%s6195_s30 + $0x860] ss:$16 sps:$4 sm:$0xff]  }
  0x97   : > { %3705 = vmatprep.subr.bf16.mxu1 %v5406_v0  ;;  %v5476_v0 = vld [vmem:[%s6195_s30 + $0xa60] ss:$16 sps:$4 sm:$0xff]  }
  0x99   : > { %3663 = vmatpush2.bf16.msra.mxu0 %v5401_v1  ;;  %v5481_v1 = vld [vmem:[%s6195_s30 + $0x844] ss:$16 sps:$4 sm:$0xff]  }
  0x9a   : > { %3706 = vmatpush2.bf16.msra.mxu1 %v5404_v2  ;;  %3664 = vmatprep.subr.bf16.mxu0 %v5409_v3  ;;  %v5484_v2 = vld [vmem:[%s6195_s30 + $0xa44] ss:$16 sps:$4 sm:$0xff]   ;;  %v5479_v3 = vld [vmem:[%s6195_s30 + $0x840] ss:$16 sps:$4 sm:$0xff]  }
  0x9b   : > { %3707 = vmatprep.subr.bf16.mxu1 %v5412_v4  ;;  %v5482_v4 = vld [vmem:[%s6195_s30 + $0xa40] ss:$16 sps:$4 sm:$0xff]  }
  0x9d   : > { %3665 = vmatpush2.bf16.msra.mxu0 %v5407_v5  ;;  %v5487_v5 = vld [vmem:[%s6195_s30 + $0x824] ss:$16 sps:$4 sm:$0xff]  }
  0x9e   : > { %3708 = vmatpush2.bf16.msra.mxu1 %v5410_v7  ;;  %3666 = vmatprep.subr.bf16.mxu0 %v5415_v9  ;;  %v5490_v7 = vld [vmem:[%s6195_s30 + $0xa24] ss:$16 sps:$4 sm:$0xff]   ;;  %v5485_v9 = vld [vmem:[%s6195_s30 + $0x820] ss:$16 sps:$4 sm:$0xff]  }
  0x9f   : > { %3709 = vmatprep.subr.bf16.mxu1 %v5418_v10  ;;  %v5488_v10 = vld [vmem:[%s6195_s30 + $0xa20] ss:$16 sps:$4 sm:$0xff]  }
  0xa1   : > { %3667 = vmatpush2.bf16.msra.mxu0 %v5413_v11  ;;  %v5493_v11 = vld [vmem:[%s6195_s30 + $0x804] ss:$16 sps:$4 sm:$0xff]  }
  0xa2   : > { %3710 = vmatpush2.bf16.msra.mxu1 %v5416_v12  ;;  %3668 = vmatprep.subr.bf16.mxu0 %v5421_v13  ;;  %v5496_v12 = vld [vmem:[%s6195_s30 + $0xa04] ss:$16 sps:$4 sm:$0xff]   ;;  %v5491_v13 = vld [vmem:[%s6195_s30 + $0x800] ss:$16 sps:$4 sm:$0xff]  }
  0xa3   : > { %3711 = vmatprep.subr.bf16.mxu1 %v5424_v14  ;;  %v5494_v14 = vld [vmem:[%s6195_s30 + $0xa00] ss:$16 sps:$4 sm:$0xff]  }
  0xa5   : > { %3669 = vmatpush2.bf16.msra.mxu0 %v5419_v15  ;;  %v5499_v15 = vld [vmem:[%s6195_s30 + $0x9e4] ss:$16 sps:$4 sm:$0xff]  }
  0xa6   : > { %3712 = vmatpush2.bf16.msra.mxu1 %v5422_v16  ;;  %3670 = vmatprep.subr.bf16.mxu0 %v5427_v17  ;;  %v5502_v16 = vld [vmem:[%s6195_s30 + $0xbe4] ss:$16 sps:$4 sm:$0xff]   ;;  %v5497_v17 = vld [vmem:[%s6195_s30 + $0x9e0] ss:$16 sps:$4 sm:$0xff]  }
  0xa7   : > { %3713 = vmatprep.subr.bf16.mxu1 %v5430_v18  ;;  %v5500_v18 = vld [vmem:[%s6195_s30 + $0xbe0] ss:$16 sps:$4 sm:$0xff]  }
  0xa9   : > { %3671 = vmatpush2.bf16.msra.mxu0 %v5425_v19  ;;  %v5505_v19 = vld [vmem:[%s6195_s30 + $0x9c4] ss:$16 sps:$4 sm:$0xff]  }
  0xaa   : > { %3714 = vmatpush2.bf16.msra.mxu1 %v5428_v20  ;;  %3672 = vmatprep.subr.bf16.mxu0 %v5433_v21  ;;  %v5508_v20 = vld [vmem:[%s6195_s30 + $0xbc4] ss:$16 sps:$4 sm:$0xff]   ;;  %v5503_v21 = vld [vmem:[%s6195_s30 + $0x9c0] ss:$16 sps:$4 sm:$0xff]  }
  0xab   : > { %3715 = vmatprep.subr.bf16.mxu1 %v5436_v22  ;;  %v5506_v22 = vld [vmem:[%s6195_s30 + $0xbc0] ss:$16 sps:$4 sm:$0xff]  }
  0xad   : > { %3673 = vmatpush2.bf16.msra.mxu0 %v5431_v23  ;;  %v5511_v23 = vld [vmem:[%s6195_s30 + $0x9a4] ss:$16 sps:$4 sm:$0xff]  }
  0xae   : > { %3716 = vmatpush2.bf16.msra.mxu1 %v5434_v24  ;;  %3674 = vmatprep.subr.bf16.mxu0 %v5439_v27  ;;  %v5514_v24 = vld [vmem:[%s6195_s30 + $0xba4] ss:$16 sps:$4 sm:$0xff]   ;;  %v5509_v27 = vld [vmem:[%s6195_s30 + $0x9a0] ss:$16 sps:$4 sm:$0xff]  }
  0xaf   : > { %3717 = vmatprep.subr.bf16.mxu1 %v5442_v28  ;;  %v5512_v28 = vld [vmem:[%s6195_s30 + $0xba0] ss:$16 sps:$4 sm:$0xff]  }
  0xb1   : > { %3675 = vmatpush2.bf16.msra.mxu0 %v5437_v29  ;;  %v5517_v29 = vld [vmem:[%s6195_s30 + $0x984] ss:$16 sps:$4 sm:$0xff]  }
  0xb2   : > { %3718 = vmatpush2.bf16.msra.mxu1 %v5440_v30  ;;  %3676 = vmatprep.subr.bf16.mxu0 %v5445_v31  ;;  %v5520_v30 = vld [vmem:[%s6195_s30 + $0xb84] ss:$16 sps:$4 sm:$0xff]   ;;  %v5515_v31 = vld [vmem:[%s6195_s30 + $0x980] ss:$16 sps:$4 sm:$0xff]  }
  0xb3   : > { %3719 = vmatprep.subr.bf16.mxu1 %v5448_v32  ;;  %v5518_v32 = vld [vmem:[%s6195_s30 + $0xb80] ss:$16 sps:$4 sm:$0xff]  }
  0xb5   : > { %3677 = vmatpush2.bf16.msra.mxu0 %v5443_v33  ;;  %v5523_v33 = vld [vmem:[%s6195_s30 + $0x964] ss:$16 sps:$4 sm:$0xff]  }
  0xb6   : > { %3720 = vmatpush2.bf16.msra.mxu1 %v5446_v34  ;;  %3732 = vmatprep.subr.bf16.mxu0 %v5451_v35  ;;  %v5526_v34 = vld [vmem:[%s6195_s30 + $0xb64] ss:$16 sps:$4 sm:$0xff]   ;;  %v5521_v35 = vld [vmem:[%s6195_s30 + $0x960] ss:$16 sps:$4 sm:$0xff]  }
  0xb7   : > { %3775 = vmatprep.subr.bf16.mxu1 %v5454_v36  ;;  %v5524_v36 = vld [vmem:[%s6195_s30 + $0xb60] ss:$16 sps:$4 sm:$0xff]  }
  0xb8   : > { %3679 = vmatmul.mubr.bf16.vlgmr.msra.gmra.mxu0 %v6386_v37 }
  0xb9   : > { %3722 = vmatmul.mubr.bf16.vlgmr.msra.gmra.mxu1 %v6390_v38  ;;  %3733 = vmatpush1.bf16.msra.mxu0 %v5449_v39  ;;  %v5529_v39 = vld [vmem:[%s6195_s30 + $0x944] ss:$16 sps:$4 sm:$0xff]  }
  0xba   : > { %3776 = vmatpush1.bf16.msra.mxu1 %v5452_v40  ;;  %3734 = vmatprep.subr.bf16.mxu0 %v5457_v41  ;;  %v5532_v40 = vld [vmem:[%s6195_s30 + $0xb44] ss:$16 sps:$4 sm:$0xff]   ;;  %v5527_v41 = vld [vmem:[%s6195_s30 + $0x940] ss:$16 sps:$4 sm:$0xff]  }
  0xbb   : > { %3777 = vmatprep.subr.bf16.mxu1 %v5460_v42  ;;  %3764 = vmatprep.mubr.bf16.mxu0 %v6415_v50  ;;  %v5530_v42 = vld [vmem:[%s6195_s30 + $0xb40] ss:$16 sps:$4 sm:$0xff]  }
  0xbc   : > { %3807 = vmatprep.mubr.bf16.mxu1 %v6420_v52 }
  0xbd   : > { %3735 = vmatpush1.bf16.msra.mxu0 %v5455_v43  ;;  %v5535_v43 = vld [vmem:[%s6195_s30 + $0x924] ss:$16 sps:$4 sm:$0xff]  }
  0xbe   : > { %3778 = vmatpush1.bf16.msra.mxu1 %v5458_v44  ;;  %3736 = vmatprep.subr.bf16.mxu0 %v5463_v49  ;;  %v5538_v44 = vld [vmem:[%s6195_s30 + $0xb24] ss:$16 sps:$4 sm:$0xff]   ;;  %v5533_v49 = vld [vmem:[%s6195_s30 + $0x920] ss:$16 sps:$4 sm:$0xff]  }
  0xbf   : > { %3779 = vmatprep.subr.bf16.mxu1 %v5466_v51  ;;  %v5536_v51 = vld [vmem:[%s6195_s30 + $0xb20] ss:$16 sps:$4 sm:$0xff]  }
  0xc1   : > { %3737 = vmatpush1.bf16.msra.mxu0 %v5461_v53  ;;  %v5541_v53 = vld [vmem:[%s6195_s30 + $0x904] ss:$16 sps:$4 sm:$0xff]  }
  0xc2   : > { %3780 = vmatpush1.bf16.msra.mxu1 %v5464_v54  ;;  %3738 = vmatprep.subr.bf16.mxu0 %v5469_v55  ;;  %v5544_v54 = vld [vmem:[%s6195_s30 + $0xb04] ss:$16 sps:$4 sm:$0xff]   ;;  %v5539_v55 = vld [vmem:[%s6195_s30 + $0x900] ss:$16 sps:$4 sm:$0xff]  }
  0xc3   : > { %3781 = vmatprep.subr.bf16.mxu1 %v5472_v56  ;;  %v5542_v56 = vld [vmem:[%s6195_s30 + $0xb00] ss:$16 sps:$4 sm:$0xff]  }
  0xc5   : > { %3739 = vmatpush1.bf16.msra.mxu0 %v5467_v57  ;;  %v5547_v57 = vld [vmem:[%s6195_s30 + $0xce4] ss:$16 sps:$4 sm:$0xff]  }
  0xc6   : > { %3782 = vmatpush1.bf16.msra.mxu1 %v5470_v59  ;;  %3740 = vmatprep.subr.bf16.mxu0 %v5475_v61  ;;  %v5550_v59 = vld [vmem:[%s6195_s30 + $0xee4] ss:$16 sps:$4 sm:$0xff]   ;;  %v5545_v61 = vld [vmem:[%s6195_s30 + $0xce0] ss:$16 sps:$4 sm:$0xff]  }
  0xc7   : > { %3783 = vmatprep.subr.bf16.mxu1 %v5478_v62  ;;  %v5548_v62 = vld [vmem:[%s6195_s30 + $0xee0] ss:$16 sps:$4 sm:$0xff]  }
  0xc9   : > { %3741 = vmatpush1.bf16.msra.mxu0 %v5473_v63  ;;  %v6483_v63 = vld [vmem:[%s6213_s26 + $0x30] sm:$0xff] }
  0xca   : > { %3784 = vmatpush1.bf16.msra.mxu1 %v5476_v0  ;;  %3742 = vmatprep.subr.bf16.mxu0 %v5481_v1  ;;  %v6486_v0 = vld [vmem:[%s6213_s26 + $0x70] sm:$0xff]  ;;  %v6490_v1 = vcombine.low %v6399_v45, %v6404_v46 }
  0xcb   : > { %3785 = vmatprep.subr.bf16.mxu1 %v5484_v2  ;;  %v6494_v2 = vcombine.low %v6407_v47, %v6410_v48  ;;  %v6506_v45 = vcombine.high %v6483_v63, %v6486_v0  ;;  %v5551_v47 = vld [vmem:[%s6195_s30 + $0xcc0] ss:$16 sps:$4 sm:$0xff]  }
  0xcc   : > { %v5554_v48 = vld [vmem:[%s6195_s30 + $0xec0] ss:$16 sps:$4 sm:$0xff]  }
  0xcd   : > { %3743 = vmatpush1.bf16.msra.mxu0 %v5479_v3  ;;  %v6497_v3 = vld [vmem:[%s6213_s26 + $0x38] sm:$0xff] }
  0xce   : > { %3786 = vmatpush1.bf16.msra.mxu1 %v5482_v4  ;;  %3744 = vmatprep.subr.bf16.mxu0 %v5487_v5  ;;  %v6500_v4 = vld [vmem:[%s6213_s26 + $0x78] sm:$0xff]  ;;  %v5553_v5 = vld [vmem:[%s6195_s30 + $0xcc4] ss:$16 sps:$4 sm:$0xff]  }
  0xcf   : > { %3787 = vmatprep.subr.bf16.mxu1 %v5490_v7  ;;  %v5556_v7 = vld [vmem:[%s6195_s30 + $0xec4] ss:$16 sps:$4 sm:$0xff]   ;;  %v6510_v46 = vcombine.high %v6497_v3, %v6500_v4 }
  0xd1   : > { %3745 = vmatpush1.bf16.msra.mxu0 %v5485_v9  ;;  %v5559_v9 = vld [vmem:[%s6195_s30 + $0xca4] ss:$16 sps:$4 sm:$0xff]  }
  0xd2   : > { %3788 = vmatpush1.bf16.msra.mxu1 %v5488_v10  ;;  %3746 = vmatprep.subr.bf16.mxu0 %v5493_v11  ;;  %v5562_v10 = vld [vmem:[%s6195_s30 + $0xea4] ss:$16 sps:$4 sm:$0xff]   ;;  %v5557_v11 = vld [vmem:[%s6195_s30 + $0xca0] ss:$16 sps:$4 sm:$0xff]  }
  0xd3   : > { %3789 = vmatprep.subr.bf16.mxu1 %v5496_v12  ;;  %v5560_v12 = vld [vmem:[%s6195_s30 + $0xea0] ss:$16 sps:$4 sm:$0xff]  }
  0xd5   : > { %3747 = vmatpush1.bf16.msra.mxu0 %v5491_v13  ;;  %v5565_v13 = vld [vmem:[%s6195_s30 + $0xc84] ss:$16 sps:$4 sm:$0xff]  }
  0xd6   : > { %3790 = vmatpush1.bf16.msra.mxu1 %v5494_v14  ;;  %3748 = vmatprep.subr.bf16.mxu0 %v5499_v15  ;;  %v5568_v14 = vld [vmem:[%s6195_s30 + $0xe84] ss:$16 sps:$4 sm:$0xff]   ;;  %v5563_v15 = vld [vmem:[%s6195_s30 + $0xc80] ss:$16 sps:$4 sm:$0xff]  }
  0xd7   : > { %3791 = vmatprep.subr.bf16.mxu1 %v5502_v16  ;;  %v5566_v16 = vld [vmem:[%s6195_s30 + $0xe80] ss:$16 sps:$4 sm:$0xff]  }
  0xd9   : > { %3749 = vmatpush2.bf16.msra.mxu0 %v5497_v17  ;;  %v5571_v17 = vld [vmem:[%s6195_s30 + $0xc64] ss:$16 sps:$4 sm:$0xff]  }
  0xda   : > { %3792 = vmatpush2.bf16.msra.mxu1 %v5500_v18  ;;  %3750 = vmatprep.subr.bf16.mxu0 %v5505_v19  ;;  %v5574_v18 = vld [vmem:[%s6195_s30 + $0xe64] ss:$16 sps:$4 sm:$0xff]   ;;  %v5569_v19 = vld [vmem:[%s6195_s30 + $0xc60] ss:$16 sps:$4 sm:$0xff]  }
  0xdb   : > { %3793 = vmatprep.subr.bf16.mxu1 %v5508_v20  ;;  %v5572_v20 = vld [vmem:[%s6195_s30 + $0xe60] ss:$16 sps:$4 sm:$0xff]  }
  0xdd   : > { %3751 = vmatpush2.bf16.msra.mxu0 %v5503_v21  ;;  %v5577_v21 = vld [vmem:[%s6195_s30 + $0xc44] ss:$16 sps:$4 sm:$0xff]  }
  0xde   : > { %3794 = vmatpush2.bf16.msra.mxu1 %v5506_v22  ;;  %3752 = vmatprep.subr.bf16.mxu0 %v5511_v23  ;;  %v5580_v22 = vld [vmem:[%s6195_s30 + $0xe44] ss:$16 sps:$4 sm:$0xff]   ;;  %v5575_v23 = vld [vmem:[%s6195_s30 + $0xc40] ss:$16 sps:$4 sm:$0xff]  }
  0xdf   : > { %3795 = vmatprep.subr.bf16.mxu1 %v5514_v24  ;;  %v5578_v24 = vld [vmem:[%s6195_s30 + $0xe40] ss:$16 sps:$4 sm:$0xff]  }
  0xe1   : > { %3753 = vmatpush2.bf16.msra.mxu0 %v5509_v27  ;;  %v5583_v27 = vld [vmem:[%s6195_s30 + $0xc24] ss:$16 sps:$4 sm:$0xff]  }
  0xe2   : > { %3796 = vmatpush2.bf16.msra.mxu1 %v5512_v28  ;;  %3754 = vmatprep.subr.bf16.mxu0 %v5517_v29  ;;  %v5586_v28 = vld [vmem:[%s6195_s30 + $0xe24] ss:$16 sps:$4 sm:$0xff]   ;;  %v5581_v29 = vld [vmem:[%s6195_s30 + $0xc20] ss:$16 sps:$4 sm:$0xff]  }
  0xe3   : > { %3797 = vmatprep.subr.bf16.mxu1 %v5520_v30  ;;  %v5584_v30 = vld [vmem:[%s6195_s30 + $0xe20] ss:$16 sps:$4 sm:$0xff]  }
  0xe5   : > { %3755 = vmatpush2.bf16.msra.mxu0 %v5515_v31  ;;  %v5589_v31 = vld [vmem:[%s6195_s30 + $0xc04] ss:$16 sps:$4 sm:$0xff]  }
  0xe6   : > { %3798 = vmatpush2.bf16.msra.mxu1 %v5518_v32  ;;  %3756 = vmatprep.subr.bf16.mxu0 %v5523_v33  ;;  %v5592_v32 = vld [vmem:[%s6195_s30 + $0xe04] ss:$16 sps:$4 sm:$0xff]   ;;  %v5587_v33 = vld [vmem:[%s6195_s30 + $0xc00] ss:$16 sps:$4 sm:$0xff]  }
  0xe7   : > { %3799 = vmatprep.subr.bf16.mxu1 %v5526_v34  ;;  %v5590_v34 = vld [vmem:[%s6195_s30 + $0xe00] ss:$16 sps:$4 sm:$0xff]  }
  0xe9   : > { %3757 = vmatpush2.bf16.msra.mxu0 %v5521_v35  ;;  %v5595_v35 = vld [vmem:[%s6195_s30 + $0xde4] ss:$16 sps:$4 sm:$0xff]  }
  0xea   : > { %3800 = vmatpush2.bf16.msra.mxu1 %v5524_v36  ;;  %3758 = vmatprep.subr.bf16.mxu0 %v5529_v39  ;;  %v5598_v36 = vld [vmem:[%s6195_s30 + $0xfe4] ss:$16 sps:$4 sm:$0xff]   ;;  %v5593_v39 = vld [vmem:[%s6195_s30 + $0xde0] ss:$16 sps:$4 sm:$0xff]  }
  0xeb   : > { %3801 = vmatprep.subr.bf16.mxu1 %v5532_v40  ;;  %v5596_v40 = vld [vmem:[%s6195_s30 + $0xfe0] ss:$16 sps:$4 sm:$0xff]  }
  0xed   : > { %3759 = vmatpush2.bf16.msra.mxu0 %v5527_v41  ;;  %v5601_v41 = vld [vmem:[%s6195_s30 + $0xdc4] ss:$16 sps:$4 sm:$0xff]  }
  0xee   : > { %3802 = vmatpush2.bf16.msra.mxu1 %v5530_v42  ;;  %3760 = vmatprep.subr.bf16.mxu0 %v5535_v43  ;;  %v5604_v42 = vld [vmem:[%s6195_s30 + $0xfc4] ss:$16 sps:$4 sm:$0xff]   ;;  %v5599_v43 = vld [vmem:[%s6195_s30 + $0xdc0] ss:$16 sps:$4 sm:$0xff]  }
  0xef   : > { %3803 = vmatprep.subr.bf16.mxu1 %v5538_v44  ;;  %v5602_v44 = vld [vmem:[%s6195_s30 + $0xfc0] ss:$16 sps:$4 sm:$0xff]  }
  0xf1   : > { %3761 = vmatpush2.bf16.msra.mxu0 %v5533_v49  ;;  %v5607_v49 = vld [vmem:[%s6195_s30 + $0xda4] ss:$16 sps:$4 sm:$0xff]  }
  0xf2   : > { %3804 = vmatpush2.bf16.msra.mxu1 %v5536_v51  ;;  %3762 = vmatprep.subr.bf16.mxu0 %v5541_v53  ;;  %v5610_v51 = vld [vmem:[%s6195_s30 + $0xfa4] ss:$16 sps:$4 sm:$0xff]   ;;  %v5605_v53 = vld [vmem:[%s6195_s30 + $0xda0] ss:$16 sps:$4 sm:$0xff]  }
  0xf3   : > { %3805 = vmatprep.subr.bf16.mxu1 %v5544_v54  ;;  %v5608_v54 = vld [vmem:[%s6195_s30 + $0xfa0] ss:$16 sps:$4 sm:$0xff]  }
  0xf5   : > { %3763 = vmatpush2.bf16.msra.mxu0 %v5539_v55  ;;  %v5613_v55 = vld [vmem:[%s6195_s30 + $0xd84] ss:$16 sps:$4 sm:$0xff]  }
  0xf6   : > { %3806 = vmatpush2.bf16.msra.mxu1 %v5542_v56  ;;  %3818 = vmatprep.subr.bf16.mxu0 %v5547_v57  ;;  %v5616_v56 = vld [vmem:[%s6195_s30 + $0xf84] ss:$16 sps:$4 sm:$0xff]   ;;  %v5611_v57 = vld [vmem:[%s6195_s30 + $0xd80] ss:$16 sps:$4 sm:$0xff]  }
  0xf7   : > { %3861 = vmatprep.subr.bf16.mxu1 %v5550_v59  ;;  %v5614_v59 = vld [vmem:[%s6195_s30 + $0xf80] ss:$16 sps:$4 sm:$0xff]  }
  0xf8   : > { %3765 = vmatmul.mubr.bf16.vlgmr.msra.gmra.mxu0 %v6490_v1 }
  0xf9   : > { %3808 = vmatmul.mubr.bf16.vlgmr.msra.gmra.mxu1 %v6494_v2  ;;  %3819 = vmatpush1.bf16.msra.mxu0 %v5545_v61  ;;  %v5619_v61 = vld [vmem:[%s6195_s30 + $0xd64] ss:$16 sps:$4 sm:$0xff]  }
  0xfa   : > { %3862 = vmatpush1.bf16.msra.mxu1 %v5548_v62  ;;  %3820 = vmatprep.subr.bf16.mxu0 %v5553_v5  ;;  %v5622_v62 = vld [vmem:[%s6195_s30 + $0xf64] ss:$16 sps:$4 sm:$0xff]   ;;  %v5617_v5 = vld [vmem:[%s6195_s30 + $0xd60] ss:$16 sps:$4 sm:$0xff]  }
  0xfb   : > { %3863 = vmatprep.subr.bf16.mxu1 %v5556_v7  ;;  %3850 = vmatprep.mubr.bf16.mxu0 %v6506_v45  ;;  %v5620_v7 = vld [vmem:[%s6195_s30 + $0xf60] ss:$16 sps:$4 sm:$0xff]  }
  0xfc   : > { %3893 = vmatprep.mubr.bf16.mxu1 %v6510_v46 }
  0xfd   : > { %3821 = vmatpush1.bf16.msra.mxu0 %v5551_v47  ;;  %v5625_v47 = vld [vmem:[%s6195_s30 + $0xd44] ss:$16 sps:$4 sm:$0xff]  }
  0xfe   : > { %3864 = vmatpush1.bf16.msra.mxu1 %v5554_v48  ;;  %3822 = vmatprep.subr.bf16.mxu0 %v5559_v9  ;;  %v5628_v48 = vld [vmem:[%s6195_s30 + $0xf44] ss:$16 sps:$4 sm:$0xff]   ;;  %v5623_v9 = vld [vmem:[%s6195_s30 + $0xd40] ss:$16 sps:$4 sm:$0xff]  }
  0xff   : > { %3865 = vmatprep.subr.bf16.mxu1 %v5562_v10  ;;  %v5626_v10 = vld [vmem:[%s6195_s30 + $0xf40] ss:$16 sps:$4 sm:$0xff]  }
 0x101   : > { %3823 = vmatpush1.bf16.msra.mxu0 %v5557_v11  ;;  %v5631_v11 = vld [vmem:[%s6195_s30 + $0xd24] ss:$16 sps:$4 sm:$0xff]  }
 0x102   : > { %3866 = vmatpush1.bf16.msra.mxu1 %v5560_v12  ;;  %3824 = vmatprep.subr.bf16.mxu0 %v5565_v13  ;;  %v5634_v12 = vld [vmem:[%s6195_s30 + $0xf24] ss:$16 sps:$4 sm:$0xff]   ;;  %v5629_v13 = vld [vmem:[%s6195_s30 + $0xd20] ss:$16 sps:$4 sm:$0xff]  }
 0x103   : > { %3867 = vmatprep.subr.bf16.mxu1 %v5568_v14  ;;  %v5632_v14 = vld [vmem:[%s6195_s30 + $0xf20] ss:$16 sps:$4 sm:$0xff]  }
 0x105   : > { %3825 = vmatpush1.bf16.msra.mxu0 %v5563_v15  ;;  %v5637_v15 = vld [vmem:[%s6195_s30 + $0xd04] ss:$16 sps:$4 sm:$0xff]  }
 0x106   : > { %3868 = vmatpush1.bf16.msra.mxu1 %v5566_v16  ;;  %3826 = vmatprep.subr.bf16.mxu0 %v5571_v17  ;;  %v5640_v16 = vld [vmem:[%s6195_s30 + $0xf04] ss:$16 sps:$4 sm:$0xff]   ;;  %v5635_v17 = vld [vmem:[%s6195_s30 + $0xd00] ss:$16 sps:$4 sm:$0xff]  }
 0x107   : > { %3869 = vmatprep.subr.bf16.mxu1 %v5574_v18  ;;  %v5638_v18 = vld [vmem:[%s6195_s30 + $0xf00] ss:$16 sps:$4 sm:$0xff]  }
 0x109   : > { %3827 = vmatpush1.bf16.msra.mxu0 %v5569_v19  ;;  %v5643_v19 = vld [vmem:[%s6195_s30 + $0xec] ss:$16 sps:$4 sm:$0xff]  }
 0x10a   : > { %3870 = vmatpush1.bf16.msra.mxu1 %v5572_v20  ;;  %3828 = vmatprep.subr.bf16.mxu0 %v5577_v21  ;;  %v5646_v20 = vld [vmem:[%s6195_s30 + $0x2ec] ss:$16 sps:$4 sm:$0xff]   ;;  %v6578_v21 = vcombine.low %v6483_v63, %v6486_v0  ;;  %v5647_v63 = vld [vmem:[%s6195_s30 + $0xc8] ss:$16 sps:$4 sm:$0xff]  }
 0x10b   : > { %3871 = vmatprep.subr.bf16.mxu1 %v5580_v22  ;;  %v6582_v22 = vcombine.low %v6497_v3, %v6500_v4  ;;  %v5650_v0 = vld [vmem:[%s6195_s30 + $0x2c8] ss:$16 sps:$4 sm:$0xff]   ;;  %v5655_v3 = vld [vmem:[%s6195_s30 + $0xac] ss:$16 sps:$4 sm:$0xff]  }
 0x10c   : > { %v5658_v4 = vld [vmem:[%s6195_s30 + $0x2ac] ss:$16 sps:$4 sm:$0xff]  }
 0x10d   : > { %3829 = vmatpush1.bf16.msra.mxu0 %v5575_v23  ;;  %v5641_v23 = vld [vmem:[%s6195_s30 + $0xe8] ss:$16 sps:$4 sm:$0xff]  }
 0x10e   : > { %3872 = vmatpush1.bf16.msra.mxu1 %v5578_v24  ;;  %3830 = vmatprep.subr.bf16.mxu0 %v5583_v27  ;;  %v5644_v24 = vld [vmem:[%s6195_s30 + $0x2e8] ss:$16 sps:$4 sm:$0xff]   ;;  %v5649_v27 = vld [vmem:[%s6195_s30 + $0xcc] ss:$16 sps:$4 sm:$0xff]  }
 0x10f   : > { %3873 = vmatprep.subr.bf16.mxu1 %v5586_v28  ;;  %v5652_v28 = vld [vmem:[%s6195_s30 + $0x2cc] ss:$16 sps:$4 sm:$0xff]  }
 0x111   : > { %3831 = vmatpush1.bf16.msra.mxu0 %v5581_v29  ;;  %v5653_v29 = vld [vmem:[%s6195_s30 + $0xa8] ss:$16 sps:$4 sm:$0xff]  }
 0x112   : > { %3874 = vmatpush1.bf16.msra.mxu1 %v5584_v30  ;;  %3832 = vmatprep.subr.bf16.mxu0 %v5589_v31  ;;  %v5656_v30 = vld [vmem:[%s6195_s30 + $0x2a8] ss:$16 sps:$4 sm:$0xff]   ;;  %v5661_v31 = vld [vmem:[%s6195_s30 + $0x8c] ss:$16 sps:$4 sm:$0xff]  }
 0x113   : > { %3875 = vmatprep.subr.bf16.mxu1 %v5592_v32  ;;  %v5664_v32 = vld [vmem:[%s6195_s30 + $0x28c] ss:$16 sps:$4 sm:$0xff]  }
 0x115   : > { %3833 = vmatpush1.bf16.msra.mxu0 %v5587_v33  ;;  %v5659_v33 = vld [vmem:[%s6195_s30 + $0x88] ss:$16 sps:$4 sm:$0xff]  }
 0x116   : > { %3876 = vmatpush1.bf16.msra.mxu1 %v5590_v34  ;;  %3834 = vmatprep.subr.bf16.mxu0 %v5595_v35  ;;  %v5662_v34 = vld [vmem:[%s6195_s30 + $0x288] ss:$16 sps:$4 sm:$0xff]  }
 0x117   : > { %3877 = vmatprep.subr.bf16.mxu1 %v5598_v36  ;;  %v5665_v35 = vld [vmem:[%s6195_s30 + $0x68] ss:$16 sps:$4 sm:$0xff]  }
 0x118   : > { %v5668_v36 = vld [vmem:[%s6195_s30 + $0x268] ss:$16 sps:$4 sm:$0xff]  }
 0x119   : > { %3835 = vmatpush2.bf16.msra.mxu0 %v5593_v39  ;;  %v5673_v39 = vld [vmem:[%s6195_s30 + $0x4c] ss:$16 sps:$4 sm:$0xff]  }
 0x11a   : > { %3878 = vmatpush2.bf16.msra.mxu1 %v5596_v40  ;;  %3836 = vmatprep.subr.bf16.mxu0 %v5601_v41  ;;  %v5676_v40 = vld [vmem:[%s6195_s30 + $0x24c] ss:$16 sps:$4 sm:$0xff]   ;;  %v5671_v41 = vld [vmem:[%s6195_s30 + $0x48] ss:$16 sps:$4 sm:$0xff]  }
 0x11b   : > { %3879 = vmatprep.subr.bf16.mxu1 %v5604_v42  ;;  %v5674_v42 = vld [vmem:[%s6195_s30 + $0x248] ss:$16 sps:$4 sm:$0xff]  }
 0x11d   : > { %3837 = vmatpush2.bf16.msra.mxu0 %v5599_v43  ;;  %v5679_v43 = vld [vmem:[%s6195_s30 + $0x2c] ss:$16 sps:$4 sm:$0xff]  }
 0x11e   : > { %3880 = vmatpush2.bf16.msra.mxu1 %v5602_v44  ;;  %3838 = vmatprep.subr.bf16.mxu0 %v5607_v49  ;;  %v5682_v44 = vld [vmem:[%s6195_s30 + $0x22c] ss:$16 sps:$4 sm:$0xff]   ;;  %v5677_v49 = vld [vmem:[%s6195_s30 + $0x28] ss:$16 sps:$4 sm:$0xff]  }
 0x11f   : > { %3881 = vmatprep.subr.bf16.mxu1 %v5610_v51  ;;  %v5680_v51 = vld [vmem:[%s6195_s30 + $0x228] ss:$16 sps:$4 sm:$0xff]  }
 0x121   : > { %3839 = vmatpush2.bf16.msra.mxu0 %v5605_v53  ;;  %v5685_v53 = vld [vmem:[%s6195_s30 + $0xc] ss:$16 sps:$4 sm:$0xff]  }
 0x122   : > { %3882 = vmatpush2.bf16.msra.mxu1 %v5608_v54  ;;  %3840 = vmatprep.subr.bf16.mxu0 %v5613_v55  ;;  %v5688_v54 = vld [vmem:[%s6195_s30 + $0x20c] ss:$16 sps:$4 sm:$0xff]   ;;  %v5683_v55 = vld [vmem:[%s6195_s30 + $0x8] ss:$16 sps:$4 sm:$0xff]  }
 0x123   : > { %3883 = vmatprep.subr.bf16.mxu1 %v5616_v56  ;;  %v5686_v56 = vld [vmem:[%s6195_s30 + $0x208] ss:$16 sps:$4 sm:$0xff]  }
 0x125   : > { %3841 = vmatpush2.bf16.msra.mxu0 %v5611_v57  ;;  %v5691_v57 = vld [vmem:[%s6195_s30 + $0x1ec] ss:$16 sps:$4 sm:$0xff]  }
 0x126   : > { %3884 = vmatpush2.bf16.msra.mxu1 %v5614_v59  ;;  %3842 = vmatprep.subr.bf16.mxu0 %v5619_v61  ;;  %v5694_v59 = vld [vmem:[%s6195_s30 + $0x3ec] ss:$16 sps:$4 sm:$0xff]   ;;  %v5689_v61 = vld [vmem:[%s6195_s30 + $0x1e8] ss:$16 sps:$4 sm:$0xff]  }
 0x127   : > { %3885 = vmatprep.subr.bf16.mxu1 %v5622_v62  ;;  %v5692_v62 = vld [vmem:[%s6195_s30 + $0x3e8] ss:$16 sps:$4 sm:$0xff]  }
 0x129   : > { %3843 = vmatpush2.bf16.msra.mxu0 %v5617_v5  ;;  %v5697_v5 = vld [vmem:[%s6195_s30 + $0x1cc] ss:$16 sps:$4 sm:$0xff]  }
 0x12a   : > { %3886 = vmatpush2.bf16.msra.mxu1 %v5620_v7  ;;  %3844 = vmatprep.subr.bf16.mxu0 %v5625_v47  ;;  %v5700_v7 = vld [vmem:[%s6195_s30 + $0x3cc] ss:$16 sps:$4 sm:$0xff]   ;;  %v5695_v47 = vld [vmem:[%s6195_s30 + $0x1c8] ss:$16 sps:$4 sm:$0xff]  }
 0x12b   : > { %3887 = vmatprep.subr.bf16.mxu1 %v5628_v48  ;;  %v5698_v48 = vld [vmem:[%s6195_s30 + $0x3c8] ss:$16 sps:$4 sm:$0xff]  }
 0x12d   : > { %3845 = vmatpush2.bf16.msra.mxu0 %v5623_v9  ;;  %v5703_v9 = vld [vmem:[%s6195_s30 + $0x1ac] ss:$16 sps:$4 sm:$0xff]  }
 0x12e   : > { %3888 = vmatpush2.bf16.msra.mxu1 %v5626_v10  ;;  %3846 = vmatprep.subr.bf16.mxu0 %v5631_v11  ;;  %v5706_v10 = vld [vmem:[%s6195_s30 + $0x3ac] ss:$16 sps:$4 sm:$0xff]   ;;  %v5701_v11 = vld [vmem:[%s6195_s30 + $0x1a8] ss:$16 sps:$4 sm:$0xff]  }
 0x12f   : > { %3889 = vmatprep.subr.bf16.mxu1 %v5634_v12  ;;  %v5704_v12 = vld [vmem:[%s6195_s30 + $0x3a8] ss:$16 sps:$4 sm:$0xff]  }
 0x131   : > { %3847 = vmatpush2.bf16.msra.mxu0 %v5629_v13  ;;  %v5709_v13 = vld [vmem:[%s6195_s30 + $0x18c] ss:$16 sps:$4 sm:$0xff]  }
 0x132   : > { %3890 = vmatpush2.bf16.msra.mxu1 %v5632_v14  ;;  %3848 = vmatprep.subr.bf16.mxu0 %v5637_v15  ;;  %v5712_v14 = vld [vmem:[%s6195_s30 + $0x38c] ss:$16 sps:$4 sm:$0xff]   ;;  %v5707_v15 = vld [vmem:[%s6195_s30 + $0x188] ss:$16 sps:$4 sm:$0xff]  }
 0x133   : > { %3891 = vmatprep.subr.bf16.mxu1 %v5640_v16  ;;  %v5710_v16 = vld [vmem:[%s6195_s30 + $0x388] ss:$16 sps:$4 sm:$0xff]  }
 0x135   : > { %3849 = vmatpush2.bf16.msra.mxu0 %v5635_v17  ;;  %v5715_v17 = vld [vmem:[%s6195_s30 + $0x16c] ss:$16 sps:$4 sm:$0xff]  }
 0x136   : > { %3892 = vmatpush2.bf16.msra.mxu1 %v5638_v18  ;;  %3904 = vmatprep.subr.bf16.mxu0 %v5643_v19  ;;  %v5718_v18 = vld [vmem:[%s6195_s30 + $0x36c] ss:$16 sps:$4 sm:$0xff]   ;;  %v5713_v19 = vld [vmem:[%s6195_s30 + $0x168] ss:$16 sps:$4 sm:$0xff]  }
 0x137   : > { %3947 = vmatprep.subr.bf16.mxu1 %v5646_v20  ;;  %v5716_v20 = vld [vmem:[%s6195_s30 + $0x368] ss:$16 sps:$4 sm:$0xff]  }
 0x138   : > { %3851 = vmatmul.mubr.bf16.vlgmr.msra.gmra.mxu0 %v6578_v21 }
 0x139   : > { %3894 = vmatmul.mubr.bf16.vlgmr.msra.gmra.mxu1 %v6582_v22  ;;  %3905 = vmatpush1.bf16.msra.mxu0 %v5641_v23  ;;  %v5721_v23 = vld [vmem:[%s6195_s30 + $0x14c] ss:$16 sps:$4 sm:$0xff]  }
 0x13a   : > { %3948 = vmatpush1.bf16.msra.mxu1 %v5644_v24  ;;  %3906 = vmatprep.subr.bf16.mxu0 %v5649_v27  ;;  %v5724_v24 = vld [vmem:[%s6195_s30 + $0x34c] ss:$16 sps:$4 sm:$0xff]   ;;  %v5719_v27 = vld [vmem:[%s6195_s30 + $0x148] ss:$16 sps:$4 sm:$0xff]  }
 0x13b   : > { %3949 = vmatprep.subr.bf16.mxu1 %v5652_v28  ;;  %3936 = vmatprep.mubr.bf16.mxu0 %v6269_v6  ;;  %v5667_v6 = vld [vmem:[%s6195_s30 + $0x6c] ss:$16 sps:$4 sm:$0xff]   ;;  %v5722_v28 = vld [vmem:[%s6195_s30 + $0x348] ss:$16 sps:$4 sm:$0xff]  }
 0x13c   : > { %3979 = vmatprep.mubr.bf16.mxu1 %v6272_v8  ;;  %v5670_v8 = vld [vmem:[%s6195_s30 + $0x26c] ss:$16 sps:$4 sm:$0xff]  }
 0x13d   : > { %3907 = vmatpush1.bf16.msra.mxu0 %v5647_v63  ;;  %v5727_v63 = vld [vmem:[%s6195_s30 + $0x12c] ss:$16 sps:$4 sm:$0xff]  }
 0x13e   : > { %3950 = vmatpush1.bf16.msra.mxu1 %v5650_v0  ;;  %3908 = vmatprep.subr.bf16.mxu0 %v5655_v3  ;;  %v5730_v0 = vld [vmem:[%s6195_s30 + $0x32c] ss:$16 sps:$4 sm:$0xff]   ;;  %v5725_v3 = vld [vmem:[%s6195_s30 + $0x128] ss:$16 sps:$4 sm:$0xff]  }
 0x13f   : > { %3951 = vmatprep.subr.bf16.mxu1 %v5658_v4  ;;  %v5728_v4 = vld [vmem:[%s6195_s30 + $0x328] ss:$16 sps:$4 sm:$0xff]  }
 0x141   : > { %3909 = vmatpush1.bf16.msra.mxu0 %v5653_v29  ;;  %v5733_v29 = vld [vmem:[%s6195_s30 + $0x10c] ss:$16 sps:$4 sm:$0xff]  }
 0x142   : > { %3952 = vmatpush1.bf16.msra.mxu1 %v5656_v30  ;;  %3910 = vmatprep.subr.bf16.mxu0 %v5661_v31  ;;  %v5736_v30 = vld [vmem:[%s6195_s30 + $0x30c] ss:$16 sps:$4 sm:$0xff]   ;;  %v5731_v31 = vld [vmem:[%s6195_s30 + $0x108] ss:$16 sps:$4 sm:$0xff]  }
 0x143   : > { %3953 = vmatprep.subr.bf16.mxu1 %v5664_v32  ;;  %v5734_v32 = vld [vmem:[%s6195_s30 + $0x308] ss:$16 sps:$4 sm:$0xff]  }
 0x145   : > { %3911 = vmatpush1.bf16.msra.mxu0 %v5659_v33  ;;  %v5739_v33 = vld [vmem:[%s6195_s30 + $0x4ec] ss:$16 sps:$4 sm:$0xff]  }
 0x146   : > { %3954 = vmatpush1.bf16.msra.mxu1 %v5662_v34  ;;  %3912 = vmatprep.subr.bf16.mxu0 %v5667_v6  ;;  %v5742_v34 = vld [vmem:[%s6195_s30 + $0x6ec] ss:$16 sps:$4 sm:$0xff]   ;;  %v5737_v6 = vld [vmem:[%s6195_s30 + $0x4e8] ss:$16 sps:$4 sm:$0xff]  }
 0x147   : > { %3955 = vmatprep.subr.bf16.mxu1 %v5670_v8  ;;  %v5740_v8 = vld [vmem:[%s6195_s30 + $0x6e8] ss:$16 sps:$4 sm:$0xff]  }
 0x149   : > { %3913 = vmatpush1.bf16.msra.mxu0 %v5665_v35  ;;  %v5745_v35 = vld [vmem:[%s6195_s30 + $0x4cc] ss:$16 sps:$4 sm:$0xff]  }
 0x14a   : > { %3956 = vmatpush1.bf16.msra.mxu1 %v5668_v36  ;;  %3914 = vmatprep.subr.bf16.mxu0 %v5673_v39  ;;  %v5748_v36 = vld [vmem:[%s6195_s30 + $0x6cc] ss:$16 sps:$4 sm:$0xff]   ;;  %v5743_v39 = vld [vmem:[%s6195_s30 + $0x4c8] ss:$16 sps:$4 sm:$0xff]  }
 0x14b   : > { %3957 = vmatprep.subr.bf16.mxu1 %v5676_v40  ;;  %v5746_v40 = vld [vmem:[%s6195_s30 + $0x6c8] ss:$16 sps:$4 sm:$0xff]  }
 0x14d   : > { %3915 = vmatpush1.bf16.msra.mxu0 %v5671_v41  ;;  %v5751_v41 = vld [vmem:[%s6195_s30 + $0x4ac] ss:$16 sps:$4 sm:$0xff]  }
 0x14e   : > { %3958 = vmatpush1.bf16.msra.mxu1 %v5674_v42  ;;  %3916 = vmatprep.subr.bf16.mxu0 %v5679_v43  ;;  %v5754_v42 = vld [vmem:[%s6195_s30 + $0x6ac] ss:$16 sps:$4 sm:$0xff]  }
 0x14f   : > { %3959 = vmatprep.subr.bf16.mxu1 %v5682_v44  ;;  %v5757_v43 = vld [vmem:[%s6195_s30 + $0x48c] ss:$16 sps:$4 sm:$0xff]  }
 0x150   : > { %v5760_v44 = vld [vmem:[%s6195_s30 + $0x68c] ss:$16 sps:$4 sm:$0xff]  }
 0x151   : > { %3917 = vmatpush1.bf16.msra.mxu0 %v5677_v49  ;;  %v5755_v49 = vld [vmem:[%s6195_s30 + $0x488] ss:$16 sps:$4 sm:$0xff]  }
 0x152   : > { %3960 = vmatpush1.bf16.msra.mxu1 %v5680_v51  ;;  %3918 = vmatprep.subr.bf16.mxu0 %v5685_v53  ;;  %v5766_v51 = vld [vmem:[%s6195_s30 + $0x66c] ss:$16 sps:$4 sm:$0xff]   ;;  %v5761_v53 = vld [vmem:[%s6195_s30 + $0x468] ss:$16 sps:$4 sm:$0xff]  }
 0x153   : > { %3961 = vmatprep.subr.bf16.mxu1 %v5688_v54  ;;  %v5764_v54 = vld [vmem:[%s6195_s30 + $0x668] ss:$16 sps:$4 sm:$0xff]  }
 0x155   : > { %3919 = vmatpush1.bf16.msra.mxu0 %v5683_v55  ;;  %v5769_v55 = vld [vmem:[%s6195_s30 + $0x44c] ss:$16 sps:$4 sm:$0xff]  }
 0x156   : > { %3962 = vmatpush1.bf16.msra.mxu1 %v5686_v56  ;;  %3920 = vmatprep.subr.bf16.mxu0 %v5691_v57  ;;  %v5772_v56 = vld [vmem:[%s6195_s30 + $0x64c] ss:$16 sps:$4 sm:$0xff]   ;;  %v5767_v57 = vld [vmem:[%s6195_s30 + $0x448] ss:$16 sps:$4 sm:$0xff]  }
 0x157   : > { %3963 = vmatprep.subr.bf16.mxu1 %v5694_v59  ;;  %v5770_v59 = vld [vmem:[%s6195_s30 + $0x648] ss:$16 sps:$4 sm:$0xff]  }
 0x159   : > { %3921 = vmatpush2.bf16.msra.mxu0 %v5689_v61  ;;  %v5775_v61 = vld [vmem:[%s6195_s30 + $0x42c] ss:$16 sps:$4 sm:$0xff]  }
 0x15a   : > { %3964 = vmatpush2.bf16.msra.mxu1 %v5692_v62  ;;  %3922 = vmatprep.subr.bf16.mxu0 %v5697_v5  ;;  %v5778_v62 = vld [vmem:[%s6195_s30 + $0x62c] ss:$16 sps:$4 sm:$0xff]   ;;  %v5773_v5 = vld [vmem:[%s6195_s30 + $0x428] ss:$16 sps:$4 sm:$0xff]  }
 0x15b   : > { %3965 = vmatprep.subr.bf16.mxu1 %v5700_v7  ;;  %v5776_v7 = vld [vmem:[%s6195_s30 + $0x628] ss:$16 sps:$4 sm:$0xff]  }
 0x15d   : > { %3923 = vmatpush2.bf16.msra.mxu0 %v5695_v47  ;;  %v5781_v47 = vld [vmem:[%s6195_s30 + $0x40c] ss:$16 sps:$4 sm:$0xff]  }
 0x15e   : > { %3966 = vmatpush2.bf16.msra.mxu1 %v5698_v48  ;;  %3924 = vmatprep.subr.bf16.mxu0 %v5703_v9  ;;  %v5784_v48 = vld [vmem:[%s6195_s30 + $0x60c] ss:$16 sps:$4 sm:$0xff]   ;;  %v5779_v9 = vld [vmem:[%s6195_s30 + $0x408] ss:$16 sps:$4 sm:$0xff]  }
 0x15f   : > { %3967 = vmatprep.subr.bf16.mxu1 %v5706_v10  ;;  %v5782_v10 = vld [vmem:[%s6195_s30 + $0x608] ss:$16 sps:$4 sm:$0xff]  }
 0x161   : > { %3925 = vmatpush2.bf16.msra.mxu0 %v5701_v11  ;;  %v5787_v11 = vld [vmem:[%s6195_s30 + $0x5ec] ss:$16 sps:$4 sm:$0xff]  }
 0x162   : > { %3968 = vmatpush2.bf16.msra.mxu1 %v5704_v12  ;;  %3926 = vmatprep.subr.bf16.mxu0 %v5709_v13  ;;  %v5790_v12 = vld [vmem:[%s6195_s30 + $0x7ec] ss:$16 sps:$4 sm:$0xff]   ;;  %v5785_v13 = vld [vmem:[%s6195_s30 + $0x5e8] ss:$16 sps:$4 sm:$0xff]  }
 0x163   : > { %3969 = vmatprep.subr.bf16.mxu1 %v5712_v14  ;;  %v5788_v14 = vld [vmem:[%s6195_s30 + $0x7e8] ss:$16 sps:$4 sm:$0xff]  }
 0x165   : > { %3927 = vmatpush2.bf16.msra.mxu0 %v5707_v15  ;;  %v5793_v15 = vld [vmem:[%s6195_s30 + $0x5cc] ss:$16 sps:$4 sm:$0xff]  }
 0x166   : > { %3970 = vmatpush2.bf16.msra.mxu1 %v5710_v16  ;;  %3928 = vmatprep.subr.bf16.mxu0 %v5715_v17  ;;  %v5796_v16 = vld [vmem:[%s6195_s30 + $0x7cc] ss:$16 sps:$4 sm:$0xff]   ;;  %v5791_v17 = vld [vmem:[%s6195_s30 + $0x5c8] ss:$16 sps:$4 sm:$0xff]  }
 0x167   : > { %3971 = vmatprep.subr.bf16.mxu1 %v5718_v18  ;;  %v5794_v18 = vld [vmem:[%s6195_s30 + $0x7c8] ss:$16 sps:$4 sm:$0xff]  }
 0x169   : > { %3929 = vmatpush2.bf16.msra.mxu0 %v5713_v19  ;;  %v5799_v19 = vld [vmem:[%s6195_s30 + $0x5ac] ss:$16 sps:$4 sm:$0xff]  }
 0x16a   : > { %3972 = vmatpush2.bf16.msra.mxu1 %v5716_v20  ;;  %3930 = vmatprep.subr.bf16.mxu0 %v5721_v23  ;;  %v5802_v20 = vld [vmem:[%s6195_s30 + $0x7ac] ss:$16 sps:$4 sm:$0xff]   ;;  %v5797_v23 = vld [vmem:[%s6195_s30 + $0x5a8] ss:$16 sps:$4 sm:$0xff]  }
 0x16b   : > { %3973 = vmatprep.subr.bf16.mxu1 %v5724_v24  ;;  %v5800_v24 = vld [vmem:[%s6195_s30 + $0x7a8] ss:$16 sps:$4 sm:$0xff]  }
 0x16d   : > { %3931 = vmatpush2.bf16.msra.mxu0 %v5719_v27  ;;  %v5805_v27 = vld [vmem:[%s6195_s30 + $0x58c] ss:$16 sps:$4 sm:$0xff]  }
 0x16e   : > { %3974 = vmatpush2.bf16.msra.mxu1 %v5722_v28  ;;  %3932 = vmatprep.subr.bf16.mxu0 %v5727_v63  ;;  %v5808_v28 = vld [vmem:[%s6195_s30 + $0x78c] ss:$16 sps:$4 sm:$0xff]   ;;  %v5803_v63 = vld [vmem:[%s6195_s30 + $0x588] ss:$16 sps:$4 sm:$0xff]  }
 0x16f   : > { %3975 = vmatprep.subr.bf16.mxu1 %v5730_v0  ;;  %v5806_v0 = vld [vmem:[%s6195_s30 + $0x788] ss:$16 sps:$4 sm:$0xff]  }
 0x171   : > { %3933 = vmatpush2.bf16.msra.mxu0 %v5725_v3  ;;  %v5811_v3 = vld [vmem:[%s6195_s30 + $0x56c] ss:$16 sps:$4 sm:$0xff]  }
 0x172   : > { %3976 = vmatpush2.bf16.msra.mxu1 %v5728_v4  ;;  %3934 = vmatprep.subr.bf16.mxu0 %v5733_v29  ;;  %v5814_v4 = vld [vmem:[%s6195_s30 + $0x76c] ss:$16 sps:$4 sm:$0xff]   ;;  %v5809_v29 = vld [vmem:[%s6195_s30 + $0x568] ss:$16 sps:$4 sm:$0xff]  }
 0x173   : > { %3977 = vmatprep.subr.bf16.mxu1 %v5736_v30  ;;  %v5812_v30 = vld [vmem:[%s6195_s30 + $0x768] ss:$16 sps:$4 sm:$0xff]  }
 0x175   : > { %3935 = vmatpush2.bf16.msra.mxu0 %v5731_v31  ;;  %v5817_v31 = vld [vmem:[%s6195_s30 + $0x54c] ss:$16 sps:$4 sm:$0xff]  }
 0x176   : > { %3978 = vmatpush2.bf16.msra.mxu1 %v5734_v32  ;;  %3990 = vmatprep.subr.bf16.mxu0 %v5739_v33  ;;  %v5820_v32 = vld [vmem:[%s6195_s30 + $0x74c] ss:$16 sps:$4 sm:$0xff]   ;;  %v5815_v33 = vld [vmem:[%s6195_s30 + $0x548] ss:$16 sps:$4 sm:$0xff]  }
 0x177   : > { %4033 = vmatprep.subr.bf16.mxu1 %v5742_v34  ;;  %v5818_v34 = vld [vmem:[%s6195_s30 + $0x748] ss:$16 sps:$4 sm:$0xff]  }
 0x178   : > { %3937 = vmatmul.mubr.bf16.vlgmr.msra.gmra.mxu0 %v6292_v25  ;;  %v5749_v25 = vld [vmem:[%s6195_s30 + $0x4a8] ss:$16 sps:$4 sm:$0xff]  }
 0x179   : > { %3980 = vmatmul.mubr.bf16.vlgmr.msra.gmra.mxu1 %v6294_v26  ;;  %3991 = vmatpush1.bf16.msra.mxu0 %v5737_v6  ;;  %v5752_v26 = vld [vmem:[%s6195_s30 + $0x6a8] ss:$16 sps:$4 sm:$0xff]   ;;  %v5823_v6 = vld [vmem:[%s6195_s30 + $0x52c] ss:$16 sps:$4 sm:$0xff]  }
 0x17a   : > { %4034 = vmatpush1.bf16.msra.mxu1 %v5740_v8  ;;  %3992 = vmatprep.subr.bf16.mxu0 %v5745_v35  ;;  %v5826_v8 = vld [vmem:[%s6195_s30 + $0x72c] ss:$16 sps:$4 sm:$0xff]   ;;  %v5821_v35 = vld [vmem:[%s6195_s30 + $0x528] ss:$16 sps:$4 sm:$0xff]  }
 0x17b   : > { %4035 = vmatprep.subr.bf16.mxu1 %v5748_v36  ;;  %4022 = vmatprep.mubr.bf16.mxu0 %v6339_v58  ;;  %v5758_v58 = vld [vmem:[%s6195_s30 + $0x688] ss:$16 sps:$4 sm:$0xff]  }
 0x17c   : > { %4065 = vmatprep.mubr.bf16.mxu1 %v6344_v60  ;;  %v5763_v60 = vld [vmem:[%s6195_s30 + $0x46c] ss:$16 sps:$4 sm:$0xff]   ;;  %v5824_v36 = vld [vmem:[%s6195_s30 + $0x728] ss:$16 sps:$4 sm:$0xff]  }
 0x17d   : > { %3993 = vmatpush1.bf16.msra.mxu0 %v5743_v39  ;;  %v5829_v39 = vld [vmem:[%s6195_s30 + $0x50c] ss:$16 sps:$4 sm:$0xff]  }
 0x17e   : > { %4036 = vmatpush1.bf16.msra.mxu1 %v5746_v40  ;;  %3994 = vmatprep.subr.bf16.mxu0 %v5751_v41  ;;  %v5832_v40 = vld [vmem:[%s6195_s30 + $0x70c] ss:$16 sps:$4 sm:$0xff]   ;;  %v5827_v41 = vld [vmem:[%s6195_s30 + $0x508] ss:$16 sps:$4 sm:$0xff]  }
 0x17f   : > { %4037 = vmatprep.subr.bf16.mxu1 %v5754_v42  ;;  %v5830_v42 = vld [vmem:[%s6195_s30 + $0x708] ss:$16 sps:$4 sm:$0xff]  }
 0x181   : > { %3995 = vmatpush1.bf16.msra.mxu0 %v5749_v25  ;;  %v5835_v25 = vld [vmem:[%s6195_s30 + $0x8ec] ss:$16 sps:$4 sm:$0xff]  }
 0x182   : > { %4038 = vmatpush1.bf16.msra.mxu1 %v5752_v26  ;;  %3996 = vmatprep.subr.bf16.mxu0 %v5757_v43  ;;  %v5838_v26 = vld [vmem:[%s6195_s30 + $0xaec] ss:$16 sps:$4 sm:$0xff]   ;;  %v5833_v43 = vld [vmem:[%s6195_s30 + $0x8e8] ss:$16 sps:$4 sm:$0xff]  }
 0x183   : > { %4039 = vmatprep.subr.bf16.mxu1 %v5760_v44  ;;  %v5836_v44 = vld [vmem:[%s6195_s30 + $0xae8] ss:$16 sps:$4 sm:$0xff]  }
 0x185   : > { %3997 = vmatpush1.bf16.msra.mxu0 %v5755_v49  ;;  %v5841_v49 = vld [vmem:[%s6195_s30 + $0x8cc] ss:$16 sps:$4 sm:$0xff]  }
 0x186   : > { %4040 = vmatpush1.bf16.msra.mxu1 %v5758_v58  ;;  %3998 = vmatprep.subr.bf16.mxu0 %v5763_v60  ;;  %v5844_v58 = vld [vmem:[%s6195_s30 + $0xacc] ss:$16 sps:$4 sm:$0xff]   ;;  %v5839_v60 = vld [vmem:[%s6195_s30 + $0x8c8] ss:$16 sps:$4 sm:$0xff]  }
 0x187   : > { %4041 = vmatprep.subr.bf16.mxu1 %v5766_v51  ;;  %v5842_v51 = vld [vmem:[%s6195_s30 + $0xac8] ss:$16 sps:$4 sm:$0xff]  }
 0x189   : > { %3999 = vmatpush1.bf16.msra.mxu0 %v5761_v53  ;;  %v5847_v53 = vld [vmem:[%s6195_s30 + $0x8ac] ss:$16 sps:$4 sm:$0xff]  }
 0x18a   : > { %4042 = vmatpush1.bf16.msra.mxu1 %v5764_v54  ;;  %4000 = vmatprep.subr.bf16.mxu0 %v5769_v55  ;;  %v5850_v54 = vld [vmem:[%s6195_s30 + $0xaac] ss:$16 sps:$4 sm:$0xff]  }
 0x18b   : > { %4043 = vmatprep.subr.bf16.mxu1 %v5772_v56  ;;  %v5853_v55 = vld [vmem:[%s6195_s30 + $0x88c] ss:$16 sps:$4 sm:$0xff]  }
 0x18c   : > { %v5856_v56 = vld [vmem:[%s6195_s30 + $0xa8c] ss:$16 sps:$4 sm:$0xff]  }
 0x18d   : > { %4001 = vmatpush1.bf16.msra.mxu0 %v5767_v57  ;;  %v5851_v57 = vld [vmem:[%s6195_s30 + $0x888] ss:$16 sps:$4 sm:$0xff]  }
 0x18e   : > { %4044 = vmatpush1.bf16.msra.mxu1 %v5770_v59  ;;  %4002 = vmatprep.subr.bf16.mxu0 %v5775_v61  ;;  %v5862_v59 = vld [vmem:[%s6195_s30 + $0xa6c] ss:$16 sps:$4 sm:$0xff]   ;;  %v5857_v61 = vld [vmem:[%s6195_s30 + $0x868] ss:$16 sps:$4 sm:$0xff]  }
 0x18f   : > { %4045 = vmatprep.subr.bf16.mxu1 %v5778_v62  ;;  %v5860_v62 = vld [vmem:[%s6195_s30 + $0xa68] ss:$16 sps:$4 sm:$0xff]  }
 0x191   : > { %4003 = vmatpush1.bf16.msra.mxu0 %v5773_v5  ;;  %v5865_v5 = vld [vmem:[%s6195_s30 + $0x84c] ss:$16 sps:$4 sm:$0xff]  }
 0x192   : > { %4046 = vmatpush1.bf16.msra.mxu1 %v5776_v7  ;;  %4004 = vmatprep.subr.bf16.mxu0 %v5781_v47  ;;  %v5868_v7 = vld [vmem:[%s6195_s30 + $0xa4c] ss:$16 sps:$4 sm:$0xff]   ;;  %v5863_v47 = vld [vmem:[%s6195_s30 + $0x848] ss:$16 sps:$4 sm:$0xff]  }
 0x193   : > { %4047 = vmatprep.subr.bf16.mxu1 %v5784_v48  ;;  %v5866_v48 = vld [vmem:[%s6195_s30 + $0xa48] ss:$16 sps:$4 sm:$0xff]  }
 0x195   : > { %4005 = vmatpush1.bf16.msra.mxu0 %v5779_v9  ;;  %v5871_v9 = vld [vmem:[%s6195_s30 + $0x82c] ss:$16 sps:$4 sm:$0xff]  }
 0x196   : > { %4048 = vmatpush1.bf16.msra.mxu1 %v5782_v10  ;;  %4006 = vmatprep.subr.bf16.mxu0 %v5787_v11  ;;  %v5874_v10 = vld [vmem:[%s6195_s30 + $0xa2c] ss:$16 sps:$4 sm:$0xff]   ;;  %v6748_v11 = vpop.f32.mrf.mxu0 }
 0x197   : > { %4049 = vmatprep.subr.bf16.mxu1 %v5790_v12  ;;  %v5869_v12 = vld [vmem:[%s6195_s30 + $0x828] ss:$16 sps:$4 sm:$0xff]  }
 0x199   : > { %4007 = vmatpush2.bf16.msra.mxu0 %v5785_v13  ;;  %v5872_v13 = vld [vmem:[%s6195_s30 + $0xa28] ss:$16 sps:$4 sm:$0xff]  }
 0x19a   : > { %4050 = vmatpush2.bf16.msra.mxu1 %v5788_v14  ;;  %4008 = vmatprep.subr.bf16.mxu0 %v5793_v15  ;;  %v6752_v14 = vpop.f32.mrf.mxu1  ;;  %v5877_v15 = vld [vmem:[%s6195_s30 + $0x80c] ss:$16 sps:$4 sm:$0xff]  }
 0x19b   : > { %4051 = vmatprep.subr.bf16.mxu1 %v5796_v16  ;;  %v5880_v16 = vld [vmem:[%s6195_s30 + $0xa0c] ss:$16 sps:$4 sm:$0xff]  }
 0x19d   : > { %4009 = vmatpush2.bf16.msra.mxu0 %v5791_v17  ;;  %v6756_v17 = vpop.f32.mrf.mxu0 }
 0x19e   : > { %4052 = vmatpush2.bf16.msra.mxu1 %v5794_v18  ;;  %4010 = vmatprep.subr.bf16.mxu0 %v5799_v19  ;;  %v5875_v18 = vld [vmem:[%s6195_s30 + $0x808] ss:$16 sps:$4 sm:$0xff]  }
 0x19f   : > { %4053 = vmatprep.subr.bf16.mxu1 %v5802_v20  ;;  %v5878_v19 = vld [vmem:[%s6195_s30 + $0xa08] ss:$16 sps:$4 sm:$0xff]   ;;  %v6760_v20 = vpop.f32.mrf.mxu1 }
 0x1a1   : > { %4011 = vmatpush2.bf16.msra.mxu0 %v5797_v23  ;;  %v5883_v23 = vld [vmem:[%s6195_s30 + $0x9ec] ss:$16 sps:$4 sm:$0xff]  }
 0x1a2   : > { %4054 = vmatpush2.bf16.msra.mxu1 %v5800_v24  ;;  %4012 = vmatprep.subr.bf16.mxu0 %v5805_v27  ;;  %v5886_v24 = vld [vmem:[%s6195_s30 + $0xbec] ss:$16 sps:$4 sm:$0xff]   ;;  %v6764_v27 = vpop.f32.mrf.mxu0 }
 0x1a3   : > { %4055 = vmatprep.subr.bf16.mxu1 %v5808_v28  ;;  %v5881_v28 = vld [vmem:[%s6195_s30 + $0x9e8] ss:$16 sps:$4 sm:$0xff]  }
 0x1a5   : > { %4013 = vmatpush2.bf16.msra.mxu0 %v5803_v63  ;;  %v5884_v63 = vld [vmem:[%s6195_s30 + $0xbe8] ss:$16 sps:$4 sm:$0xff]  }
 0x1a6   : > { %4056 = vmatpush2.bf16.msra.mxu1 %v5806_v0  ;;  %4014 = vmatprep.subr.bf16.mxu0 %v5811_v3  ;;  %v6768_v0 = vpop.f32.mrf.mxu1  ;;  %v5889_v3 = vld [vmem:[%s6195_s30 + $0x9cc] ss:$16 sps:$4 sm:$0xff]  }
 0x1a7   : > { %4057 = vmatprep.subr.bf16.mxu1 %v5814_v4  ;;  %v5892_v4 = vld [vmem:[%s6195_s30 + $0xbcc] ss:$16 sps:$4 sm:$0xff]  }
 0x1a9   : > { %4015 = vmatpush2.bf16.msra.mxu0 %v5809_v29  ;;  %v6772_v29 = vpop.f32.mrf.mxu0 }
 0x1aa   : > { %4058 = vmatpush2.bf16.msra.mxu1 %v5812_v30  ;;  %4016 = vmatprep.subr.bf16.mxu0 %v5817_v31  ;;  %v5887_v30 = vld [vmem:[%s6195_s30 + $0x9c8] ss:$16 sps:$4 sm:$0xff]  }
 0x1ab   : > { %4059 = vmatprep.subr.bf16.mxu1 %v5820_v32  ;;  %v5890_v31 = vld [vmem:[%s6195_s30 + $0xbc8] ss:$16 sps:$4 sm:$0xff]   ;;  %v3643_v32 = vpop.f32.mrf.mxu1 }
 0x1ad   : > { %4017 = vmatpush2.bf16.msra.mxu0 %v5815_v33  ;;  %v5895_v33 = vld [vmem:[%s6195_s30 + $0x9ac] ss:$16 sps:$4 sm:$0xff]  }
 0x1ae   : > { %4060 = vmatpush2.bf16.msra.mxu1 %v5818_v34  ;;  %4018 = vmatprep.subr.bf16.mxu0 %v5823_v6  ;;  %v5898_v34 = vld [vmem:[%s6195_s30 + $0xbac] ss:$16 sps:$4 sm:$0xff]   ;;  %v3680_v6 = vpop.f32.mrf.mxu0 }
 0x1af   : > { %4061 = vmatprep.subr.bf16.mxu1 %v5826_v8  ;;  %v3723_v8 = vpop.f32.mrf.mxu1 }
 0x1b1   : > { %4019 = vmatpush2.bf16.msra.mxu0 %v5821_v35  ;;  %v5893_v35 = vld [vmem:[%s6195_s30 + $0x9a8] ss:$16 sps:$4 sm:$0xff]  }
 0x1b2   : > { %4062 = vmatpush2.bf16.msra.mxu1 %v5824_v36  ;;  %4020 = vmatprep.subr.bf16.mxu0 %v5829_v39  ;;  %v5896_v36 = vld [vmem:[%s6195_s30 + $0xba8] ss:$16 sps:$4 sm:$0xff]   ;;  %v5901_v39 = vld [vmem:[%s6195_s30 + $0x98c] ss:$16 sps:$4 sm:$0xff]  }
 0x1b3   : > { %4063 = vmatprep.subr.bf16.mxu1 %v5832_v40  ;;  %v5904_v40 = vld [vmem:[%s6195_s30 + $0xb8c] ss:$16 sps:$4 sm:$0xff]  }
 0x1b5   : > { %4021 = vmatpush2.bf16.msra.mxu0 %v5827_v41  ;;  %v3682_v41 = vpop.f32.mrf.mxu0 }
 0x1b6   : > { %4064 = vmatpush2.bf16.msra.mxu1 %v5830_v42  ;;  %4076 = vmatprep.subr.bf16.mxu0 %v5835_v25  ;;  %v3725_v42 = vpop.f32.mrf.mxu1  ;;  %v5899_v25 = vld [vmem:[%s6195_s30 + $0x988] ss:$16 sps:$4 sm:$0xff]  }
 0x1b7   : > { %4119 = vmatprep.subr.bf16.mxu1 %v5838_v26  ;;  %v5902_v26 = vld [vmem:[%s6195_s30 + $0xb88] ss:$16 sps:$4 sm:$0xff]  }
 0x1b8   : > { %4023 = vmatmul.mubr.bf16.vlgmr.msra.gmra.mxu0 %v6386_v37  ;;  %v5845_v37 = vld [vmem:[%s6195_s30 + $0x8a8] ss:$16 sps:$4 sm:$0xff]  }
 0x1b9   : > { %4066 = vmatmul.mubr.bf16.vlgmr.msra.gmra.mxu1 %v6390_v38  ;;  %4077 = vmatpush1.bf16.msra.mxu0 %v5833_v43  ;;  %v5848_v38 = vld [vmem:[%s6195_s30 + $0xaa8] ss:$16 sps:$4 sm:$0xff]   ;;  %v5907_v43 = vld [vmem:[%s6195_s30 + $0x96c] ss:$16 sps:$4 sm:$0xff]  }
 0x1ba   : > { %4120 = vmatpush1.bf16.msra.mxu1 %v5836_v44  ;;  %4078 = vmatprep.subr.bf16.mxu0 %v5841_v49  ;;  %v5910_v44 = vld [vmem:[%s6195_s30 + $0xb6c] ss:$16 sps:$4 sm:$0xff]   ;;  %v3684_v49 = vpop.f32.mrf.mxu0 }
 0x1bb   : > { %4121 = vmatprep.subr.bf16.mxu1 %v5844_v58  ;;  %4108 = vmatprep.mubr.bf16.mxu0 %v6415_v50  ;;  %v5854_v50 = vld [vmem:[%s6195_s30 + $0xa88] ss:$16 sps:$4 sm:$0xff]   ;;  %v3727_v58 = vpop.f32.mrf.mxu1 }
 0x1bc   : > { %4151 = vmatprep.mubr.bf16.mxu1 %v6420_v52  ;;  %v5859_v52 = vld [vmem:[%s6195_s30 + $0x86c] ss:$16 sps:$4 sm:$0xff]  }
 0x1bd   : > { %4079 = vmatpush1.bf16.msra.mxu0 %v5839_v60  ;;  %v5905_v60 = vld [vmem:[%s6195_s30 + $0x968] ss:$16 sps:$4 sm:$0xff]  }
 0x1be   : > { %4122 = vmatpush1.bf16.msra.mxu1 %v5842_v51  ;;  %4080 = vmatprep.subr.bf16.mxu0 %v5847_v53  ;;  %v5908_v51 = vld [vmem:[%s6195_s30 + $0xb68] ss:$16 sps:$4 sm:$0xff]   ;;  %v5913_v53 = vld [vmem:[%s6195_s30 + $0x94c] ss:$16 sps:$4 sm:$0xff]  }
 0x1bf   : > { %4123 = vmatprep.subr.bf16.mxu1 %v5850_v54  ;;  %v5916_v54 = vld [vmem:[%s6195_s30 + $0xb4c] ss:$16 sps:$4 sm:$0xff]  }
 0x1c1   : > { %4081 = vmatpush1.bf16.msra.mxu0 %v5845_v37  ;;  %v3686_v37 = vpop.f32.mrf.mxu0 }
 0x1c2   : > { %4124 = vmatpush1.bf16.msra.mxu1 %v5848_v38  ;;  %4082 = vmatprep.subr.bf16.mxu0 %v5853_v55  ;;  %v3729_v38 = vpop.f32.mrf.mxu1 }
 0x1c3   : > { %4125 = vmatprep.subr.bf16.mxu1 %v5856_v56  ;;  %v3766_v55 = vpop.f32.mrf.mxu0  ;;  %v5911_v56 = vld [vmem:[%s6195_s30 + $0x948] ss:$16 sps:$4 sm:$0xff]  }
 0x1c5   : > { %4083 = vmatpush1.bf16.msra.mxu0 %v5851_v57  ;;  %v5914_v57 = vld [vmem:[%s6195_s30 + $0xb48] ss:$16 sps:$4 sm:$0xff]  }
 0x1c6   : > { %4126 = vmatpush1.bf16.msra.mxu1 %v5854_v50  ;;  %4084 = vmatprep.subr.bf16.mxu0 %v5859_v52  ;;  %v3809_v50 = vpop.f32.mrf.mxu1  ;;  %v5919_v52 = vld [vmem:[%s6195_s30 + $0x92c] ss:$16 sps:$4 sm:$0xff]  }
 0x1c7   : > { %4127 = vmatprep.subr.bf16.mxu1 %v5862_v59  ;;  %v5922_v59 = vld [vmem:[%s6195_s30 + $0xb2c] ss:$16 sps:$4 sm:$0xff]  }
 0x1c9   : > { %4085 = vmatpush1.bf16.msra.mxu0 %v5857_v61  ;;  %v3638_v61 = vadd.f32 %v6752_v14, %v6748_v11  ;;  %v3642_v11 = vadd.f32 %v6768_v0, %v6764_v27  ;;  %v3644_v14 = vadd.f32 %v3643_v32, %v6772_v29  ;;  %v5934_v27 = vld [vmem:[%s6195_s30 + $0xeec] ss:$16 sps:$4 sm:$0xff]   ;;  %v5929_v29 = vld [vmem:[%s6195_s30 + $0xce8] ss:$16 sps:$4 sm:$0xff]  }
 0x1ca   : > { %4128 = vmatpush1.bf16.msra.mxu1 %v5860_v62  ;;  %4086 = vmatprep.subr.bf16.mxu0 %v5865_v5  ;;  %v3640_v62 = vadd.f32 %v6760_v20, %v6756_v17 }
 0x1cb   : > { %4129 = vmatprep.subr.bf16.mxu1 %v5868_v7  ;;  %v3681_v5 = vadd.f32 %v3680_v6, %v3638_v61  ;;  %v3768_v7 = vpop.f32.mrf.mxu0  ;;  %v3687_v20 = vadd.f32 %v3686_v37, %v3644_v14 }
 0x1cd   : > { %4087 = vmatpush1.bf16.msra.mxu0 %v5863_v47  ;;  %v5917_v47 = vld [vmem:[%s6195_s30 + $0x928] ss:$16 sps:$4 sm:$0xff]   ;;  %v3770_v17 = vpop.f32.mrf.mxu0 }
 0x1ce   : > { %4130 = vmatpush1.bf16.msra.mxu1 %v5866_v48  ;;  %4088 = vmatprep.subr.bf16.mxu0 %v5871_v9  ;;  %v5920_v48 = vld [vmem:[%s6195_s30 + $0xb28] ss:$16 sps:$4 sm:$0xff]   ;;  %v3811_v9 = vpop.f32.mrf.mxu1 }
 0x1cf   : > { %4131 = vmatprep.subr.bf16.mxu1 %v5874_v10  ;;  %v5925_v10 = vld [vmem:[%s6195_s30 + $0x90c] ss:$16 sps:$4 sm:$0xff]  }
 0x1d1   : > { %4089 = vmatpush1.bf16.msra.mxu0 %v5869_v12  ;;  %v5928_v12 = vld [vmem:[%s6195_s30 + $0xb0c] ss:$16 sps:$4 sm:$0xff]  }
 0x1d2   : > { %4132 = vmatpush1.bf16.msra.mxu1 %v5872_v13  ;;  %4090 = vmatprep.subr.bf16.mxu0 %v5877_v15  ;;  %v3683_v13 = vadd.f32 %v3682_v41, %v3640_v62  ;;  %v3724_v15 = vadd.f32 %v3723_v8, %v3681_v5 }
 0x1d3   : > { %4133 = vmatprep.subr.bf16.mxu1 %v5880_v16  ;;  %v3685_v16 = vadd.f32 %v3684_v49, %v3642_v11  ;;  %v5943_v49 = vld [vmem:[%s6195_s30 + $0xcac] ss:$16 sps:$4 sm:$0xff]  }
 0x1d4   : > { %v5955_v11 = vld [vmem:[%s6195_s30 + $0xc6c] ss:$16 sps:$4 sm:$0xff]  }
 0x1d5   : > { %4091 = vmatpush1.bf16.msra.mxu0 %v5875_v18  ;;  %v5923_v18 = vld [vmem:[%s6195_s30 + $0x908] ss:$16 sps:$4 sm:$0xff]   ;;  %v3728_v0 = vadd.f32 %v3727_v58, %v3685_v16  ;;  %v5946_v58 = vld [vmem:[%s6195_s30 + $0xeac] ss:$16 sps:$4 sm:$0xff]  }
 0x1d6   : > { %4134 = vmatpush1.bf16.msra.mxu1 %v5878_v19  ;;  %4092 = vmatprep.subr.bf16.mxu0 %v5883_v23  ;;  %v5926_v19 = vld [vmem:[%s6195_s30 + $0xb08] ss:$16 sps:$4 sm:$0xff]   ;;  %v3813_v23 = vpop.f32.mrf.mxu1 }
 0x1d7   : > { %4135 = vmatprep.subr.bf16.mxu1 %v5886_v24  ;;  %v5931_v24 = vld [vmem:[%s6195_s30 + $0xcec] ss:$16 sps:$4 sm:$0xff]   ;;  %v3771_v8 = vadd.f32 %v3770_v17, %v3728_v0  ;;  %v5956_v16 = vld [vmem:[%s6195_s30 + $0xe68] ss:$16 sps:$4 sm:$0xff]  }
 0x1d8   : > { %v3815_v32 = vpop.f32.mrf.mxu1  ;;  %v5961_v17 = vld [vmem:[%s6195_s30 + $0xc4c] ss:$16 sps:$4 sm:$0xff]  }
 0x1d9   : > { %4093 = vmatpush2.bf16.msra.mxu0 %v5881_v28  ;;  %v3726_v28 = vadd.f32 %v3725_v42, %v3683_v13  ;;  %v5935_v42 = vld [vmem:[%s6195_s30 + $0xcc8] ss:$16 sps:$4 sm:$0xff]   ;;  %v5958_v13 = vld [vmem:[%s6195_s30 + $0xe6c] ss:$16 sps:$4 sm:$0xff]  }
 0x1da   : > { %4136 = vmatpush2.bf16.msra.mxu1 %v5884_v63  ;;  %4094 = vmatprep.subr.bf16.mxu0 %v5889_v3  ;;  %v3767_v63 = vadd.f32 %v3766_v55, %v3724_v15  ;;  %v5953_v15 = vld [vmem:[%s6195_s30 + $0xc68] ss:$16 sps:$4 sm:$0xff]   ;;  %v5976_v0 = vld [vmem:[%s6195_s30 + $0xe0c] ss:$16 sps:$4 sm:$0xff]  }
 0x1db   : > { %4137 = vmatprep.subr.bf16.mxu1 %v5892_v4  ;;  %v3769_v3 = vadd.f32 %v3768_v7, %v3726_v28  ;;  %v3772_v4 = vpop.f32.mrf.mxu0  ;;  %v389_v7 = vld [vmem:[#allocation2 + $0x20] sm:$0xff]  ;;  %v5968_v28 = vld [vmem:[%s6195_s30 + $0xe28] ss:$16 sps:$4 sm:$0xff]  }
 0x1dc   : > { %v3810_v6 = vadd.f32 %v3809_v50, %v3767_v63  ;;  %v5944_v50 = vld [vmem:[%s6195_s30 + $0xea8] ss:$16 sps:$4 sm:$0xff]   ;;  %v5973_v63 = vld [vmem:[%s6195_s30 + $0xc0c] ss:$16 sps:$4 sm:$0xff]  }
 0x1dd   : > { %4095 = vmatpush2.bf16.msra.mxu0 %v5887_v30  ;;  %v5932_v30 = vld [vmem:[%s6195_s30 + $0xee8] ss:$16 sps:$4 sm:$0xff]  }
 0x1de   : > { %4138 = vmatpush2.bf16.msra.mxu1 %v5890_v31  ;;  %4096 = vmatprep.subr.bf16.mxu0 %v5895_v33  ;;  %v3730_v31 = vadd.f32 %v3729_v38, %v3687_v20  ;;  %v5937_v33 = vld [vmem:[%s6195_s30 + $0xccc] ss:$16 sps:$4 sm:$0xff]   ;;  %v5962_v20 = vld [vmem:[%s6195_s30 + $0xe48] ss:$16 sps:$4 sm:$0xff]  }
 0x1df   : > { %4139 = vmatprep.subr.bf16.mxu1 %v5898_v34  ;;  %v5940_v34 = vld [vmem:[%s6195_s30 + $0xecc] ss:$16 sps:$4 sm:$0xff]  }
 0x1e1   : > { %4097 = vmatpush2.bf16.msra.mxu0 %v5893_v35  ;;  %v3773_v35 = vadd.f32 %v3772_v4, %v3730_v31  ;;  %v5974_v4 = vld [vmem:[%s6195_s30 + $0xe08] ss:$16 sps:$4 sm:$0xff]  }
 0x1e2   : > { %4140 = vmatpush2.bf16.msra.mxu1 %v5896_v36  ;;  %4098 = vmatprep.subr.bf16.mxu0 %v5901_v39  ;;  %v5977_v31 = vld [vmem:[%s6195_s30 + $0xde8] ss:$16 sps:$4 sm:$0xff]  }
 0x1e3   : > { %4141 = vmatprep.subr.bf16.mxu1 %v5904_v40  ;;  %v3812_v40 = vadd.f32 %v3811_v9, %v3769_v3  ;;  %v5971_v3 = vld [vmem:[%s6195_s30 + $0xc08] ss:$16 sps:$4 sm:$0xff]  }
 0x1e5   : > { %4099 = vmatpush2.bf16.msra.mxu0 %v5899_v25  ;;  %v5938_v25 = vld [vmem:[%s6195_s30 + $0xec8] ss:$16 sps:$4 sm:$0xff]  }
 0x1e6   : > { %4142 = vmatpush2.bf16.msra.mxu1 %v5902_v26  ;;  %4100 = vmatprep.subr.bf16.mxu0 %v5907_v43  ;;  %v384_v26 = vld [vmem:[#allocation2 + $0x30] sm:$0xff] }
 0x1e7   : > { %4143 = vmatprep.subr.bf16.mxu1 %v5910_v44 }
 0x1e9   : > { %4101 = vmatpush2.bf16.msra.mxu0 %v5905_v60  ;;  %v3814_v60 = vadd.f32 %v3813_v23, %v3771_v8  ;;  %v5967_v23 = vld [vmem:[%s6195_s30 + $0xc2c] ss:$16 sps:$4 sm:$0xff]   ;;  %v5986_v8 = vld [vmem:[%s6195_s30 + $0xfc8] ss:$16 sps:$4 sm:$0xff]  }
 0x1ea   : > { %4144 = vmatpush2.bf16.msra.mxu1 %v5908_v51  ;;  %4102 = vmatprep.subr.bf16.mxu0 %v5913_v53  ;;  %v385_v53 = vld [vmem:[#allocation2] sm:$0xff] }
 0x1eb   : > { %4145 = vmatprep.subr.bf16.mxu1 %v5916_v54 }
 0x1ed   : > { %4103 = vmatpush2.bf16.msra.mxu0 %v5911_v56 }
 0x1ee   : > { %4146 = vmatpush2.bf16.msra.mxu1 %v5914_v57  ;;  %4104 = vmatprep.subr.bf16.mxu0 %v5919_v52  ;;  %v5941_v57 = vld [vmem:[%s6195_s30 + $0xca8] ss:$16 sps:$4 sm:$0xff]  }
 0x1ef   : > { %4147 = vmatprep.subr.bf16.mxu1 %v5922_v59  ;;  %v388_v52 = vld [vmem:[#allocation2 + $0x8] sm:$0xff] }
 0x1f1   : > { %4105 = vmatpush2.bf16.msra.mxu0 %v5917_v47 }
 0x1f2   : > { %4148 = vmatpush2.bf16.msra.mxu1 %v5920_v48  ;;  %4106 = vmatprep.subr.bf16.mxu0 %v5925_v10  ;;  %v5947_v10 = vld [vmem:[%s6195_s30 + $0xc88] ss:$16 sps:$4 sm:$0xff]  }
 0x1f3   : > { %4149 = vmatprep.subr.bf16.mxu1 %v5928_v12  ;;  %v5950_v12 = vld [vmem:[%s6195_s30 + $0xe88] ss:$16 sps:$4 sm:$0xff]  }
 0x1f5   : > { %4107 = vmatpush2.bf16.msra.mxu0 %v5923_v18  ;;  %v5964_v18 = vld [vmem:[%s6195_s30 + $0xe4c] ss:$16 sps:$4 sm:$0xff]  }
 0x1f6   : > { %4150 = vmatpush2.bf16.msra.mxu1 %v5926_v19  ;;  %4162 = vmatprep.subr.bf16.mxu0 %v5931_v24  ;;  %v5959_v19 = vld [vmem:[%s6195_s30 + $0xc48] ss:$16 sps:$4 sm:$0xff]   ;;  %v5970_v24 = vld [vmem:[%s6195_s30 + $0xe2c] ss:$16 sps:$4 sm:$0xff]  }
 0x1f7   : > { %4205 = vmatprep.subr.bf16.mxu1 %v5934_v27  ;;  %v5965_v27 = vld [vmem:[%s6195_s30 + $0xc28] ss:$16 sps:$4 sm:$0xff]  }
 0x1f8   : > { %v3852_v36 = vpop.f32.mrf.mxu0  ;;  %4109 = vmatmul.mubr.bf16.vlgmr.msra.gmra.mxu0 %v6490_v1 }
 0x1f9   : > { %v3895_v39 = vpop.f32.mrf.mxu1  ;;  %4152 = vmatmul.mubr.bf16.vlgmr.msra.gmra.mxu1 %v6494_v2  ;;  %v3853_v41 = vadd.f32 %v3852_v36, %v3810_v6  ;;  %4163 = vmatpush1.bf16.msra.mxu0 %v5929_v29  ;;  %v3816_v2 = vadd.f32 %v3815_v32, %v3773_v35  ;;  %v5979_v29 = vld [vmem:[%s6195_s30 + $0xdec] ss:$16 sps:$4 sm:$0xff]   ;;  %v5980_v32 = vld [vmem:[%s6195_s30 + $0xfe8] ss:$16 sps:$4 sm:$0xff]  }
 0x1fa   : > { %4206 = vmatpush1.bf16.msra.mxu1 %v5932_v30  ;;  %v3854_v43 = vpop.f32.mrf.mxu0  ;;  %4164 = vmatprep.subr.bf16.mxu0 %v5937_v33  ;;  %v5982_v30 = vld [vmem:[%s6195_s30 + $0xfec] ss:$16 sps:$4 sm:$0xff]   ;;  %v5983_v6 = vld [vmem:[%s6195_s30 + $0xdc8] ss:$16 sps:$4 sm:$0xff]  }
 0x1fb   : > { %v3897_v44 = vpop.f32.mrf.mxu1  ;;  %4207 = vmatprep.subr.bf16.mxu1 %v5940_v34  ;;  %v3896_v51 = vadd.f32 %v3895_v39, %v3853_v41  ;;  %v3855_v1 = vadd.f32 %v3854_v43, %v3812_v40  ;;  %4194 = vmatprep.mubr.bf16.mxu0 %v6506_v45  ;;  %v5949_v45 = vld [vmem:[%s6195_s30 + $0xc8c] ss:$16 sps:$4 sm:$0xff]   ;;  %v5989_v39 = vld [vmem:[%s6195_s30 + $0xda8] ss:$16 sps:$4 sm:$0xff]  }
 0x1fc   : > { %4237 = vmatprep.mubr.bf16.mxu1 %v6510_v46  ;;  %v3856_v54 = vpop.f32.mrf.mxu0  ;;  %v5952_v46 = vld [vmem:[%s6195_s30 + $0xe8c] ss:$16 sps:$4 sm:$0xff]   ;;  %v5992_v40 = vld [vmem:[%s6195_s30 + $0xfa8] ss:$16 sps:$4 sm:$0xff]  }
 0x1fd   : > { %v3899_v37 = vpop.f32.mrf.mxu1  ;;  %v4248_v38 = vadd.f32 %v3896_v51, %v384_v26  ;;  %v3898_v55 = vadd.f32 %v3897_v44, %v3855_v1  ;;  %v3857_v56 = vadd.f32 %v3856_v54, %v3814_v60  ;;  %4165 = vmatpush1.bf16.msra.mxu0 %v5935_v42  ;;  %v5985_v33 = vld [vmem:[%s6195_s30 + $0xdcc] ss:$16 sps:$4 sm:$0xff]   ;;  %v5998_v26 = vld [vmem:[%s6195_s30 + $0xf88] ss:$16 sps:$4 sm:$0xff]  }
 0x1fe   : > { %4208 = vmatpush1.bf16.msra.mxu1 %v5938_v25  ;;  %v3858_v59 = vpop.f32.mrf.mxu0  ;;  %4166 = vmatprep.subr.bf16.mxu0 %v5943_v49  ;;  %v5988_v34 = vld [vmem:[%s6195_s30 + $0xfcc] ss:$16 sps:$4 sm:$0xff]   ;;  %v5995_v25 = vld [vmem:[%s6195_s30 + $0xd88] ss:$16 sps:$4 sm:$0xff]  }
 0x1ff   : > { %4209 = vmatprep.subr.bf16.mxu1 %v5946_v58  ;;  %4256 = vst [vmem:[#allocation2 + $0x30] sm:$0xff] %v4248_v38  ;;  %v4249_v61 = vadd.f32 %v3898_v55, %v385_v53  ;;  %v3900_v62 = vadd.f32 %v3899_v37, %v3857_v56  ;;  %v3859_v5 = vadd.f32 %v3858_v59, %v3816_v2  ;;  %v3901_v47 = vpop.f32.mrf.mxu1  ;;  %v5991_v35 = vld [vmem:[%s6195_s30 + $0xdac] ss:$16 sps:$4 sm:$0xff]   ;;  %v6001_v49 = vld [vmem:[%s6195_s30 + $0xd68] ss:$16 sps:$4 sm:$0xff]  }
 0x200   : > { %v5994_v36 = vld [vmem:[%s6195_s30 + $0xfac] ss:$16 sps:$4 sm:$0xff]   ;;  %v6004_v58 = vld [vmem:[%s6195_s30 + $0xf68] ss:$16 sps:$4 sm:$0xff]  }
 0x201   : > { %4257 = vst [vmem:[#allocation2] sm:$0xff] %v4249_v61  ;;  %v4252_v48 = vadd.f32 %v3900_v62, %v388_v52  ;;  %v3902_v9 = vadd.f32 %v3901_v47, %v3859_v5  ;;  %4167 = vmatpush1.bf16.msra.mxu0 %v5941_v57  ;;  %v5997_v41 = vld [vmem:[%s6195_s30 + $0xd8c] ss:$16 sps:$4 sm:$0xff]   ;;  %v6007_v1 = vld [vmem:[%s6195_s30 + $0xd48] ss:$16 sps:$4 sm:$0xff]  }
 0x202   : > { %4210 = vmatpush1.bf16.msra.mxu1 %v5944_v50  ;;  %4168 = vmatprep.subr.bf16.mxu0 %v5949_v45  ;;  %v6000_v42 = vld [vmem:[%s6195_s30 + $0xf8c] ss:$16 sps:$4 sm:$0xff]   ;;  %v6010_v2 = vld [vmem:[%s6195_s30 + $0xf48] ss:$16 sps:$4 sm:$0xff]  }
 0x203   : > { %4211 = vmatprep.subr.bf16.mxu1 %v5952_v46  ;;  %4260 = vst [vmem:[#allocation2 + $0x8] sm:$0xff] %v4252_v48  ;;  %v4253_v14 = vadd.f32 %v3902_v9, %v389_v7  ;;  %v6003_v43 = vld [vmem:[%s6195_s30 + $0xd6c] ss:$16 sps:$4 sm:$0xff]   ;;  %v6013_v37 = vld [vmem:[%s6195_s30 + $0xd28] ss:$16 sps:$4 sm:$0xff]  }
 0x204   : > { %v6006_v44 = vld [vmem:[%s6195_s30 + $0xf6c] ss:$16 sps:$4 sm:$0xff]   ;;  %v6016_v38 = vld [vmem:[%s6195_s30 + $0xf28] ss:$16 sps:$4 sm:$0xff]  }
 0x205   : > { %4261 = vst [vmem:[#allocation2 + $0x20] sm:$0xff] %v4253_v14  ;;  %4169 = vmatpush1.bf16.msra.mxu0 %v5947_v10  ;;  %v6009_v60 = vld [vmem:[%s6195_s30 + $0xd4c] ss:$16 sps:$4 sm:$0xff]   ;;  %v6019_v57 = vld [vmem:[%s6195_s30 + $0xd08] ss:$16 sps:$4 sm:$0xff]  }
 0x206   : > { %4212 = vmatpush1.bf16.msra.mxu1 %v5950_v12  ;;  %4170 = vmatprep.subr.bf16.mxu0 %v5955_v11  ;;  %v6012_v51 = vld [vmem:[%s6195_s30 + $0xf4c] ss:$16 sps:$4 sm:$0xff]   ;;  %v6022_v50 = vld [vmem:[%s6195_s30 + $0xf08] ss:$16 sps:$4 sm:$0xff]  }
 0x207   : > { %4213 = vmatprep.subr.bf16.mxu1 %v5958_v13  ;;  %v6015_v53 = vld [vmem:[%s6195_s30 + $0xd2c] ss:$16 sps:$4 sm:$0xff]  }
 0x208   : > { %v6018_v54 = vld [vmem:[%s6195_s30 + $0xf2c] ss:$16 sps:$4 sm:$0xff]  }
 0x209   : > { %4171 = vmatpush1.bf16.msra.mxu0 %v5953_v15  ;;  %v6021_v55 = vld [vmem:[%s6195_s30 + $0xd0c] ss:$16 sps:$4 sm:$0xff]  }
 0x20a   : > { %4214 = vmatpush1.bf16.msra.mxu1 %v5956_v16  ;;  %4172 = vmatprep.subr.bf16.mxu0 %v5961_v17  ;;  %v6024_v56 = vld [vmem:[%s6195_s30 + $0xf0c] ss:$16 sps:$4 sm:$0xff]  }
 0x20b   : > { %4215 = vmatprep.subr.bf16.mxu1 %v5964_v18 }
 0x20d   : > { %4173 = vmatpush1.bf16.msra.mxu0 %v5959_v19 }
 0x20e   : > { %4216 = vmatpush1.bf16.msra.mxu1 %v5962_v20  ;;  %4174 = vmatprep.subr.bf16.mxu0 %v5967_v23 }
 0x20f   : > { %4217 = vmatprep.subr.bf16.mxu1 %v5970_v24 }
 0x211   : > { %4175 = vmatpush1.bf16.msra.mxu0 %v5965_v27 }
 0x212   : > { %4218 = vmatpush1.bf16.msra.mxu1 %v5968_v28  ;;  %4176 = vmatprep.subr.bf16.mxu0 %v5973_v63 }
 0x213   : > { %4219 = vmatprep.subr.bf16.mxu1 %v5976_v0 }
 0x215   : > { %4177 = vmatpush1.bf16.msra.mxu0 %v5971_v3 }
 0x216   : > { %4220 = vmatpush1.bf16.msra.mxu1 %v5974_v4  ;;  %4178 = vmatprep.subr.bf16.mxu0 %v5979_v29 }
 0x217   : > { %4221 = vmatprep.subr.bf16.mxu1 %v5982_v30 }
 0x219   : > { %4179 = vmatpush2.bf16.msra.mxu0 %v5977_v31 }
 0x21a   : > { %4222 = vmatpush2.bf16.msra.mxu1 %v5980_v32  ;;  %4180 = vmatprep.subr.bf16.mxu0 %v5985_v33 }
 0x21b   : > { %4223 = vmatprep.subr.bf16.mxu1 %v5988_v34 }
 0x21d   : > { %4181 = vmatpush2.bf16.msra.mxu0 %v5983_v6 }
 0x21e   : > { %4224 = vmatpush2.bf16.msra.mxu1 %v5986_v8  ;;  %4182 = vmatprep.subr.bf16.mxu0 %v5991_v35 }
 0x21f   : > { %4225 = vmatprep.subr.bf16.mxu1 %v5994_v36 }
 0x221   : > { %4183 = vmatpush2.bf16.msra.mxu0 %v5989_v39 }
 0x222   : > { %4226 = vmatpush2.bf16.msra.mxu1 %v5992_v40  ;;  %4184 = vmatprep.subr.bf16.mxu0 %v5997_v41 }
 0x223   : > { %4227 = vmatprep.subr.bf16.mxu1 %v6000_v42  ;;  %v386_v42 = vld [vmem:[#allocation2 + $0x18] sm:$0xff] }
 0x225   : > { %4185 = vmatpush2.bf16.msra.mxu0 %v5995_v25 }
 0x226   : > { %4228 = vmatpush2.bf16.msra.mxu1 %v5998_v26  ;;  %4186 = vmatprep.subr.bf16.mxu0 %v6003_v43 }
 0x227   : > { %4229 = vmatprep.subr.bf16.mxu1 %v6006_v44 }
 0x229   : > { %4187 = vmatpush2.bf16.msra.mxu0 %v6001_v49 }
 0x22a   : > { %4230 = vmatpush2.bf16.msra.mxu1 %v6004_v58  ;;  %4188 = vmatprep.subr.bf16.mxu0 %v6009_v60  ;;  %v387_v58 = vld [vmem:[#allocation2 + $0x10] sm:$0xff] }
 0x22b   : > { %4231 = vmatprep.subr.bf16.mxu1 %v6012_v51 }
 0x22d   : > { %4189 = vmatpush2.bf16.msra.mxu0 %v6007_v1 }
 0x22e   : > { %4232 = vmatpush2.bf16.msra.mxu1 %v6010_v2  ;;  %4190 = vmatprep.subr.bf16.mxu0 %v6015_v53 }
 0x22f   : > { %4233 = vmatprep.subr.bf16.mxu1 %v6018_v54 }
 0x231   : > { %4191 = vmatpush2.bf16.msra.mxu0 %v6013_v37  ;;  %v390_v37 = vld [vmem:[#allocation2 + $0x28] sm:$0xff] }
 0x232   : > { %4234 = vmatpush2.bf16.msra.mxu1 %v6016_v38  ;;  %4192 = vmatprep.subr.bf16.mxu0 %v6021_v55 }
 0x233   : > { %4235 = vmatprep.subr.bf16.mxu1 %v6024_v56 }
 0x235   : > { %4193 = vmatpush2.bf16.msra.mxu0 %v6019_v57 }
 0x236   : > { %4236 = vmatpush2.bf16.msra.mxu1 %v6022_v50  ;;  %v391_v50 = vld [vmem:[#allocation2 + $0x38] sm:$0xff] }
 0x238   : > { %4195 = vmatmul.mubr.bf16.vlgmr.msra.gmra.mxu0 %v6578_v21  ;;  %v3938_v52 = vpop.f32.mrf.mxu0 }
 0x239   : > { %4238 = vmatmul.mubr.bf16.vlgmr.msra.gmra.mxu1 %v6582_v22  ;;  %v3981_v59 = vpop.f32.mrf.mxu1 }
 0x23a   : > { %v3940_v45 = vpop.f32.mrf.mxu0  ;;  %v3982_v16 = vadd.f32 %v3981_v59, %v3938_v52 }
 0x23b   : > { %v3983_v46 = vpop.f32.mrf.mxu1 }
 0x23c   : > { %v3942_v61 = vpop.f32.mrf.mxu0  ;;  %v3984_v22 = vadd.f32 %v3983_v46, %v3940_v45 }
 0x23d   : > { %v3985_v62 = vpop.f32.mrf.mxu1 }
 0x23e   : > { %v3944_v5 = vpop.f32.mrf.mxu0  ;;  %v3986_v20 = vadd.f32 %v3985_v62, %v3942_v61 }
 0x23f   : > { %v3987_v7 = vpop.f32.mrf.mxu1 }
 0x240   : > { %v3988_v24 = vadd.f32 %v3987_v7, %v3944_v5 }
 0x278   : > { %v4024_v47 = vpop.f32.mrf.mxu0 }
 0x279   : > { %v4067_v48 = vpop.f32.mrf.mxu1  ;;  %v4025_v17 = vadd.f32 %v4024_v47, %v3982_v16 }
 0x27a   : > { %v4026_v9 = vpop.f32.mrf.mxu0 }
 0x27b   : > { %v4069_v10 = vpop.f32.mrf.mxu1  ;;  %v4027_v23 = vadd.f32 %v4026_v9, %v3984_v22  ;;  %v4068_v27 = vadd.f32 %v4067_v48, %v4025_v17 }
 0x27c   : > { %v4028_v12 = vpop.f32.mrf.mxu0 }
 0x27d   : > { %v4071_v11 = vpop.f32.mrf.mxu1  ;;  %v4029_v28 = vadd.f32 %v4028_v12, %v3986_v20  ;;  %v4070_v3 = vadd.f32 %v4069_v10, %v4027_v23 }
 0x27e   : > { %v4030_v13 = vpop.f32.mrf.mxu0 }
 0x27f   : > { %v4073_v14 = vpop.f32.mrf.mxu1  ;;  %v4031_v4 = vadd.f32 %v4030_v13, %v3988_v24  ;;  %v4072_v30 = vadd.f32 %v4071_v11, %v4029_v28 }
 0x281   : > { %v4074_v34 = vadd.f32 %v4073_v14, %v4031_v4 }
 0x2b8   : > { %v4110_v15 = vpop.f32.mrf.mxu0 }
 0x2b9   : > { %v4153_v21 = vpop.f32.mrf.mxu1  ;;  %v4111_v29 = vadd.f32 %v4110_v15, %v4068_v27 }
 0x2ba   : > { %v4112_v18 = vpop.f32.mrf.mxu0 }
 0x2bb   : > { %v4155_v19 = vpop.f32.mrf.mxu1  ;;  %v4113_v31 = vadd.f32 %v4112_v18, %v4070_v3  ;;  %v4154_v6 = vadd.f32 %v4153_v21, %v4111_v29 }
 0x2bc   : > { %v4114_v63 = vpop.f32.mrf.mxu0 }
 0x2bd   : > { %v4157_v0 = vpop.f32.mrf.mxu1  ;;  %v4115_v8 = vadd.f32 %v4114_v63, %v4072_v30  ;;  %v4156_v39 = vadd.f32 %v4155_v19, %v4113_v31 }
 0x2be   : > { %v4116_v32 = vpop.f32.mrf.mxu0 }
 0x2bf   : > { %v4159_v33 = vpop.f32.mrf.mxu1  ;;  %v4117_v40 = vadd.f32 %v4116_v32, %v4074_v34  ;;  %v4158_v43 = vadd.f32 %v4157_v0, %v4115_v8 }
 0x2c1   : > { %v4160_v1 = vadd.f32 %v4159_v33, %v4117_v40 }
 0x2f8   : > { %v4196_v35 = vpop.f32.mrf.mxu0 }
 0x2f9   : > { %v4239_v36 = vpop.f32.mrf.mxu1  ;;  %v4197_v41 = vadd.f32 %v4196_v35, %v4154_v6 }
 0x2fa   : > { %v4198_v25 = vpop.f32.mrf.mxu0 }
 0x2fb   : > { %v4241_v26 = vpop.f32.mrf.mxu1  ;;  %v4240_v44 = vadd.f32 %v4239_v36, %v4197_v41  ;;  %v4199_v49 = vadd.f32 %v4198_v25, %v4156_v39 }
 0x2fc   : > { %v4200_v60 = vpop.f32.mrf.mxu0 }
 0x2fd   : > { %v4243_v51 = vpop.f32.mrf.mxu1  ;;  %v4250_v2 = vadd.f32 %v4240_v44, %v386_v42  ;;  %v4242_v53 = vadd.f32 %v4241_v26, %v4199_v49  ;;  %v4201_v54 = vadd.f32 %v4200_v60, %v4158_v43 }
 0x2fe   : > { %v4202_v38 = vpop.f32.mrf.mxu0 }
 0x2ff   : > { %4258 = vst [vmem:[#allocation2 + $0x18] sm:$0xff] %v4250_v2  ;;  %v4251_v55 = vadd.f32 %v4242_v53, %v387_v58  ;;  %v4244_v56 = vadd.f32 %v4243_v51, %v4201_v54  ;;  %v4203_v57 = vadd.f32 %v4202_v38, %v4160_v1  ;;  %v4245_v52 = vpop.f32.mrf.mxu1 }
 0x301   : > { %4259 = vst [vmem:[#allocation2 + $0x10] sm:$0xff] %v4251_v55  ;;  %v4254_v59 = vadd.f32 %v4244_v56, %v390_v37  ;;  %v4246_v45 = vadd.f32 %v4245_v52, %v4203_v57  ;;  %4267 = sbr.rel (%p5185_p0) target bundleno = 806 (0x326), region = 59 }
 0x303   : > { %4262 = vst [vmem:[#allocation2 + $0x28] sm:$0xff] %v4254_v59  ;;  %v4255_v46 = vadd.f32 %v4246_v45, %v391_v50 }
 0x305   : > { %4263 = vst [vmem:[#allocation2 + $0x38] sm:$0xff] %v4255_v46 }
 0x306   : > { %v4268_v61 = vld [vmem:[#allocation2 + $0x30] sm:$0xff]  ;;  %v4269_v62 = vld [vmem:[#allocation2] sm:$0xff]  ;;  %v4270_v5 = vld [vmem:[#allocation2 + $0x18] sm:$0xff]  ;;  %v4341_v7 = vlaneseq  ;;  %v6082_v50 = vmov 1966171168  }
 0x307   : > { %v5195_v47 = vpack.c.bf16 %v4269_v62, %v4268_v61  ;;  %v4366_v48 = vmul.f32 %v4268_v61, %v4268_v61  ;;  %v4367_v9 = vmul.f32 %v4269_v62, %v4269_v62  ;;  %v4368_v12 = vmul.f32 %v4270_v5, %v4270_v5  ;;  %v4272_v11 = vld [vmem:[#allocation2 + $0x8] sm:$0xff]  ;;  %v4273_v13 = vld [vmem:[#allocation2 + $0x20] sm:$0xff] }
 0x308   : > { %v4271_v10 = vld [vmem:[#allocation2 + $0x10] sm:$0xff]  ;;  %v5197_v21 = vpack.c.bf16 %v4273_v13, %v4272_v11  ;;  %v4304_v16 = vadd.f32 %v4272_v11, %v4268_v61  ;;  %v4311_v18 = vadd.f32 %v4273_v13, %v4269_v62  ;;  %v4370_v19 = vmul.f32 %v4272_v11, %v4272_v11 }
 0x309   : > { %v5196_v14 = vpack.c.bf16 %v4271_v10, %v4270_v5  ;;  %v4369_v15 = vmul.f32 %v4271_v10, %v4271_v10  ;;  %4300 = vst [vmem:[%s6201_s15] sm:$0xff] %v5195_v47  ;;  %v4371_v20 = vmul.f32 %v4273_v13, %v4273_v13  ;;  %v4339_v52 = vunpack.c.l.s4 %v6082_v50 }
 0x30a   : > { %v4274_v22 = vld [vmem:[#allocation2 + $0x28] sm:$0xff]  ;;  %4302 = vst [vmem:[%s6201_s15 + $0x10] sm:$0xff] %v5197_v21  ;;  %v4305_v24 = vrot.slane %v4304_v16, 4  ;;  %v4312_v0 = vrot.slane %v4311_v18, 4  ;;  %v4374_v3 = vadd.f32 %v4370_v19, %v4366_v48  ;;  %v4342_v59 = vshrl.u32 %v4341_v7, 7 }
 0x30b   : > { %4301 = vst [vmem:[%s6201_s15 + $0x8] sm:$0xff] %v5196_v14  ;;  %v4318_v27 = vadd.f32 %v4274_v22, %v4270_v5  ;;  %v4372_v63 = vmul.f32 %v4274_v22, %v4274_v22  ;;  %v4381_v4 = vadd.f32 %v4371_v20, %v4367_v9  ;;  %v4340_v5 = vunpack.c.0.s8 %v4339_v52 }
 0x30c   : > { %v4275_v17 = vld [vmem:[#allocation2 + $0x38] sm:$0xff]  ;;  %v4306_v30 = vadd.f32 %v4305_v24, %v4304_v16  ;;  %v4313_v34 = vadd.f32 %v4312_v0, %v4311_v18  ;;  %v4375_v6 = vrot.slane %v4374_v3, 4  ;;  %vm4363_vm0 = vcmp.lt.s32.totalorder %v4341_v7, 512 }
 0x30d   : > { %v5198_v23 = vpack.c.bf16 %v4275_v17, %v4274_v22  ;;  %v4325_v28 = vadd.f32 %v4275_v17, %v4271_v10  ;;  %v4373_v29 = vmul.f32 %v4275_v17, %v4275_v17  ;;  %v4319_v31 = vrot.slane %v4318_v27, 4 }
 0x30e   : > { %v4388_v33 = vadd.f32 %v4372_v63, %v4368_v12  ;;  %v4382_v8 = vrot.slane %v4381_v4, 4  ;;  %v4307_v36 = vrot.slane %v4306_v30, 2  ;;  %v4314_v42 = vrot.slane %v4313_v34, 2 }
 0x30f   : > { %4303 = vst [vmem:[%s6201_s15 + $0x18] sm:$0xff] %v5198_v23  ;;  %v4326_v32 = vrot.slane %v4325_v28, 4  ;;  %v4395_v35 = vadd.f32 %v4373_v29, %v4369_v15  ;;  %v4320_v39 = vadd.f32 %v4319_v31, %v4318_v27  ;;  %v4376_v25 = vadd.f32 %v4375_v6, %v4374_v3 }
 0x310   : > { %v4389_v41 = vrot.slane %v4388_v33, 4  ;;  %v4383_v26 = vadd.f32 %v4382_v8, %v4381_v4  ;;  %v4308_v44 = vadd.f32 %v4307_v36, %v4306_v30  ;;  %v4315_v51 = vadd.f32 %v4314_v42, %v4313_v34 }
 0x311   : > { %v4327_v40 = vadd.f32 %v4326_v32, %v4325_v28  ;;  %v4396_v43 = vrot.slane %v4395_v35, 4  ;;  %v4321_v49 = vrot.slane %v4320_v39, 2  ;;  %v4377_v1 = vrot.slane %v4376_v25, 2 }
 0x312   : > { %v4390_v60 = vadd.f32 %v4389_v41, %v4388_v33  ;;  %v4384_v2 = vrot.slane %v4383_v26, 2  ;;  %v4309_v55 = vrot.slane %v4308_v44, 1  ;;  %v4316_v57 = vrot.slane %v4315_v51, 1 }
 0x313   : > { %v4328_v58 = vrot.slane %v4327_v40, 2  ;;  %v4397_v53 = vadd.f32 %v4396_v43, %v4395_v35  ;;  %v4322_v54 = vadd.f32 %v4321_v49, %v4320_v39  ;;  %v4378_v47 = vadd.f32 %v4377_v1, %v4376_v25 }
 0x314   : > { %v4391_v38 = vrot.slane %v4390_v60, 2  ;;  %v4310_v45 = vadd.f32 %v4309_v55, %v4308_v44  ;;  %v4317_v62 = vadd.f32 %v4316_v57, %v4315_v51  ;;  %v4385_v48 = vadd.f32 %v4384_v2, %v4383_v26 }
 0x315   : > { %v4329_v37 = vadd.f32 %v4328_v58, %v4327_v40  ;;  %v4398_v56 = vrot.slane %v4397_v53, 2  ;;  %v4323_v46 = vrot.slane %v4322_v54, 1  ;;  %v4343_v14 = vsub.s32 %v4340_v5, %v4342_v59 }
 0x316   : > { %v4392_v12 = vadd.f32 %v4391_v38, %v4390_v60  ;;  %v4336_v13 = vcombine.low %v4310_v45, %v4317_v62  ;;  %v4379_v15 = vrot.slane %v4378_v47, 1  ;;  %v4386_v21 = vrot.slane %v4385_v48, 1 }
 0x317   : > { %v4330_v61 = vrot.slane %v4329_v37, 1  ;;  %v4324_v9 = vadd.f32 %v4323_v46, %v4322_v54  ;;  %v4399_v11 = vadd.f32 %v4398_v56, %v4397_v53 }
 0x318   : > { %v4393_v22 = vrot.slane %v4392_v12, 1  ;;  %v4344_v18 = vrot.slane %v4336_v13, %v4343_v14  ;;  %v4380_v19 = vadd.f32 %v4379_v15, %v4378_v47  ;;  %v4387_v20 = vadd.f32 %v4386_v21, %v4385_v48 }
 0x319   : > { %v4331_v10 = vadd.f32 %v4330_v61, %v4329_v37  ;;  %v4400_v17 = vrot.slane %v4399_v11, 1 }
 0x31a   : > { %v4394_v24 = vadd.f32 %v4393_v22, %v4392_v12  ;;  %v4406_v28 = vcombine.low %v4380_v19, %v4387_v20 }
 0x31b   : > { %v4337_v16 = vcombine.low %v4324_v9, %v4331_v10  ;;  %v4401_v27 = vadd.f32 %v4400_v17, %v4399_v11 }
 0x31c   : > { %v4414_v3 = vrot.slane %v4406_v28, %v4343_v14 }
 0x31d   : > { %v4351_v23 = vrot.slane %v4337_v16, %v4343_v14  ;;  %v4407_v0 = vcombine.low %v4394_v24, %v4401_v27 }
 0x31f   : > { %v4352_v63 = vcombine.low %v4344_v18, %v4351_v23  ;;  %v4421_v29 = vrot.slane %v4407_v0, %v4343_v14 }
 0x321   : > { %v4359_v4 = vrot.slane %v4352_v63, %v4343_v14  ;;  %v4422_v30 = vcombine.low %v4414_v3, %v4421_v29 }
 0x323   : > { %4365 = vst.msk [vmem:[%s6206_s11] sm:$0xf] %vm4363_vm0, %v4359_v4  ;;  %v4429_v31 = vrot.slane %v4422_v30, %v4343_v14 }
 0x325   : > { %4431 = vst.msk [vmem:[%s6211_s14] sm:$0xf] %vm4363_vm0, %v4429_v31 }
 0x326 PF: > { %s15_s21 = sadd.s32 1, %s6079_s21   ;;  %s6912_s15 = smov %s6059_s16 }
 0x327   : > { %p12_p1 = scmp.ge.s32.totalorder %s15_s21, 6   ;;  %s6913_s16 = smov %s6159_s28 }
 0x328   : > { %s6914_s17 = smov %s6071_s19  ;;  %s6915_s18 = smov %s6075_s20 }
 0x329   : > { %s6916_s19 = smov %s6919_s22  ;;  %s6917_s20 = smov %s6923_s23 }
 0x32a   :  { %14 = sbr.rel (!%p12_p1) target bundleno = 4 (0x4), region = 121 }

// kernel: _lambda_.15
= control target key start
LH: loop header
LB: loop body
LE: loop exit
PB: predicated region body
PF: predicated region fallthrough
CT: control target
= control target key end

     0   :  { %s2461_s12 = smov 0   ;;  %s2463_s13 = smov 0   ;;  %s2703_s0 = inlined_call_operand.vmem [shape: bf16[16,8192], index: 0, kind: input, shape index: {}]   ;;  %s2704_s1 = inlined_call_operand.vmem [shape: bf16[8192,128], index: 1, kind: input, shape index: {}]   ;;  %s2705_s2 = inlined_call_operand.vmem [shape: f32[1,128], index: 2, kind: input, shape index: {}]   ;;  %s2706_s3 = inlined_call_operand.vmem [shape: f32[16,128], index: 3, kind: output, shape index: {}]  }
   0x1   :  { %s2465_s14 = smov 0   ;;  %s2467_s15 = smov 0  }
   0x2   :  { %s2469_s16 = smov 0  }
   0x3 LB: > { %s25_s17 = sadd.s32 1, %s2434_s15  ;;  %p48_p1 = scmp.ne.s32.totalorder %s2426_s13, %s2422_s12  ;;  %s2438_s16 = sphi %s2469_s16, %s13_s16   ;;  %s2434_s15 = sphi %s2467_s15, %s2710_s15   ;;  %s2430_s14 = sphi %s2465_s14, %s2709_s14   ;;  %s2426_s13 = sphi %s2463_s13, %s2708_s13   ;;  %s2422_s12 = sphi %s2461_s12, %s2707_s12  }
   0x4   : > { %p26_p0 = scmp.ge.s32.totalorder %s25_s17, 4  ;;  %p49_p2 = scmp.eq.s32.totalorder %s2438_s16, 0 }
   0x5   : > { %s41_s19 = sadd.s32 1, %s2426_s13  ;;  %p1895_p5 = scmp.ge.s32.totalorder %s2438_s16, 4 }
   0x6   : > { %s2712_s17 = smov (%p26_p0, %s25_s17), 0  ;;  %p50_p3 = por %p49_p2, %p48_p1 }
   0x7   : > { %s37_s18 = ssub.s32 %s2434_s15, %s2712_s17  ;;  %162 = sbr.rel (%p1895_p5) target bundleno = 24 (0x18), region = 20 }
   0x8   : > { %p39_p4 = scmp.eq.s32.totalorder %s37_s18, 0 }
   0xa   : > { %s2496_s20 = scalar_select %p39_p4, %s2426_s13, %s41_s19  }
   0xc   : > { %165 = sbr.rel (!%p50_p3) target bundleno = 24 (0x18), region = 24  ;;  %s167_s21 = sand.u32 (%p50_p3), 1, %s2426_s13  }
   0xd   : > { %s2054_s22 = sshll.u32 (%p50_p3), %s2434_s15, 6  ;;  %s1896_s23 = sshll.u32 (%p50_p3), %s167_s21, 7 }
   0xe   : > { %s2504_s26 = scalar_lea.vmem (%p50_p3), %s2703_s0, %s2054_s22  ;;  %s169_s27 = scalar_lea.vmem (%p50_p3), [#allocation3], %s1896_s23 }
   0xf   : > { %v188_v0 = vld [vmem:[%s2504_s26] sm:$0xff] (%p50_p3)  ;;  %v190_v1 = vld [vmem:[%s2504_s26 + $0x8] sm:$0xff] (%p50_p3)  ;;  %v192_v2 = vld [vmem:[%s2504_s26 + $0x10] sm:$0xff] (%p50_p3) }
  0x10   : > { %189 = vst [vmem:[%s169_s27] sm:$0xff] (%p50_p3), %v188_v0  ;;  %191 = vst [vmem:[%s169_s27 + $0x8] sm:$0xff] (%p50_p3), %v190_v1  ;;  %v194_v3 = vld [vmem:[%s2504_s26 + $0x18] sm:$0xff] (%p50_p3)  ;;  %v196_v4 = vld [vmem:[%s2504_s26 + $0x20] sm:$0xff] (%p50_p3) }
  0x11   : > { %193 = vst [vmem:[%s169_s27 + $0x10] sm:$0xff] %v192_v2  ;;  %v198_v5 = vld [vmem:[%s2504_s26 + $0x28] sm:$0xff]  ;;  %195 = vst [vmem:[%s169_s27 + $0x18] sm:$0xff] %v194_v3  ;;  %v200_v6 = vld [vmem:[%s2504_s26 + $0x30] sm:$0xff] }
  0x12   : > { %197 = vst [vmem:[%s169_s27 + $0x20] sm:$0xff] %v196_v4  ;;  %199 = vst [vmem:[%s169_s27 + $0x28] sm:$0xff] %v198_v5  ;;  %v202_v7 = vld [vmem:[%s2504_s26 + $0x38] sm:$0xff]  ;;  %v204_v8 = vld [vmem:[%s2504_s26 + $0x100] sm:$0xff] }
  0x13   : > { %201 = vst [vmem:[%s169_s27 + $0x30] sm:$0xff] %v200_v6  ;;  %203 = vst [vmem:[%s169_s27 + $0x38] sm:$0xff] %v202_v7  ;;  %v206_v9 = vld [vmem:[%s2504_s26 + $0x108] sm:$0xff]  ;;  %v208_v10 = vld [vmem:[%s2504_s26 + $0x110] sm:$0xff] }
  0x14   : > { %205 = vst [vmem:[%s169_s27 + $0x40] sm:$0xff] %v204_v8  ;;  %v210_v11 = vld [vmem:[%s2504_s26 + $0x118] sm:$0xff]  ;;  %207 = vst [vmem:[%s169_s27 + $0x48] sm:$0xff] %v206_v9  ;;  %v212_v12 = vld [vmem:[%s2504_s26 + $0x120] sm:$0xff] }
  0x15   : > { %209 = vst [vmem:[%s169_s27 + $0x50] sm:$0xff] %v208_v10  ;;  %211 = vst [vmem:[%s169_s27 + $0x58] sm:$0xff] %v210_v11  ;;  %v214_v13 = vld [vmem:[%s2504_s26 + $0x128] sm:$0xff]  ;;  %v216_v14 = vld [vmem:[%s2504_s26 + $0x130] sm:$0xff] }
  0x16   : > { %213 = vst [vmem:[%s169_s27 + $0x60] sm:$0xff] %v212_v12  ;;  %215 = vst [vmem:[%s169_s27 + $0x68] sm:$0xff] %v214_v13  ;;  %v218_v15 = vld [vmem:[%s2504_s26 + $0x138] sm:$0xff] }
  0x17   : > { %217 = vst [vmem:[%s169_s27 + $0x70] sm:$0xff] %v216_v14  ;;  %219 = vst [vmem:[%s169_s27 + $0x78] sm:$0xff] %v218_v15 }
  0x18 PF: > { %p1899_p6 = scmp.ge.s32.totalorder %s2438_s16, 1  ;;  %p236_p7 = scmp.lt.s32.totalorder %s2438_s16, 5 }
  0x1a   : > { %p237_p8 = pnand %p1899_p6, %p236_p7 }
  0x1b   : > { %s243_s28 = sand.u32 (!%p237_p8), 1, %s2422_s12   ;;  %s1901_s29 = sshll.u32 (!%p237_p8), %s2430_s14, 8 }
  0x1c   : > { %240 = sbr.rel (%p237_p8) target bundleno = 388 (0x184), region = 51  ;;  %s1900_s30 = sshll.u32 (!%p237_p8), %s243_s28, 7 }
  0x1d   : > { %p283_p9 = scmp.lt.s32.totalorder (!%p237_p8), %s1901_s29, 1023  ;;  %s2531_s8 = scalar_lea.vmem (!%p237_p8), [#allocation3], %s1900_s30 }
  0x1e   : > { %p1903_p10 = scmp.ne.s32.totalorder (!%p237_p8), %s2430_s14, 0 }
  0x21   : > { %s2714_s29 = smov (!%p283_p9, %s1901_s29), 1023  ;;  %307 = sbr.rel (%p1903_p10) target bundleno = 40 (0x28), region = 59 }
  0x22   : > { %s1902_s4 = sshll.u32 %s2714_s29, 2 }
  0x23   : > { %s2529_s7 = scalar_lea.vmem %s2704_s1, %s1902_s4 }
  0x26   : > { %v2440_v16 = vmov 0.0  }
  0x27   : > { %308 = vst [vmem:[#allocation2] sm:$0xff] %v2440_v16  ;;  %309 = vst [vmem:[#allocation2 + $0x8] sm:$0xff] %v2440_v16 }
  0x28 PF: > { %v2272_v17 = vld [vmem:[%s2529_s7 + $0x78] sm:$0xff]   ;;  %v2276_v21 = vld [vmem:[%s2529_s7 + $0x70] sm:$0xff]   ;;  %v2280_v25 = vld [vmem:[%s2529_s7 + $0x68] sm:$0xff]   ;;  %p2048_p11 = scmp.ne.s32.totalorder %s2430_s14, 3 }
  0x29   : > { %v2273_v18 = vld [vmem:[%s2529_s7 + $0xf8] sm:$0xff]   ;;  %2055 = vmatprep.subr.bf16.mxu0 %v2272_v17  ;;  %v2277_v22 = vld [vmem:[%s2529_s7 + $0xf0] sm:$0xff]   ;;  %v2281_v26 = vld [vmem:[%s2529_s7 + $0xe8] sm:$0xff]  }
  0x2a   : > { %v2274_v19 = vld [vmem:[%s2529_s7 + $0x38] sm:$0xff]   ;;  %2077 = vmatprep.subr.bf16.mxu1 %v2273_v18  ;;  %v2278_v23 = vld [vmem:[%s2529_s7 + $0x30] sm:$0xff]   ;;  %v2282_v27 = vld [vmem:[%s2529_s7 + $0x28] sm:$0xff]  }
  0x2b   : > { %v2275_v20 = vld [vmem:[%s2529_s7 + $0xb8] sm:$0xff]   ;;  %2056 = vmatpush3.bf16.msra.mxu0 %v2274_v19  ;;  %v2279_v24 = vld [vmem:[%s2529_s7 + $0xb0] sm:$0xff]   ;;  %v2283_v28 = vld [vmem:[%s2529_s7 + $0xa8] sm:$0xff]  }
  0x2c   : > { %2078 = vmatpush3.bf16.msra.mxu1 %v2275_v20  ;;  %2057 = vmatprep.subr.bf16.mxu0 %v2276_v21  ;;  %v2284_v29 = vld [vmem:[%s2529_s7 + $0x60] sm:$0xff]   ;;  %v2288_v33 = vld [vmem:[%s2529_s7 + $0x58] sm:$0xff]   ;;  %v2292_v37 = vld [vmem:[%s2529_s7 + $0x50] sm:$0xff]  }
  0x2d   : > { %2079 = vmatprep.subr.bf16.mxu1 %v2277_v22  ;;  %v2285_v30 = vld [vmem:[%s2529_s7 + $0xe0] sm:$0xff]   ;;  %v2289_v34 = vld [vmem:[%s2529_s7 + $0xd8] sm:$0xff]   ;;  %v2293_v38 = vld [vmem:[%s2529_s7 + $0xd0] sm:$0xff]  }
  0x2e   : > { %v2286_v31 = vld [vmem:[%s2529_s7 + $0x20] sm:$0xff]   ;;  %v2290_v35 = vld [vmem:[%s2529_s7 + $0x18] sm:$0xff]   ;;  %v2294_v39 = vld [vmem:[%s2529_s7 + $0x10] sm:$0xff]  }
  0x2f   : > { %2058 = vmatpush3.bf16.msra.mxu0 %v2278_v23  ;;  %v2287_v32 = vld [vmem:[%s2529_s7 + $0xa0] sm:$0xff]   ;;  %v2291_v36 = vld [vmem:[%s2529_s7 + $0x98] sm:$0xff]   ;;  %v2295_v40 = vld [vmem:[%s2529_s7 + $0x90] sm:$0xff]  }
  0x30   : > { %2080 = vmatpush3.bf16.msra.mxu1 %v2279_v24  ;;  %2059 = vmatprep.subr.bf16.mxu0 %v2280_v25  ;;  %v2296_v41 = vld [vmem:[%s2529_s7 + $0x48] sm:$0xff]   ;;  %v2300_v45 = vld [vmem:[%s2529_s7 + $0x40] sm:$0xff]   ;;  %v312_v49 = vld [vmem:[%s2531_s8] sm:$0xff] }
  0x31   : > { %2081 = vmatprep.subr.bf16.mxu1 %v2281_v26  ;;  %v2297_v42 = vld [vmem:[%s2529_s7 + $0xc8] sm:$0xff]   ;;  %v2301_v46 = vld [vmem:[%s2529_s7 + $0xc0] sm:$0xff]   ;;  %v320_v50 = vld [vmem:[%s2531_s8 + $0x40] sm:$0xff] }
  0x32   : > { %v2298_v43 = vld [vmem:[%s2529_s7 + $0x8] sm:$0xff]   ;;  %v2302_v47 = vld [vmem:[%s2529_s7] sm:$0xff]   ;;  %v313_v51 = vld [vmem:[%s2531_s8 + $0x8] sm:$0xff]  ;;  %v1904_v52 = vcombine.low %v312_v49, %v320_v50  ;;  %v1905_v53 = vcombine.high %v312_v49, %v320_v50 }
  0x33   : > { %2060 = vmatpush3.bf16.msra.mxu0 %v2282_v27  ;;  %v2299_v44 = vld [vmem:[%s2529_s7 + $0x88] sm:$0xff]   ;;  %v2303_v48 = vld [vmem:[%s2529_s7 + $0x80] sm:$0xff]   ;;  %v321_v54 = vld [vmem:[%s2531_s8 + $0x48] sm:$0xff] }
  0x34   : > { %2082 = vmatpush3.bf16.msra.mxu1 %v2283_v28  ;;  %2061 = vmatprep.subr.bf16.mxu0 %v2284_v29  ;;  %v1906_v55 = vcombine.low %v313_v51, %v321_v54  ;;  %v1907_v56 = vcombine.high %v313_v51, %v321_v54  ;;  %v2304_v57 = vld [vmem:[%s2529_s7 + $0x178] sm:$0xff]   ;;  %v2308_v61 = vld [vmem:[%s2529_s7 + $0x170] sm:$0xff]   ;;  %v2312_v1 = vld [vmem:[%s2529_s7 + $0x168] sm:$0xff]  }
  0x35   : > { %2083 = vmatprep.subr.bf16.mxu1 %v2285_v30  ;;  %1464 = vmatprep.mubr.bf16.mxu0 %v1905_v53  ;;  %v2305_v58 = vld [vmem:[%s2529_s7 + $0x1f8] sm:$0xff]   ;;  %v2309_v62 = vld [vmem:[%s2529_s7 + $0x1f0] sm:$0xff]   ;;  %v2313_v2 = vld [vmem:[%s2529_s7 + $0x1e8] sm:$0xff]  }
  0x36   : > { %1505 = vmatprep.mubr.bf16.mxu1 %v1907_v56  ;;  %v2306_v59 = vld [vmem:[%s2529_s7 + $0x138] sm:$0xff]   ;;  %v2310_v63 = vld [vmem:[%s2529_s7 + $0x130] sm:$0xff]   ;;  %v2314_v3 = vld [vmem:[%s2529_s7 + $0x128] sm:$0xff]  }
  0x37   : > { %2062 = vmatpush3.bf16.msra.mxu0 %v2286_v31  ;;  %v2307_v60 = vld [vmem:[%s2529_s7 + $0x1b8] sm:$0xff]   ;;  %v2311_v0 = vld [vmem:[%s2529_s7 + $0x1b0] sm:$0xff]   ;;  %v2315_v4 = vld [vmem:[%s2529_s7 + $0x1a8] sm:$0xff]  }
  0x38   : > { %2084 = vmatpush3.bf16.msra.mxu1 %v2287_v32  ;;  %2063 = vmatprep.subr.bf16.mxu0 %v2288_v33  ;;  %v2316_v5 = vld [vmem:[%s2529_s7 + $0x160] sm:$0xff]   ;;  %v2320_v9 = vld [vmem:[%s2529_s7 + $0x158] sm:$0xff]   ;;  %v2324_v13 = vld [vmem:[%s2529_s7 + $0x150] sm:$0xff]  }
  0x39   : > { %2085 = vmatprep.subr.bf16.mxu1 %v2289_v34  ;;  %v2317_v6 = vld [vmem:[%s2529_s7 + $0x1e0] sm:$0xff]   ;;  %v2321_v10 = vld [vmem:[%s2529_s7 + $0x1d8] sm:$0xff]   ;;  %v2325_v14 = vld [vmem:[%s2529_s7 + $0x1d0] sm:$0xff]  }
  0x3a   : > { %v2318_v7 = vld [vmem:[%s2529_s7 + $0x120] sm:$0xff]   ;;  %v2322_v11 = vld [vmem:[%s2529_s7 + $0x118] sm:$0xff]   ;;  %v2326_v15 = vld [vmem:[%s2529_s7 + $0x110] sm:$0xff]  }
  0x3b   : > { %2064 = vmatpush3.bf16.msra.mxu0 %v2290_v35  ;;  %v2319_v8 = vld [vmem:[%s2529_s7 + $0x1a0] sm:$0xff]   ;;  %v2323_v12 = vld [vmem:[%s2529_s7 + $0x198] sm:$0xff]   ;;  %v2327_v16 = vld [vmem:[%s2529_s7 + $0x190] sm:$0xff]  }
  0x3c   : > { %2086 = vmatpush3.bf16.msra.mxu1 %v2291_v36  ;;  %2065 = vmatprep.subr.bf16.mxu0 %v2292_v37  ;;  %v2328_v17 = vld [vmem:[%s2529_s7 + $0x148] sm:$0xff]   ;;  %v2332_v21 = vld [vmem:[%s2529_s7 + $0x140] sm:$0xff]   ;;  %v2336_v33 = vld [vmem:[%s2529_s7 + $0x278] sm:$0xff]  }
  0x3d   : > { %2087 = vmatprep.subr.bf16.mxu1 %v2293_v38  ;;  %v2329_v18 = vld [vmem:[%s2529_s7 + $0x1c8] sm:$0xff]   ;;  %v2333_v22 = vld [vmem:[%s2529_s7 + $0x1c0] sm:$0xff]   ;;  %v2337_v34 = vld [vmem:[%s2529_s7 + $0x2f8] sm:$0xff]  }
  0x3e   : > { %v2330_v19 = vld [vmem:[%s2529_s7 + $0x108] sm:$0xff]   ;;  %v2334_v23 = vld [vmem:[%s2529_s7 + $0x100] sm:$0xff]   ;;  %v2338_v35 = vld [vmem:[%s2529_s7 + $0x238] sm:$0xff]  }
  0x3f   : > { %2066 = vmatpush3.bf16.msra.mxu0 %v2294_v39  ;;  %v2331_v20 = vld [vmem:[%s2529_s7 + $0x188] sm:$0xff]   ;;  %v2335_v24 = vld [vmem:[%s2529_s7 + $0x180] sm:$0xff]   ;;  %v2339_v36 = vld [vmem:[%s2529_s7 + $0x2b8] sm:$0xff]  }
  0x40   : > { %2088 = vmatpush3.bf16.msra.mxu1 %v2295_v40  ;;  %2067 = vmatprep.subr.bf16.mxu0 %v2296_v41  ;;  %v314_v25 = vld [vmem:[%s2531_s8 + $0x10] sm:$0xff]  ;;  %v315_v29 = vld [vmem:[%s2531_s8 + $0x18] sm:$0xff]  ;;  %v2340_v37 = vld [vmem:[%s2529_s7 + $0x270] sm:$0xff]  }
  0x41   : > { %2089 = vmatprep.subr.bf16.mxu1 %v2297_v42  ;;  %v322_v26 = vld [vmem:[%s2531_s8 + $0x50] sm:$0xff]  ;;  %v323_v30 = vld [vmem:[%s2531_s8 + $0x58] sm:$0xff]  ;;  %v2341_v38 = vld [vmem:[%s2529_s7 + $0x2f0] sm:$0xff]  }
  0x42   : > { %v1908_v27 = vcombine.low %v314_v25, %v322_v26  ;;  %v1909_v28 = vcombine.high %v314_v25, %v322_v26  ;;  %v1910_v31 = vcombine.low %v315_v29, %v323_v30  ;;  %v1911_v32 = vcombine.high %v315_v29, %v323_v30  ;;  %v2342_v39 = vld [vmem:[%s2529_s7 + $0x230] sm:$0xff]   ;;  %v2344_v41 = vld [vmem:[%s2529_s7 + $0x268] sm:$0xff]   ;;  %v2352_v49 = vld [vmem:[%s2529_s7 + $0x258] sm:$0xff]  }
  0x43   : > { %2068 = vmatpush3.bf16.msra.mxu0 %v2298_v43  ;;  %v2343_v40 = vld [vmem:[%s2529_s7 + $0x2b0] sm:$0xff]   ;;  %v2345_v42 = vld [vmem:[%s2529_s7 + $0x2e8] sm:$0xff]   ;;  %v2353_v50 = vld [vmem:[%s2529_s7 + $0x2d8] sm:$0xff]  }
  0x44   : > { %2090 = vmatpush3.bf16.msra.mxu1 %v2299_v44  ;;  %2069 = vmatprep.subr.bf16.mxu0 %v2300_v45  ;;  %v2346_v43 = vld [vmem:[%s2529_s7 + $0x228] sm:$0xff]   ;;  %v2348_v45 = vld [vmem:[%s2529_s7 + $0x260] sm:$0xff]   ;;  %v2354_v51 = vld [vmem:[%s2529_s7 + $0x218] sm:$0xff]  }
  0x45   : > { %2091 = vmatprep.subr.bf16.mxu1 %v2301_v46  ;;  %v2347_v44 = vld [vmem:[%s2529_s7 + $0x2a8] sm:$0xff]   ;;  %v2349_v46 = vld [vmem:[%s2529_s7 + $0x2e0] sm:$0xff]   ;;  %v2356_v53 = vld [vmem:[%s2529_s7 + $0x250] sm:$0xff]  }
  0x46   : > { %v2357_v54 = vld [vmem:[%s2529_s7 + $0x2d0] sm:$0xff]   ;;  %v2384_v25 = vld [vmem:[%s2529_s7 + $0x358] sm:$0xff]  }
  0x47   : > { %2070 = vmatpush3.bf16.msra.mxu0 %v2302_v47  ;;  %v2350_v47 = vld [vmem:[%s2529_s7 + $0x220] sm:$0xff]   ;;  %v2359_v56 = vld [vmem:[%s2529_s7 + $0x290] sm:$0xff]   ;;  %v2385_v26 = vld [vmem:[%s2529_s7 + $0x3d8] sm:$0xff]  }
  0x48   : > { %2092 = vmatpush3.bf16.msra.mxu1 %v2303_v48  ;;  %2099 = vmatprep.subr.bf16.mxu0 %v2304_v57  ;;  %v2351_v48 = vld [vmem:[%s2529_s7 + $0x2a0] sm:$0xff]   ;;  %v2360_v57 = vld [vmem:[%s2529_s7 + $0x248] sm:$0xff]   ;;  %v2388_v29 = vld [vmem:[%s2529_s7 + $0x350] sm:$0xff]  }
  0x49   : > { %2121 = vmatprep.subr.bf16.mxu1 %v2305_v58  ;;  %v2361_v58 = vld [vmem:[%s2529_s7 + $0x2c8] sm:$0xff]   ;;  %v2389_v30 = vld [vmem:[%s2529_s7 + $0x3d0] sm:$0xff]  }
  0x4a   : > { %1465 = vmatmul.mubr.bf16.vlgmr.msra.gmra.mxu0 %v1904_v52  ;;  %v2355_v52 = vld [vmem:[%s2529_s7 + $0x298] sm:$0xff]  }
  0x4b   : > { %1506 = vmatmul.mubr.bf16.vlgmr.msra.gmra.mxu1 %v1906_v55  ;;  %2100 = vmatpush3.bf16.msra.mxu0 %v2306_v59  ;;  %v2358_v55 = vld [vmem:[%s2529_s7 + $0x210] sm:$0xff]   ;;  %v2362_v59 = vld [vmem:[%s2529_s7 + $0x208] sm:$0xff]  }
  0x4c   : > { %2122 = vmatpush3.bf16.msra.mxu1 %v2307_v60  ;;  %2101 = vmatprep.subr.bf16.mxu0 %v2308_v61  ;;  %v2363_v60 = vld [vmem:[%s2529_s7 + $0x288] sm:$0xff]   ;;  %v2364_v61 = vld [vmem:[%s2529_s7 + $0x240] sm:$0xff]  }
  0x4d   : > { %2123 = vmatprep.subr.bf16.mxu1 %v2309_v62  ;;  %1546 = vmatprep.mubr.bf16.mxu0 %v1909_v28  ;;  %v2365_v62 = vld [vmem:[%s2529_s7 + $0x2c0] sm:$0xff]   ;;  %v2387_v28 = vld [vmem:[%s2529_s7 + $0x398] sm:$0xff]  }
  0x4e   : > { %1587 = vmatprep.mubr.bf16.mxu1 %v1911_v32  ;;  %v2391_v32 = vld [vmem:[%s2529_s7 + $0x390] sm:$0xff]  }
  0x4f   : > { %2102 = vmatpush3.bf16.msra.mxu0 %v2310_v63  ;;  %v2366_v63 = vld [vmem:[%s2529_s7 + $0x200] sm:$0xff]  }
  0x50   : > { %2124 = vmatpush3.bf16.msra.mxu1 %v2311_v0  ;;  %2103 = vmatprep.subr.bf16.mxu0 %v2312_v1  ;;  %v2367_v0 = vld [vmem:[%s2529_s7 + $0x280] sm:$0xff]   ;;  %v316_v1 = vld [vmem:[%s2531_s8 + $0x20] sm:$0xff] }
  0x51   : > { %2125 = vmatprep.subr.bf16.mxu1 %v2313_v2  ;;  %v324_v2 = vld [vmem:[%s2531_s8 + $0x60] sm:$0xff] }
  0x53   : > { %2104 = vmatpush3.bf16.msra.mxu0 %v2314_v3  ;;  %v317_v3 = vld [vmem:[%s2531_s8 + $0x28] sm:$0xff] }
  0x54   : > { %2126 = vmatpush3.bf16.msra.mxu1 %v2315_v4  ;;  %2105 = vmatprep.subr.bf16.mxu0 %v2316_v5  ;;  %v325_v4 = vld [vmem:[%s2531_s8 + $0x68] sm:$0xff]  ;;  %v1912_v5 = vcombine.low %v316_v1, %v324_v2 }
  0x55   : > { %2127 = vmatprep.subr.bf16.mxu1 %v2317_v6  ;;  %v1913_v6 = vcombine.high %v316_v1, %v324_v2 }
  0x57   : > { %2106 = vmatpush3.bf16.msra.mxu0 %v2318_v7  ;;  %v1914_v7 = vcombine.low %v317_v3, %v325_v4 }
  0x58   : > { %2128 = vmatpush3.bf16.msra.mxu1 %v2319_v8  ;;  %2107 = vmatprep.subr.bf16.mxu0 %v2320_v9  ;;  %v1915_v8 = vcombine.high %v317_v3, %v325_v4  ;;  %v2368_v9 = vld [vmem:[%s2529_s7 + $0x378] sm:$0xff]  }
  0x59   : > { %2129 = vmatprep.subr.bf16.mxu1 %v2321_v10  ;;  %v2369_v10 = vld [vmem:[%s2529_s7 + $0x3f8] sm:$0xff]  }
  0x5b   : > { %2108 = vmatpush3.bf16.msra.mxu0 %v2322_v11  ;;  %v2370_v11 = vld [vmem:[%s2529_s7 + $0x338] sm:$0xff]  }
  0x5c   : > { %2130 = vmatpush3.bf16.msra.mxu1 %v2323_v12  ;;  %2109 = vmatprep.subr.bf16.mxu0 %v2324_v13  ;;  %v2371_v12 = vld [vmem:[%s2529_s7 + $0x3b8] sm:$0xff]   ;;  %v2372_v13 = vld [vmem:[%s2529_s7 + $0x370] sm:$0xff]  }
  0x5d   : > { %2131 = vmatprep.subr.bf16.mxu1 %v2325_v14  ;;  %v2373_v14 = vld [vmem:[%s2529_s7 + $0x3f0] sm:$0xff]  }
  0x5f   : > { %2110 = vmatpush3.bf16.msra.mxu0 %v2326_v15  ;;  %v2374_v15 = vld [vmem:[%s2529_s7 + $0x330] sm:$0xff]  }
  0x60   : > { %2132 = vmatpush3.bf16.msra.mxu1 %v2327_v16  ;;  %2111 = vmatprep.subr.bf16.mxu0 %v2328_v17  ;;  %v2375_v16 = vld [vmem:[%s2529_s7 + $0x3b0] sm:$0xff]   ;;  %v2376_v17 = vld [vmem:[%s2529_s7 + $0x368] sm:$0xff]  }
  0x61   : > { %2133 = vmatprep.subr.bf16.mxu1 %v2329_v18  ;;  %v2377_v18 = vld [vmem:[%s2529_s7 + $0x3e8] sm:$0xff]  }
  0x63   : > { %2112 = vmatpush3.bf16.msra.mxu0 %v2330_v19  ;;  %v2378_v19 = vld [vmem:[%s2529_s7 + $0x328] sm:$0xff]  }
  0x64   : > { %2134 = vmatpush3.bf16.msra.mxu1 %v2331_v20  ;;  %2113 = vmatprep.subr.bf16.mxu0 %v2332_v21  ;;  %v2379_v20 = vld [vmem:[%s2529_s7 + $0x3a8] sm:$0xff]   ;;  %v2380_v21 = vld [vmem:[%s2529_s7 + $0x360] sm:$0xff]  }
  0x65   : > { %2135 = vmatprep.subr.bf16.mxu1 %v2333_v22  ;;  %v2381_v22 = vld [vmem:[%s2529_s7 + $0x3e0] sm:$0xff]  }
  0x67   : > { %2114 = vmatpush3.bf16.msra.mxu0 %v2334_v23  ;;  %v2382_v23 = vld [vmem:[%s2529_s7 + $0x320] sm:$0xff]  }
  0x68   : > { %2136 = vmatpush3.bf16.msra.mxu1 %v2335_v24  ;;  %2143 = vmatprep.subr.bf16.mxu0 %v2336_v33  ;;  %v2383_v24 = vld [vmem:[%s2529_s7 + $0x3a0] sm:$0xff]   ;;  %v2392_v33 = vld [vmem:[%s2529_s7 + $0x348] sm:$0xff]  }
  0x69   : > { %2165 = vmatprep.subr.bf16.mxu1 %v2337_v34  ;;  %v2393_v34 = vld [vmem:[%s2529_s7 + $0x3c8] sm:$0xff]  }
  0x6a   : > { %1547 = vmatmul.mubr.bf16.vlgmr.msra.gmra.mxu0 %v1908_v27  ;;  %v2386_v27 = vld [vmem:[%s2529_s7 + $0x318] sm:$0xff]  }
  0x6b   : > { %1588 = vmatmul.mubr.bf16.vlgmr.msra.gmra.mxu1 %v1910_v31  ;;  %2144 = vmatpush3.bf16.msra.mxu0 %v2338_v35  ;;  %v2390_v31 = vld [vmem:[%s2529_s7 + $0x310] sm:$0xff]   ;;  %v2394_v35 = vld [vmem:[%s2529_s7 + $0x308] sm:$0xff]  }
  0x6c   : > { %2166 = vmatpush3.bf16.msra.mxu1 %v2339_v36  ;;  %2145 = vmatprep.subr.bf16.mxu0 %v2340_v37  ;;  %v2395_v36 = vld [vmem:[%s2529_s7 + $0x388] sm:$0xff]   ;;  %v2396_v37 = vld [vmem:[%s2529_s7 + $0x340] sm:$0xff]  }
  0x6d   : > { %2167 = vmatprep.subr.bf16.mxu1 %v2341_v38  ;;  %1628 = vmatprep.mubr.bf16.mxu0 %v1913_v6  ;;  %v2397_v38 = vld [vmem:[%s2529_s7 + $0x3c0] sm:$0xff]  }
  0x6e   : > { %1669 = vmatprep.mubr.bf16.mxu1 %v1915_v8 }
  0x6f   : > { %2146 = vmatpush3.bf16.msra.mxu0 %v2342_v39  ;;  %v2398_v39 = vld [vmem:[%s2529_s7 + $0x300] sm:$0xff]  }
  0x70   : > { %2168 = vmatpush3.bf16.msra.mxu1 %v2343_v40  ;;  %2147 = vmatprep.subr.bf16.mxu0 %v2344_v41  ;;  %v2399_v40 = vld [vmem:[%s2529_s7 + $0x380] sm:$0xff]  }
  0x71   : > { %2169 = vmatprep.subr.bf16.mxu1 %v2345_v42  ;;  %v318_v41 = vld [vmem:[%s2531_s8 + $0x30] sm:$0xff] }
  0x72   : > { %v326_v42 = vld [vmem:[%s2531_s8 + $0x70] sm:$0xff] }
  0x73   : > { %2148 = vmatpush3.bf16.msra.mxu0 %v2346_v43  ;;  %v319_v43 = vld [vmem:[%s2531_s8 + $0x38] sm:$0xff] }
  0x74   : > { %2170 = vmatpush3.bf16.msra.mxu1 %v2347_v44  ;;  %2149 = vmatprep.subr.bf16.mxu0 %v2348_v45  ;;  %v1916_v44 = vcombine.low %v318_v41, %v326_v42  ;;  %v1917_v45 = vcombine.high %v318_v41, %v326_v42 }
  0x75   : > { %2171 = vmatprep.subr.bf16.mxu1 %v2349_v46  ;;  %v327_v46 = vld [vmem:[%s2531_s8 + $0x78] sm:$0xff] }
  0x77   : > { %2150 = vmatpush3.bf16.msra.mxu0 %v2350_v47  ;;  %v1918_v47 = vcombine.low %v319_v43, %v327_v46 }
  0x78   : > { %2172 = vmatpush3.bf16.msra.mxu1 %v2351_v48  ;;  %2151 = vmatprep.subr.bf16.mxu0 %v2352_v49  ;;  %v1919_v48 = vcombine.high %v319_v43, %v327_v46 }
  0x79   : > { %2173 = vmatprep.subr.bf16.mxu1 %v2353_v50 }
  0x7b   : > { %2152 = vmatpush3.bf16.msra.mxu0 %v2354_v51 }
  0x7c   : > { %2174 = vmatpush3.bf16.msra.mxu1 %v2355_v52  ;;  %2153 = vmatprep.subr.bf16.mxu0 %v2356_v53 }
  0x7d   : > { %2175 = vmatprep.subr.bf16.mxu1 %v2357_v54 }
  0x7f   : > { %2154 = vmatpush3.bf16.msra.mxu0 %v2358_v55 }
  0x80   : > { %2176 = vmatpush3.bf16.msra.mxu1 %v2359_v56  ;;  %2155 = vmatprep.subr.bf16.mxu0 %v2360_v57 }
  0x81   : > { %2177 = vmatprep.subr.bf16.mxu1 %v2361_v58 }
  0x83   : > { %2156 = vmatpush3.bf16.msra.mxu0 %v2362_v59 }
  0x84   : > { %2178 = vmatpush3.bf16.msra.mxu1 %v2363_v60  ;;  %2157 = vmatprep.subr.bf16.mxu0 %v2364_v61 }
  0x85   : > { %2179 = vmatprep.subr.bf16.mxu1 %v2365_v62 }
  0x87   : > { %2158 = vmatpush3.bf16.msra.mxu0 %v2366_v63 }
  0x88   : > { %2180 = vmatpush3.bf16.msra.mxu1 %v2367_v0  ;;  %2187 = vmatprep.subr.bf16.mxu0 %v2368_v9 }
  0x89   : > { %2209 = vmatprep.subr.bf16.mxu1 %v2369_v10 }
  0x8a   : > { %1629 = vmatmul.mubr.bf16.vlgmr.msra.gmra.mxu0 %v1912_v5 }
  0x8b   : > { %1670 = vmatmul.mubr.bf16.vlgmr.msra.gmra.mxu1 %v1914_v7  ;;  %2188 = vmatpush3.bf16.msra.mxu0 %v2370_v11 }
  0x8c   : > { %2210 = vmatpush3.bf16.msra.mxu1 %v2371_v12  ;;  %2189 = vmatprep.subr.bf16.mxu0 %v2372_v13 }
  0x8d   : > { %2211 = vmatprep.subr.bf16.mxu1 %v2373_v14  ;;  %1710 = vmatprep.mubr.bf16.mxu0 %v1917_v45 }
  0x8e   : > { %1751 = vmatprep.mubr.bf16.mxu1 %v1919_v48  ;;  %v311_v48 = vld [vmem:[#allocation2 + $0x8] sm:$0xff] }
  0x8f   : > { %2190 = vmatpush3.bf16.msra.mxu0 %v2374_v15 }
  0x90   : > { %2212 = vmatpush3.bf16.msra.mxu1 %v2375_v16  ;;  %2191 = vmatprep.subr.bf16.mxu0 %v2376_v17 }
  0x91   : > { %2213 = vmatprep.subr.bf16.mxu1 %v2377_v18 }
  0x93   : > { %2192 = vmatpush3.bf16.msra.mxu0 %v2378_v19 }
  0x94   : > { %2214 = vmatpush3.bf16.msra.mxu1 %v2379_v20  ;;  %2193 = vmatprep.subr.bf16.mxu0 %v2380_v21 }
  0x95   : > { %2215 = vmatprep.subr.bf16.mxu1 %v2381_v22 }
  0x97   : > { %2194 = vmatpush3.bf16.msra.mxu0 %v2382_v23 }
  0x98   : > { %2216 = vmatpush3.bf16.msra.mxu1 %v2383_v24  ;;  %2195 = vmatprep.subr.bf16.mxu0 %v2384_v25 }
  0x99   : > { %2217 = vmatprep.subr.bf16.mxu1 %v2385_v26 }
  0x9b   : > { %2196 = vmatpush3.bf16.msra.mxu0 %v2386_v27 }
  0x9c   : > { %2218 = vmatpush3.bf16.msra.mxu1 %v2387_v28  ;;  %2197 = vmatprep.subr.bf16.mxu0 %v2388_v29 }
  0x9d   : > { %2219 = vmatprep.subr.bf16.mxu1 %v2389_v30 }
  0x9f   : > { %2198 = vmatpush3.bf16.msra.mxu0 %v2390_v31 }
  0xa0   : > { %2220 = vmatpush3.bf16.msra.mxu1 %v2391_v32  ;;  %2199 = vmatprep.subr.bf16.mxu0 %v2392_v33 }
  0xa1   : > { %2221 = vmatprep.subr.bf16.mxu1 %v2393_v34 }
  0xa3   : > { %2200 = vmatpush3.bf16.msra.mxu0 %v2394_v35 }
  0xa4   : > { %2222 = vmatpush3.bf16.msra.mxu1 %v2395_v36  ;;  %2201 = vmatprep.subr.bf16.mxu0 %v2396_v37 }
  0xa5   : > { %2223 = vmatprep.subr.bf16.mxu1 %v2397_v38 }
  0xa7   : > { %2202 = vmatpush3.bf16.msra.mxu0 %v2398_v39  ;;  %v310_v39 = vld [vmem:[#allocation2] sm:$0xff] }
  0xa8   : > { %2224 = vmatpush3.bf16.msra.mxu1 %v2399_v40 }
  0xaa   : > { %1711 = vmatmul.mubr.bf16.vlgmr.msra.gmra.mxu0 %v1916_v44 }
  0xab   : > { %1752 = vmatmul.mubr.bf16.vlgmr.msra.gmra.mxu1 %v1918_v47 }
 0x10a   : > { %v2071_v49 = vpop.f32.mrf.mxu0 }
 0x10b   : > { %v2093_v50 = vpop.f32.mrf.mxu1 }
 0x10c   : > { %v2072_v51 = vpop.f32.mrf.mxu0 }
 0x10d   : > { %v2094_v52 = vpop.f32.mrf.mxu1  ;;  %v2073_v2 = vadd.f32 %v2072_v51, %v2071_v49 }
 0x10e   : > { %v2074_v53 = vpop.f32.mrf.mxu0  ;;  %v2095_v3 = vadd.f32 %v2094_v52, %v2093_v50 }
 0x10f   : > { %v2096_v54 = vpop.f32.mrf.mxu1 }
 0x110   : > { %v2075_v55 = vpop.f32.mrf.mxu0  ;;  %v1508_v7 = vadd.f32 %v2095_v3, %v2073_v2 }
 0x111   : > { %v2097_v57 = vpop.f32.mrf.mxu1  ;;  %v2076_v8 = vadd.f32 %v2075_v55, %v2074_v53 }
 0x112   : > { %v2098_v9 = vadd.f32 %v2097_v57, %v2096_v54 }
 0x114   : > { %v1511_v15 = vadd.f32 %v2098_v9, %v2076_v8 }
 0x12a   : > { %v2115_v56 = vpop.f32.mrf.mxu0 }
 0x12b   : > { %v2137_v58 = vpop.f32.mrf.mxu1 }
 0x12c   : > { %v2116_v59 = vpop.f32.mrf.mxu0 }
 0x12d   : > { %v2138_v60 = vpop.f32.mrf.mxu1  ;;  %v2117_v6 = vadd.f32 %v2116_v59, %v2115_v56 }
 0x12e   : > { %v2118_v61 = vpop.f32.mrf.mxu0  ;;  %v2139_v13 = vadd.f32 %v2138_v60, %v2137_v58 }
 0x12f   : > { %v2140_v62 = vpop.f32.mrf.mxu1  ;;  %v1549_v12 = vadd.f32 %v2117_v6, %v1508_v7 }
 0x130   : > { %v2119_v63 = vpop.f32.mrf.mxu0 }
 0x131   : > { %v2141_v1 = vpop.f32.mrf.mxu1  ;;  %v2120_v14 = vadd.f32 %v2119_v63, %v2118_v61  ;;  %v1590_v19 = vadd.f32 %v2139_v13, %v1549_v12 }
 0x132   : > { %v2142_v21 = vadd.f32 %v2141_v1, %v2140_v62 }
 0x133   : > { %v1552_v20 = vadd.f32 %v2120_v14, %v1511_v15 }
 0x135   : > { %v1593_v27 = vadd.f32 %v2142_v21, %v1552_v20 }
 0x14a   : > { %v2159_v0 = vpop.f32.mrf.mxu0 }
 0x14b   : > { %v2181_v4 = vpop.f32.mrf.mxu1 }
 0x14c   : > { %v2160_v5 = vpop.f32.mrf.mxu0 }
 0x14d   : > { %v2182_v10 = vpop.f32.mrf.mxu1  ;;  %v2161_v16 = vadd.f32 %v2160_v5, %v2159_v0 }
 0x14e   : > { %v2162_v11 = vpop.f32.mrf.mxu0  ;;  %v2183_v23 = vadd.f32 %v2182_v10, %v2181_v4 }
 0x14f   : > { %v2184_v17 = vpop.f32.mrf.mxu1  ;;  %v1631_v22 = vadd.f32 %v2161_v16, %v1590_v19 }
 0x150   : > { %v2163_v18 = vpop.f32.mrf.mxu0 }
 0x151   : > { %v2164_v24 = vadd.f32 %v2163_v18, %v2162_v11  ;;  %v2185_v25 = vpop.f32.mrf.mxu1  ;;  %v1672_v30 = vadd.f32 %v2183_v23, %v1631_v22 }
 0x152   : > { %v2186_v35 = vadd.f32 %v2185_v25, %v2184_v17 }
 0x153   : > { %v1634_v31 = vadd.f32 %v2164_v24, %v1593_v27 }
 0x155   : > { %v1675_v41 = vadd.f32 %v2186_v35, %v1634_v31 }
 0x16a   : > { %v2203_v26 = vpop.f32.mrf.mxu0 }
 0x16b   : > { %v2225_v28 = vpop.f32.mrf.mxu1 }
 0x16c   : > { %v2204_v29 = vpop.f32.mrf.mxu0 }
 0x16d   : > { %v2205_v32 = vadd.f32 %v2204_v29, %v2203_v26  ;;  %v2226_v33 = vpop.f32.mrf.mxu1 }
 0x16e   : > { %v2206_v34 = vpop.f32.mrf.mxu0  ;;  %v2227_v37 = vadd.f32 %v2226_v33, %v2225_v28 }
 0x16f   : > { %v1713_v36 = vadd.f32 %v2205_v32, %v1672_v30  ;;  %v2228_v38 = vpop.f32.mrf.mxu1 }
 0x170   : > { %v2207_v40 = vpop.f32.mrf.mxu0 }
 0x171   : > { %v1754_v42 = vadd.f32 %v2227_v37, %v1713_v36  ;;  %v2208_v43 = vadd.f32 %v2207_v40, %v2206_v34  ;;  %v2229_v44 = vpop.f32.mrf.mxu1 }
 0x172   : > { %v2230_v47 = vadd.f32 %v2229_v44, %v2228_v38 }
 0x173   : > { %v1760_v45 = vadd.f32 %v1754_v42, %v310_v39  ;;  %v1716_v46 = vadd.f32 %v2208_v43, %v1675_v41 }
 0x175   : > { %1762 = vst [vmem:[#allocation2] sm:$0xff] %v1760_v45  ;;  %v1757_v49 = vadd.f32 %v2230_v47, %v1716_v46  ;;  %1767 = sbr.rel (%p2048_p11) target bundleno = 388 (0x184), region = 63 }
 0x177   : > { %v1761_v50 = vadd.f32 %v1757_v49, %v311_v48 }
 0x179   : > { %1763 = vst [vmem:[#allocation2 + $0x8] sm:$0xff] %v1761_v50 }
 0x17a   : > { %v2049_v52 = vld [vmem:[%s2705_s2] ss:$0 sm:$0xff] }
 0x17c   : > { %v1768_v51 = vld [vmem:[#allocation2] sm:$0xff] }
 0x17d   : > { %v1777_v54 = vadd.f32 %v2049_v52, %v1768_v51 }
 0x17f   : > { %1779 = vst [vmem:[%s2706_s3] sm:$0xff] %v1777_v54 }
 0x180   : > { %v1769_v53 = vld [vmem:[#allocation2 + $0x8] sm:$0xff] }
 0x181   : > { %v1778_v55 = vadd.f32 %v2049_v52, %v1769_v53 }
 0x183   : > { %1780 = vst [vmem:[%s2706_s3 + $0x8] sm:$0xff] %v1778_v55 }
 0x184 PF: > { %s13_s16 = sadd.s32 1, %s2438_s16   ;;  %s2707_s12 = smov %s2426_s13 }
 0x185   : > { %p10_p12 = scmp.ge.s32.totalorder %s13_s16, 6   ;;  %s2708_s13 = smov %s2496_s20 }
 0x186   : > { %s2709_s14 = smov %s2434_s15  ;;  %s2710_s15 = smov %s2712_s17 }
 0x187   :  { %12 = sbr.rel (!%p10_p12) target bundleno = 3 (0x3), region = 104 }

</bundles_post_ra>
